<compile_context>
chip_gen: v5e
topology: v5e:2x2
jax: 0.10.0
libtpu: 0.0.40
codegen_flags: <defaults>
</compile_context>

<pallas_src>
import math

import jax
import jax.numpy as jnp
from jax.experimental import pallas as pl
from jax.experimental.pallas import tpu as pltpu


def _round_up(x, m):
    return ((x + m - 1) // m) * m


def _posenc_kernel(nl_ref, tbl_ref, out_ref):
    # nl_ref:  (TB, 1)   per-batch noise level column (broadcasts over lanes)
    # tbl_ref: (2, dim)  row 0 = [f_0..f_{h-1}, f_0..f_{h-1}], row 1 = [0...0, pi/2...pi/2]
    # out_ref: (TB, dim)
    nl = nl_ref[...]                                  # (TB, 1) f32
    freq = tbl_ref[0:1, :]                            # (1, dim)
    phase = tbl_ref[1:2, :]                           # (1, dim)
    arg = nl * freq + phase                           # (TB, dim), lane-dense
    out_ref[...] = jnp.sin(arg).astype(out_ref.dtype)


def _posenc_jnp(noise_level, dim, out_dtype):
    """Plain-JAX path (fused by XLA into the consumer) — exact PyTorch math."""
    half = dim // 2
    step = jnp.arange(half, dtype=jnp.float32) / half
    enc = noise_level[:, None].astype(jnp.float32) * jnp.exp(
        -math.log(10000.0) * step[None, :])
    return jnp.concatenate([jnp.sin(enc), jnp.cos(enc)], axis=-1).astype(out_dtype)


def positional_encoding(noise_level, dim, out_dtype=None, force_pallas=False):
    """noise_level: (B,) array; returns (B, dim) sinusoidal encoding."""
    assert dim % 2 == 0, "dim must be even (matches PyTorch concat of sin/cos halves)"
    B = noise_level.shape[0]
    half = dim // 2
    if out_dtype is None:
        out_dtype = noise_level.dtype

    # ---- Small-size / lane-sparse gate: let XLA fuse the tiny elementwise op. ----
    small = (B * dim * 4) < (256 * 1024)
    if not force_pallas and (small or dim < 128):
        return _posenc_jnp(noise_level, dim, out_dtype)

    # ---- Hoisted constant table: (2, dim), built once, batch-independent. ----
    step = jnp.arange(half, dtype=jnp.float32) / half
    freqs = jnp.exp(-math.log(10000.0) * step)                          # (half,)
    freq_full = jnp.concatenate([freqs, freqs])                         # (dim,)
    phase = jnp.concatenate(
        [jnp.zeros((half,), jnp.float32),
         jnp.full((half,), jnp.pi / 2, jnp.float32)])                   # (dim,)
    tbl = jnp.stack([freq_full, phase], axis=0)                         # (2, dim)

    nl_col = noise_level.reshape(B, 1).astype(jnp.float32)              # (B, 1)

    # ---- Batch tile selection. ----
    # VMEM guard: keep the double-buffered output block (2 * TB * dim * 4 B) ~<= 16 MiB.
    vmem_budget = 16 * 1024 * 1024
    tb_cap = max(8, ((vmem_budget // (2 * dim * 4)) // 8) * 8)
    tb_target = min(512, tb_cap)
    # v7x: give the "parallel" batch axis >= 2 grid steps once per-step work is
    # comfortably above the ~0.35us step overhead, so both TensorCores get work.
    if B * dim >= 65536 and B >= 16:
        tb_target = min(tb_target, _round_up(pl.cdiv(B, 2), 8))

    if B <= tb_target:
        TB = B                       # full batch block; (8,128) rule trivially satisfied
    else:
        n_tiles = pl.cdiv(B, tb_target)
        TB = _round_up(pl.cdiv(B, n_tiles), 8)   # even split -> last tile barely ragged
    grid = (pl.cdiv(B, TB),)

    out = pl.pallas_call(
        _posenc_kernel,
        out_shape=jax.ShapeDtypeStruct((B, dim), out_dtype),
        grid_spec=pltpu.PrefetchScalarGridSpec(
            num_scalar_prefetch=0,
            grid=grid,
            in_specs=[
                pl.BlockSpec((TB, 1), lambda i: (i, 0)),    # noise-level column
                pl.BlockSpec((2, dim), lambda i: (0, 0)),   # merged freq/phase table
            ],
            out_specs=pl.BlockSpec((TB, dim), lambda i: (i, 0)),  # lane-dense output
        ),
        compiler_params=pltpu.CompilerParams(
            dimension_semantics=("parallel",)),
    )(nl_col, tbl)

    return out


def _reference(noise_level, dim):
    return _posenc_jnp(noise_level, dim, noise_level.dtype)


if __name__ == "__main__":
    key = jax.random.PRNGKey(0)
    keys = jax.random.split(key, 4)

    ok = True

    # Small shapes consistent with the module's usage -> jnp fallback path.
    for kk, (B, dim) in [(keys[0], (2, 32)), (keys[1], (8, 64))]:
        noise_level = jax.random.uniform(kk, (B,), jnp.float32, 0.0, 1.0)
        out = jax.block_until_ready(positional_encoding(noise_level, dim))
        ref = _reference(noise_level, dim)
        ok &= bool(jnp.allclose(out, ref, atol=1e-5, rtol=1e-5))

    # Large-enough shape -> Pallas path, 2-step parallel batch grid (TB = 256).
    B, dim = 512, 128
    noise_level = jax.random.uniform(keys[2], (B,), jnp.float32, 0.0, 1.0)
    out = jax.block_until_ready(positional_encoding(noise_level, dim))
    ref = _reference(noise_level, dim)
    ok &= bool(jnp.allclose(out, ref, atol=1e-5, rtol=1e-5))

    # Force the Pallas path at a modest shape (single full-batch block) as well.
    B, dim = 40, 256
    noise_level = jax.random.uniform(keys[3], (B,), jnp.float32, 0.0, 1.0)
    out = jax.block_until_ready(
        positional_encoding(noise_level, dim, force_pallas=True))
    ref = _reference(noise_level, dim)
    ok &= bool(jnp.allclose(out, ref, atol=1e-5, rtol=1e-5))

    if ok:
        print("KERNEL_OK")
    else:
        print("MISMATCH")
</pallas_src>

<mosaic_0001>
module attributes {stable_mosaic.version = 11 : i64} {
  func.func @_posenc_kernel(%arg0: i32, %arg1: memref<256x1xf32, #tpu.memory_space<vmem>>, %arg2: memref<2x128xf32, #tpu.memory_space<vmem>>, %arg3: memref<256x128xf32, #tpu.memory_space<vmem>>) attributes {dimension_semantics = [#tpu.dimension_semantics<parallel>], iteration_bounds = array<i64: 2>, scalar_prefetch = 0 : i64, scratch_operands = 0 : i64, tpu.core_type = #tpu.core_type<tc>, window_params = [{transform_indices = @transform_0, window_bounds = array<i64: 256, 1>}, {pipeline_mode = #tpu.pipeline_mode<synchronous>, transform_indices = @transform_1, window_bounds = array<i64: 2, 128>}, {transform_indices = @transform_2, window_bounds = array<i64: 256, 128>}]} {
    %c0 = arith.constant 0 : index
    %c0_0 = arith.constant 0 : index
    %0 = vector.load %arg1[%c0, %c0_0] : memref<256x1xf32, #tpu.memory_space<vmem>>, vector<256x1xf32>
    %c0_1 = arith.constant 0 : index
    %c0_2 = arith.constant 0 : index
    %1 = vector.load %arg2[%c0_1, %c0_2] : memref<2x128xf32, #tpu.memory_space<vmem>>, vector<1x128xf32>
    %c1 = arith.constant 1 : index
    %c0_3 = arith.constant 0 : index
    %2 = vector.load %arg2[%c1, %c0_3] : memref<2x128xf32, #tpu.memory_space<vmem>>, vector<1x128xf32>
    %3 = vector.broadcast %0 : vector<256x1xf32> to vector<256x128xf32>
    %4 = vector.broadcast %1 : vector<1x128xf32> to vector<256x128xf32>
    %5 = arith.mulf %3, %4 : vector<256x128xf32>
    %6 = vector.broadcast %2 : vector<1x128xf32> to vector<256x128xf32>
    %7 = arith.addf %5, %6 : vector<256x128xf32>
    %8 = math.sin %7 : vector<256x128xf32>
    %c0_4 = arith.constant 0 : index
    %c0_5 = arith.constant 0 : index
    %9 = vector.load %arg3[%c0_4, %c0_5] : memref<256x128xf32, #tpu.memory_space<vmem>>, vector<256x128xf32>
    tpu.vector_store %arg3[%c0_4, %c0_5], %8 {strides = array<i32>} : memref<256x128xf32, #tpu.memory_space<vmem>>, vector<256x128xf32>,
    return
  }
  func.func @transform_0(%arg0: i32) -> (i32, i32) {
    %c0_i32 = arith.constant 0 : i32
    %c0_i32_0 = arith.constant 0 : i32
    return %arg0, %c0_i32 : i32, i32
  }
  func.func @transform_1(%arg0: i32) -> (i32, i32) {
    %c0_i32 = arith.constant 0 : i32
    %c0_i32_0 = arith.constant 0 : i32
    %c0_i32_1 = arith.constant 0 : i32
    return %c0_i32, %c0_i32_0 : i32, i32
  }
  func.func @transform_2(%arg0: i32) -> (i32, i32) {
    %c0_i32 = arith.constant 0 : i32
    %c0_i32_0 = arith.constant 0 : i32
    return %arg0, %c0_i32 : i32, i32
  }
}

</mosaic_0001>

<bundles_post_ra>
// kernel: tpu_custom_call.1
= control target key start
LH: loop header
LB: loop body
LE: loop exit
PB: predicated region body
PF: predicated region fallthrough
CT: control target
= control target key end

     0   :  { %7 = vsyncpa [#allocation3], 0  ;;  %s9599_s0 = inlined_call_operand.vmem [shape: f32[512,1], index: 0, kind: input, shape index: {}]   ;;  %s9600_s1 = inlined_call_operand.vmem [shape: f32[2,128], index: 1, kind: input, shape index: {}]   ;;  %s9601_s2 = inlined_call_operand.hbm [shape: f32[512,128], index: 2, kind: output, shape index: {}]  }
   0x1   :  { %9 = vsyncpa [#allocation3 + $0x1], 0  ;;  %s5737_s9 = smov 0   ;;  %s5739_s10 = smov 0  }
   0x2   :  { %s5741_s11 = smov 0   ;;  %s5743_s12 = smov 0  }
   0x3 LB: > { %s5758_s13 = sadd.s32 4294967295, %s5711_s12   ;;  %s5475_s14 = sadd.s32 4294967294, %s5711_s12   ;;  %s5711_s12 = sphi %s5743_s12, %s9667_s12   ;;  %s5707_s11 = sphi %s5741_s11, %s9666_s11   ;;  %s5703_s10 = sphi %s5739_s10, %s9665_s10   ;;  %s5699_s9 = sphi %s5737_s9, %s9664_s9  }
   0x4   : > { %s5762_s15 = sadd.s32 1, %s5711_s12   ;;  %s69_s16 = sadd.s32 1, %s5707_s11 }
   0x5   : > { %s66_s17 = ssub.s32 %s5711_s12, %s5762_s15  ;;  %p79_p0 = scmp.ne.s32.totalorder %s5707_s11, %s5703_s10 }
   0x6   : > { %p67_p1 = scmp.eq.s32.totalorder %s66_s17, 0  ;;  %p80_p2 = scmp.eq.s32.totalorder %s5758_s13, 1 }
   0x7   : > { %p85_p3 = scmp.ne.s32.totalorder %s5703_s10, %s5699_s9  ;;  %p86_p4 = scmp.eq.s32.totalorder %s5475_s14, 1 }
   0x8   : > { %s5773_s18 = scalar_select %p67_p1, %s5707_s11, %s69_s16  }
   0x9   : > { %p5775_p5 = por %p80_p2, %p79_p0  ;;  %p5779_p6 = por %p86_p4, %p85_p3 }
   0xa   : > { %p5478_p7 = scmp.ge.s32.totalorder %s5711_s12, 1  ;;  %p116_p8 = scmp.lt.s32.totalorder %s5711_s12, 3 }
   0xc   : > { %p117_p9 = pnand %p5478_p7, %p116_p8 }
   0xd   : > { %s5480_s21 = sshll.u32 (!%p117_p9), %s5758_s13, 5  ;;  %s135_s30 = sand.u32 (!%p117_p9), 1, %s5703_s10  }
   0xe   : > { %120 = sbr.rel (%p117_p9) target bundleno = 1392 (0x570), region = 28  ;;  %p139_p10 = scmp.lt.s32.totalorder (!%p117_p9), %s5480_s21, 63 }
   0xf   : > { %s5479_s3 = sshll.u32 (!%p117_p9), %s135_s30, 8  ;;  %s5669_s5 = scalar_lea.hbm (!%p117_p9), %s9601_s2, 512 }
  0x10   : > { %s6113_s4 = scalar_lea.vmem (!%p117_p9), [#allocation2], %s5479_s3 }
  0x13   : > { %v5713_v0 = vmov 0   ;;  %s9669_s21 = smov (!%p139_p10, %s5480_s21), 63  ;;  %v5829_v33 = vld [vmem:[%s9600_s1] ss:$0 sm:$0xff]  ;;  %v5835_v36 = vld [vmem:[%s9600_s1 + $0x1] ss:$0 sm:$0xff] }
  0x14   : > { %5634 = vset.pattern.permute.xlu2 %v5713_v0  ;;  %5633 = vset.pattern.permute.xlu1 %v5713_v0  ;;  %s5481_s22 = sshll.u32 %s9669_s21, 3  ;;  %v5714_v52 = vmov 683565275   ;;  %v5715_v55 = vmov 2475754826   ;;  %s5583_s21 = sshll.u32 %s5758_s13, 8 }
  0x15   : > { %5632 = vset.pattern.permute.xlu0 %v5713_v0  ;;  %s5792_s25 = scalar_lea.vmem %s9599_s0, %s5481_s22  ;;  %v5716_v58 = vmov 2131351028   ;;  %v5717_v61 = vmov 2102212464   ;;  %s5409_s24 = scalar_lea.hbm %s9601_s2, %s5583_s21 }
  0x16   : > { %v149_v1 = vld [vmem:[%s5792_s25 + $0x20] sm:$0xff]  ;;  %v147_v2 = vld [vmem:[%s5792_s25 + $0x10] sm:$0xff]  ;;  %v150_v4 = vld [vmem:[%s5792_s25 + $0x28] sm:$0xff]  ;;  %s5412_s26 = sshll.u32 %s5409_s24, 4  ;;  %s5398_s13 = scalar_lea.sflag [#allocation3], %s135_s30  ;;  %s5413_s26 = int_to_ptr.hbm [resolvable:$true] %s5412_s26 }
  0x17   : > { %v145_v3 = vld [vmem:[%s5792_s25] sm:$0xff]  ;;  %201 = vperm.xlu2 %5634, %v149_v1   ;;  %191 = vperm.xlu1 %5633, %v147_v2   ;;  %v148_v5 = vld [vmem:[%s5792_s25 + $0x18] sm:$0xff]  ;;  %v146_v6 = vld [vmem:[%s5792_s25 + $0x8] sm:$0xff]  ;;  %v5718_v1 = vmov 920167782   ;;  %s5663_s27 = sshra.s32 %s5413_s26, 4  ;;  %s5664_s27 = int_to_ptr.hbm [resolvable:$true] %s5663_s27 }
  0x18   : > { %181 = vperm.xlu0 %5632, %v145_v3   ;;  %v153_v7 = vld [vmem:[%s5792_s25 + $0x40] sm:$0xff]  ;;  %v152_v8 = vld [vmem:[%s5792_s25 + $0x38] sm:$0xff]  ;;  %v151_v9 = vld [vmem:[%s5792_s25 + $0x30] sm:$0xff]  ;;  %v5719_v3 = vmov 1326507024   ;;  %s5665_s28 = scalar_lea.hbm %s5664_s27, 256  ;;  %p5670_p0 = scmp.lt.s32.totalorder %s5664_s27, %s9601_s2 }
  0x19   : > { %v156_v10 = vld [vmem:[%s5792_s25 + $0x58] sm:$0xff]  ;;  %v155_v11 = vld [vmem:[%s5792_s25 + $0x50] sm:$0xff]  ;;  %v154_v12 = vld [vmem:[%s5792_s25 + $0x48] sm:$0xff]  ;;  %p5666_p11 = scmp.ne.s32.totalorder %s5664_s27, %s5665_s28  ;;  %p5671_p1 = scmp.lt.s32.totalorder %s5669_s5, %s5665_s28 }
  0x1a   : > { %v159_v13 = vld [vmem:[%s5792_s25 + $0x70] sm:$0xff]  ;;  %v158_v14 = vld [vmem:[%s5792_s25 + $0x68] sm:$0xff]  ;;  %v157_v15 = vld [vmem:[%s5792_s25 + $0x60] sm:$0xff] }
  0x1b   : > { %v162_v16 = vld [vmem:[%s5792_s25 + $0x88] sm:$0xff]  ;;  %v161_v17 = vld [vmem:[%s5792_s25 + $0x80] sm:$0xff]  ;;  %v160_v18 = vld [vmem:[%s5792_s25 + $0x78] sm:$0xff]  ;;  %p5667_p12 = pnand %p5666_p11, %p5775_p5  ;;  %p5672_p2 = por %p5671_p1, %p5670_p0 }
  0x1c   : > { %v165_v19 = vld [vmem:[%s5792_s25 + $0xa0] sm:$0xff]  ;;  %v164_v20 = vld [vmem:[%s5792_s25 + $0x98] sm:$0xff]  ;;  %v163_v21 = vld [vmem:[%s5792_s25 + $0x90] sm:$0xff] }
  0x1d   : > { %v168_v22 = vld [vmem:[%s5792_s25 + $0xb8] sm:$0xff]  ;;  %v167_v23 = vld [vmem:[%s5792_s25 + $0xb0] sm:$0xff]  ;;  %v166_v24 = vld [vmem:[%s5792_s25 + $0xa8] sm:$0xff]  ;;  %p5668_p13 = pneg %p5667_p12 }
  0x1e   : > { %v171_v25 = vld [vmem:[%s5792_s25 + $0xd0] sm:$0xff]  ;;  %v170_v26 = vld [vmem:[%s5792_s25 + $0xc8] sm:$0xff]  ;;  %v169_v27 = vld [vmem:[%s5792_s25 + $0xc0] sm:$0xff] }
  0x1f   : > { %206 = vperm.xlu2 %5634, %v150_v4   ;;  %196 = vperm.xlu1 %5633, %v148_v5   ;;  %v174_v28 = vld [vmem:[%s5792_s25 + $0xe8] sm:$0xff]  ;;  %v173_v29 = vld [vmem:[%s5792_s25 + $0xe0] sm:$0xff]  ;;  %v172_v30 = vld [vmem:[%s5792_s25 + $0xd8] sm:$0xff]  ;;  %p5673_p3 = pnand %p5672_p2, %p5668_p13 }
  0x20   : > { %186 = vperm.xlu0 %5632, %v146_v6   ;;  %v176_v31 = vld [vmem:[%s5792_s25 + $0xf8] sm:$0xff]  ;;  %v175_v32 = vld [vmem:[%s5792_s25 + $0xf0] sm:$0xff]  ;;  %s5410_s25 = sshll.u32 %s6113_s4, 4  ;;  %s5411_s25 = int_to_ptr.vmem [resolvable:$true] %s5410_s25 }
  0x27   : > { %221 = vperm.xlu2 %5634, %v153_v7   ;;  %216 = vperm.xlu1 %5633, %v152_v8  }
  0x28   : > { %211 = vperm.xlu0 %5632, %v151_v9  }
  0x2f   : > { %236 = vperm.xlu2 %5634, %v156_v10   ;;  %231 = vperm.xlu1 %5633, %v155_v11  }
  0x30   : > { %226 = vperm.xlu0 %5632, %v154_v12  }
  0x37   : > { %251 = vperm.xlu2 %5634, %v159_v13   ;;  %246 = vperm.xlu1 %5633, %v158_v14  }
  0x38   : > { %241 = vperm.xlu0 %5632, %v157_v15  }
  0x3f   : > { %266 = vperm.xlu2 %5634, %v162_v16   ;;  %261 = vperm.xlu1 %5633, %v161_v17  }
  0x40   : > { %256 = vperm.xlu0 %5632, %v160_v18  }
  0x47   : > { %281 = vperm.xlu2 %5634, %v165_v19   ;;  %276 = vperm.xlu1 %5633, %v164_v20  }
  0x48   : > { %271 = vperm.xlu0 %5632, %v163_v21  }
  0x4f   : > { %296 = vperm.xlu2 %5634, %v168_v22   ;;  %291 = vperm.xlu1 %5633, %v167_v23  }
  0x50   : > { %286 = vperm.xlu0 %5632, %v166_v24  }
  0x57   : > { %311 = vperm.xlu2 %5634, %v171_v25   ;;  %306 = vperm.xlu1 %5633, %v170_v26  }
  0x58   : > { %301 = vperm.xlu0 %5632, %v169_v27  }
  0x5f   : > { %326 = vperm.xlu2 %5634, %v174_v28   ;;  %321 = vperm.xlu1 %5633, %v173_v29  }
  0x60   : > { %316 = vperm.xlu0 %5632, %v172_v30  }
  0x67   : > { %336 = vperm.xlu1 %5633, %v176_v31  }
  0x68   : > { %331 = vperm.xlu0 %5632, %v175_v32  }
  0x89   : > { %v192_v15 = vpop.permute.xlu1 %191 }
  0x8a   : > { %v182_v34 = vpop.permute.xlu0 %181  ;;  %v342_v24 = vmul.f32 %v5829_v33, %v192_v15 }
  0x8b   : > { %v340_v35 = vmul.f32 %v5829_v33, %v182_v34 }
  0x8d   : > { %v5838_v37 = vadd.f32 %v5835_v36, %v340_v35 }
  0x8f   : > { %v408_v38 = vand.u32 2139095040, %v5838_v37  ;;  %v405_v43 = vand.u32 2147483647, %v5838_v37 }
  0x91   : > { %v409_v39 = vshrl.u32 %v408_v38, 23  ;;  %v412_v46 = vand.u32 8388607, %v405_v43 }
  0x92   : > { %v187_v40 = vpop.permute.xlu0 %186 }
  0x93   : > { %v5482_v41 = vadd.s32 4294967169, %v409_v39  ;;  %v341_v42 = vmul.f32 %v5829_v33, %v187_v40  ;;  %v413_v50 = vor.u32 8388608, %v412_v46  ;;  %v5890_v40 = vadd.f32 %v5835_v36, %v342_v24 }
  0x95   : > { %v415_v44 = vadd.s32 1, %v5482_v41  ;;  %v5844_v45 = vadd.f32 %v5835_v36, %v341_v42  ;;  %v5865_v13 = vshll.u32 %v413_v50, 8 }
  0x97   : > { %vm416_vm0 = vcmp.gt.s32.totalorder %v415_v44, 0  ;;  %v563_v54 = vand.u32 2139095040, %v5844_v45  ;;  %v454_v21 = vand.u32 65535, %v5865_v13  ;;  %v455_v27 = vshrl.u32 %v5865_v13, 16 }
  0x98   : > { %v417_v47 = vsel %vm416_vm0, %v415_v44, 0 }
  0x99   : > { %v419_v48 = vand.u32 31, %v417_v47  ;;  %v5848_v51 = vshrl.u32 %v417_v47, 5  ;;  %v564_v10 = vshrl.u32 %v563_v54, 23 }
  0x9b   : > { %v420_v49 = vsub.s32 32, %v419_v48  ;;  %v422_v53 = vshll.u32 %v5714_v52, %v419_v48  ;;  %v425_v57 = vshll.u32 %v5715_v55, %v419_v48  ;;  %v428_v60 = vshll.u32 %v5716_v58, %v419_v48 }
  0x9c   : > { %v431_v63 = vshll.u32 %v5717_v61, %v419_v48  ;;  %v434_v7 = vshll.u32 %v5718_v1, %v419_v48  ;;  %vm437_vm1 = vcmp.lt.s32.totalorder %v5848_v51, 1  ;;  %vm440_vm2 = vcmp.lt.s32.totalorder %v5848_v51, 4 }
  0x9d   : > { %v423_v56 = vshrl.u32 %v5715_v55, %v420_v49  ;;  %v426_v59 = vshrl.u32 %v5716_v58, %v420_v49  ;;  %v429_v62 = vshrl.u32 %v5717_v61, %v420_v49  ;;  %v432_v2 = vshrl.u32 %v5718_v1, %v420_v49 }
  0x9e   : > { %v435_v4 = vshrl.u32 %v5719_v3, %v420_v49  ;;  %vm439_vm3 = vcmp.lt.s32.totalorder %v5848_v51, 3  ;;  %vm438_vm4 = vcmp.lt.s32.totalorder %v5848_v51, 2  ;;  %v5485_v19 = vadd.s32 4294967169, %v564_v10 }
  0x9f   : > { %v424_v5 = vor.u32 %v423_v56, %v422_v53  ;;  %v427_v6 = vor.u32 %v426_v59, %v425_v57  ;;  %v430_v8 = vor.u32 %v429_v62, %v428_v60  ;;  %v433_v9 = vor.u32 %v432_v2, %v431_v63 }
  0xa0   : > { %v436_v11 = vor.u32 %v435_v4, %v434_v7  ;;  %v570_v32 = vadd.s32 1, %v5485_v19  ;;  %v421_v34 = vshrl.u32 %v5714_v52, %v420_v49  ;;  %v560_v63 = vand.u32 2147483647, %v5844_v45 }
  0xa1   : > { %v445_v12 = vsel %vm437_vm1, %v424_v5, %v427_v6  ;;  %v446_v14 = vsel %vm440_vm2, %v433_v9, 920167782  ;;  %v449_v18 = vsel %vm437_vm1, %v427_v6, %v430_v8  ;;  %v442_v29 = vsel %vm440_vm2, %v430_v8, 2102212464 }
  0xa2   : > { %v447_v16 = vsel %vm439_vm3, %v430_v8, %v446_v14  ;;  %v450_v20 = vsel %vm440_vm2, %v436_v11, 1326507024  ;;  %v441_v42 = vsel %vm437_vm1, %v421_v34, %v424_v5  ;;  %v443_v44 = vsel %vm439_vm3, %v427_v6, %v442_v29 }
  0xa3   : > { %v448_v17 = vsel %vm438_vm4, %v445_v12, %v447_v16  ;;  %v451_v25 = vsel %vm439_vm3, %v433_v9, %v450_v20  ;;  %vm571_vm6 = vcmp.gt.s32.totalorder %v570_v32, 0  ;;  %v718_v5 = vand.u32 2139095040, %v5890_v40 }
  0xa4   : > { %v478_v22 = vand.u32 65535, %v448_v17  ;;  %v479_v23 = vshrl.u32 %v448_v17, 16  ;;  %v452_v26 = vsel %vm438_vm4, %v449_v18, %v451_v25  ;;  %v572_v2 = vsel %vm571_vm6, %v570_v32, 0 }
  0xa5   : > { %v456_v30 = vand.u32 65535, %v452_v26  ;;  %v457_v31 = vshrl.u32 %v452_v26, 16  ;;  %v444_v6 = vsel %vm438_vm4, %v441_v42, %v443_v44  ;;  %v574_v9 = vand.u32 31, %v572_v2 }
  0xa6   : > { %v481_v28 = vmul.u32 %v479_v23, %v454_v21  ;;  %v480_v35 = vmul.u32 %v478_v22, %v454_v21  ;;  %v482_v38 = vmul.u32 %v478_v22, %v455_v27  ;;  %v483_v50 = vmul.u32 %v479_v23, %v455_v27 }
  0xa7   : > { %v459_v41 = vmul.u32 %v457_v31, %v454_v21  ;;  %v460_v46 = vmul.u32 %v456_v30, %v455_v27  ;;  %v458_v47 = vmul.u32 %v456_v30, %v454_v21  ;;  %v461_v49 = vmul.u32 %v457_v31, %v455_v27 }
  0xa8   : > { %v484_v39 = vshll.u32 %v481_v28, 16  ;;  %v486_v54 = vshll.u32 %v482_v38, 16  ;;  %v485_v12 = vshrl.u32 %v481_v28, 16  ;;  %v567_v15 = vand.u32 8388607, %v560_v63 }
  0xa9   : > { %v462_v48 = vshll.u32 %v459_v41, 16  ;;  %v464_v53 = vshll.u32 %v460_v46, 16  ;;  %v463_v10 = vshrl.u32 %v459_v41, 16  ;;  %v5906_v16 = vsub.s32 32, %v574_v9 }
  0xaa   : > { %vm488_vm5 = vc.u32 %v480_v35, %v484_v39  ;;  %v490_v59 = vadd.s32 %v484_v39, %v480_v35  ;;  %v465_v17 = vshrl.u32 %v460_v46, 16  ;;  %v487_v19 = vshrl.u32 %v482_v38, 16 }
  0xab   : > { %v489_v56 = vsel %vm488_vm5, 1, %v5713_v0  ;;  %vm466_vm7 = vc.u32 %v458_v47, %v462_v48  ;;  %v468_v57 = vadd.s32 %v462_v48, %v458_v47  ;;  %v498_v21 = vmul.u32 %v5865_v13, %v444_v6 }
  0xac   : > { %v491_v60 = vadd.s32 %v489_v56, %v483_v50  ;;  %v467_v62 = vsel %vm466_vm7, 1, %v5713_v0  ;;  %vm492_vm9 = vc.u32 %v490_v59, %v486_v54  ;;  %v5908_v51 = vadd.s32 %v490_v59, %v486_v54 }
  0xad   : > { %v469_v4 = vadd.s32 %v467_v62, %v461_v49  ;;  %vm470_vm8 = vc.u32 %v468_v57, %v464_v53  ;;  %v493_v8 = vsel %vm492_vm9, 1, %v5713_v0  ;;  %v578_v22 = vshrl.u32 %v5715_v55, %v5906_v16 }
  0xae   : > { %v471_v7 = vsel %vm470_vm8, 1, %v5713_v0  ;;  %v495_v14 = vadd.s32 %v493_v8, %v491_v60  ;;  %v719_v23 = vshrl.u32 %v718_v5, 23  ;;  %v581_v26 = vshrl.u32 %v5716_v58, %v5906_v16 }
  0xaf   : > { %v473_v11 = vadd.s32 %v471_v7, %v469_v4  ;;  %v584_v27 = vshrl.u32 %v5717_v61, %v5906_v16  ;;  %v568_v28 = vor.u32 8388608, %v567_v15  ;;  %v577_v29 = vshll.u32 %v5714_v52, %v574_v9 }
  0xb0   : > { %v496_v20 = vadd.s32 %v495_v14, %v485_v12  ;;  %v580_v30 = vshll.u32 %v5715_v55, %v574_v9  ;;  %v587_v13 = vshrl.u32 %v5718_v1, %v5906_v16  ;;  %v583_v32 = vshll.u32 %v5716_v58, %v574_v9 }
  0xb1   : > { %v474_v18 = vadd.s32 %v473_v11, %v463_v10  ;;  %v586_v34 = vshll.u32 %v5717_v61, %v574_v9  ;;  %v5927_v35 = vshrl.u32 %v572_v2, 5  ;;  %v579_v38 = vor.u32 %v578_v22, %v577_v29 }
  0xb2   : > { %v497_v25 = vadd.s32 %v496_v20, %v487_v19  ;;  %v589_v39 = vshll.u32 %v5718_v1, %v574_v9  ;;  %v590_v41 = vshrl.u32 %v5719_v3, %v5906_v16  ;;  %v582_v44 = vor.u32 %v581_v26, %v580_v30 }
  0xb3   : > { %v5913_v24 = vadd.s32 %v474_v18, %v465_v17  ;;  %v585_v46 = vor.u32 %v584_v27, %v583_v32  ;;  %v588_v47 = vor.u32 %v587_v13, %v586_v34  ;;  %v5932_v49 = vshll.u32 %v568_v28, 8 }
  0xb4   : > { %v501_v31 = vadd.s32 1, %v497_v25  ;;  %v591_v50 = vor.u32 %v590_v41, %v589_v39  ;;  %v5488_v53 = vadd.s32 4294967169, %v719_v23  ;;  %vm592_vm11 = vcmp.lt.s32.totalorder %v5927_v35, 1 }
  0xb5   : > { %vm500_vm10 = vc.u32 %v5913_v24, %v5908_v51  ;;  %vm594_vm12 = vcmp.lt.s32.totalorder %v5927_v35, 3  ;;  %vm595_vm13 = vcmp.lt.s32.totalorder %v5927_v35, 4  ;;  %v600_v56 = vsel %vm592_vm11, %v579_v38, %v582_v44 }
  0xb6   : > { %v502_v42 = vsel %vm500_vm10, %v501_v31, %v497_v25  ;;  %v601_v57 = vsel %vm595_vm13, %v588_v47, 920167782  ;;  %v604_v59 = vsel %vm592_vm11, %v582_v44, %v585_v46  ;;  %v605_v60 = vsel %vm595_vm13, %v591_v50, 1326507024 }
  0xb7   : > { %v503_v48 = vadd.s32 %v502_v42, %v498_v21  ;;  %vm593_vm14 = vcmp.lt.s32.totalorder %v5927_v35, 2  ;;  %v602_v2 = vsel %vm594_vm12, %v585_v46, %v601_v57  ;;  %v606_v4 = vsel %vm594_vm12, %v588_v47, %v605_v60 }
  0xb8   : > { %v607_v5 = vsel %vm593_vm14, %v604_v59, %v606_v4  ;;  %v603_v7 = vsel %vm593_vm14, %v600_v56, %v602_v2  ;;  %v609_v10 = vand.u32 65535, %v5932_v49  ;;  %v610_v11 = vshrl.u32 %v5932_v49, 16 }
  0xb9   : > { %v504_v54 = vadd.s32 536870912, %v503_v48  ;;  %v611_v8 = vand.u32 65535, %v607_v5  ;;  %v612_v9 = vshrl.u32 %v607_v5, 16  ;;  %v725_v12 = vadd.s32 1, %v5488_v53 }
  0xba   : > { %v634_v18 = vshrl.u32 %v603_v7, 16  ;;  %v633_v26 = vand.u32 65535, %v603_v7  ;;  %v576_v30 = vshrl.u32 %v5714_v52, %v5906_v16  ;;  %v597_v32 = vsel %vm595_vm13, %v585_v46, 2102212464 }
  0xbb   : > { %v5945_v62 = vshrl.u32 %v504_v54, 30  ;;  %v614_v15 = vmul.u32 %v612_v9, %v609_v10  ;;  %v615_v17 = vmul.u32 %v611_v8, %v610_v11  ;;  %v613_v20 = vmul.u32 %v611_v8, %v609_v10 }
  0xbc   : > { %vm726_vm0 = vcmp.gt.s32.totalorder %v725_v12, 0  ;;  %v616_v23 = vmul.u32 %v612_v9, %v610_v11  ;;  %v636_v29 = vmul.u32 %v634_v18, %v609_v10  ;;  %v499_v39 = vadd.s32 %v5908_v51, %v5913_v24 }
  0xbd   : > { %v506_v6 = vshll.u32 %v5945_v62, 30  ;;  %v617_v21 = vshll.u32 %v614_v15, 16  ;;  %v619_v25 = vshll.u32 %v615_v17, 16  ;;  %v637_v42 = vmul.u32 %v633_v26, %v610_v11 }
  0xbe   : > { %v727_v47 = vsel %vm726_vm0, %v725_v12, 0  ;;  %v596_v16 = vsel %vm592_vm11, %v576_v30, %v579_v38  ;;  %v639_v50 = vshll.u32 %v636_v29, 16  ;;  %v529_v54 = vsub.s32 4, %v5945_v62 }
  0xbf   : > { %v507_v14 = vsub.s32 %v503_v48, %v506_v6  ;;  %vm621_vm1 = vc.u32 %v613_v20, %v617_v21  ;;  %v623_v28 = vadd.s32 %v617_v21, %v613_v20  ;;  %v598_v46 = vsel %vm594_vm12, %v582_v44, %v597_v32  ;;  %v202_v44 = vpop.permute.xlu2 %201 }
  0xc0   : > { %v622_v13 = vsel %vm621_vm1, 1, %v5713_v0  ;;  %v635_v56 = vmul.u32 %v633_v26, %v609_v10  ;;  %v618_v24 = vshrl.u32 %v614_v15, 16  ;;  %v638_v59 = vmul.u32 %v634_v18, %v610_v11 }
  0xc1   : > { %vm508_vm15 = vcmp.lt.s32.totalorder %v507_v14, 0  ;;  %v509_v19 = vsub.s32 0, %v507_v14  ;;  %v624_v34 = vadd.s32 %v622_v13, %v616_v23  ;;  %vm625_vm2 = vc.u32 %v623_v28, %v619_v25 }
  0xc2   : > { %v626_v41 = vsel %vm625_vm2, 1, %v5713_v0  ;;  %v641_v2 = vshll.u32 %v637_v42, 16  ;;  %vm643_vm4 = vc.u32 %v635_v56, %v639_v50  ;;  %v645_v4 = vadd.s32 %v639_v50, %v635_v56 }
  0xc3   : > { %v510_v22 = vsel %vm508_vm15, %v509_v19, %v507_v14  ;;  %v628_v48 = vadd.s32 %v626_v41, %v624_v34  ;;  %v644_v7 = vsel %vm643_vm4, 1, %v5713_v0  ;;  %vm407_vm5 = vcmp.lt.s32.totalorder %v5838_v37, 0 }
  0xc4   : > { %v511_v27 = vclz %v510_v22  ;;  %v646_v8 = vadd.s32 %v644_v7, %v638_v59  ;;  %vm647_vm6 = vc.u32 %v645_v4, %v641_v2  ;;  %v729_v9 = vand.u32 31, %v727_v47 }
  0xc5   : > { %v629_v38 = vadd.s32 %v628_v48, %v618_v24  ;;  %v620_v19 = vshrl.u32 %v615_v17, 16  ;;  %v648_v11 = vsel %vm647_vm6, 1, %v5713_v0  ;;  %v640_v15 = vshrl.u32 %v636_v29, 16 }
  0xc6   : > { %v5483_v31 = vadd.s32 4294967294, %v511_v27  ;;  %v650_v18 = vadd.s32 %v648_v11, %v646_v8  ;;  %v715_v20 = vand.u32 2147483647, %v5890_v40  ;;  %v530_v22 = vsel %vm407_vm5, %v529_v54, %v5945_v62 }
  0xc7   : > { %v5982_v23 = vadd.s32 %v629_v38, %v620_v19  ;;  %v5984_v25 = vsub.s32 32, %v729_v9  ;;  %v344_v17 = vmul.f32 %v5829_v33, %v202_v44  ;;  %v642_v26 = vshrl.u32 %v637_v42, 16 }
  0xc8   : > { %vm5484_vm3 = vcmp.lt.s32.totalorder %v5483_v31, 0  ;;  %v651_v27 = vadd.s32 %v650_v18, %v640_v15  ;;  %vm5989_vm7 = vcmp.le.f32.partialorder %v405_v43, 0.7853982  ;;  %v5993_v30 = vadd.s32 %v645_v4, %v641_v2 }
  0xc9   : > { %v514_v53 = vsel %vm5484_vm3, 0, %v5483_v31  ;;  %v532_v62 = vsel %vm5989_vm7, 0, %v530_v22  ;;  %v722_v32 = vand.u32 8388607, %v715_v20  ;;  %v736_v43 = vshrl.u32 %v5716_v58, %v5984_v25 }
  0xca   : > { %v515_v57 = vsub.s32 32, %v514_v53  ;;  %v519_v51 = vsub.s32 4294967266, %v514_v53  ;;  %v516_v60 = vshll.u32 %v507_v14, %v514_v53  ;;  %v599_v14 = vsel %vm593_vm14, %v596_v16, %v598_v46 }
  0xcb   : > { %v652_v13 = vadd.s32 %v651_v27, %v642_v26  ;;  %v653_v31 = vmul.u32 %v5932_v49, %v599_v14  ;;  %vm655_vm8 = vc.u32 %v5982_v23, %v5993_v30  ;;  %v742_v42 = vshrl.u32 %v5718_v1, %v5984_v25 }
  0xcc   : > { %v517_v5 = vshrl.u32 %v499_v39, %v515_v57  ;;  %v520_v6 = vadd.s32 127, %v519_v51  ;;  %v739_v39 = vshrl.u32 %v5717_v61, %v5984_v25  ;;  %v744_v16 = vshll.u32 %v5718_v1, %v729_v9 }
  0xcd   : > { %v656_v41 = vadd.s32 1, %v652_v13  ;;  %v745_v49 = vshrl.u32 %v5719_v3, %v5984_v25  ;;  %v6011_v50 = vshrl.u32 %v727_v47, 5  ;;  %v735_v53 = vshll.u32 %v5715_v55, %v729_v9 }
  0xce   : > { %v518_v10 = vor.u32 %v517_v5, %v516_v60  ;;  %v521_v12 = vshll.u32 %v520_v6, 23  ;;  %v738_v54 = vshll.u32 %v5716_v58, %v729_v9  ;;  %v733_v56 = vshrl.u32 %v5715_v55, %v5984_v25 }
  0xcf   : > { %v657_v46 = vsel %vm655_vm8, %v656_v41, %v652_v13  ;;  %v741_v57 = vshll.u32 %v5717_v61, %v729_v9  ;;  %v746_v51 = vor.u32 %v745_v49, %v744_v16  ;;  %v6020_v60 = vor.u32 %v736_v43, %v735_v53 }
  0xd0   : > { %v522_v21 = vor.u32 4788187, %v521_v12  ;;  %v525_v29 = vcvt.s32.f32 %v518_v10  ;;  %v658_v59 = vadd.s32 %v657_v46, %v653_v31  ;;  %v6022_v2 = vor.u32 %v739_v39, %v738_v54  ;;  %v197_v12 = vpop.permute.xlu1 %196 }
  0xd1   : > { %v723_v4 = vor.u32 8388608, %v722_v32  ;;  %v732_v5 = vshll.u32 %v5714_v52, %v729_v9  ;;  %v743_v6 = vor.u32 %v742_v42, %v741_v57  ;;  %v549_v7 = vadd.s32 3, %v532_v62 }
  0xd2   : > { %v523_v28 = vand.u32 2147483647, %v522_v21  ;;  %v659_v8 = vadd.s32 536870912, %v658_v59  ;;  %vm750_vm9 = vcmp.lt.s32.totalorder %v6011_v50, 4  ;;  %vm747_vm10 = vcmp.lt.s32.totalorder %v6011_v50, 1 }
  0xd3   : > { %v6033_v44 = vor.u32 %v733_v56, %v732_v5  ;;  %vm749_vm11 = vcmp.lt.s32.totalorder %v6011_v50, 3  ;;  %v760_v10 = vsel %vm750_vm9, %v746_v51, 1326507024  ;;  %v759_v14 = vsel %vm747_vm10, %v6020_v60, %v6022_v2 }
  0xd4   : > { %v526_v34 = vmul.f32 %v525_v29, %v523_v28  ;;  %v6039_v11 = vshrl.u32 %v659_v8, 30  ;;  %v756_v15 = vsel %vm750_vm9, %v743_v6, 920167782  ;;  %v761_v18 = vsel %vm749_vm11, %v743_v6, %v760_v10 }
  0xd5   : > { %v6049_v21 = vshll.u32 %v723_v4, 8  ;;  %vm748_vm12 = vcmp.lt.s32.totalorder %v6011_v50, 2  ;;  %v343_v35 = vmul.f32 %v5829_v33, %v197_v12  ;;  %v6055_v28 = vadd.f32 %v5835_v36, %v344_v17 }
  0xd6   : > { %v527_v48 = vxor.u32 2147483648, %v526_v34  ;;  %v661_v27 = vshll.u32 %v6039_v11, 30  ;;  %v550_v29 = vand.u32 3, %v549_v7  ;;  %v762_v62 = vsel %vm748_vm12, %v759_v14, %v761_v18 }
  0xd7   : > { %v757_v33 = vsel %vm749_vm11, %v6022_v2, %v756_v15  ;;  %v764_v17 = vand.u32 65535, %v6049_v21  ;;  %v766_v43 = vand.u32 65535, %v762_v62  ;;  %v767_v39 = vshrl.u32 %v762_v62, 16 }
  0xd8   : > { %v528_v24 = vsel %vm407_vm5, %v527_v48, %v526_v34  ;;  %v6059_v32 = vsub.s32 %v658_v59, %v661_v27  ;;  %v755_v34 = vsel %vm747_vm10, %v6033_v44, %v6020_v60  ;;  %v6072_v49 = vadd.f32 %v5835_v36, %v343_v35 }
  0xd9   : > { %v6027_v47 = vsel %vm5989_vm7, %v5838_v37, %v528_v24  ;;  %vm552_vm14 = vcmp.eq.s32.totalorder %v550_v29, 0  ;;  %v765_v48 = vshrl.u32 %v6049_v21, 16  ;;  %v6075_v53 = vmul.u32 %v767_v39, %v764_v17 }
  0xda   : > { %v533_v38 = vmul.f32 %v6027_v47, %v6027_v47  ;;  %vm663_vm13 = vcmp.lt.s32.totalorder %v6059_v32, 0  ;;  %v664_v16 = vsub.s32 0, %v6059_v32  ;;  %vm551_vm15 = vcmp.lt.s32.totalorder %v550_v29, 2 }
  0xdb   : > { %v758_v57 = vsel %vm748_vm12, %v755_v34, %v757_v33  ;;  %vm548_vm0 = vweird.f32 %v5838_v37  ;;  %vm555_vm1 = vcmp.eq.s32.totalorder %v550_v29, 2  ;;  %v6081_v36 = vmul.u32 %v766_v43, %v765_v48 }
  0xdc   : > { %v534_v19 = vmul.f32 -0.001358992, %v533_v38  ;;  %v541_v9 = vmul.f32 -0.00019511016, %v533_v38  ;;  %v665_v56 = vsel %vm663_vm13, %v664_v16, %v6059_v32  ;;  %v772_v24 = vshll.u32 %v6075_v53, 16 }
  0xdd   : > { %v666_v51 = vclz %v665_v56  ;;  %v654_v5 = vadd.s32 %v5993_v30, %v5982_v23  ;;  %v768_v6 = vmul.u32 %v766_v43, %v764_v17  ;;  %v684_v7 = vsub.s32 4, %v6039_v11 }
  0xde   : > { %v535_v22 = vadd.f32 0.041655596, %v534_v19  ;;  %v542_v26 = vadd.f32 0.008332121, %v541_v9  ;;  %v771_v8 = vmul.u32 %v767_v39, %v765_v48  ;;  %v788_v10 = vand.u32 65535, %v758_v57 }
  0xdf   : > { %vm562_vm2 = vcmp.lt.s32.totalorder %v5844_v45, 0  ;;  %vm776_vm3 = vc.u32 %v768_v6, %v772_v24  ;;  %v778_v9 = vadd.s32 %v772_v24, %v768_v6  ;;  %v774_v14 = vshll.u32 %v6081_v36, 16 }
  0xe0   : > { %v536_v13 = vmul.f32 %v535_v22, %v533_v38  ;;  %v543_v31 = vmul.f32 %v542_v26, %v533_v38  ;;  %v777_v23 = vsel %vm776_vm3, 1, %v5713_v0  ;;  %v789_v30 = vshrl.u32 %v758_v57, 16 }
  0xe1   : > { %v779_v26 = vadd.s32 %v777_v23, %v771_v8  ;;  %vm780_vm5 = vc.u32 %v778_v9, %v774_v14  ;;  %vm6099_vm6 = vcmp.le.f32.partialorder %v560_v63, 0.7853982  ;;  %v792_v33 = vmul.u32 %v788_v10, %v765_v48 }
  0xe2   : > { %v537_v41 = vadd.f32 -0.4999988, %v536_v13  ;;  %v544_v42 = vadd.f32 -0.16666654, %v543_v31  ;;  %v781_v31 = vsel %vm780_vm5, 1, %v5713_v0  ;;  %v791_v34 = vmul.u32 %v789_v30, %v764_v17 }
  0xe3   : > { %v731_v16 = vshrl.u32 %v5714_v52, %v5984_v25  ;;  %v752_v57 = vsel %vm750_vm9, %v6022_v2, 2102212464  ;;  %v773_v29 = vshrl.u32 %v6075_v53, 16  ;;  %v796_v37 = vshll.u32 %v792_v33, 16 }
  0xe4   : > { %v538_v54 = vmul.f32 %v537_v41, %v533_v38  ;;  %v545_v46 = vmul.f32 %v544_v42, %v533_v38  ;;  %v5486_v38 = vadd.s32 4294967294, %v666_v51  ;;  %v783_v42 = vadd.s32 %v781_v31, %v779_v26 }
  0xe5   : > { %v794_v63 = vshll.u32 %v791_v34, 16  ;;  %v793_v51 = vmul.u32 %v789_v30, %v765_v48  ;;  %v685_v25 = vsel %vm562_vm2, %v684_v7, %v6039_v11  ;;  %v775_v2 = vshrl.u32 %v6081_v36, 16 }
  0xe6   : > { %v539_v59 = vadd.f32 1.0, %v538_v54  ;;  %v546_v4 = vadd.f32 1.0, %v545_v46  ;;  %vm5487_vm4 = vcmp.lt.s32.totalorder %v5486_v38, 0  ;;  %v790_v54 = vmul.u32 %v788_v10, %v764_v17 }
  0xe7   : > { %v669_v22 = vsel %vm5487_vm4, 0, %v5486_v38  ;;  %v784_v17 = vadd.s32 %v783_v42, %v773_v29  ;;  %v870_v53 = vand.u32 2147483647, %v6072_v49  ;;  %v873_v8 = vand.u32 2139095040, %v6072_v49 }
  0xe8   : > { %v547_v12 = vmul.f32 %v546_v4, %v6027_v47  ;;  %v556_v19 = vxor.u32 2147483648, %v539_v59  ;;  %v670_v27 = vsub.s32 32, %v669_v22  ;;  %v671_v47 = vshll.u32 %v6059_v32, %v669_v22 }
  0xe9   : > { %v674_v35 = vsub.s32 4294967266, %v669_v22  ;;  %vm798_vm7 = vc.u32 %v790_v54, %v794_v63  ;;  %v800_v24 = vadd.s32 %v794_v63, %v790_v54  ;;  %v751_v10 = vsel %vm747_vm10, %v731_v16, %v6033_v44 }
  0xea   : > { %v553_v15 = vxor.u32 2147483648, %v547_v12  ;;  %v557_v18 = vsel %vm555_vm1, %v556_v19, %v547_v12  ;;  %v672_v39 = vshrl.u32 %v654_v5, %v670_v27  ;;  %v799_v4 = vsel %vm798_vm7, 1, %v5713_v0 }
  0xeb   : > { %v675_v41 = vadd.s32 127, %v674_v35  ;;  %v801_v5 = vadd.s32 %v799_v4, %v793_v51  ;;  %vm802_vm8 = vc.u32 %v800_v24, %v796_v37  ;;  %v753_v11 = vsel %vm749_vm11, %v6020_v60, %v752_v57 }
  0xec   : > { %v554_v62 = vsel %vm552_vm14, %v539_v59, %v553_v15  ;;  %v673_v46 = vor.u32 %v672_v39, %v671_v47  ;;  %v803_v48 = vsel %vm802_vm8, 1, %v5713_v0  ;;  %v795_v7 = vshrl.u32 %v791_v34, 16 }
  0xed   : > { %v558_v43 = vsel %vm551_vm15, %v554_v62, %v557_v18  ;;  %v676_v56 = vshll.u32 %v675_v41, 23  ;;  %v805_v36 = vadd.s32 %v803_v48, %v801_v5  ;;  %v687_v19 = vsel %vm6099_vm6, 0, %v685_v25 }
  0xee   : > { %v559_v32 = vsel %vm548_vm0, nan, %v558_v43  ;;  %v680_v38 = vcvt.s32.f32 %v673_v46  ;;  %v785_v9 = vadd.s32 %v784_v17, %v775_v2  ;;  %v874_v14 = vshrl.u32 %v873_v8, 23 }
  0xef   : > { %5365 = vst [vmem:[%s6113_s4] sm:$0xff] %v559_v32  ;;  %v677_v59 = vor.u32 4788187, %v676_v56  ;;  %v797_v23 = vshrl.u32 %v792_v33, 16  ;;  %v806_v30 = vadd.s32 %v805_v36, %v795_v7  ;;  %v877_v15 = vand.u32 8388607, %v870_v53 }
  0xf0   : > { %v1028_v18 = vand.u32 2139095040, %v6055_v28  ;;  %v804_v22 = vadd.s32 %v800_v24, %v796_v37  ;;  %v5491_v26 = vadd.s32 4294967169, %v874_v14  ;;  %v754_v60 = vsel %vm748_vm12, %v751_v10, %v753_v11 }
  0xf1   : > { %v678_v6 = vand.u32 2147483647, %v677_v59  ;;  %v807_v27 = vadd.s32 %v806_v30, %v797_v23  ;;  %v704_v35 = vadd.s32 3, %v687_v19  ;;  %v878_v33 = vor.u32 8388608, %v877_v15 }
  0xf2   : > { %vm810_vm9 = vc.u32 %v785_v9, %v804_v22  ;;  %v880_v62 = vadd.s32 1, %v5491_v26  ;;  %v1029_v43 = vshrl.u32 %v1028_v18, 23  ;;  %v808_v41 = vmul.u32 %v6049_v21, %v754_v60 }
  0xf3   : > { %v681_v12 = vmul.f32 %v680_v38, %v678_v6  ;;  %v811_v34 = vadd.s32 1, %v807_v27  ;;  %v1025_v63 = vand.u32 2147483647, %v6055_v28  ;;  %v6144_v46 = vand.u32 3, %v704_v35 }
  0xf4   : > { %vm881_vm10 = vcmp.gt.s32.totalorder %v880_v62, 0  ;;  %v6146_v57 = vshll.u32 %v878_v33, 8  ;;  %v5494_v13 = vadd.s32 4294967169, %v1029_v43  ;;  %v6150_v21 = vadd.s32 %v804_v22, %v785_v9 }
  0xf5   : > { %v682_v44 = vxor.u32 2147483648, %v681_v12  ;;  %v812_v50 = vsel %vm810_vm9, %v811_v34, %v807_v27  ;;  %v882_v42 = vsel %vm881_vm10, %v880_v62, 0  ;;  %v6156_v2 = vand.u32 8388607, %v1025_v63 }
  0xf6   : > { %v813_v54 = vadd.s32 %v812_v50, %v808_v41  ;;  %v884_v56 = vand.u32 31, %v882_v42  ;;  %v6148_v24 = vshrl.u32 %v882_v42, 5  ;;  %v6160_v6 = vand.u32 65535, %v6146_v57 }
  0xf7   : > { %v683_v47 = vsel %vm562_vm2, %v682_v44, %v681_v12  ;;  %v6163_v38 = vshrl.u32 %v6146_v57, 16  ;;  %v6165_v48 = vadd.s32 1, %v5494_v13  ;;  %vm710_vm11 = vcmp.eq.s32.totalorder %v6144_v46, 2 }
  0xf8   : > { %v686_v31 = vsel %vm6099_vm6, %v5844_v45, %v683_v47  ;;  %v814_v37 = vadd.s32 536870912, %v813_v54  ;;  %v885_v59 = vsub.s32 32, %v884_v56  ;;  %vm902_vm12 = vcmp.lt.s32.totalorder %v6148_v24, 1 }
  0xf9   : > { %v688_v39 = vmul.f32 %v686_v31, %v686_v31  ;;  %vm707_vm13 = vcmp.eq.s32.totalorder %v6144_v46, 0  ;;  %v893_v12 = vshll.u32 %v5716_v58, %v884_v56  ;;  %vm706_vm14 = vcmp.lt.s32.totalorder %v6144_v46, 2 }
  0xfa   : > { %v6152_v4 = vshrl.u32 %v814_v37, 30  ;;  %v894_v5 = vshrl.u32 %v5717_v61, %v885_v59  ;;  %v888_v7 = vshrl.u32 %v5715_v55, %v885_v59  ;;  %v891_v36 = vshrl.u32 %v5716_v58, %v885_v59 }
  0xfb   : > { %v689_v32 = vmul.f32 -0.001358992, %v688_v39  ;;  %v696_v16 = vmul.f32 -0.00019511016, %v688_v39  ;;  %v897_v19 = vshrl.u32 %v5718_v1, %v885_v59  ;;  %v887_v30 = vshll.u32 %v5714_v52, %v884_v56 }
  0xfc   : > { %v816_v11 = vshll.u32 %v6152_v4, 30  ;;  %vm703_vm15 = vweird.f32 %v5844_v45  ;;  %v890_v15 = vshll.u32 %v5715_v55, %v884_v56  ;;  %v895_v18 = vor.u32 %v894_v5, %v893_v12 }
  0xfd   : > { %v690_v29 = vadd.f32 0.041655596, %v689_v32  ;;  %v697_v51 = vadd.f32 0.008332121, %v696_v16  ;;  %v896_v44 = vshll.u32 %v5717_v61, %v884_v56  ;;  %v900_v22 = vshrl.u32 %v5719_v3, %v885_v59 }
  0xfe   : > { %v6176_v23 = vsub.s32 %v813_v54, %v816_v11  ;;  %vm717_vm0 = vcmp.lt.s32.totalorder %v5890_v40, 0  ;;  %v889_v47 = vor.u32 %v888_v7, %v887_v30  ;;  %v892_v35 = vor.u32 %v891_v36, %v890_v15 }
  0xff   : > { %v691_v25 = vmul.f32 %v690_v29, %v688_v39  ;;  %v698_v17 = vmul.f32 %v697_v51, %v688_v39  ;;  %v898_v62 = vor.u32 %v897_v19, %v896_v44  ;;  %v899_v34 = vshll.u32 %v5718_v1, %v884_v56 }
 0x100   : > { %vm818_vm1 = vcmp.lt.s32.totalorder %v6176_v23, 0  ;;  %v819_v27 = vsub.s32 0, %v6176_v23  ;;  %vm905_vm2 = vcmp.lt.s32.totalorder %v6148_v24, 4  ;;  %vm6191_vm3 = vcmp.le.f32.partialorder %v715_v20, 0.7853982 }
 0x101   : > { %v692_v8 = vadd.f32 -0.4999988, %v691_v25  ;;  %v699_v10 = vadd.f32 -0.16666654, %v698_v17  ;;  %v886_v42 = vshrl.u32 %v5714_v52, %v885_v59  ;;  %v901_v32 = vor.u32 %v900_v22, %v899_v34 }
 0x102   : > { %v907_v16 = vsel %vm905_vm2, %v895_v18, 2102212464  ;;  %vm1036_vm4 = vcmp.gt.s32.totalorder %v6165_v48, 0  ;;  %v839_v54 = vsub.s32 4, %v6152_v4  ;;  %vm903_vm5 = vcmp.lt.s32.totalorder %v6148_v24, 2 }
 0x103   : > { %v693_v9 = vmul.f32 %v692_v8, %v688_v39  ;;  %v700_v14 = vmul.f32 %v699_v10, %v688_v39  ;;  %v820_v39 = vsel %vm818_vm1, %v819_v27, %v6176_v23  ;;  %vm904_vm6 = vcmp.lt.s32.totalorder %v6148_v24, 3 }
 0x104   : > { %v821_v50 = vclz %v820_v39  ;;  %v906_v13 = vsel %vm902_vm12, %v886_v42, %v889_v47  ;;  %v910_v29 = vsel %vm902_vm12, %v889_v47, %v892_v35  ;;  %v908_v37 = vsel %vm904_vm6, %v892_v35, %v907_v16 }
 0x105   : > { %v694_v26 = vadd.f32 1.0, %v693_v9  ;;  %v701_v60 = vadd.f32 1.0, %v700_v14  ;;  %v911_v59 = vsel %vm905_vm2, %v898_v62, 920167782  ;;  %v914_v25 = vsel %vm902_vm12, %v892_v35, %v895_v18 }
 0x106   : > { %v5489_v56 = vadd.s32 4294967294, %v821_v50  ;;  %v912_v5 = vsel %vm904_vm6, %v895_v18, %v911_v59  ;;  %v915_v8 = vsel %vm905_vm2, %v901_v32, 1326507024  ;;  %v6231_v19 = vsel %vm717_vm0, %v839_v54, %v6152_v4 }
 0x107   : > { %v702_v33 = vmul.f32 %v701_v60, %v686_v31  ;;  %v711_v43 = vxor.u32 2147483648, %v694_v26  ;;  %v913_v7 = vsel %vm903_vm5, %v910_v29, %v912_v5  ;;  %v916_v36 = vsel %vm904_vm6, %v898_v62, %v915_v8 }
 0x108   : > { %vm5490_vm7 = vcmp.lt.s32.totalorder %v5489_v56, 0  ;;  %v917_v9 = vsel %vm903_vm5, %v914_v25, %v916_v36  ;;  %v6238_v45 = vsel %vm903_vm5, %v906_v13, %v908_v37  ;;  %v944_v15 = vshrl.u32 %v913_v7, 16 }
 0x109   : > { %v708_v31 = vxor.u32 2147483648, %v702_v33  ;;  %v712_v20 = vsel %vm710_vm11, %v711_v43, %v702_v33  ;;  %v824_v11 = vsel %vm5490_vm7, 0, %v5489_v56  ;;  %v921_v14 = vand.u32 65535, %v917_v9 }
 0x10a   : > { %v825_v12 = vsub.s32 32, %v824_v11  ;;  %v829_v46 = vsub.s32 4294967266, %v824_v11  ;;  %v922_v30 = vshrl.u32 %v917_v9, 16  ;;  %v826_v18 = vshll.u32 %v6176_v23, %v824_v11 }
 0x10b   : > { %v709_v51 = vsel %vm707_vm13, %v694_v26, %v708_v31  ;;  %v943_v26 = vand.u32 65535, %v913_v7  ;;  %v842_v4 = vsel %vm6191_vm3, 0, %v6231_v19  ;;  %v925_v27 = vmul.u32 %v921_v14, %v6163_v38 }
 0x10c   : > { %v713_v17 = vsel %vm706_vm14, %v709_v51, %v712_v20  ;;  %v827_v44 = vshrl.u32 %v6150_v21, %v825_v12  ;;  %v830_v22 = vadd.s32 127, %v829_v46  ;;  %v924_v60 = vmul.u32 %v922_v30, %v6160_v6 }
 0x10d   : > { %v714_v10 = vsel %vm703_vm15, nan, %v713_v17  ;;  %v1033_v24 = vor.u32 8388608, %v6156_v2  ;;  %v946_v62 = vmul.u32 %v944_v15, %v6160_v6  ;;  %v963_v23 = vmul.u32 %v6146_v57, %v6238_v45  ;;  %v207_v45 = vpop.permute.xlu2 %206 }
 0x10e   : > { %5366 = vst [vmem:[%s6113_s4 + $0x8] sm:$0xff] %v714_v10  ;;  %v828_v47 = vor.u32 %v827_v44, %v826_v18  ;;  %v831_v35 = vshll.u32 %v830_v22, 23  ;;  %v923_v21 = vmul.u32 %v921_v14, %v6160_v6  ;;  %v926_v34 = vmul.u32 %v922_v30, %v6163_v38 }
 0x10f   : > { %v927_v33 = vshll.u32 %v924_v60, 16  ;;  %v1037_v43 = vsel %vm1036_vm4, %v6165_v48, 0  ;;  %v929_v50 = vshll.u32 %v925_v27, 16  ;;  %v945_v42 = vmul.u32 %v943_v26, %v6160_v6 }
 0x110   : > { %v832_v39 = vor.u32 4788187, %v831_v35  ;;  %v947_v32 = vmul.u32 %v943_v26, %v6163_v38  ;;  %v835_v16 = vcvt.s32.f32 %v828_v47  ;;  %v949_v54 = vshll.u32 %v946_v62, 16 }
 0x111   : > { %vm931_vm8 = vc.u32 %v923_v21, %v927_v33  ;;  %v933_v31 = vadd.s32 %v927_v33, %v923_v21  ;;  %v948_v13 = vmul.u32 %v944_v15, %v6163_v38  ;;  %v928_v59 = vshrl.u32 %v924_v60, 16 }
 0x112   : > { %v833_v20 = vand.u32 2147483647, %v832_v39  ;;  %v932_v56 = vsel %vm931_vm8, 1, %v5713_v0  ;;  %v951_v29 = vshll.u32 %v947_v32, 16  ;;  %vm953_vm10 = vc.u32 %v945_v42, %v949_v54 }
 0x113   : > { %v934_v51 = vadd.s32 %v932_v56, %v926_v34  ;;  %vm935_vm9 = vc.u32 %v933_v31, %v929_v50  ;;  %v955_v48 = vadd.s32 %v949_v54, %v945_v42  ;;  %v954_v25 = vsel %vm953_vm10, 1, %v5713_v0 }
 0x114   : > { %v836_v37 = vmul.f32 %v835_v16, %v833_v20  ;;  %v936_v6 = vsel %vm935_vm9, 1, %v5713_v0  ;;  %v930_v17 = vshrl.u32 %v925_v27, 16  ;;  %v956_v8 = vadd.s32 %v954_v25, %v948_v13 }
 0x115   : > { %v938_v5 = vadd.s32 %v936_v6, %v934_v51  ;;  %vm957_vm11 = vc.u32 %v955_v48, %v951_v29  ;;  %v6263_v7 = vshrl.u32 %v1037_v43, 5  ;;  %v1039_v38 = vand.u32 31, %v1037_v43 }
 0x116   : > { %v837_v10 = vxor.u32 2147483648, %v836_v37  ;;  %v958_v11 = vsel %vm957_vm11, 1, %v5713_v0  ;;  %v950_v12 = vshrl.u32 %v946_v62, 16  ;;  %v952_v46 = vshrl.u32 %v947_v32, 16 }
 0x117   : > { %v939_v36 = vadd.s32 %v938_v5, %v928_v59  ;;  %v960_v9 = vadd.s32 %v958_v11, %v956_v8  ;;  %v6267_v30 = vadd.s32 %v955_v48, %v951_v29  ;;  %v6269_v15 = vsub.s32 32, %v1039_v38 }
 0x118   : > { %v838_v14 = vsel %vm717_vm0, %v837_v10, %v836_v37  ;;  %v1042_v18 = vshll.u32 %v5714_v52, %v1039_v38  ;;  %v1045_v60 = vshll.u32 %v5715_v55, %v1039_v38  ;;  %vm1057_vm12 = vcmp.lt.s32.totalorder %v6263_v7, 1 }
 0x119   : > { %v841_v44 = vsel %vm6191_vm3, %v5890_v40, %v838_v14  ;;  %v6275_v22 = vadd.s32 %v939_v36, %v930_v17  ;;  %v961_v26 = vadd.s32 %v960_v9, %v950_v12  ;;  %v1043_v47 = vshrl.u32 %v5715_v55, %v6269_v15  ;;  %v6338_v14 = vld [vmem:[%s9600_s1] ss:$0 sm:$0xff] }
 0x11a   : > { %v843_v27 = vmul.f32 %v841_v44, %v841_v44  ;;  %v1046_v35 = vshrl.u32 %v5716_v58, %v6269_v15  ;;  %v1048_v21 = vshll.u32 %v5716_v58, %v1039_v38  ;;  %v1049_v34 = vshrl.u32 %v5717_v61, %v6269_v15 }
 0x11b   : > { %v962_v62 = vadd.s32 %v961_v26, %v952_v46  ;;  %vm1059_vm13 = vcmp.lt.s32.totalorder %v6263_v7, 3  ;;  %vm965_vm14 = vc.u32 %v6275_v22, %v6267_v30  ;;  %v6289_v39 = vor.u32 %v1043_v47, %v1042_v18 }
 0x11c   : > { %v844_v33 = vmul.f32 -0.001358992, %v843_v27  ;;  %v851_v43 = vmul.f32 -0.00019511016, %v843_v27  ;;  %v6291_v42 = vor.u32 %v1046_v35, %v1045_v60  ;;  %v1051_v32 = vshll.u32 %v5717_v61, %v1039_v38 }
 0x11d   : > { %v966_v50 = vadd.s32 1, %v962_v62  ;;  %v1052_v16 = vshrl.u32 %v5718_v1, %v6269_v15  ;;  %v1054_v20 = vshll.u32 %v5718_v1, %v1039_v38  ;;  %v1055_v56 = vshrl.u32 %v5719_v3, %v6269_v15 }
 0x11e   : > { %v845_v31 = vadd.f32 0.041655596, %v844_v33  ;;  %v852_v54 = vadd.f32 0.008332121, %v851_v43  ;;  %v6299_v29 = vor.u32 %v1049_v34, %v1048_v21  ;;  %vm1060_vm15 = vcmp.lt.s32.totalorder %v6263_v7, 4 }
 0x11f   : > { %v967_v13 = vsel %vm965_vm14, %v966_v50, %v962_v62  ;;  %v1053_v51 = vor.u32 %v1052_v16, %v1051_v32  ;;  %v1056_v6 = vor.u32 %v1055_v56, %v1054_v20  ;;  %v859_v25 = vadd.s32 3, %v842_v4 }
 0x120   : > { %v846_v48 = vmul.f32 %v845_v31, %v843_v27  ;;  %v853_v37 = vmul.f32 %v852_v54, %v843_v27  ;;  %v968_v59 = vadd.s32 %v967_v13, %v963_v23  ;;  %vm1058_vm0 = vcmp.lt.s32.totalorder %v6263_v7, 2  ;;  %v212_v7 = vpop.permute.xlu0 %211 }
 0x121   : > { %v1065_v17 = vsel %vm1057_vm12, %v6289_v39, %v6291_v42  ;;  %v1066_v5 = vsel %vm1060_vm15, %v1053_v51, 920167782  ;;  %v1069_v19 = vsel %vm1057_vm12, %v6291_v42, %v6299_v29  ;;  %v1070_v4 = vsel %vm1060_vm15, %v1056_v6, 1326507024 }
 0x122   : > { %v847_v8 = vadd.f32 -0.4999988, %v846_v48  ;;  %v854_v10 = vadd.f32 -0.16666654, %v853_v37  ;;  %v969_v57 = vadd.s32 536870912, %v968_v59  ;;  %v1067_v41 = vsel %vm1059_vm13, %v6299_v29, %v1066_v5 }
 0x123   : > { %v6327_v23 = vshll.u32 %v1033_v24, 8  ;;  %v1068_v12 = vsel %vm1058_vm0, %v1065_v17, %v1067_v41  ;;  %v860_v46 = vand.u32 3, %v859_v25  ;;  %v1071_v9 = vsel %vm1059_vm13, %v1053_v51, %v1070_v4 }
 0x124   : > { %v848_v11 = vmul.f32 %v847_v8, %v843_v27  ;;  %v855_v38 = vmul.f32 %v854_v10, %v843_v27  ;;  %v6329_v36 = vshrl.u32 %v969_v57, 30  ;;  %v345_v2 = vmul.f32 %v6338_v14, %v207_v45  ;;  %v6353_v10 = vld [vmem:[%s9600_s1 + $0x1] ss:$0 sm:$0xff] }
 0x125   : > { %v1072_v60 = vsel %vm1058_vm0, %v1069_v19, %v1071_v9  ;;  %v1074_v27 = vand.u32 65535, %v6327_v23  ;;  %v1075_v47 = vshrl.u32 %v6327_v23, 16  ;;  %v1099_v35 = vshrl.u32 %v1068_v12, 16 }
 0x126   : > { %v849_v24 = vadd.f32 1.0, %v848_v11  ;;  %v856_v18 = vadd.f32 1.0, %v855_v38  ;;  %v971_v26 = vshll.u32 %v6329_v36, 30  ;;  %vm858_vm1 = vweird.f32 %v5890_v40 }
 0x127   : > { %vm861_vm2 = vcmp.lt.s32.totalorder %v860_v46, 2  ;;  %v1076_v33 = vand.u32 65535, %v1072_v60  ;;  %v1077_v43 = vshrl.u32 %v1072_v60, 16  ;;  %v1098_v50 = vand.u32 65535, %v1068_v12 }
 0x128   : > { %v857_v62 = vmul.f32 %v856_v18, %v841_v44  ;;  %v866_v21 = vxor.u32 2147483648, %v849_v24  ;;  %v972_v34 = vsub.s32 %v968_v59, %v971_v26  ;;  %vm862_vm3 = vcmp.eq.s32.totalorder %v860_v46, 0 }
 0x129   : > { %vm865_vm5 = vcmp.eq.s32.totalorder %v860_v46, 2  ;;  %v1079_v31 = vmul.u32 %v1077_v43, %v1074_v27  ;;  %v1080_v54 = vmul.u32 %v1076_v33, %v1075_v47  ;;  %v1101_v20 = vmul.u32 %v1099_v35, %v1074_v27 }
 0x12a   : > { %v863_v32 = vxor.u32 2147483648, %v857_v62  ;;  %vm973_vm4 = vcmp.lt.s32.totalorder %v972_v34, 0  ;;  %v974_v16 = vsub.s32 0, %v972_v34  ;;  %v867_v13 = vsel %vm865_vm5, %v866_v21, %v857_v62 }
 0x12b   : > { %v1078_v51 = vmul.u32 %v1076_v33, %v1074_v27  ;;  %v1082_v59 = vshll.u32 %v1079_v31, 16  ;;  %v1102_v6 = vmul.u32 %v1098_v50, %v1075_v47  ;;  %v1081_v17 = vmul.u32 %v1077_v43, %v1075_v47 }
 0x12c   : > { %v864_v56 = vsel %vm862_vm3, %v849_v24, %v863_v32  ;;  %v975_v44 = vsel %vm973_vm4, %v974_v16, %v972_v34  ;;  %v1084_v5 = vshll.u32 %v1080_v54, 16  ;;  %v1100_v8 = vmul.u32 %v1098_v50, %v1074_v27 }
 0x12d   : > { %v868_v48 = vsel %vm861_vm2, %v864_v56, %v867_v13  ;;  %v976_v37 = vclz %v975_v44  ;;  %v6356_v57 = vadd.f32 %v6353_v10, %v345_v2  ;;  %v964_v45 = vadd.s32 %v6267_v30, %v6275_v22 }
 0x12e   : > { %v869_v25 = vsel %vm858_vm1, nan, %v868_v48  ;;  %v1041_v19 = vshrl.u32 %v5714_v52, %v6269_v15  ;;  %vm1086_vm6 = vc.u32 %v1078_v51, %v1082_v59  ;;  %v1088_v40 = vadd.s32 %v1082_v59, %v1078_v51 }
 0x12f   : > { %v5492_v41 = vadd.s32 4294967294, %v976_v37  ;;  %5367 = vst [vmem:[%s6113_s4 + $0x10] sm:$0xff] %v869_v25  ;;  %v1103_v4 = vmul.u32 %v1099_v35, %v1075_v47  ;;  %v1104_v11 = vshll.u32 %v1101_v20, 16  ;;  %v1083_v38 = vshrl.u32 %v1079_v31, 16 }
 0x130   : > { %v1087_v12 = vsel %vm1086_vm6, 1, %v5713_v0  ;;  %v1106_v46 = vshll.u32 %v1102_v6, 16  ;;  %vm1090_vm8 = vc.u32 %v1088_v40, %v1084_v5  ;;  %v1062_v15 = vsel %vm1060_vm15, %v6299_v29, 2102212464 }
 0x131   : > { %vm5493_vm7 = vcmp.lt.s32.totalorder %v5492_v41, 0  ;;  %v1089_v2 = vadd.s32 %v1087_v12, %v1081_v17  ;;  %vm1108_vm9 = vc.u32 %v1100_v8, %v1104_v11  ;;  %v1091_v22 = vsel %vm1090_vm8, 1, %v5713_v0 }
 0x132   : > { %v979_v9 = vsel %vm5493_vm7, 0, %v5492_v41  ;;  %v1085_v18 = vshrl.u32 %v1080_v54, 16  ;;  %v1109_v60 = vsel %vm1108_vm9, 1, %v5713_v0  ;;  %v1110_v27 = vadd.s32 %v1104_v11, %v1100_v8 }
 0x133   : > { %v980_v24 = vsub.s32 32, %v979_v9  ;;  %v984_v30 = vsub.s32 4294967266, %v979_v9  ;;  %v1093_v26 = vadd.s32 %v1091_v22, %v1089_v2  ;;  %v981_v47 = vshll.u32 %v972_v34, %v979_v9 }
 0x134   : > { %v1111_v21 = vadd.s32 %v1109_v60, %v1103_v4  ;;  %v1061_v33 = vsel %vm1057_vm12, %v1041_v19, %v6289_v39  ;;  %v1105_v50 = vshrl.u32 %v1101_v20, 16  ;;  %vm1112_vm10 = vc.u32 %v1110_v27, %v1106_v46 }
 0x135   : > { %v982_v35 = vshrl.u32 %v964_v45, %v980_v24  ;;  %v985_v62 = vadd.s32 127, %v984_v30  ;;  %v1094_v43 = vadd.s32 %v1093_v26, %v1083_v38  ;;  %v1063_v16 = vsel %vm1059_vm13, %v6291_v42, %v1062_v15 }
 0x136   : > { %v1113_v31 = vsel %vm1112_vm10, 1, %v5713_v0  ;;  %v994_v34 = vsub.s32 4, %v6329_v36  ;;  %v1107_v54 = vshrl.u32 %v1102_v6, 16  ;;  %v1183_v13 = vand.u32 2139095040, %v6356_v57 }
 0x137   : > { %v983_v32 = vor.u32 %v982_v35, %v981_v47  ;;  %v986_v29 = vshll.u32 %v985_v62, 23  ;;  %v1115_v56 = vadd.s32 %v1113_v31, %v1111_v21  ;;  %v1095_v51 = vadd.s32 %v1094_v43, %v1085_v18 }
 0x138   : > { %v1114_v39 = vadd.s32 %v1110_v27, %v1106_v46  ;;  %v1064_v20 = vsel %vm1058_vm0, %v1061_v33, %v1063_v16  ;;  %v1180_v37 = vand.u32 2147483647, %v6356_v57  ;;  %v1184_v59 = vshrl.u32 %v1183_v13, 23 }
 0x139   : > { %v987_v44 = vor.u32 4788187, %v986_v29  ;;  %v1116_v48 = vadd.s32 %v1115_v56, %v1105_v50  ;;  %vm872_vm11 = vcmp.lt.s32.totalorder %v6072_v49, 0  ;;  %v990_v25 = vcvt.s32.f32 %v983_v32 }
 0x13a   : > { %v995_v6 = vsel %vm872_vm11, %v994_v34, %v6329_v36  ;;  %v5497_v5 = vadd.s32 4294967169, %v1184_v59  ;;  %v1118_v45 = vmul.u32 %v6327_v23, %v1064_v20  ;;  %vm1120_vm12 = vc.u32 %v1095_v51, %v1114_v39 }
 0x13b   : > { %v988_v42 = vand.u32 2147483647, %v987_v44  ;;  %v1117_v17 = vadd.s32 %v1116_v48, %v1107_v54  ;;  %vm871_vm13 = vcmp.le.f32.partialorder %v870_v53, 0.7853982  ;;  %v1187_v19 = vand.u32 8388607, %v1180_v37 }
 0x13c   : > { %v1190_v40 = vadd.s32 1, %v5497_v5  ;;  %v997_v11 = vsel %vm871_vm13, 0, %v995_v6  ;;  %v346_v36 = vmul.f32 %v6338_v14, %v212_v7  ;;  %v6405_v50 = vadd.s32 %v1114_v39, %v1095_v51 }
 0x13d   : > { %v991_v8 = vmul.f32 %v990_v25, %v988_v42  ;;  %v1121_v41 = vadd.s32 1, %v1117_v17  ;;  %v1014_v2 = vadd.s32 3, %v997_v11  ;;  %v1188_v53 = vor.u32 8388608, %v1187_v19 }
 0x13e   : > { %vm1191_vm14 = vcmp.gt.s32.totalorder %v1190_v40, 0  ;;  %v6395_v18 = vadd.f32 %v6353_v10, %v346_v36  ;;  %vm1013_vm4 = vweird.f32 %v6072_v49  ;;  %vm1027_vm5 = vcmp.lt.s32.totalorder %v6055_v28, 0 }
 0x13f   : > { %v992_v4 = vxor.u32 2147483648, %v991_v8  ;;  %v1122_v38 = vsel %vm1120_vm12, %v1121_v41, %v1117_v17  ;;  %v1192_v46 = vsel %vm1191_vm14, %v1190_v40, 0  ;;  %v6399_v47 = vand.u32 3, %v1014_v2 }
 0x140   : > { %v1123_v23 = vadd.s32 %v1122_v38, %v1118_v45  ;;  %v1194_v24 = vand.u32 31, %v1192_v46  ;;  %v6403_v21 = vshll.u32 %v1188_v53, 8  ;;  %v6414_v44 = vshrl.u32 %v1192_v46, 5 }
 0x141   : > { %v993_v12 = vsel %vm872_vm11, %v992_v4, %v991_v8  ;;  %vm1020_vm15 = vcmp.eq.s32.totalorder %v6399_v47, 2  ;;  %vm1017_vm1 = vcmp.eq.s32.totalorder %v6399_v47, 0  ;;  %vm1016_vm2 = vcmp.lt.s32.totalorder %v6399_v47, 2 }
 0x142   : > { %v996_v9 = vsel %vm871_vm13, %v6072_v49, %v993_v12  ;;  %v1124_v15 = vadd.s32 536870912, %v1123_v23  ;;  %v1195_v22 = vsub.s32 32, %v1194_v24  ;;  %v1197_v35 = vshll.u32 %v5714_v52, %v1194_v24 }
 0x143   : > { %v998_v30 = vmul.f32 %v996_v9, %v996_v9  ;;  %v1200_v29 = vshll.u32 %v5715_v55, %v1194_v24  ;;  %v1206_v31 = vshll.u32 %v5717_v61, %v1194_v24  ;;  %v1203_v39 = vshll.u32 %v5716_v58, %v1194_v24 }
 0x144   : > { %v6397_v27 = vshrl.u32 %v1124_v15, 30  ;;  %v1198_v62 = vshrl.u32 %v5715_v55, %v1195_v22  ;;  %v1201_v16 = vshrl.u32 %v5716_v58, %v1195_v22  ;;  %v1207_v34 = vshrl.u32 %v5718_v1, %v1195_v22 }
 0x145   : > { %v999_v26 = vmul.f32 -0.001358992, %v998_v30  ;;  %v1006_v60 = vmul.f32 -0.00019511016, %v998_v30  ;;  %v1204_v20 = vshrl.u32 %v5717_v61, %v1195_v22  ;;  %v6422_v48 = vand.u32 65535, %v6403_v21 }
 0x146   : > { %v1126_v32 = vshll.u32 %v6397_v27, 30  ;;  %v6417_v51 = vor.u32 %v1198_v62, %v1197_v35  ;;  %v6427_v6 = vor.u32 %v1201_v16, %v1200_v29  ;;  %v1208_v17 = vor.u32 %v1207_v34, %v1206_v31 }
 0x147   : > { %v1000_v33 = vadd.f32 0.041655596, %v999_v26  ;;  %v1007_v43 = vadd.f32 0.008332121, %v1006_v60  ;;  %v1209_v5 = vshll.u32 %v5718_v1, %v1194_v24  ;;  %v1210_v8 = vshrl.u32 %v5719_v3, %v1195_v22 }
 0x148   : > { %v6412_v13 = vsub.s32 %v1123_v23, %v1126_v32  ;;  %vm1212_vm3 = vcmp.lt.s32.totalorder %v6414_v44, 1  ;;  %v1205_v40 = vor.u32 %v1204_v20, %v1203_v39  ;;  %vm1215_vm6 = vcmp.lt.s32.totalorder %v6414_v44, 4 }
 0x149   : > { %v1001_v54 = vmul.f32 %v1000_v33, %v998_v30  ;;  %v1008_v56 = vmul.f32 %v1007_v43, %v998_v30  ;;  %v1230_v4 = vshrl.u32 %v6403_v21, 16  ;;  %vm1214_vm7 = vcmp.lt.s32.totalorder %v6414_v44, 3 }
 0x14a   : > { %vm1128_vm0 = vcmp.lt.s32.totalorder %v6412_v13, 0  ;;  %v1129_v25 = vsub.s32 0, %v6412_v13  ;;  %v1335_v36 = vand.u32 2147483647, %v6395_v18  ;;  %v1211_v23 = vor.u32 %v1210_v8, %v1209_v5 }
 0x14b   : > { %v1002_v59 = vadd.f32 -0.4999988, %v1001_v54  ;;  %v1009_v42 = vadd.f32 -0.16666654, %v1008_v56  ;;  %vm1213_vm8 = vcmp.lt.s32.totalorder %v6414_v44, 2  ;;  %v1220_v46 = vsel %vm1212_vm3, %v6417_v51, %v6427_v6 }
 0x14c   : > { %v1130_v41 = vsel %vm1128_vm0, %v1129_v25, %v6412_v13  ;;  %vm6447_vm9 = vcmp.le.f32.partialorder %v1025_v63, 0.7853982  ;;  %v1221_v15 = vsel %vm1215_vm6, %v1208_v17, 920167782  ;;  %v1149_v26 = vsub.s32 4, %v6397_v27 }
 0x14d   : > { %v1003_v45 = vmul.f32 %v1002_v59, %v998_v30  ;;  %v1010_v7 = vmul.f32 %v1009_v42, %v998_v30  ;;  %v1131_v19 = vclz %v1130_v41  ;;  %v6452_v30 = vshrl.u32 %v5714_v52, %v1195_v22 }
 0x14e   : > { %v1222_v60 = vsel %vm1214_vm7, %v1205_v40, %v1221_v15  ;;  %v1225_v29 = vsel %vm1215_vm6, %v1211_v23, 1326507024  ;;  %v1150_v42 = vsel %vm1027_vm5, %v1149_v26, %v6397_v27  ;;  %v1217_v27 = vsel %vm1215_vm6, %v1205_v40, 2102212464 }
 0x14f   : > { %v1004_v11 = vadd.f32 1.0, %v1003_v45  ;;  %v1011_v38 = vadd.f32 1.0, %v1010_v7  ;;  %v5495_v12 = vadd.s32 4294967294, %v1131_v19  ;;  %v1223_v22 = vsel %vm1213_vm8, %v1220_v46, %v1222_v60 }
 0x150   : > { %v1226_v31 = vsel %vm1214_vm7, %v1208_v17, %v1225_v29  ;;  %v1253_v34 = vand.u32 65535, %v1223_v22  ;;  %v1254_v54 = vshrl.u32 %v1223_v22, 16  ;;  %v1342_v24 = vand.u32 8388607, %v1335_v36 }
 0x151   : > { %v1012_v2 = vmul.f32 %v1011_v38, %v996_v9  ;;  %v1021_v53 = vxor.u32 2147483648, %v1004_v11  ;;  %vm5496_vm10 = vcmp.lt.s32.totalorder %v5495_v12, 0  ;;  %v1224_v9 = vsel %vm1212_vm3, %v6427_v6, %v1205_v40 }
 0x152   : > { %v1134_v62 = vsel %vm5496_vm10, 0, %v5495_v12  ;;  %v1256_v47 = vmul.u32 %v1254_v54, %v6422_v48  ;;  %v1257_v45 = vmul.u32 %v1253_v34, %v1230_v4  ;;  %v1255_v49 = vmul.u32 %v1253_v34, %v6422_v48 }
 0x153   : > { %v1018_v63 = vxor.u32 2147483648, %v1012_v2  ;;  %v1022_v35 = vsel %vm1020_vm15, %v1021_v53, %v1012_v2  ;;  %v1135_v33 = vsub.s32 32, %v1134_v62  ;;  %v1136_v43 = vshll.u32 %v6412_v13, %v1134_v62 }
 0x154   : > { %v1139_v32 = vsub.s32 4294967266, %v1134_v62  ;;  %v1227_v13 = vsel %vm1213_vm8, %v1224_v9, %v1226_v31  ;;  %v1259_v38 = vshll.u32 %v1256_v47, 16  ;;  %v1258_v2 = vmul.u32 %v1254_v54, %v1230_v4 }
 0x155   : > { %v1019_v16 = vsel %vm1017_vm1, %v1004_v11, %v1018_v63  ;;  %v1137_v39 = vshrl.u32 %v6405_v50, %v1135_v33  ;;  %v1231_v25 = vand.u32 65535, %v1227_v13  ;;  %v1232_v17 = vshrl.u32 %v1227_v13, 16 }
 0x156   : > { %v1023_v56 = vsel %vm1016_vm2, %v1019_v16, %v1022_v35  ;;  %v1140_v20 = vadd.s32 127, %v1139_v32  ;;  %v1152_v11 = vsel %vm6447_vm9, 0, %v1150_v42  ;;  %v1261_v60 = vshll.u32 %v1257_v45, 16 }
 0x157   : > { %v1024_v59 = vsel %vm1013_vm4, nan, %v1023_v56  ;;  %v1138_v5 = vor.u32 %v1137_v39, %v1136_v43  ;;  %v1233_v50 = vmul.u32 %v1231_v25, %v6422_v48  ;;  %v1234_v7 = vmul.u32 %v1232_v17, %v6422_v48 }
 0x158   : > { %v1141_v8 = vshll.u32 %v1140_v20, 23  ;;  %5368 = vst [vmem:[%s6113_s4 + $0x18] sm:$0xff] %v1024_v59  ;;  %v1235_v41 = vmul.u32 %v1231_v25, %v1230_v4  ;;  %v1236_v12 = vmul.u32 %v1232_v17, %v1230_v4  ;;  %vm1263_vm12 = vc.u32 %v1255_v49, %v1259_v38 }
 0x159   : > { %v1237_v23 = vshll.u32 %v1234_v7, 16  ;;  %v1145_v15 = vcvt.s32.f32 %v1138_v5  ;;  %v1238_v26 = vshrl.u32 %v1234_v7, 16  ;;  %v1265_v48 = vadd.s32 %v1259_v38, %v1255_v49 }
 0x15a   : > { %v1142_v19 = vor.u32 4788187, %v1141_v8  ;;  %v1239_v46 = vshll.u32 %v1235_v41, 16  ;;  %v1260_v62 = vshrl.u32 %v1256_v47, 16  ;;  %v1264_v22 = vsel %vm1263_vm12, 1, %v5713_v0 }
 0x15b   : > { %vm1241_vm11 = vc.u32 %v1233_v50, %v1237_v23  ;;  %v1243_v9 = vadd.s32 %v1237_v23, %v1233_v50  ;;  %v1266_v33 = vadd.s32 %v1264_v22, %v1258_v2  ;;  %vm1267_vm14 = vc.u32 %v1265_v48, %v1261_v60  ;;  %v217_v50 = vpop.permute.xlu1 %216  ;;  %v222_v23 = vpop.permute.xlu2 %221 }
 0x15c   : > { %v1143_v53 = vand.u32 2147483647, %v1142_v19  ;;  %v1242_v35 = vsel %vm1241_vm11, 1, %v5713_v0  ;;  %v1240_v4 = vshrl.u32 %v1235_v41, 16  ;;  %v1268_v29 = vsel %vm1267_vm14, 1, %v5713_v0 }
 0x15d   : > { %v1244_v40 = vadd.s32 %v1242_v35, %v1236_v12  ;;  %vm1245_vm13 = vc.u32 %v1243_v9, %v1239_v46  ;;  %v1262_v31 = vshrl.u32 %v1257_v45, 16  ;;  %v1270_v34 = vadd.s32 %v1268_v29, %v1266_v33 }
 0x15e   : > { %v1146_v63 = vmul.f32 %v1145_v15, %v1143_v53  ;;  %v1246_v32 = vsel %vm1245_vm13, 1, %v5713_v0  ;;  %v1338_v54 = vand.u32 2139095040, %v6395_v18  ;;  %v1216_v39 = vsel %vm1212_vm3, %v6452_v30, %v6417_v51 }
 0x15f   : > { %v1248_v16 = vadd.s32 %v1246_v32, %v1244_v40  ;;  %v1218_v20 = vsel %vm1214_vm7, %v6427_v6, %v1217_v27  ;;  %v6506_v13 = vadd.s32 %v1265_v48, %v1261_v60  ;;  %v1271_v25 = vadd.s32 %v1270_v34, %v1260_v62 }
 0x160   : > { %v1147_v43 = vxor.u32 2147483648, %v1146_v63  ;;  %v1339_v17 = vshrl.u32 %v1338_v54, 23  ;;  %v1169_v8 = vadd.s32 3, %v1152_v11  ;;  %v1219_v47 = vsel %vm1213_vm8, %v1216_v39, %v1218_v20 }
 0x161   : > { %v1249_v42 = vadd.s32 %v1248_v16, %v1238_v26  ;;  %v1272_v51 = vadd.s32 %v1271_v25, %v1262_v31  ;;  %v1273_v11 = vmul.u32 %v6403_v21, %v1219_v47  ;;  %v347_v44 = vmul.f32 %v6338_v14, %v217_v50 }
 0x162   : > { %v1148_v56 = vsel %vm1027_vm5, %v1147_v43, %v1146_v63  ;;  %v5500_v30 = vadd.s32 4294967169, %v1339_v17  ;;  %v1170_v38 = vand.u32 3, %v1169_v8  ;;  %v1343_v26 = vor.u32 8388608, %v1342_v24 }
 0x163   : > { %v1151_v59 = vsel %vm6447_vm9, %v6055_v28, %v1148_v56  ;;  %v1250_v45 = vadd.s32 %v1249_v42, %v1240_v4  ;;  %v1276_v41 = vadd.s32 1, %v1272_v51  ;;  %v6519_v35 = vmul.f32 %v6338_v14, %v222_v23 }
 0x164   : > { %v1153_v5 = vmul.f32 %v1151_v59, %v1151_v59  ;;  %v1345_v49 = vadd.s32 1, %v5500_v30  ;;  %v6522_v21 = vadd.f32 %v6353_v10, %v347_v44  ;;  %vm1171_vm1 = vcmp.lt.s32.totalorder %v1170_v38, 2 }
 0x165   : > { %vm1275_vm15 = vc.u32 %v1250_v45, %v6506_v13  ;;  %vm1172_vm2 = vcmp.eq.s32.totalorder %v1170_v38, 0  ;;  %vm1168_vm3 = vweird.f32 %v6055_v28  ;;  %v6535_v32 = vshll.u32 %v1343_v26, 8 }
 0x166   : > { %v1154_v7 = vmul.f32 -0.001358992, %v1153_v5  ;;  %v1161_v6 = vmul.f32 -0.00019511016, %v1153_v5  ;;  %v1277_v12 = vsel %vm1275_vm15, %v1276_v41, %v1272_v51  ;;  %vm1346_vm0 = vcmp.gt.s32.totalorder %v1345_v49, 0 }
 0x167   : > { %v1278_v53 = vadd.s32 %v1277_v12, %v1273_v11  ;;  %v1347_v15 = vsel %vm1346_vm0, %v1345_v49, 0  ;;  %vm1175_vm5 = vcmp.eq.s32.totalorder %v1170_v38, 2  ;;  %v1274_v41 = vadd.s32 %v6506_v13, %v1250_v45 }
 0x168   : > { %v1155_v19 = vadd.f32 0.041655596, %v1154_v7  ;;  %v1162_v27 = vadd.f32 0.008332121, %v1161_v6  ;;  %v1349_v60 = vand.u32 31, %v1347_v15  ;;  %v6529_v43 = vshrl.u32 %v1347_v15, 5 }
 0x169   : > { %v1279_v63 = vadd.s32 536870912, %v1278_v53  ;;  %v1493_v24 = vand.u32 2139095040, %v6522_v21  ;;  %vm1182_vm6 = vcmp.lt.s32.totalorder %v6356_v57, 0  ;;  %v1384_v38 = vand.u32 65535, %v6535_v32 }
 0x16a   : > { %v1156_v46 = vmul.f32 %v1155_v19, %v1153_v5  ;;  %v1163_v2 = vmul.f32 %v1162_v27, %v1153_v5  ;;  %v6524_v62 = vsub.s32 32, %v1349_v60  ;;  %v1352_v34 = vshll.u32 %v5714_v52, %v1349_v60 }
 0x16b   : > { %v6526_v33 = vshrl.u32 %v1279_v63, 30  ;;  %v1355_v54 = vshll.u32 %v5715_v55, %v1349_v60  ;;  %v1361_v39 = vshll.u32 %v5717_v61, %v1349_v60  ;;  %v1364_v6 = vshll.u32 %v5718_v1, %v1349_v60 }
 0x16c   : > { %v1157_v9 = vadd.f32 -0.4999988, %v1156_v46  ;;  %v1164_v48 = vadd.f32 -0.16666654, %v1163_v2  ;;  %v1353_v4 = vshrl.u32 %v5715_v55, %v6524_v62  ;;  %v1356_v14 = vshrl.u32 %v5716_v58, %v6524_v62 }
 0x16d   : > { %v1281_v31 = vshll.u32 %v6526_v33, 30  ;;  %v1359_v56 = vshrl.u32 %v5717_v61, %v6524_v62  ;;  %v1362_v20 = vshrl.u32 %v5718_v1, %v6524_v62  ;;  %v1365_v30 = vshrl.u32 %v5719_v3, %v6524_v62 }
 0x16e   : > { %v1158_v22 = vmul.f32 %v1157_v9, %v1153_v5  ;;  %v1165_v40 = vmul.f32 %v1164_v48, %v1153_v5  ;;  %v1358_v5 = vshll.u32 %v5716_v58, %v1349_v60  ;;  %v1354_v8 = vor.u32 %v1353_v4, %v1352_v34 }
 0x16f   : > { %v1282_v17 = vsub.s32 %v1278_v53, %v1281_v31  ;;  %v6546_v47 = vor.u32 %v1356_v14, %v1355_v54  ;;  %v1363_v51 = vor.u32 %v1362_v20, %v1361_v39  ;;  %v1366_v11 = vor.u32 %v1365_v30, %v1364_v6 }
 0x170   : > { %v1159_v29 = vadd.f32 1.0, %v1158_v22  ;;  %v1166_v16 = vadd.f32 1.0, %v1165_v40  ;;  %vm1367_vm7 = vcmp.lt.s32.totalorder %v6529_v43, 1  ;;  %vm1370_vm8 = vcmp.lt.s32.totalorder %v6529_v43, 4 }
 0x171   : > { %vm1283_vm4 = vcmp.lt.s32.totalorder %v1282_v17, 0  ;;  %v1284_v7 = vsub.s32 0, %v1282_v17  ;;  %v1375_v45 = vsel %vm1367_vm7, %v1354_v8, %v6546_v47  ;;  %v1376_v23 = vsel %vm1370_vm8, %v1363_v51, 920167782 }
 0x172   : > { %v1167_v42 = vmul.f32 %v1166_v16, %v1151_v59  ;;  %v1176_v25 = vxor.u32 2147483648, %v1159_v29  ;;  %v1360_v59 = vor.u32 %v1359_v56, %v1358_v5  ;;  %vm1369_vm9 = vcmp.lt.s32.totalorder %v6529_v43, 3 }
 0x173   : > { %v1285_v27 = vsel %vm1283_vm4, %v1284_v7, %v1282_v17  ;;  %v1385_v2 = vshrl.u32 %v6535_v32, 16  ;;  %v1494_v53 = vshrl.u32 %v1493_v24, 23  ;;  %vm1368_vm10 = vcmp.lt.s32.totalorder %v6529_v43, 2 }
 0x174   : > { %v1173_v50 = vxor.u32 2147483648, %v1167_v42  ;;  %v1177_v19 = vsel %vm1175_vm5, %v1176_v25, %v1167_v42  ;;  %v1286_v12 = vclz %v1285_v27  ;;  %v1377_v28 = vsel %vm1369_vm9, %v1360_v59, %v1376_v23 }
 0x175   : > { %v1379_v15 = vsel %vm1367_vm7, %v6546_v47, %v1360_v59  ;;  %v1380_v26 = vsel %vm1370_vm8, %v1366_v11, 1326507024  ;;  %v1304_v60 = vsub.s32 4, %v6526_v33  ;;  %v1378_v9 = vsel %vm1368_vm10, %v1375_v45, %v1377_v28 }
 0x176   : > { %v1174_v49 = vsel %vm1172_vm2, %v1159_v29, %v1173_v50  ;;  %v5498_v46 = vadd.s32 4294967294, %v1286_v12  ;;  %v1381_v48 = vsel %vm1369_vm9, %v1363_v51, %v1380_v26  ;;  %v1408_v40 = vand.u32 65535, %v1378_v9 }
 0x177   : > { %v1178_v44 = vsel %vm1171_vm1, %v1174_v49, %v1177_v19  ;;  %v1382_v22 = vsel %vm1368_vm10, %v1379_v15, %v1381_v48  ;;  %v1409_v4 = vshrl.u32 %v1378_v9, 16  ;;  %v5503_v31 = vadd.s32 4294967169, %v1494_v53 }
 0x178   : > { %v1179_v13 = vsel %vm1168_vm3, nan, %v1178_v44  ;;  %vm5499_vm11 = vcmp.lt.s32.totalorder %v5498_v46, 0  ;;  %v1386_v16 = vand.u32 65535, %v1382_v22  ;;  %v1351_v54 = vshrl.u32 %v5714_v52, %v6524_v62 }
 0x179   : > { %5369 = vst [vmem:[%s6113_s4 + $0x20] sm:$0xff] %v1179_v13  ;;  %v1289_v63 = vsel %vm5499_vm11, 0, %v5498_v46  ;;  %v1387_v56 = vshrl.u32 %v1382_v22, 16  ;;  %v1411_v39 = vmul.u32 %v1409_v4, %v1384_v38  ;;  %v1412_v5 = vmul.u32 %v1408_v40, %v1385_v2 }
 0x17a   : > { %v1290_v14 = vsub.s32 32, %v1289_v63  ;;  %v1294_v29 = vsub.s32 4294967266, %v1289_v63  ;;  %v1291_v34 = vshll.u32 %v1282_v17, %v1289_v63  ;;  %v1390_v25 = vmul.u32 %v1386_v16, %v1385_v2 }
 0x17b   : > { %v1305_v51 = vsel %vm1182_vm6, %v1304_v60, %v6526_v33  ;;  %v1371_v30 = vsel %vm1367_vm7, %v1351_v54, %v1354_v8  ;;  %v1389_v50 = vmul.u32 %v1387_v56, %v1384_v38  ;;  %v1414_v7 = vshll.u32 %v1411_v39, 16 }
 0x17c   : > { %v1292_v20 = vshrl.u32 %v1274_v41, %v1290_v14  ;;  %v1295_v42 = vadd.s32 127, %v1294_v29  ;;  %v1372_v62 = vsel %vm1370_vm8, %v1360_v59, 2102212464  ;;  %v1410_v24 = vmul.u32 %v1408_v40, %v1384_v38 }
 0x17d   : > { %vm6595_vm12 = vcmp.le.f32.partialorder %v1180_v37, 0.7853982  ;;  %v1388_v49 = vmul.u32 %v1386_v16, %v1384_v38  ;;  %v1391_v19 = vmul.u32 %v1387_v56, %v1385_v2  ;;  %v1392_v33 = vshll.u32 %v1389_v50, 16 }
 0x17e   : > { %v1293_v6 = vor.u32 %v1292_v20, %v1291_v34  ;;  %v1296_v17 = vshll.u32 %v1295_v42, 23  ;;  %v1413_v27 = vmul.u32 %v1409_v4, %v1385_v2  ;;  %v1394_v8 = vshll.u32 %v1390_v25, 16 }
 0x17f   : > { %v1416_v44 = vshll.u32 %v1412_v5, 16  ;;  %vm1418_vm13 = vc.u32 %v1410_v24, %v1414_v7  ;;  %vm1396_vm14 = vc.u32 %v1388_v49, %v1392_v33  ;;  %v1398_v12 = vadd.s32 %v1392_v33, %v1388_v49 }
 0x180   : > { %v1297_v11 = vor.u32 4788187, %v1296_v17  ;;  %v1419_v13 = vsel %vm1418_vm13, 1, %v5713_v0  ;;  %v1420_v59 = vadd.s32 %v1414_v7, %v1410_v24  ;;  %v1300_v23 = vcvt.s32.f32 %v1293_v6 }
 0x181   : > { %v1397_v37 = vsel %vm1396_vm14, 1, %v5713_v0  ;;  %v1421_v46 = vadd.s32 %v1419_v13, %v1413_v27  ;;  %v1373_v38 = vsel %vm1369_vm9, %v6546_v47, %v1372_v62  ;;  %vm1400_vm15 = vc.u32 %v1398_v12, %v1394_v8 }
 0x182   : > { %v1298_v45 = vand.u32 2147483647, %v1297_v11  ;;  %v1399_v53 = vadd.s32 %v1397_v37, %v1391_v19  ;;  %vm1422_vm0 = vc.u32 %v1420_v59, %v1416_v44  ;;  %v1401_v28 = vsel %vm1400_vm15, 1, %v5713_v0 }
 0x183   : > { %v1423_v15 = vsel %vm1422_vm0, 1, %v5713_v0  ;;  %v1500_v26 = vadd.s32 1, %v5503_v31  ;;  %v1393_v60 = vshrl.u32 %v1389_v50, 16  ;;  %v1415_v48 = vshrl.u32 %v1411_v39, 16 }
 0x184   : > { %v1301_v2 = vmul.f32 %v1300_v23, %v1298_v45  ;;  %v1403_v9 = vadd.s32 %v1401_v28, %v1399_v53  ;;  %v1425_v63 = vadd.s32 %v1423_v15, %v1421_v46  ;;  %v1395_v40 = vshrl.u32 %v1390_v25, 16 }
 0x185   : > { %v1490_v4 = vand.u32 2147483647, %v6522_v21  ;;  %vm1501_vm1 = vcmp.gt.s32.totalorder %v1500_v26, 0  ;;  %v1417_v47 = vshrl.u32 %v1412_v5, 16  ;;  %v1307_v54 = vsel %vm6595_vm12, 0, %v1305_v51 }
 0x186   : > { %v1302_v22 = vxor.u32 2147483648, %v1301_v2  ;;  %v1404_v14 = vadd.s32 %v1403_v9, %v1393_v60  ;;  %v1426_v29 = vadd.s32 %v1425_v63, %v1415_v48  ;;  %v1502_v16 = vsel %vm1501_vm1, %v1500_v26, 0 }
 0x187   : > { %v1374_v31 = vsel %vm1368_vm10, %v1371_v30, %v1373_v38  ;;  %v1504_v56 = vand.u32 31, %v1502_v16  ;;  %v6618_v42 = vadd.s32 %v1420_v59, %v1416_v44  ;;  %v6622_v5 = vadd.f32 %v6353_v10, %v6519_v35 }
 0x188   : > { %v1303_v34 = vsel %vm1182_vm6, %v1302_v22, %v1301_v2  ;;  %v6616_v20 = vadd.s32 %v1404_v14, %v1395_v40  ;;  %v1427_v25 = vadd.s32 %v1426_v29, %v1417_v47  ;;  %v1497_v51 = vand.u32 8388607, %v1490_v4 }
 0x189   : > { %v1306_v39 = vsel %vm6595_vm12, %v6356_v57, %v1303_v34  ;;  %v6626_v43 = vsub.s32 32, %v1504_v56  ;;  %v1324_v30 = vadd.s32 3, %v1307_v54  ;;  %v1428_v7 = vmul.u32 %v6535_v32, %v1374_v31 }
 0x18a   : > { %v1308_v50 = vmul.f32 %v1306_v39, %v1306_v39  ;;  %vm1430_vm2 = vc.u32 %v6616_v20, %v6618_v42  ;;  %v1431_v6 = vadd.s32 1, %v1427_v25  ;;  %v6631_v24 = vshrl.u32 %v1502_v16, 5 }
 0x18b   : > { %v1507_v10 = vshll.u32 %v5714_v52, %v1504_v56  ;;  %v1508_v41 = vshrl.u32 %v5715_v55, %v6626_v43  ;;  %v1511_v49 = vshrl.u32 %v5716_v58, %v6626_v43  ;;  %v1514_v32 = vshrl.u32 %v5717_v61, %v6626_v43 }
 0x18c   : > { %v1309_v17 = vmul.f32 -0.001358992, %v1308_v50  ;;  %v1316_v62 = vmul.f32 -0.00019511016, %v1308_v50  ;;  %v1432_v35 = vsel %vm1430_vm2, %v1431_v6, %v1427_v25  ;;  %v1510_v11 = vshll.u32 %v5715_v55, %v1504_v56 }
 0x18d   : > { %v1433_v27 = vadd.s32 %v1432_v35, %v1428_v7  ;;  %v1513_v8 = vshll.u32 %v5716_v58, %v1504_v56  ;;  %v1516_v44 = vshll.u32 %v5717_v61, %v1504_v56  ;;  %v1517_v12 = vshrl.u32 %v5718_v1, %v6626_v43 }
 0x18e   : > { %v1310_v19 = vadd.f32 0.041655596, %v1309_v17  ;;  %v1317_v33 = vadd.f32 0.008332121, %v1316_v62  ;;  %v1519_v13 = vshll.u32 %v5718_v1, %v1504_v56  ;;  %v1520_v37 = vshrl.u32 %v5719_v3, %v6626_v43 }
 0x18f   : > { %v1434_v23 = vadd.s32 536870912, %v1433_v27  ;;  %v1509_v46 = vor.u32 %v1508_v41, %v1507_v10  ;;  %v6648_v38 = vor.u32 %v1511_v49, %v1510_v11  ;;  %v1515_v53 = vor.u32 %v1514_v32, %v1513_v8 }
 0x190   : > { %v1311_v59 = vmul.f32 %v1310_v19, %v1308_v50  ;;  %v1318_v45 = vmul.f32 %v1317_v33, %v1308_v50  ;;  %v1518_v2 = vor.u32 %v1517_v12, %v1516_v44  ;;  %v1521_v60 = vor.u32 %v1520_v37, %v1519_v13 }
 0x191   : > { %v6650_v26 = vshrl.u32 %v1434_v23, 30  ;;  %v1325_v9 = vand.u32 3, %v1324_v30  ;;  %v1498_v48 = vor.u32 8388608, %v1497_v51  ;;  %vm1522_vm3 = vcmp.lt.s32.totalorder %v6631_v24, 1 }
 0x192   : > { %v1312_v28 = vadd.f32 -0.4999988, %v1311_v59  ;;  %v1319_v15 = vadd.f32 -0.16666654, %v1318_v45  ;;  %v1648_v63 = vand.u32 2139095040, %v6622_v5  ;;  %vm1525_vm4 = vcmp.lt.s32.totalorder %v6631_v24, 4 }
 0x193   : > { %v1436_v14 = vshll.u32 %v6650_v26, 30  ;;  %vm1323_vm5 = vweird.f32 %v6356_v57  ;;  %vm1524_vm6 = vcmp.lt.s32.totalorder %v6631_v24, 3  ;;  %v1530_v47 = vsel %vm1522_vm3, %v1509_v46, %v6648_v38 }
 0x194   : > { %v1313_v22 = vmul.f32 %v1312_v28, %v1308_v50  ;;  %v1320_v40 = vmul.f32 %v1319_v15, %v1308_v50  ;;  %v1531_v29 = vsel %vm1525_vm4, %v1518_v2, 920167782  ;;  %v1535_v16 = vsel %vm1525_vm4, %v1521_v60, 1326507024 }
 0x195   : > { %v1437_v31 = vsub.s32 %v1433_v27, %v1436_v14  ;;  %v1534_v56 = vsel %vm1522_vm3, %v6648_v38, %v1515_v53  ;;  %vm1523_vm7 = vcmp.lt.s32.totalorder %v6631_v24, 2  ;;  %v1532_v25 = vsel %vm1524_vm6, %v1515_v53, %v1531_v29 }
 0x196   : > { %v1314_v34 = vadd.f32 1.0, %v1313_v22  ;;  %v1321_v54 = vadd.f32 1.0, %v1320_v40  ;;  %v1536_v50 = vsel %vm1524_vm6, %v1518_v2, %v1535_v16  ;;  %v6673_v51 = vshll.u32 %v1498_v48, 8 }
 0x197   : > { %vm1438_vm8 = vcmp.lt.s32.totalorder %v1437_v31, 0  ;;  %v1439_v6 = vsub.s32 0, %v1437_v31  ;;  %vm1326_vm9 = vcmp.lt.s32.totalorder %v1325_v9, 2  ;;  %vm1327_vm10 = vcmp.eq.s32.totalorder %v1325_v9, 0 }
 0x198   : > { %v1322_v30 = vmul.f32 %v1321_v54, %v1306_v39  ;;  %v1331_v7 = vxor.u32 2147483648, %v1314_v34  ;;  %v1533_v17 = vsel %vm1523_vm7, %v1530_v47, %v1532_v25  ;;  %v1537_v62 = vsel %vm1523_vm7, %v1534_v56, %v1536_v50 }
 0x199   : > { %vm1330_vm11 = vcmp.eq.s32.totalorder %v1325_v9, 2  ;;  %v1440_v35 = vsel %vm1438_vm8, %v1439_v6, %v1437_v31  ;;  %v1541_v41 = vand.u32 65535, %v1537_v62  ;;  %v1539_v32 = vand.u32 65535, %v6673_v51 }
 0x19a   : > { %v1328_v10 = vxor.u32 2147483648, %v1322_v30  ;;  %v1441_v49 = vclz %v1440_v35  ;;  %v1540_v39 = vshrl.u32 %v6673_v51, 16  ;;  %v1542_v19 = vshrl.u32 %v1537_v62, 16 }
 0x19b   : > { %v1332_v27 = vsel %vm1330_vm11, %v1331_v7, %v1322_v30  ;;  %v1506_v11 = vshrl.u32 %v5714_v52, %v6626_v43  ;;  %v1564_v8 = vshrl.u32 %v1533_v17, 16  ;;  %v1563_v59 = vand.u32 65535, %v1533_v17 }
 0x19c   : > { %v1329_v33 = vsel %vm1327_vm10, %v1314_v34, %v1328_v10  ;;  %v5501_v12 = vadd.s32 4294967294, %v1441_v49  ;;  %v1545_v13 = vmul.u32 %v1541_v41, %v1540_v39  ;;  %v1429_v23 = vadd.s32 %v6618_v42, %v6616_v20 }
 0x19d   : > { %v1333_v44 = vsel %vm1326_vm9, %v1329_v33, %v1332_v27  ;;  %v1544_v37 = vmul.u32 %v1542_v19, %v1539_v32  ;;  %v1649_v2 = vshrl.u32 %v1648_v63, 23  ;;  %v1526_v28 = vsel %vm1522_vm3, %v1506_v11, %v1509_v46 }
 0x19e   : > { %v1334_v45 = vsel %vm1323_vm5, nan, %v1333_v44  ;;  %vm5502_vm12 = vcmp.lt.s32.totalorder %v5501_v12, 0  ;;  %v1527_v43 = vsel %vm1525_vm4, %v1515_v53, 2102212464  ;;  %v1543_v15 = vmul.u32 %v1541_v41, %v1539_v32 }
 0x19f   : > { %5370 = vst [vmem:[%s6113_s4 + $0x28] sm:$0xff] %v1334_v45  ;;  %v1444_v60 = vsel %vm5502_vm12, 0, %v5501_v12  ;;  %v1546_v9 = vmul.u32 %v1542_v19, %v1540_v39  ;;  %v1547_v48 = vshll.u32 %v1544_v37, 16  ;;  %v1566_v22 = vmul.u32 %v1564_v8, %v1539_v32 }
 0x1a0   : > { %v1445_v57 = vsub.s32 32, %v1444_v60  ;;  %v1449_v40 = vsub.s32 4294967266, %v1444_v60  ;;  %v1549_v14 = vshll.u32 %v1545_v13, 16  ;;  %v1565_v47 = vmul.u32 %v1563_v59, %v1539_v32 }
 0x1a1   : > { %vm1551_vm13 = vc.u32 %v1543_v15, %v1547_v48  ;;  %v1553_v20 = vadd.s32 %v1547_v48, %v1543_v15  ;;  %v1567_v42 = vmul.u32 %v1563_v59, %v1540_v39  ;;  %v1569_v63 = vshll.u32 %v1566_v22, 16 }
 0x1a2   : > { %v1446_v29 = vshll.u32 %v1437_v31, %v1444_v60  ;;  %v1447_v16 = vshrl.u32 %v1429_v23, %v1445_v57  ;;  %v1450_v46 = vadd.s32 127, %v1449_v40  ;;  %v1552_v34 = vsel %vm1551_vm13, 1, %v5713_v0 }
 0x1a3   : > { %v1548_v53 = vshrl.u32 %v1544_v37, 16  ;;  %v1554_v54 = vadd.s32 %v1552_v34, %v1546_v9  ;;  %vm1555_vm14 = vc.u32 %v1553_v20, %v1549_v14  ;;  %v1568_v56 = vmul.u32 %v1564_v8, %v1540_v39 }
 0x1a4   : > { %v1448_v25 = vor.u32 %v1447_v16, %v1446_v29  ;;  %v1451_v50 = vshll.u32 %v1450_v46, 23  ;;  %v1556_v30 = vsel %vm1555_vm14, 1, %v5713_v0  ;;  %vm1573_vm15 = vc.u32 %v1565_v47, %v1569_v63 }
 0x1a5   : > { %v1558_v7 = vadd.s32 %v1556_v30, %v1554_v54  ;;  %v1571_v6 = vshll.u32 %v1567_v42, 16  ;;  %v1574_v17 = vsel %vm1573_vm15, 1, %v5713_v0  ;;  %v1575_v62 = vadd.s32 %v1569_v63, %v1565_v47 }
 0x1a6   : > { %v1452_v10 = vor.u32 4788187, %v1451_v50  ;;  %v1459_v31 = vsub.s32 4, %v6650_v26  ;;  %v1576_v35 = vadd.s32 %v1574_v17, %v1568_v56  ;;  %v5506_v41 = vadd.s32 4294967169, %v1649_v2 }
 0x1a7   : > { %v1528_v49 = vsel %vm1524_vm6, %v6648_v38, %v1527_v43  ;;  %v1550_v32 = vshrl.u32 %v1545_v13, 16  ;;  %v1559_v39 = vadd.s32 %v1558_v7, %v1548_v53  ;;  %vm1577_vm0 = vc.u32 %v1575_v62, %v1571_v6 }
 0x1a8   : > { %v1453_v19 = vand.u32 2147483647, %v1452_v10  ;;  %v1455_v33 = vcvt.s32.f32 %v1448_v25  ;;  %v1578_v27 = vsel %vm1577_vm0, 1, %v5713_v0  ;;  %v1655_v11 = vadd.s32 1, %v5506_v41 }
 0x1a9   : > { %v6701_v8 = vadd.s32 %v1559_v39, %v1550_v32  ;;  %v1570_v44 = vshrl.u32 %v1566_v22, 16  ;;  %v1580_v12 = vadd.s32 %v1578_v27, %v1576_v35  ;;  %v1645_v59 = vand.u32 2147483647, %v6622_v5 }
 0x1aa   : > { %vm1337_vm1 = vcmp.lt.s32.totalorder %v6395_v18, 0  ;;  %v1456_v45 = vmul.f32 %v1455_v33, %v1453_v19  ;;  %v1529_v38 = vsel %vm1523_vm7, %v1526_v28, %v1528_v49  ;;  %vm1656_vm2 = vcmp.gt.s32.totalorder %v1655_v11, 0 }
 0x1ab   : > { %v1572_v13 = vshrl.u32 %v1567_v42, 16  ;;  %v6707_v23 = vadd.s32 %v1575_v62, %v1571_v6  ;;  %v1581_v37 = vadd.s32 %v1580_v12, %v1570_v44  ;;  %v1657_v2 = vsel %vm1656_vm2, %v1655_v11, 0  ;;  %v232_v11 = vpop.permute.xlu1 %231  ;;  %v227_v44 = vpop.permute.xlu0 %226 }
 0x1ac   : > { %vm6711_vm3 = vcmp.le.f32.partialorder %v1335_v36, 0.7853982  ;;  %v1457_v15 = vxor.u32 2147483648, %v1456_v45  ;;  %v1460_v60 = vsel %vm1337_vm1, %v1459_v31, %v6650_v26  ;;  %v1659_v9 = vand.u32 31, %v1657_v2 }
 0x1ad   : > { %v1582_v24 = vadd.s32 %v1581_v37, %v1572_v13  ;;  %v1583_v28 = vmul.u32 %v6673_v51, %v1529_v38  ;;  %vm1585_vm4 = vc.u32 %v6701_v8, %v6707_v23  ;;  %v1652_v48 = vand.u32 8388607, %v1645_v59 }
 0x1ae   : > { %v1458_v36 = vsel %vm1337_vm1, %v1457_v15, %v1456_v45  ;;  %v6725_v22 = vshrl.u32 %v1657_v2, 5  ;;  %v6727_v57 = vsub.s32 32, %v1659_v9  ;;  %v1662_v40 = vshll.u32 %v5714_v52, %v1659_v9 }
 0x1af   : > { %v1461_v26 = vsel %vm6711_vm3, %v6395_v18, %v1458_v36  ;;  %v1586_v51 = vadd.s32 1, %v1582_v24  ;;  %v1665_v14 = vshll.u32 %v5715_v55, %v1659_v9  ;;  %v1671_v47 = vshll.u32 %v5717_v61, %v1659_v9 }
 0x1b0   : > { %v1463_v20 = vmul.f32 %v1461_v26, %v1461_v26  ;;  %v1663_v42 = vshrl.u32 %v5715_v55, %v6727_v57  ;;  %v1666_v63 = vshrl.u32 %v5716_v58, %v6727_v57  ;;  %v1668_v29 = vshll.u32 %v5716_v58, %v1659_v9 }
 0x1b1   : > { %v1587_v16 = vsel %vm1585_vm4, %v1586_v51, %v1582_v24  ;;  %v1669_v46 = vshrl.u32 %v5717_v61, %v6727_v57  ;;  %v1672_v34 = vshrl.u32 %v5718_v1, %v6727_v57  ;;  %v1674_v53 = vshll.u32 %v5718_v1, %v1659_v9 }
 0x1b2   : > { %v1464_v54 = vmul.f32 -0.001358992, %v1463_v20  ;;  %v1471_v56 = vmul.f32 -0.00019511016, %v1463_v20  ;;  %v1588_v25 = vadd.s32 %v1587_v16, %v1583_v28  ;;  %v1462_v50 = vsel %vm6711_vm3, 0, %v1460_v60 }
 0x1b3   : > { %v1653_v30 = vor.u32 8388608, %v1652_v48  ;;  %v1673_v7 = vor.u32 %v1672_v34, %v1671_v47  ;;  %v1675_v6 = vshrl.u32 %v5719_v3, %v6727_v57  ;;  %v6749_v31 = vor.u32 %v1663_v42, %v1662_v40  ;;  %v6784_v28 = vld [vmem:[%s9600_s1] ss:$0 sm:$0xff] }
 0x1b4   : > { %v1465_v17 = vadd.f32 0.041655596, %v1464_v54  ;;  %v1472_v62 = vadd.f32 0.008332121, %v1471_v56  ;;  %v1589_v10 = vadd.s32 536870912, %v1588_v25  ;;  %v6751_v35 = vor.u32 %v1666_v63, %v1665_v14 }
 0x1b5   : > { %v6753_v41 = vor.u32 %v1669_v46, %v1668_v29  ;;  %v1676_v49 = vor.u32 %v1675_v6, %v1674_v53  ;;  %vm1680_vm5 = vcmp.lt.s32.totalorder %v6725_v22, 4  ;;  %vm1677_vm6 = vcmp.lt.s32.totalorder %v6725_v22, 1  ;;  %v6804_v56 = vld [vmem:[%s9600_s1 + $0x1] ss:$0 sm:$0xff] }
 0x1b6   : > { %v1466_v32 = vmul.f32 %v1465_v17, %v1463_v20  ;;  %v1473_v39 = vmul.f32 %v1472_v62, %v1463_v20  ;;  %v6756_v19 = vshrl.u32 %v1589_v10, 30  ;;  %v1479_v33 = vadd.s32 3, %v1462_v50 }
 0x1b7   : > { %vm1679_vm7 = vcmp.lt.s32.totalorder %v6725_v22, 3  ;;  %v1686_v27 = vsel %vm1680_vm5, %v1673_v7, 920167782  ;;  %v6763_v13 = vshll.u32 %v1653_v30, 8  ;;  %vm1678_vm8 = vcmp.lt.s32.totalorder %v6725_v22, 2 }
 0x1b8   : > { %v1467_v12 = vadd.f32 -0.4999988, %v1466_v32  ;;  %v1474_v45 = vadd.f32 -0.16666654, %v1473_v39  ;;  %v1591_v38 = vshll.u32 %v6756_v19, 30  ;;  %v1685_v37 = vsel %vm1677_vm6, %v6749_v31, %v6751_v35 }
 0x1b9   : > { %v1689_v2 = vsel %vm1677_vm6, %v6751_v35, %v6753_v41  ;;  %v1690_v43 = vsel %vm1680_vm5, %v1676_v49, 1326507024  ;;  %v1687_v24 = vsel %vm1679_vm7, %v6753_v41, %v1686_v27  ;;  %v349_v48 = vmul.f32 %v6784_v28, %v227_v44 }
 0x1ba   : > { %v1468_v15 = vmul.f32 %v1467_v12, %v1463_v20  ;;  %v1475_v60 = vmul.f32 %v1474_v45, %v1463_v20  ;;  %v6776_v9 = vsub.s32 %v1588_v25, %v1591_v38  ;;  %v6788_v36 = vmul.f32 %v6784_v28, %v232_v11 }
 0x1bb   : > { %v1480_v40 = vand.u32 3, %v1479_v33  ;;  %v1691_v51 = vsel %vm1679_vm7, %v1673_v7, %v1690_v43  ;;  %v1688_v42 = vsel %vm1678_vm8, %v1685_v37, %v1687_v24  ;;  %v1694_v29 = vand.u32 65535, %v6763_v13 }
 0x1bc   : > { %v1469_v14 = vadd.f32 1.0, %v1468_v15  ;;  %v1476_v47 = vadd.f32 1.0, %v1475_v60  ;;  %vm1593_vm9 = vcmp.lt.s32.totalorder %v6776_v9, 0  ;;  %v1594_v20 = vsub.s32 0, %v6776_v9 }
 0x1bd   : > { %v1692_v63 = vsel %vm1678_vm8, %v1689_v2, %v1691_v51  ;;  %v1695_v16 = vshrl.u32 %v6763_v13, 16  ;;  %v6807_v25 = vadd.f32 %v6804_v56, %v349_v48  ;;  %vm1478_vm10 = vweird.f32 %v6395_v18 }
 0x1be   : > { %v1477_v46 = vmul.f32 %v1476_v47, %v1461_v26  ;;  %v1486_v34 = vxor.u32 2147483648, %v1469_v14  ;;  %v1595_v53 = vsel %vm1593_vm9, %v1594_v20, %v6776_v9  ;;  %v1696_v54 = vand.u32 65535, %v1692_v63 }
 0x1bf   : > { %v1596_v50 = vclz %v1595_v53  ;;  %v1697_v30 = vshrl.u32 %v1692_v63, 16  ;;  %vm1481_vm11 = vcmp.lt.s32.totalorder %v1480_v40, 2  ;;  %vm1482_vm12 = vcmp.eq.s32.totalorder %v1480_v40, 0 }
 0x1c0   : > { %v1483_v7 = vxor.u32 2147483648, %v1477_v46  ;;  %v6810_v26 = vmul.u32 %v1696_v54, %v1695_v16  ;;  %vm1485_vm13 = vcmp.eq.s32.totalorder %v1480_v40, 2  ;;  %v1718_v17 = vand.u32 65535, %v1688_v42 }
 0x1c1   : > { %v5504_v6 = vadd.s32 4294967294, %v1596_v50  ;;  %v1719_v62 = vshrl.u32 %v1688_v42, 16  ;;  %v1487_v49 = vsel %vm1485_vm13, %v1486_v34, %v1477_v46  ;;  %v1698_v32 = vmul.u32 %v1696_v54, %v1694_v29 }
 0x1c2   : > { %v1484_v10 = vsel %vm1482_vm12, %v1469_v14, %v1483_v7  ;;  %v1699_v39 = vmul.u32 %v1697_v30, %v1694_v29  ;;  %v1584_v27 = vadd.s32 %v6707_v23, %v6701_v8  ;;  %v1701_v11 = vmul.u32 %v1697_v30, %v1695_v16 }
 0x1c3   : > { %v1488_v33 = vsel %vm1481_vm11, %v1484_v10, %v1487_v49  ;;  %vm5505_vm14 = vcmp.lt.s32.totalorder %v5504_v6, 0  ;;  %v1704_v38 = vshll.u32 %v6810_v26, 16  ;;  %v1720_v43 = vmul.u32 %v1718_v17, %v1694_v29 }
 0x1c4   : > { %v1489_v44 = vsel %vm1478_vm10, nan, %v1488_v33  ;;  %v1599_v12 = vsel %vm5505_vm14, 0, %v5504_v6  ;;  %v1702_v45 = vshll.u32 %v1699_v39, 16  ;;  %v1721_v15 = vmul.u32 %v1719_v62, %v1694_v29 }
 0x1c5   : > { %v1600_v37 = vsub.s32 32, %v1599_v12  ;;  %v1604_v2 = vsub.s32 4294967266, %v1599_v12  ;;  %5371 = vst [vmem:[%s6113_s4 + $0x30] sm:$0xff] %v1489_v44  ;;  %vm1492_vm15 = vcmp.lt.s32.totalorder %v6522_v21, 0  ;;  %v1601_v60 = vshll.u32 %v6776_v9, %v1599_v12 }
 0x1c6   : > { %vm1706_vm0 = vc.u32 %v1698_v32, %v1702_v45  ;;  %v1708_v8 = vadd.s32 %v1702_v45, %v1698_v32  ;;  %v1722_v23 = vmul.u32 %v1718_v17, %v1695_v16  ;;  %v1724_v40 = vshll.u32 %v1721_v15, 16 }
 0x1c7   : > { %v1602_v24 = vshrl.u32 %v1584_v27, %v1600_v37  ;;  %v1605_v48 = vadd.s32 127, %v1604_v2  ;;  %v1707_v18 = vsel %vm1706_vm0, 1, %v5713_v0  ;;  %v1723_v14 = vmul.u32 %v1719_v62, %v1695_v16 }
 0x1c8   : > { %v1709_v51 = vadd.s32 %v1707_v18, %v1701_v11  ;;  %vm1710_vm1 = vc.u32 %v1708_v8, %v1704_v38  ;;  %v1726_v47 = vshll.u32 %v1722_v23, 16  ;;  %v1661_v63 = vshrl.u32 %v5714_v52, %v6727_v57 }
 0x1c9   : > { %v1603_v20 = vor.u32 %v1602_v24, %v1601_v60  ;;  %v1606_v42 = vshll.u32 %v1605_v48, 23  ;;  %v1711_v29 = vsel %vm1710_vm1, 1, %v5713_v0  ;;  %v1703_v9 = vshrl.u32 %v1699_v39, 16 }
 0x1ca   : > { %v1713_v46 = vadd.s32 %v1711_v29, %v1709_v51  ;;  %vm1728_vm2 = vc.u32 %v1720_v43, %v1724_v40  ;;  %v1730_v34 = vadd.s32 %v1724_v40, %v1720_v43  ;;  %v1614_v54 = vsub.s32 4, %v6756_v19 }
 0x1cb   : > { %v1607_v53 = vor.u32 4788187, %v1606_v42  ;;  %v1682_v50 = vsel %vm1680_vm5, %v6753_v41, 2102212464  ;;  %v1729_v16 = vsel %vm1728_vm2, 1, %v5713_v0  ;;  %v1610_v17 = vcvt.s32.f32 %v1603_v20 }
 0x1cc   : > { %v1714_v30 = vadd.s32 %v1713_v46, %v1703_v9  ;;  %v1731_v7 = vadd.s32 %v1729_v16, %v1723_v14  ;;  %vm1732_vm3 = vc.u32 %v1730_v34, %v1726_v47  ;;  %v1800_v57 = vand.u32 2147483647, %v6807_v25 }
 0x1cd   : > { %v1608_v6 = vand.u32 2147483647, %v1607_v53  ;;  %v1705_v62 = vshrl.u32 %v6810_v26, 16  ;;  %v1733_v10 = vsel %vm1732_vm3, 1, %v5713_v0  ;;  %v1681_v49 = vsel %vm1677_vm6, %v1661_v63, %v6749_v31 }
 0x1ce   : > { %v1725_v32 = vshrl.u32 %v1721_v15, 16  ;;  %v1735_v39 = vadd.s32 %v1733_v10, %v1731_v7  ;;  %v1803_v41 = vand.u32 2139095040, %v6807_v25  ;;  %v1615_v27 = vsel %vm1492_vm15, %v1614_v54, %v6756_v19  ;;  %v237_v15 = vpop.permute.xlu2 %236 }
 0x1cf   : > { %v1611_v33 = vmul.f32 %v1610_v17, %v1608_v6  ;;  %v1683_v11 = vsel %vm1679_vm7, %v6751_v35, %v1682_v50  ;;  %v1715_v26 = vadd.s32 %v1714_v30, %v1705_v62  ;;  %v1727_v44 = vshrl.u32 %v1722_v23, 16 }
 0x1d0   : > { %v1736_v12 = vadd.s32 %v1735_v39, %v1725_v32  ;;  %v1804_v45 = vshrl.u32 %v1803_v41, 23  ;;  %v1807_v31 = vand.u32 8388607, %v1800_v57  ;;  %v1734_v37 = vadd.s32 %v1730_v34, %v1726_v47 }
 0x1d1   : > { %v1612_v38 = vxor.u32 2147483648, %v1611_v33  ;;  %vm6846_vm4 = vcmp.le.f32.partialorder %v1490_v4, 0.7853982  ;;  %v1684_v19 = vsel %vm1678_vm8, %v1681_v49, %v1683_v11  ;;  %v6854_v60 = vadd.f32 %v6804_v56, %v6788_v36 }
 0x1d2   : > { %v1737_v43 = vadd.s32 %v1736_v12, %v1727_v44  ;;  %v5509_v35 = vadd.s32 4294967169, %v1804_v45  ;;  %v1617_v23 = vsel %vm6846_vm4, 0, %v1615_v27  ;;  %vm1740_vm5 = vc.u32 %v1715_v26, %v1734_v37 }
 0x1d3   : > { %v1613_v8 = vsel %vm1492_vm15, %v1612_v38, %v1611_v33  ;;  %v1808_v24 = vor.u32 8388608, %v1807_v31  ;;  %v1738_v40 = vmul.u32 %v6763_v13, %v1684_v19  ;;  %v351_v36 = vmul.f32 %v6784_v28, %v237_v15 }
 0x1d4   : > { %v1616_v4 = vsel %vm6846_vm4, %v6522_v21, %v1613_v8  ;;  %v1741_v22 = vadd.s32 1, %v1737_v43  ;;  %v1810_v48 = vadd.s32 1, %v5509_v35  ;;  %v1634_v51 = vadd.s32 3, %v1617_v23 }
 0x1d5   : > { %v1618_v18 = vmul.f32 %v1616_v4, %v1616_v4  ;;  %v6865_v9 = vshll.u32 %v1808_v24, 8  ;;  %v1955_v46 = vand.u32 2147483647, %v6854_v60  ;;  %v1958_v34 = vand.u32 2139095040, %v6854_v60 }
 0x1d6   : > { %v1742_v14 = vsel %vm1740_vm5, %v1741_v22, %v1737_v43  ;;  %vm1811_vm6 = vcmp.gt.s32.totalorder %v1810_v48, 0  ;;  %v6870_v13 = vadd.f32 %v6804_v56, %v351_v36  ;;  %v1635_v16 = vand.u32 3, %v1634_v51 }
 0x1d7   : > { %v1619_v47 = vmul.f32 -0.001358992, %v1618_v18  ;;  %v1626_v20 = vmul.f32 -0.00019511016, %v1618_v18  ;;  %v1743_v42 = vadd.s32 %v1742_v14, %v1738_v40  ;;  %v1812_v63 = vsel %vm1811_vm6, %v1810_v48, 0 }
 0x1d8   : > { %v1814_v29 = vand.u32 31, %v1812_v63  ;;  %v6872_v17 = vadd.s32 %v1734_v37, %v1715_v26  ;;  %vm1647_vm7 = vcmp.lt.s32.totalorder %v6622_v5, 0  ;;  %v6876_v10 = vand.u32 65535, %v6865_v9 }
 0x1d9   : > { %v1620_v53 = vadd.f32 0.041655596, %v1619_v47  ;;  %v1627_v54 = vadd.f32 0.008332121, %v1626_v20  ;;  %v1744_v50 = vadd.s32 536870912, %v1743_v42  ;;  %v6879_v49 = vshrl.u32 %v6865_v9, 16 }
 0x1da   : > { %v1815_v30 = vsub.s32 32, %v1814_v29  ;;  %v1959_v32 = vshrl.u32 %v1958_v34, 23  ;;  %v6883_v39 = vand.u32 8388607, %v1955_v46  ;;  %v6885_v11 = vshrl.u32 %v1812_v63, 5 }
 0x1db   : > { %v1621_v7 = vmul.f32 %v1620_v53, %v1618_v18  ;;  %v1628_v6 = vmul.f32 %v1627_v54, %v1618_v18  ;;  %v1745_v62 = vshrl.u32 %v1744_v50, 30  ;;  %vm1637_vm8 = vcmp.eq.s32.totalorder %v1635_v16, 0 }
 0x1dc   : > { %vm1640_vm9 = vcmp.eq.s32.totalorder %v1635_v16, 2  ;;  %v1817_v26 = vshll.u32 %v5714_v52, %v1814_v29  ;;  %v1818_v44 = vshrl.u32 %v5715_v55, %v1815_v30  ;;  %v1821_v12 = vshrl.u32 %v5716_v58, %v1815_v30 }
 0x1dd   : > { %v1622_v41 = vadd.f32 -0.4999988, %v1621_v7  ;;  %v1629_v33 = vadd.f32 -0.16666654, %v1628_v6  ;;  %v1746_v27 = vshll.u32 %v1745_v62, 30  ;;  %v1827_v45 = vshrl.u32 %v5718_v1, %v1815_v30 }
 0x1de   : > { %vm1636_vm10 = vcmp.lt.s32.totalorder %v1635_v16, 2  ;;  %v1820_v2 = vshll.u32 %v5715_v55, %v1814_v29  ;;  %vm1633_vm11 = vweird.f32 %v6522_v21  ;;  %v1769_v19 = vsub.s32 4, %v1745_v62 }
 0x1df   : > { %v1623_v31 = vmul.f32 %v1622_v41, %v1618_v18  ;;  %v1630_v38 = vmul.f32 %v1629_v33, %v1618_v18  ;;  %v1747_v37 = vsub.s32 %v1743_v42, %v1746_v27  ;;  %v1824_v43 = vshrl.u32 %v5717_v61, %v1815_v30 }
 0x1e0   : > { %v1826_v35 = vshll.u32 %v5717_v61, %v1814_v29  ;;  %v1830_v15 = vshrl.u32 %v5719_v3, %v1815_v30  ;;  %v1819_v24 = vor.u32 %v1818_v44, %v1817_v26  ;;  %v1822_v48 = vor.u32 %v1821_v12, %v1820_v2 }
 0x1e1   : > { %v1624_v8 = vadd.f32 1.0, %v1623_v31  ;;  %v1631_v23 = vadd.f32 1.0, %v1630_v38  ;;  %vm1748_vm12 = vcmp.lt.s32.totalorder %v1747_v37, 0  ;;  %v1749_v22 = vsub.s32 0, %v1747_v37 }
 0x1e2   : > { %v1823_v18 = vshll.u32 %v5716_v58, %v1814_v29  ;;  %v1828_v40 = vor.u32 %v1827_v45, %v1826_v35  ;;  %v1829_v47 = vshll.u32 %v5718_v1, %v1814_v29  ;;  %vm6900_vm13 = vcmp.le.f32.partialorder %v1645_v59, 0.7853982 }
 0x1e3   : > { %v1632_v36 = vmul.f32 %v1631_v23, %v1616_v4  ;;  %v1641_v51 = vxor.u32 2147483648, %v1624_v8  ;;  %v1750_v14 = vsel %vm1748_vm12, %v1749_v22, %v1747_v37  ;;  %v1816_v63 = vshrl.u32 %v5714_v52, %v1815_v30 }
 0x1e4   : > { %v1751_v42 = vclz %v1750_v14  ;;  %v1825_v34 = vor.u32 %v1824_v43, %v1823_v18  ;;  %v5512_v53 = vadd.s32 4294967169, %v1959_v32  ;;  %v6907_v50 = vsel %vm1647_vm7, %v1769_v19, %v1745_v62 }
 0x1e5   : > { %v1638_v54 = vxor.u32 2147483648, %v1632_v36  ;;  %v1831_v4 = vor.u32 %v1830_v15, %v1829_v47  ;;  %vm1832_vm14 = vcmp.lt.s32.totalorder %v6885_v11, 1  ;;  %vm1833_vm15 = vcmp.lt.s32.totalorder %v6885_v11, 2 }
 0x1e6   : > { %v5507_v29 = vadd.s32 4294967294, %v1751_v42  ;;  %vm1835_vm0 = vcmp.lt.s32.totalorder %v6885_v11, 4  ;;  %v1840_v59 = vsel %vm1832_vm14, %v1819_v24, %v1822_v48  ;;  %v1642_v7 = vsel %vm1640_vm9, %v1641_v51, %v1632_v36 }
 0x1e7   : > { %v1639_v30 = vsel %vm1637_vm8, %v1624_v8, %v1638_v54  ;;  %vm1834_vm1 = vcmp.lt.s32.totalorder %v6885_v11, 3  ;;  %v1841_v6 = vsel %vm1835_vm0, %v1828_v40, 920167782  ;;  %v1844_v41 = vsel %vm1832_vm14, %v1822_v48, %v1825_v34 }
 0x1e8   : > { %v1643_v62 = vsel %vm1636_vm10, %v1639_v30, %v1642_v7  ;;  %vm5508_vm2 = vcmp.lt.s32.totalorder %v5507_v29, 0  ;;  %v1842_v32 = vsel %vm1834_vm1, %v1825_v34, %v1841_v6  ;;  %v1845_v44 = vsel %vm1835_vm0, %v1831_v4, 1326507024 }
 0x1e9   : > { %v1644_v33 = vsel %vm1633_vm11, nan, %v1643_v62  ;;  %v1754_v27 = vsel %vm5508_vm2, 0, %v5507_v29  ;;  %v1843_v26 = vsel %vm1833_vm15, %v1840_v59, %v1842_v32  ;;  %v1837_v45 = vsel %vm1835_vm0, %v1825_v34, 2102212464 }
 0x1ea   : > { %v1755_v12 = vsub.s32 32, %v1754_v27  ;;  %v1759_v16 = vsub.s32 4294967266, %v1754_v27  ;;  %v1846_v31 = vsel %vm1834_vm1, %v1828_v40, %v1845_v44  ;;  %5372 = vst [vmem:[%s6113_s4 + $0x38] sm:$0xff] %v1644_v33  ;;  %v1756_v38 = vshll.u32 %v1747_v37, %v1754_v27 }
 0x1eb   : > { %v1847_v21 = vsel %vm1833_vm15, %v1844_v41, %v1846_v31  ;;  %v1873_v2 = vand.u32 65535, %v1843_v26  ;;  %v1874_v19 = vshrl.u32 %v1843_v26, 16  ;;  %v1772_v23 = vsel %vm6900_vm13, 0, %v6907_v50 }
 0x1ec   : > { %v1757_v43 = vshrl.u32 %v6872_v17, %v1755_v12  ;;  %v1760_v35 = vadd.s32 127, %v1759_v16  ;;  %v1851_v15 = vand.u32 65535, %v1847_v21  ;;  %v1852_v8 = vshrl.u32 %v1847_v21, 16 }
 0x1ed   : > { %v1876_v22 = vmul.u32 %v1874_v19, %v6876_v10  ;;  %v1877_v18 = vmul.u32 %v1873_v2, %v6879_v49  ;;  %v1965_v40 = vadd.s32 1, %v5512_v53  ;;  %v1836_v51 = vsel %vm1832_vm14, %v1816_v63, %v1819_v24 }
 0x1ee   : > { %v1758_v37 = vor.u32 %v1757_v43, %v1756_v38  ;;  %v1761_v36 = vshll.u32 %v1760_v35, 23  ;;  %v1854_v14 = vmul.u32 %v1852_v8, %v6876_v10  ;;  %v1838_v17 = vsel %vm1834_vm1, %v1822_v48, %v1837_v45 }
 0x1ef   : > { %v1855_v47 = vmul.u32 %v1851_v15, %v6879_v49  ;;  %v1875_v42 = vmul.u32 %v1873_v2, %v6876_v10  ;;  %v1879_v34 = vshll.u32 %v1876_v22, 16  ;;  %v1853_v50 = vmul.u32 %v1851_v15, %v6876_v10 }
 0x1f0   : > { %v1762_v54 = vor.u32 4788187, %v1761_v36  ;;  %v1857_v4 = vshll.u32 %v1854_v14, 16  ;;  %v1878_v53 = vmul.u32 %v1874_v19, %v6879_v49  ;;  %v1765_v29 = vcvt.s32.f32 %v1758_v37 }
 0x1f1   : > { %v1856_v59 = vmul.u32 %v1852_v8, %v6879_v49  ;;  %v1859_v24 = vshll.u32 %v1855_v47, 16  ;;  %v1881_v63 = vshll.u32 %v1877_v18, 16  ;;  %vm1883_vm4 = vc.u32 %v1875_v42, %v1879_v34 }
 0x1f2   : > { %v1763_v30 = vand.u32 2147483647, %v1762_v54  ;;  %vm1861_vm3 = vc.u32 %v1853_v50, %v1857_v4  ;;  %v1863_v7 = vadd.s32 %v1857_v4, %v1853_v50  ;;  %v1884_v6 = vsel %vm1883_vm4, 1, %v5713_v0 }
 0x1f3   : > { %v1862_v48 = vsel %vm1861_vm3, 1, %v5713_v0  ;;  %v1885_v62 = vadd.s32 %v1879_v34, %v1875_v42  ;;  %vm1966_vm5 = vcmp.gt.s32.totalorder %v1965_v40, 0  ;;  %v1886_v41 = vadd.s32 %v1884_v6, %v1878_v53 }
 0x1f4   : > { %v1766_v32 = vmul.f32 %v1765_v29, %v1763_v30  ;;  %v1864_v10 = vadd.s32 %v1862_v48, %v1856_v59  ;;  %vm1865_vm6 = vc.u32 %v1863_v7, %v1859_v24  ;;  %v1839_v33 = vsel %vm1833_vm15, %v1836_v51, %v1838_v17 }
 0x1f5   : > { %v1866_v49 = vsel %vm1865_vm6, 1, %v5713_v0  ;;  %vm1887_vm8 = vc.u32 %v1885_v62, %v1881_v63  ;;  %v1967_v27 = vsel %vm1966_vm5, %v1965_v40, 0  ;;  %v1858_v44 = vshrl.u32 %v1854_v14, 16 }
 0x1f6   : > { %v1767_v26 = vxor.u32 2147483648, %v1766_v32  ;;  %v1868_v12 = vadd.s32 %v1866_v49, %v1864_v10  ;;  %v1888_v16 = vsel %vm1887_vm8, 1, %v5713_v0  ;;  %v1789_v45 = vadd.s32 3, %v1772_v23 }
 0x1f7   : > { %v1880_v31 = vshrl.u32 %v1876_v22, 16  ;;  %v1890_v38 = vadd.s32 %v1888_v16, %v1886_v41  ;;  %v1969_v21 = vand.u32 31, %v1967_v27  ;;  %v1860_v19 = vshrl.u32 %v1855_v47, 16 }
 0x1f8   : > { %v1768_v2 = vsel %vm1647_vm7, %v1767_v26, %v1766_v32  ;;  %v1869_v43 = vadd.s32 %v1868_v12, %v1858_v44  ;;  %v1893_v11 = vmul.u32 %v6865_v9, %v1839_v33  ;;  %v1882_v15 = vshrl.u32 %v1877_v18, 16 }
 0x1f9   : > { %v1771_v35 = vsel %vm6900_vm13, %v6622_v5, %v1768_v2  ;;  %v1891_v8 = vadd.s32 %v1890_v38, %v1880_v31  ;;  %v6965_v40 = vsub.s32 32, %v1969_v21  ;;  %v6969_v22 = vadd.s32 %v1885_v62, %v1881_v63 }
 0x1fa   : > { %v1773_v37 = vmul.f32 %v1771_v35, %v1771_v35  ;;  %v6967_v23 = vadd.s32 %v1869_v43, %v1860_v19  ;;  %v6971_v36 = vshrl.u32 %v1967_v27, 5  ;;  %v1972_v14 = vshll.u32 %v5714_v52, %v1969_v21 }
 0x1fb   : > { %v1892_v51 = vadd.s32 %v1891_v8, %v1882_v15  ;;  %v1975_v9 = vshll.u32 %v5715_v55, %v1969_v21  ;;  %v1976_v20 = vshrl.u32 %v5716_v58, %v6965_v40  ;;  %v1978_v47 = vshll.u32 %v5716_v58, %v1969_v21 }
 0x1fc   : > { %v1774_v17 = vmul.f32 -0.001358992, %v1773_v37  ;;  %v1781_v18 = vmul.f32 -0.00019511016, %v1773_v37  ;;  %vm1895_vm7 = vc.u32 %v6967_v23, %v6969_v22  ;;  %v1973_v34 = vshrl.u32 %v5715_v55, %v6965_v40 }
 0x1fd   : > { %v1896_v42 = vadd.s32 1, %v1892_v51  ;;  %v6982_v54 = vor.u32 %v1976_v20, %v1975_v9  ;;  %v1979_v50 = vshrl.u32 %v5717_v61, %v6965_v40  ;;  %v1981_v29 = vshll.u32 %v5717_v61, %v1969_v21 }
 0x1fe   : > { %v1775_v4 = vadd.f32 0.041655596, %v1774_v17  ;;  %v1782_v53 = vadd.f32 0.008332121, %v1781_v18  ;;  %v1982_v59 = vshrl.u32 %v5718_v1, %v6965_v40  ;;  %v1984_v30 = vshll.u32 %v5718_v1, %v1969_v21 }
 0x1ff   : > { %v1897_v24 = vsel %vm1895_vm7, %v1896_v42, %v1892_v51  ;;  %v6989_v63 = vor.u32 %v1979_v50, %v1978_v47  ;;  %v1985_v7 = vshrl.u32 %v5719_v3, %v6965_v40  ;;  %v1790_v10 = vand.u32 3, %v1789_v45 }
 0x200   : > { %v1776_v48 = vmul.f32 %v1775_v4, %v1773_v37  ;;  %v1783_v6 = vmul.f32 %v1782_v53, %v1773_v37  ;;  %v1898_v62 = vadd.s32 %v1897_v24, %v1893_v11  ;;  %v1983_v32 = vor.u32 %v1982_v59, %v1981_v29 }
 0x201   : > { %v1963_v41 = vor.u32 8388608, %v6883_v39  ;;  %v1974_v33 = vor.u32 %v1973_v34, %v1972_v14  ;;  %v1986_v49 = vor.u32 %v1985_v7, %v1984_v30  ;;  %vm1990_vm9 = vcmp.lt.s32.totalorder %v6971_v36, 4 }
 0x202   : > { %v1777_v27 = vadd.f32 -0.4999988, %v1776_v48  ;;  %v1784_v26 = vadd.f32 -0.16666654, %v1783_v6  ;;  %v1899_v44 = vadd.s32 536870912, %v1898_v62  ;;  %vm1987_vm10 = vcmp.lt.s32.totalorder %v6971_v36, 1 }
 0x203   : > { %vm1989_vm11 = vcmp.lt.s32.totalorder %v6971_v36, 3  ;;  %v1996_v12 = vsel %vm1990_vm9, %v1983_v32, 920167782  ;;  %v2000_v16 = vsel %vm1990_vm9, %v1986_v49, 1326507024  ;;  %v1999_v38 = vsel %vm1987_vm10, %v6982_v54, %v6989_v63 }
 0x204   : > { %v1778_v45 = vmul.f32 %v1777_v27, %v1773_v37  ;;  %v1785_v31 = vmul.f32 %v1784_v26, %v1773_v37  ;;  %v7002_v39 = vshrl.u32 %v1899_v44, 30  ;;  %vm1988_vm12 = vcmp.lt.s32.totalorder %v6971_v36, 2 }
 0x205   : > { %v1995_v21 = vsel %vm1987_vm10, %v1974_v33, %v6982_v54  ;;  %v2001_v2 = vsel %vm1989_vm11, %v1983_v32, %v2000_v16  ;;  %v7014_v19 = vshll.u32 %v1963_v41, 8  ;;  %v1997_v8 = vsel %vm1989_vm11, %v6989_v63, %v1996_v12 }
 0x206   : > { %v1779_v43 = vadd.f32 1.0, %v1778_v45  ;;  %v1786_v11 = vadd.f32 1.0, %v1785_v31  ;;  %v1901_v15 = vshll.u32 %v7002_v39, 30  ;;  %vm1788_vm13 = vweird.f32 %v6622_v5 }
 0x207   : > { %vm1791_vm14 = vcmp.lt.s32.totalorder %v1790_v10, 2  ;;  %v2002_v37 = vsel %vm1988_vm12, %v1999_v38, %v2001_v2  ;;  %v2113_v51 = vand.u32 2139095040, %v6870_v13  ;;  %vm1795_vm15 = vcmp.eq.s32.totalorder %v1790_v10, 2 }
 0x208   : > { %v1787_v14 = vmul.f32 %v1786_v11, %v1771_v35  ;;  %v1796_v9 = vxor.u32 2147483648, %v1779_v43  ;;  %v1902_v20 = vsub.s32 %v1898_v62, %v1901_v15  ;;  %v1998_v17 = vsel %vm1988_vm12, %v1995_v21, %v1997_v8 }
 0x209   : > { %v2004_v18 = vand.u32 65535, %v7014_v19  ;;  %v2006_v47 = vand.u32 65535, %v2002_v37  ;;  %v2007_v42 = vshrl.u32 %v2002_v37, 16  ;;  %v2005_v4 = vshrl.u32 %v7014_v19, 16 }
 0x20a   : > { %v1793_v34 = vxor.u32 2147483648, %v1787_v14  ;;  %vm1903_vm0 = vcmp.lt.s32.totalorder %v1902_v20, 0  ;;  %v1904_v50 = vsub.s32 0, %v1902_v20  ;;  %vm1792_vm1 = vcmp.eq.s32.totalorder %v1790_v10, 0 }
 0x20b   : > { %v1797_v53 = vsel %vm1795_vm15, %v1796_v9, %v1787_v14  ;;  %v1971_v35 = vshrl.u32 %v5714_v52, %v6965_v40  ;;  %v2009_v29 = vmul.u32 %v2007_v42, %v2004_v18  ;;  %v2010_v30 = vmul.u32 %v2006_v47, %v2005_v4 }
 0x20c   : > { %v1794_v59 = vsel %vm1792_vm1, %v1779_v43, %v1793_v34  ;;  %v1905_v24 = vsel %vm1903_vm0, %v1904_v50, %v1902_v20  ;;  %v2029_v7 = vshrl.u32 %v1998_v17, 16  ;;  %v2028_v32 = vand.u32 65535, %v1998_v17 }
 0x20d   : > { %v1798_v48 = vsel %vm1791_vm14, %v1794_v59, %v1797_v53  ;;  %v1906_v6 = vclz %v1905_v24  ;;  %v2012_v62 = vshll.u32 %v2009_v29, 16  ;;  %v1894_v49 = vadd.s32 %v6969_v22, %v6967_v23 }
 0x20e   : > { %v1799_v41 = vsel %vm1788_vm13, nan, %v1798_v48  ;;  %v2008_v27 = vmul.u32 %v2006_v47, %v2004_v18  ;;  %v2114_v26 = vshrl.u32 %v2113_v51, 23  ;;  %v1991_v44 = vsel %vm1987_vm10, %v1971_v35, %v1974_v33 }
 0x20f   : > { %v5510_v40 = vadd.s32 4294967294, %v1906_v6  ;;  %v1992_v10 = vsel %vm1990_vm9, %v6989_v63, 2102212464  ;;  %v2011_v12 = vmul.u32 %v2007_v42, %v2005_v4  ;;  %5373 = vst [vmem:[%s6113_s4 + $0x40] sm:$0xff] %v1799_v41  ;;  %v2014_v16 = vshll.u32 %v2010_v30, 16  ;;  %v247_v6 = vpop.permute.xlu1 %246 }
 0x210   : > { %vm2016_vm2 = vc.u32 %v2008_v27, %v2012_v62  ;;  %v2018_v45 = vadd.s32 %v2012_v62, %v2008_v27  ;;  %v2031_v5 = vmul.u32 %v2029_v7, %v2004_v18  ;;  %v2013_v31 = vshrl.u32 %v2009_v29, 16 }
 0x211   : > { %vm5511_vm3 = vcmp.lt.s32.totalorder %v5510_v40, 0  ;;  %v2017_v23 = vsel %vm2016_vm2, 1, %v5713_v0  ;;  %v2032_v22 = vmul.u32 %v2028_v32, %v2005_v4  ;;  %v2030_v63 = vmul.u32 %v2028_v32, %v2004_v18 }
 0x212   : > { %v1909_v38 = vsel %vm5511_vm3, 0, %v5510_v40  ;;  %v2019_v21 = vadd.s32 %v2017_v23, %v2011_v12  ;;  %vm2020_vm4 = vc.u32 %v2018_v45, %v2014_v16  ;;  %v2034_v2 = vshll.u32 %v2031_v5, 16 }
 0x213   : > { %v1910_v33 = vsub.s32 32, %v1909_v38  ;;  %v1914_v43 = vsub.s32 4294967266, %v1909_v38  ;;  %v2021_v11 = vsel %vm2020_vm4, 1, %v5713_v0  ;;  %v1911_v15 = vshll.u32 %v1902_v20, %v1909_v38  ;;  %v242_v38 = vpop.permute.xlu0 %241 }
 0x214   : > { %v2023_v8 = vadd.s32 %v2021_v11, %v2019_v21  ;;  %v2033_v37 = vmul.u32 %v2029_v7, %v2005_v4  ;;  %v2036_v51 = vshll.u32 %v2032_v22, 16  ;;  %vm2038_vm5 = vc.u32 %v2030_v63, %v2034_v2 }
 0x215   : > { %v1912_v14 = vshrl.u32 %v1894_v49, %v1910_v33  ;;  %v1915_v9 = vadd.s32 127, %v1914_v43  ;;  %v2040_v17 = vadd.s32 %v2034_v2, %v2030_v63  ;;  %v1993_v47 = vsel %vm1989_vm11, %v6982_v54, %v1992_v10 }
 0x216   : > { %v2024_v42 = vadd.s32 %v2023_v8, %v2013_v31  ;;  %v2039_v34 = vsel %vm2038_vm5, 1, %v5713_v0  ;;  %v5515_v50 = vadd.s32 4294967169, %v2114_v26  ;;  %v1924_v20 = vsub.s32 4, %v7002_v39 }
 0x217   : > { %v1913_v53 = vor.u32 %v1912_v14, %v1911_v15  ;;  %v1916_v35 = vshll.u32 %v1915_v9, 23  ;;  %v2041_v29 = vadd.s32 %v2039_v34, %v2033_v37  ;;  %vm2042_vm6 = vc.u32 %v2040_v17, %v2036_v51 }
 0x218   : > { %v2015_v18 = vshrl.u32 %v2010_v30, 16  ;;  %v2043_v4 = vsel %vm2042_vm6, 1, %v5713_v0  ;;  %v2035_v24 = vshrl.u32 %v2031_v5, 16  ;;  %v2120_v48 = vadd.s32 1, %v5515_v50 }
 0x219   : > { %v1917_v59 = vor.u32 4788187, %v1916_v35  ;;  %v2045_v7 = vadd.s32 %v2043_v4, %v2041_v29  ;;  %vm1802_vm8 = vcmp.lt.s32.totalorder %v6807_v25, 0  ;;  %v1994_v54 = vsel %vm1988_vm12, %v1991_v44, %v1993_v47 }
 0x21a   : > { %v7052_v62 = vadd.s32 %v2024_v42, %v2015_v18  ;;  %v2037_v32 = vshrl.u32 %v2032_v22, 16  ;;  %v1920_v49 = vcvt.s32.f32 %v1913_v53  ;;  %vm2121_vm7 = vcmp.gt.s32.totalorder %v2120_v48, 0 }
 0x21b   : > { %v1918_v41 = vand.u32 2147483647, %v1917_v59  ;;  %v2046_v27 = vadd.s32 %v2045_v7, %v2035_v24  ;;  %v1925_v30 = vsel %vm1802_vm8, %v1924_v20, %v7002_v39  ;;  %v7057_v26 = vadd.s32 %v2040_v17, %v2036_v51 }
 0x21c   : > { %v2122_v40 = vsel %vm2121_vm7, %v2120_v48, 0  ;;  %v353_v10 = vmul.f32 %v6784_v28, %v247_v6  ;;  %vm7062_vm9 = vcmp.le.f32.partialorder %v1800_v57, 0.7853982  ;;  %v2048_v45 = vmul.u32 %v7014_v19, %v1994_v54 }
 0x21d   : > { %v1921_v12 = vmul.f32 %v1920_v49, %v1918_v41  ;;  %v2047_v16 = vadd.s32 %v2046_v27, %v2037_v32  ;;  %v2124_v36 = vand.u32 31, %v2122_v40  ;;  %vm2050_vm10 = vc.u32 %v7052_v62, %v7057_v26 }
 0x21e   : > { %v2110_v39 = vand.u32 2147483647, %v6870_v13  ;;  %v1927_v31 = vsel %vm7062_vm9, 0, %v1925_v30  ;;  %v7074_v21 = vshrl.u32 %v2122_v40, 5  ;;  %v352_v14 = vmul.f32 %v6784_v28, %v242_v38 }
 0x21f   : > { %v1922_v5 = vxor.u32 2147483648, %v1921_v12  ;;  %v2051_v23 = vadd.s32 1, %v2047_v16  ;;  %v7072_v22 = vsub.s32 32, %v2124_v36  ;;  %v2127_v57 = vshll.u32 %v5714_v52, %v2124_v36 }
 0x220   : > { %v2130_v2 = vshll.u32 %v5715_v55, %v2124_v36  ;;  %v2133_v19 = vshll.u32 %v5716_v58, %v2124_v36  ;;  %v2136_v63 = vshll.u32 %v5717_v61, %v2124_v36  ;;  %v1944_v17 = vadd.s32 3, %v1927_v31 }
 0x221   : > { %v1923_v33 = vsel %vm1802_vm8, %v1922_v5, %v1921_v12  ;;  %v2052_v43 = vsel %vm2050_vm10, %v2051_v23, %v2047_v16  ;;  %v2128_v11 = vshrl.u32 %v5715_v55, %v7072_v22  ;;  %v2131_v37 = vshrl.u32 %v5716_v58, %v7072_v22 }
 0x222   : > { %v1926_v15 = vsel %vm7062_vm9, %v6807_v25, %v1923_v33  ;;  %v2053_v8 = vadd.s32 %v2052_v43, %v2048_v45  ;;  %v2134_v51 = vshrl.u32 %v5717_v61, %v7072_v22  ;;  %v2137_v47 = vshrl.u32 %v5718_v1, %v7072_v22 }
 0x223   : > { %v1928_v9 = vmul.f32 %v1926_v15, %v1926_v15  ;;  %v2117_v34 = vand.u32 8388607, %v2110_v39  ;;  %v2139_v50 = vshll.u32 %v5718_v1, %v2124_v36  ;;  %v2140_v53 = vshrl.u32 %v5719_v3, %v7072_v22 }
 0x224   : > { %v2054_v42 = vadd.s32 536870912, %v2053_v8  ;;  %v7099_v20 = vor.u32 %v2128_v11, %v2127_v57  ;;  %v2138_v18 = vor.u32 %v2137_v47, %v2136_v63  ;;  %v7103_v4 = vor.u32 %v2131_v37, %v2130_v2 }
 0x225   : > { %v1929_v35 = vmul.f32 -0.001358992, %v1928_v9  ;;  %v1936_v29 = vmul.f32 -0.00019511016, %v1928_v9  ;;  %v7105_v59 = vor.u32 %v2134_v51, %v2133_v19  ;;  %vm2145_vm11 = vcmp.lt.s32.totalorder %v7074_v21, 4 }
 0x226   : > { %v7101_v28 = vshrl.u32 %v2054_v42, 30  ;;  %vm2142_vm12 = vcmp.lt.s32.totalorder %v7074_v21, 1  ;;  %vm2144_vm13 = vcmp.lt.s32.totalorder %v7074_v21, 3  ;;  %v7111_v48 = vadd.f32 %v6804_v56, %v353_v10 }
 0x227   : > { %v1930_v24 = vadd.f32 0.041655596, %v1929_v35  ;;  %v1937_v7 = vadd.f32 0.008332121, %v1936_v29  ;;  %v2118_v54 = vor.u32 8388608, %v2117_v34  ;;  %v2141_v32 = vor.u32 %v2140_v53, %v2139_v50 }
 0x228   : > { %v2056_v6 = vshll.u32 %v7101_v28, 30  ;;  %v1945_v27 = vand.u32 3, %v1944_v17  ;;  %v2151_v30 = vsel %vm2145_vm11, %v2138_v18, 920167782  ;;  %vm2143_vm14 = vcmp.lt.s32.totalorder %v7074_v21, 2 }
 0x229   : > { %v1931_v41 = vmul.f32 %v1930_v24, %v1928_v9  ;;  %v1938_v49 = vmul.f32 %v1937_v7, %v1928_v9  ;;  %v2150_v10 = vsel %vm2142_vm12, %v7099_v20, %v7103_v4  ;;  %v2152_v12 = vsel %vm2144_vm13, %v7105_v59, %v2151_v30 }
 0x22a   : > { %v7116_v40 = vsub.s32 %v2053_v8, %v2056_v6  ;;  %v7127_v16 = vadd.f32 %v6804_v56, %v352_v14  ;;  %v2154_v45 = vsel %vm2142_vm12, %v7103_v4, %v7105_v59  ;;  %v2155_v31 = vsel %vm2145_vm11, %v2141_v32, 1326507024 }
 0x22b   : > { %v1932_v36 = vadd.f32 -0.4999988, %v1931_v41  ;;  %v1939_v44 = vadd.f32 -0.16666654, %v1938_v49  ;;  %v7137_v23 = vshll.u32 %v2118_v54, 8  ;;  %vm1946_vm0 = vcmp.lt.s32.totalorder %v1945_v27, 2 }
 0x22c   : > { %vm2058_vm15 = vcmp.lt.s32.totalorder %v7116_v40, 0  ;;  %v2059_v5 = vsub.s32 0, %v7116_v40  ;;  %v2153_v56 = vsel %vm2143_vm14, %v2150_v10, %v2152_v12  ;;  %v2156_v2 = vsel %vm2144_vm13, %v2138_v18, %v2155_v31 }
 0x22d   : > { %v1933_v38 = vmul.f32 %v1932_v36, %v1928_v9  ;;  %v1940_v57 = vmul.f32 %v1939_v44, %v1928_v9  ;;  %vm1943_vm1 = vweird.f32 %v6807_v25  ;;  %vm1947_vm2 = vcmp.eq.s32.totalorder %v1945_v27, 0 }
 0x22e   : > { %vm1950_vm3 = vcmp.eq.s32.totalorder %v1945_v27, 2  ;;  %v2060_v19 = vsel %vm2058_vm15, %v2059_v5, %v7116_v40  ;;  %v2157_v33 = vsel %vm2143_vm14, %v2154_v45, %v2156_v2  ;;  %v2159_v37 = vand.u32 65535, %v7137_v23 }
 0x22f   : > { %v1934_v43 = vadd.f32 1.0, %v1933_v38  ;;  %v1941_v11 = vadd.f32 1.0, %v1940_v57  ;;  %v2061_v63 = vclz %v2060_v19  ;;  %v2161_v8 = vand.u32 65535, %v2157_v33 }
 0x230   : > { %v2160_v51 = vshrl.u32 %v7137_v23, 16  ;;  %v2162_v14 = vshrl.u32 %v2157_v33, 16  ;;  %v2184_v9 = vshrl.u32 %v2153_v56, 16  ;;  %v2049_v42 = vadd.s32 %v7057_v26, %v7052_v62 }
 0x231   : > { %v1942_v17 = vmul.f32 %v1941_v11, %v1926_v15  ;;  %v1951_v47 = vxor.u32 2147483648, %v1934_v43  ;;  %v5513_v34 = vadd.s32 4294967294, %v2061_v63  ;;  %v2126_v50 = vshrl.u32 %v5714_v52, %v7072_v22 }
 0x232   : > { %v2164_v53 = vmul.u32 %v2162_v14, %v2159_v37  ;;  %v2165_v35 = vmul.u32 %v2161_v8, %v2160_v51  ;;  %v2183_v29 = vand.u32 65535, %v2153_v56  ;;  %v2163_v24 = vmul.u32 %v2161_v8, %v2159_v37 }
 0x233   : > { %v1948_v18 = vxor.u32 2147483648, %v1942_v17  ;;  %vm5514_vm4 = vcmp.lt.s32.totalorder %v5513_v34, 0  ;;  %v2166_v7 = vmul.u32 %v2162_v14, %v2160_v51  ;;  %v1952_v6 = vsel %vm1950_vm3, %v1951_v47, %v1942_v17 }
 0x234   : > { %v2064_v54 = vsel %vm5514_vm4, 0, %v5513_v34  ;;  %v2167_v32 = vshll.u32 %v2164_v53, 16  ;;  %v2186_v15 = vmul.u32 %v2184_v9, %v2159_v37  ;;  %v2169_v26 = vshll.u32 %v2165_v35, 16 }
 0x235   : > { %v1949_v41 = vsel %vm1947_vm2, %v1934_v43, %v1948_v18  ;;  %v2065_v49 = vsub.s32 32, %v2064_v54  ;;  %v2069_v62 = vsub.s32 4294967266, %v2064_v54  ;;  %v2066_v30 = vshll.u32 %v7116_v40, %v2064_v54 }
 0x236   : > { %v1953_v22 = vsel %vm1946_vm0, %v1949_v41, %v1952_v6  ;;  %vm2171_vm5 = vc.u32 %v2163_v24, %v2167_v32  ;;  %v2173_v10 = vadd.s32 %v2167_v32, %v2163_v24  ;;  %vm1957_vm6 = vcmp.lt.s32.totalorder %v6854_v60, 0 }
 0x237   : > { %v1954_v12 = vsel %vm1943_vm1, nan, %v1953_v22  ;;  %v2067_v36 = vshrl.u32 %v2049_v42, %v2065_v49  ;;  %v2070_v44 = vadd.s32 127, %v2069_v62  ;;  %v2172_v45 = vsel %vm2171_vm5, 1, %v5713_v0  ;;  %v252_v62 = vpop.permute.xlu2 %251 }
 0x238   : > { %v2174_v5 = vadd.s32 %v2172_v45, %v2166_v7  ;;  %vm2175_vm8 = vc.u32 %v2173_v10, %v2169_v26  ;;  %v2185_v31 = vmul.u32 %v2183_v29, %v2159_v37  ;;  %v2187_v38 = vmul.u32 %v2183_v29, %v2160_v51  ;;  %5374 = vst [vmem:[%s6113_s4 + $0x48] sm:$0xff] %v1954_v12  ;;  %v7201_v45 = vld [vmem:[%s9600_s1] ss:$0 sm:$0xff] }
 0x239   : > { %v2068_v27 = vor.u32 %v2067_v36, %v2066_v30  ;;  %v2071_v57 = vshll.u32 %v2070_v44, 23  ;;  %v2176_v40 = vsel %vm2175_vm8, 1, %v5713_v0  ;;  %v2189_v56 = vshll.u32 %v2186_v15, 16 }
 0x23a   : > { %v2147_v25 = vsel %vm2145_vm11, %v7105_v59, 2102212464  ;;  %v2168_v2 = vshrl.u32 %v2164_v53, 16  ;;  %v2178_v19 = vadd.s32 %v2176_v40, %v2174_v5  ;;  %v2188_v33 = vmul.u32 %v2184_v9, %v2160_v51 }
 0x23b   : > { %v2072_v43 = vor.u32 4788187, %v2071_v57  ;;  %v2191_v11 = vshll.u32 %v2187_v38, 16  ;;  %vm2193_vm7 = vc.u32 %v2185_v31, %v2189_v56  ;;  %v2195_v63 = vadd.s32 %v2189_v56, %v2185_v31 }
 0x23c   : > { %v2075_v8 = vcvt.s32.f32 %v2068_v27  ;;  %v2079_v37 = vsub.s32 4, %v7101_v28  ;;  %v2179_v14 = vadd.s32 %v2178_v19, %v2168_v2  ;;  %v2194_v17 = vsel %vm2193_vm7, 1, %v5713_v0 }
 0x23d   : > { %v2073_v47 = vand.u32 2147483647, %v2072_v43  ;;  %v2196_v42 = vadd.s32 %v2194_v17, %v2188_v33  ;;  %vm2197_vm9 = vc.u32 %v2195_v63, %v2191_v11  ;;  %v2265_v34 = vand.u32 2147483647, %v7127_v16 }
 0x23e   : > { %v2146_v59 = vsel %vm2142_vm12, %v2126_v50, %v7099_v20  ;;  %v2148_v51 = vsel %vm2144_vm13, %v7103_v4, %v2147_v25  ;;  %v2170_v9 = vshrl.u32 %v2165_v35, 16  ;;  %v2198_v53 = vsel %vm2197_vm9, 1, %v5713_v0 }
 0x23f   : > { %v2076_v29 = vmul.f32 %v2075_v8, %v2073_v47  ;;  %v2190_v18 = vshrl.u32 %v2186_v15, 16  ;;  %v2200_v24 = vadd.s32 %v2198_v53, %v2196_v42  ;;  %v2268_v7 = vand.u32 2139095040, %v7127_v16 }
 0x240   : > { %v2080_v6 = vsel %vm1957_vm6, %v2079_v37, %v7101_v28  ;;  %v2180_v54 = vadd.s32 %v2179_v14, %v2170_v9  ;;  %v2192_v32 = vshrl.u32 %v2187_v38, 16  ;;  %v2272_v4 = vand.u32 8388607, %v2265_v34 }
 0x241   : > { %v2077_v41 = vxor.u32 2147483648, %v2076_v29  ;;  %v2201_v20 = vadd.s32 %v2200_v24, %v2190_v18  ;;  %v2269_v50 = vshrl.u32 %v2268_v7, 23  ;;  %vm7184_vm10 = vcmp.le.f32.partialorder %v1955_v46, 0.7853982 }
 0x242   : > { %v2149_v15 = vsel %vm2143_vm14, %v2146_v59, %v2148_v51  ;;  %v2199_v49 = vadd.s32 %v2195_v63, %v2191_v11  ;;  %v2423_v28 = vand.u32 2139095040, %v7111_v48  ;;  %v2082_v22 = vsel %vm7184_vm10, 0, %v2080_v6 }
 0x243   : > { %v2078_v26 = vsel %vm1957_vm6, %v2077_v41, %v2076_v29  ;;  %v2202_v30 = vadd.s32 %v2201_v20, %v2192_v32  ;;  %v5518_v10 = vadd.s32 4294967169, %v2269_v50  ;;  %v2273_v36 = vor.u32 8388608, %v2272_v4 }
 0x244   : > { %v2081_v46 = vsel %vm7184_vm10, %v6854_v60, %v2078_v26  ;;  %vm2205_vm11 = vc.u32 %v2180_v54, %v2199_v49  ;;  %v354_v5 = vmul.f32 %v7201_v45, %v252_v62  ;;  %v2099_v31 = vadd.s32 3, %v2082_v22 }
 0x245   : > { %v2083_v12 = vmul.f32 %v2081_v46, %v2081_v46  ;;  %v2206_v21 = vadd.s32 1, %v2202_v30  ;;  %v2275_v44 = vadd.s32 1, %v5518_v10  ;;  %v2203_v38 = vmul.u32 %v7137_v23, %v2149_v15  ;;  %v7213_v23 = vld [vmem:[%s9600_s1 + $0x1] ss:$0 sm:$0xff] }
 0x246   : > { %v2424_v27 = vshrl.u32 %v2423_v28, 23  ;;  %v2420_v19 = vand.u32 2147483647, %v7111_v48  ;;  %v7206_v63 = vshll.u32 %v2273_v36, 8  ;;  %v7208_v8 = vand.u32 3, %v2099_v31 }
 0x247   : > { %v2084_v57 = vmul.f32 -0.001358992, %v2083_v12  ;;  %v2091_v40 = vmul.f32 -0.00019511016, %v2083_v12  ;;  %v2207_v56 = vsel %vm2205_vm11, %v2206_v21, %v2202_v30  ;;  %vm2276_vm12 = vcmp.gt.s32.totalorder %v2275_v44, 0 }
 0x248   : > { %v2208_v25 = vadd.s32 %v2207_v56, %v2203_v38  ;;  %v2277_v2 = vsel %vm2276_vm12, %v2275_v44, 0  ;;  %v5521_v14 = vadd.s32 4294967169, %v2424_v27  ;;  %v7216_v17 = vadd.f32 %v7213_v23, %v354_v5 }
 0x249   : > { %v2085_v33 = vadd.f32 0.041655596, %v2084_v57  ;;  %v2092_v43 = vadd.f32 0.008332121, %v2091_v40  ;;  %v2279_v11 = vand.u32 31, %v2277_v2  ;;  %vm2112_vm13 = vcmp.lt.s32.totalorder %v6870_v13, 0 }
 0x24a   : > { %v2209_v37 = vadd.s32 536870912, %v2208_v25  ;;  %v7219_v51 = vadd.s32 %v2199_v49, %v2180_v54  ;;  %v7223_v53 = vand.u32 8388607, %v2420_v19  ;;  %v7226_v24 = vand.u32 65535, %v7206_v63 }
 0x24b   : > { %v2086_v47 = vmul.f32 %v2085_v33, %v2083_v12  ;;  %v2093_v42 = vmul.f32 %v2092_v43, %v2083_v12  ;;  %v2280_v59 = vsub.s32 32, %v2279_v11  ;;  %v7229_v7 = vshrl.u32 %v7206_v63, 16 }
 0x24c   : > { %v2210_v9 = vshrl.u32 %v2209_v37, 30  ;;  %vm2102_vm14 = vcmp.eq.s32.totalorder %v7208_v8, 0  ;;  %vm2105_vm15 = vcmp.eq.s32.totalorder %v7208_v8, 2  ;;  %v7233_v54 = vshrl.u32 %v2277_v2, 5 }
 0x24d   : > { %v2087_v29 = vadd.f32 -0.4999988, %v2086_v47  ;;  %v2094_v18 = vadd.f32 -0.16666654, %v2093_v42  ;;  %v2283_v32 = vshrl.u32 %v5715_v55, %v2280_v59  ;;  %v7236_v41 = vadd.s32 1, %v5521_v14 }
 0x24e   : > { %v2211_v6 = vshll.u32 %v2210_v9, 30  ;;  %vm2101_vm0 = vcmp.lt.s32.totalorder %v7208_v8, 2  ;;  %v2282_v4 = vshll.u32 %v5714_v52, %v2279_v11  ;;  %v2286_v35 = vshrl.u32 %v5716_v58, %v2280_v59 }
 0x24f   : > { %v2088_v20 = vmul.f32 %v2087_v29, %v2083_v12  ;;  %v2095_v50 = vmul.f32 %v2094_v18, %v2083_v12  ;;  %vm2098_vm1 = vweird.f32 %v6854_v60  ;;  %v2285_v49 = vshll.u32 %v5715_v55, %v2279_v11 }
 0x250   : > { %v7242_v15 = vsub.s32 %v2208_v25, %v2211_v6  ;;  %v2289_v28 = vshrl.u32 %v5717_v61, %v2280_v59  ;;  %v2292_v62 = vshrl.u32 %v5718_v1, %v2280_v59  ;;  %v2234_v30 = vsub.s32 4, %v2210_v9 }
 0x251   : > { %v2089_v26 = vadd.f32 1.0, %v2088_v20  ;;  %v2096_v22 = vadd.f32 1.0, %v2095_v50  ;;  %v2288_v10 = vshll.u32 %v5716_v58, %v2279_v11  ;;  %v2284_v21 = vor.u32 %v2283_v32, %v2282_v4 }
 0x252   : > { %vm2213_vm2 = vcmp.lt.s32.totalorder %v7242_v15, 0  ;;  %v2214_v12 = vsub.s32 0, %v7242_v15  ;;  %v2291_v36 = vshll.u32 %v5717_v61, %v2279_v11  ;;  %v2287_v31 = vor.u32 %v2286_v35, %v2285_v49 }
 0x253   : > { %v2097_v44 = vmul.f32 %v2096_v22, %v2081_v46  ;;  %v2106_v5 = vxor.u32 2147483648, %v2089_v26  ;;  %v2295_v38 = vshrl.u32 %v5719_v3, %v2280_v59  ;;  %v2290_v57 = vor.u32 %v2289_v28, %v2288_v10 }
 0x254   : > { %v2215_v27 = vsel %vm2213_vm2, %v2214_v12, %v7242_v15  ;;  %v2293_v40 = vor.u32 %v2292_v62, %v2291_v36  ;;  %v2294_v56 = vshll.u32 %v5718_v1, %v2279_v11  ;;  %v7256_v33 = vsel %vm2112_vm13, %v2234_v30, %v2210_v9 }
 0x255   : > { %v2103_v25 = vxor.u32 2147483648, %v2097_v44  ;;  %v2216_v2 = vclz %v2215_v27  ;;  %v2281_v43 = vshrl.u32 %v5714_v52, %v2280_v59  ;;  %vm7261_vm3 = vcmp.le.f32.partialorder %v2110_v39, 0.7853982 }
 0x256   : > { %v2296_v37 = vor.u32 %v2295_v38, %v2294_v56  ;;  %vm2297_vm4 = vcmp.lt.s32.totalorder %v7233_v54, 1  ;;  %vm2298_vm5 = vcmp.lt.s32.totalorder %v7233_v54, 2  ;;  %vm2299_vm6 = vcmp.lt.s32.totalorder %v7233_v54, 3 }
 0x257   : > { %v2104_v11 = vsel %vm2102_vm14, %v2089_v26, %v2103_v25  ;;  %v2107_v14 = vsel %vm2105_vm15, %v2106_v5, %v2097_v44  ;;  %v5516_v47 = vadd.s32 4294967294, %v2216_v2  ;;  %vm2300_vm8 = vcmp.lt.s32.totalorder %v7233_v54, 4 }
 0x258   : > { %v2108_v39 = vsel %vm2101_vm0, %v2104_v11, %v2107_v14  ;;  %v2302_v42 = vsel %vm2300_vm8, %v2290_v57, 2102212464  ;;  %v2305_v59 = vsel %vm2297_vm4, %v2284_v21, %v2287_v31  ;;  %v2306_v9 = vsel %vm2300_vm8, %v2293_v40, 920167782 }
 0x259   : > { %v2109_v29 = vsel %vm2098_vm1, nan, %v2108_v39  ;;  %vm5517_vm7 = vcmp.lt.s32.totalorder %v5516_v47, 0  ;;  %v2301_v18 = vsel %vm2297_vm4, %v2281_v43, %v2284_v21  ;;  %v2307_v6 = vsel %vm2299_vm6, %v2290_v57, %v2306_v9 }
 0x25a   : > { %v2219_v32 = vsel %vm5517_vm7, 0, %v5516_v47  ;;  %v2308_v8 = vsel %vm2298_vm5, %v2305_v59, %v2307_v6  ;;  %v2309_v20 = vsel %vm2297_vm4, %v2287_v31, %v2290_v57  ;;  %v2310_v50 = vsel %vm2300_vm8, %v2296_v37, 1326507024  ;;  %5375 = vst [vmem:[%s6113_s4 + $0x50] sm:$0xff] %v2109_v29 }
 0x25b   : > { %v2220_v4 = vsub.s32 32, %v2219_v32  ;;  %v2224_v35 = vsub.s32 4294967266, %v2219_v32  ;;  %v2303_v60 = vsel %vm2299_vm6, %v2287_v31, %v2302_v42  ;;  %v2311_v49 = vsel %vm2299_vm6, %v2293_v40, %v2310_v50 }
 0x25c   : > { %v2221_v28 = vshll.u32 %v7242_v15, %v2219_v32  ;;  %v2312_v62 = vsel %vm2298_vm5, %v2309_v20, %v2311_v49  ;;  %v2338_v26 = vand.u32 65535, %v2308_v8  ;;  %v2339_v22 = vshrl.u32 %v2308_v8, 16 }
 0x25d   : > { %v2222_v30 = vshrl.u32 %v7219_v51, %v2220_v4  ;;  %v2225_v10 = vadd.s32 127, %v2224_v35  ;;  %v2316_v12 = vand.u32 65535, %v2312_v62  ;;  %v2317_v21 = vshrl.u32 %v2312_v62, 16 }
 0x25e   : > { %v2341_v36 = vmul.u32 %v2339_v22, %v7226_v24  ;;  %v2342_v44 = vmul.u32 %v2338_v26, %v7229_v7  ;;  %v2428_v5 = vor.u32 8388608, %v7223_v53  ;;  %vm2431_vm9 = vcmp.gt.s32.totalorder %v7236_v41, 0 }
 0x25f   : > { %v2223_v31 = vor.u32 %v2222_v30, %v2221_v28  ;;  %v2226_v15 = vshll.u32 %v2225_v10, 23  ;;  %v2237_v38 = vsel %vm7261_vm3, 0, %v7256_v33  ;;  %v2319_v27 = vmul.u32 %v2317_v21, %v7226_v24 }
 0x260   : > { %v7306_v51 = vsel %vm2298_vm5, %v2301_v18, %v2303_v60  ;;  %v2320_v57 = vmul.u32 %v2316_v12, %v7229_v7  ;;  %v2340_v40 = vmul.u32 %v2338_v26, %v7226_v24  ;;  %v2344_v56 = vshll.u32 %v2341_v36, 16 }
 0x261   : > { %v2227_v25 = vor.u32 4788187, %v2226_v15  ;;  %v2318_v2 = vmul.u32 %v2316_v12, %v7226_v24  ;;  %v2322_v43 = vshll.u32 %v2319_v27, 16  ;;  %v2343_v37 = vmul.u32 %v2339_v22, %v7229_v7 }
 0x262   : > { %v2230_v11 = vcvt.s32.f32 %v2223_v31  ;;  %v2321_v33 = vmul.u32 %v2317_v21, %v7229_v7  ;;  %v2324_v14 = vshll.u32 %v2320_v57, 16  ;;  %v2346_v47 = vshll.u32 %v2342_v44, 16 }
 0x263   : > { %v2228_v39 = vand.u32 2147483647, %v2227_v25  ;;  %vm2326_vm10 = vc.u32 %v2318_v2, %v2322_v43  ;;  %v2328_v54 = vadd.s32 %v2322_v43, %v2318_v2  ;;  %vm2348_vm11 = vc.u32 %v2340_v40, %v2344_v56 }
 0x264   : > { %v2327_v42 = vsel %vm2326_vm10, 1, %v5713_v0  ;;  %v2349_v59 = vsel %vm2348_vm11, 1, %v5713_v0  ;;  %v2350_v9 = vadd.s32 %v2344_v56, %v2340_v40  ;;  %v2432_v24 = vsel %vm2431_vm9, %v7236_v41, 0 }
 0x265   : > { %v2231_v29 = vmul.f32 %v2230_v11, %v2228_v39  ;;  %v2329_v18 = vadd.s32 %v2327_v42, %v2321_v33  ;;  %vm2330_vm12 = vc.u32 %v2328_v54, %v2324_v14  ;;  %v2351_v6 = vadd.s32 %v2349_v59, %v2343_v37 }
 0x266   : > { %v2323_v7 = vshrl.u32 %v2319_v27, 16  ;;  %v2331_v32 = vsel %vm2330_vm12, 1, %v5713_v0  ;;  %vm2352_vm14 = vc.u32 %v2350_v9, %v2346_v47  ;;  %v2578_v8 = vand.u32 2139095040, %v7216_v17 }
 0x267   : > { %v2232_v20 = vxor.u32 2147483648, %v2231_v29  ;;  %v2333_v50 = vadd.s32 %v2331_v32, %v2329_v18  ;;  %v2353_v4 = vsel %vm2352_vm14, 1, %v5713_v0  ;;  %v2434_v35 = vand.u32 31, %v2432_v24 }
 0x268   : > { %v2254_v60 = vadd.s32 3, %v2237_v38  ;;  %v2345_v49 = vshrl.u32 %v2341_v36, 16  ;;  %v2355_v28 = vadd.s32 %v2353_v4, %v2351_v6  ;;  %v2358_v41 = vmul.u32 %v7206_v63, %v7306_v51 }
 0x269   : > { %v2233_v62 = vsel %vm2112_vm13, %v2232_v20, %v2231_v29  ;;  %v2325_v26 = vshrl.u32 %v2320_v57, 16  ;;  %v2334_v22 = vadd.s32 %v2333_v50, %v2323_v7  ;;  %v7325_v30 = vsub.s32 32, %v2434_v35 }
 0x26a   : > { %v2236_v10 = vsel %vm7261_vm3, %v6870_v13, %v2233_v62  ;;  %v2347_v12 = vshrl.u32 %v2342_v44, 16  ;;  %v7330_v21 = vadd.s32 %v2350_v9, %v2346_v47  ;;  %v2356_v31 = vadd.s32 %v2355_v28, %v2345_v49 }
 0x26b   : > { %v2238_v36 = vmul.f32 %v2236_v10, %v2236_v10  ;;  %v7332_v15 = vadd.s32 %v2334_v22, %v2325_v26  ;;  %v7334_v38 = vshrl.u32 %v2432_v24, 5  ;;  %v2438_v63 = vshrl.u32 %v5715_v55, %v7325_v30 }
 0x26c   : > { %v2357_v27 = vadd.s32 %v2356_v31, %v2347_v12  ;;  %v2437_v51 = vshll.u32 %v5714_v52, %v2434_v35  ;;  %v2441_v57 = vshrl.u32 %v5716_v58, %v7325_v30  ;;  %v2444_v46 = vshrl.u32 %v5717_v61, %v7325_v30 }
 0x26d   : > { %v2239_v44 = vmul.f32 -0.001358992, %v2238_v36  ;;  %v2246_v40 = vmul.f32 -0.00019511016, %v2238_v36  ;;  %vm2360_vm13 = vc.u32 %v7332_v15, %v7330_v21  ;;  %v2440_v56 = vshll.u32 %v5715_v55, %v2434_v35 }
 0x26e   : > { %v2361_v25 = vadd.s32 1, %v2357_v27  ;;  %v7346_v2 = vor.u32 %v2438_v63, %v2437_v51  ;;  %v2443_v43 = vshll.u32 %v5716_v58, %v2434_v35  ;;  %v2446_v37 = vshll.u32 %v5717_v61, %v2434_v35 }
 0x26f   : > { %v2240_v11 = vadd.f32 0.041655596, %v2239_v44  ;;  %v2247_v33 = vadd.f32 0.008332121, %v2246_v40  ;;  %v7350_v14 = vor.u32 %v2441_v57, %v2440_v56  ;;  %v2447_v47 = vshrl.u32 %v5718_v1, %v7325_v30 }
 0x270   : > { %v2362_v39 = vsel %vm2360_vm13, %v2361_v25, %v2357_v27  ;;  %v2445_v54 = vor.u32 %v2444_v46, %v2443_v43  ;;  %v2449_v42 = vshll.u32 %v5718_v1, %v2434_v35  ;;  %v2450_v59 = vshrl.u32 %v5719_v3, %v7325_v30 }
 0x271   : > { %v2241_v9 = vmul.f32 %v2240_v11, %v2238_v36  ;;  %v2248_v24 = vmul.f32 %v2247_v33, %v2238_v36  ;;  %v2363_v29 = vadd.s32 %v2362_v39, %v2358_v41  ;;  %v2448_v18 = vor.u32 %v2447_v47, %v2446_v37 }
 0x272   : > { %v2255_v6 = vand.u32 3, %v2254_v60  ;;  %v2451_v7 = vor.u32 %v2450_v59, %v2449_v42  ;;  %vm2452_vm15 = vcmp.lt.s32.totalorder %v7334_v38, 1  ;;  %vm2454_vm0 = vcmp.lt.s32.totalorder %v7334_v38, 3 }
 0x273   : > { %v2242_v32 = vadd.f32 -0.4999988, %v2241_v9  ;;  %v2249_v20 = vadd.f32 -0.16666654, %v2248_v24  ;;  %v2364_v50 = vadd.s32 536870912, %v2363_v29  ;;  %vm2455_vm1 = vcmp.lt.s32.totalorder %v7334_v38, 4 }
 0x274   : > { %v2460_v4 = vsel %vm2452_vm15, %v7346_v2, %v7350_v14  ;;  %v2461_v35 = vsel %vm2455_vm1, %v2448_v18, 920167782  ;;  %v2464_v60 = vsel %vm2452_vm15, %v7350_v14, %v2445_v54  ;;  %v2465_v49 = vsel %vm2455_vm1, %v2451_v7, 1326507024 }
 0x275   : > { %v2243_v28 = vmul.f32 %v2242_v32, %v2238_v36  ;;  %v2250_v41 = vmul.f32 %v2249_v20, %v2238_v36  ;;  %v7371_v62 = vshrl.u32 %v2364_v50, 30  ;;  %v2462_v26 = vsel %vm2454_vm0, %v2445_v54, %v2461_v35 }
 0x276   : > { %vm2253_vm2 = vweird.f32 %v6870_v13  ;;  %vm2453_vm3 = vcmp.lt.s32.totalorder %v7334_v38, 2  ;;  %v2466_v22 = vsel %vm2454_vm0, %v2448_v18, %v2465_v49  ;;  %v7381_v12 = vshll.u32 %v2428_v5, 8 }
 0x277   : > { %v2244_v31 = vadd.f32 1.0, %v2243_v28  ;;  %v2251_v63 = vadd.f32 1.0, %v2250_v41  ;;  %v2366_v36 = vshll.u32 %v7371_v62, 30  ;;  %v2463_v27 = vsel %vm2453_vm3, %v2460_v4, %v2462_v26 }
 0x278   : > { %vm2256_vm4 = vcmp.lt.s32.totalorder %v2255_v6, 2  ;;  %vm2257_vm5 = vcmp.eq.s32.totalorder %v2255_v6, 0  ;;  %v2467_v51 = vsel %vm2453_vm3, %v2464_v60, %v2466_v22  ;;  %v2579_v57 = vshrl.u32 %v2578_v8, 23 }
 0x279   : > { %v2252_v46 = vmul.f32 %v2251_v63, %v2236_v10  ;;  %vm2260_vm6 = vcmp.eq.s32.totalorder %v2255_v6, 2  ;;  %v2261_v53 = vxor.u32 2147483648, %v2244_v31  ;;  %v2367_v5 = vsub.s32 %v2363_v29, %v2366_v36 }
 0x27a   : > { %v2469_v44 = vand.u32 65535, %v7381_v12  ;;  %v2471_v40 = vand.u32 65535, %v2467_v51  ;;  %v2472_v56 = vshrl.u32 %v2467_v51, 16  ;;  %v2494_v25 = vshrl.u32 %v2463_v27, 16 }
 0x27b   : > { %v2258_v43 = vxor.u32 2147483648, %v2252_v46  ;;  %vm2368_vm8 = vcmp.lt.s32.totalorder %v2367_v5, 0  ;;  %v2369_v37 = vsub.s32 0, %v2367_v5  ;;  %v2470_v11 = vshrl.u32 %v7381_v12, 16 }
 0x27c   : > { %v2436_v33 = vshrl.u32 %v5714_v52, %v7325_v30  ;;  %v2457_v8 = vsel %vm2455_vm1, %v2445_v54, 2102212464  ;;  %v2474_v10 = vmul.u32 %v2472_v56, %v2469_v44  ;;  %v2493_v47 = vand.u32 65535, %v2463_v27 }
 0x27d   : > { %v2259_v39 = vsel %vm2257_vm5, %v2244_v31, %v2258_v43  ;;  %v2262_v42 = vsel %vm2260_vm6, %v2261_v53, %v2252_v46  ;;  %v2370_v59 = vsel %vm2368_vm8, %v2369_v37, %v2367_v5  ;;  %v2475_v9 = vmul.u32 %v2471_v40, %v2470_v11 }
 0x27e   : > { %v2263_v24 = vsel %vm2256_vm4, %v2259_v39, %v2262_v42  ;;  %v2371_v29 = vclz %v2370_v59  ;;  %v2477_v18 = vshll.u32 %v2474_v10, 16  ;;  %v2496_v7 = vmul.u32 %v2494_v25, %v2469_v44  ;;  %v262_v39 = vpop.permute.xlu1 %261 }
 0x27f   : > { %v2264_v30 = vsel %vm2253_vm2, nan, %v2263_v24  ;;  %v2359_v54 = vadd.s32 %v7330_v21, %v7332_v15  ;;  %v2456_v32 = vsel %vm2452_vm15, %v2436_v33, %v7346_v2  ;;  %v2473_v20 = vmul.u32 %v2471_v40, %v2469_v44 }
 0x280   : > { %v5519_v50 = vadd.s32 4294967294, %v2371_v29  ;;  %v2458_v6 = vsel %vm2454_vm0, %v7350_v14, %v2457_v8  ;;  %v2476_v4 = vmul.u32 %v2472_v56, %v2470_v11  ;;  %v2495_v35 = vmul.u32 %v2493_v47, %v2469_v44  ;;  %5376 = vst [vmem:[%s6113_s4 + $0x58] sm:$0xff] %v2264_v30 }
 0x281   : > { %v2479_v60 = vshll.u32 %v2475_v9, 16  ;;  %vm2481_vm7 = vc.u32 %v2473_v20, %v2477_v18  ;;  %v2483_v13 = vadd.s32 %v2477_v18, %v2473_v20  ;;  %v2497_v49 = vmul.u32 %v2493_v47, %v2470_v11 }
 0x282   : > { %vm5520_vm9 = vcmp.lt.s32.totalorder %v5519_v50, 0  ;;  %v2478_v28 = vshrl.u32 %v2474_v10, 16  ;;  %v2482_v21 = vsel %vm2481_vm7, 1, %v5713_v0  ;;  %v2499_v15 = vshll.u32 %v2496_v7, 16 }
 0x283   : > { %v2374_v41 = vsel %vm5520_vm9, 0, %v5519_v50  ;;  %v2484_v2 = vadd.s32 %v2482_v21, %v2476_v4  ;;  %vm2485_vm10 = vc.u32 %v2483_v13, %v2479_v60  ;;  %v2498_v26 = vmul.u32 %v2494_v25, %v2470_v11 }
 0x284   : > { %v2375_v22 = vsub.s32 32, %v2374_v41  ;;  %v2379_v31 = vsub.s32 4294967266, %v2374_v41  ;;  %v2486_v14 = vsel %vm2485_vm10, 1, %v5713_v0  ;;  %v2501_v63 = vshll.u32 %v2497_v49, 16 }
 0x285   : > { %v2376_v36 = vshll.u32 %v2367_v5, %v2374_v41  ;;  %v2488_v27 = vadd.s32 %v2486_v14, %v2484_v2  ;;  %vm2503_vm11 = vc.u32 %v2495_v35, %v2499_v15  ;;  %v2505_v51 = vadd.s32 %v2499_v15, %v2495_v35 }
 0x286   : > { %v2377_v46 = vshrl.u32 %v2359_v54, %v2375_v22  ;;  %v2380_v53 = vadd.s32 127, %v2379_v31  ;;  %v2504_v44 = vsel %vm2503_vm11, 1, %v5713_v0  ;;  %v5524_v40 = vadd.s32 4294967169, %v2579_v57 }
 0x287   : > { %v2389_v56 = vsub.s32 4, %v7371_v62  ;;  %v2489_v43 = vadd.s32 %v2488_v27, %v2478_v28  ;;  %v2506_v37 = vadd.s32 %v2504_v44, %v2498_v26  ;;  %vm2507_vm12 = vc.u32 %v2505_v51, %v2501_v63 }
 0x288   : > { %v2378_v25 = vor.u32 %v2377_v46, %v2376_v36  ;;  %v2381_v11 = vshll.u32 %v2380_v53, 23  ;;  %v2480_v33 = vshrl.u32 %v2475_v9, 16  ;;  %v2508_v8 = vsel %vm2507_vm12, 1, %v5713_v0  ;;  %v257_v53 = vpop.permute.xlu0 %256 }
 0x289   : > { %vm2267_vm14 = vcmp.lt.s32.totalorder %v7127_v16, 0  ;;  %v2500_v5 = vshrl.u32 %v2496_v7, 16  ;;  %v2510_v10 = vadd.s32 %v2508_v8, %v2506_v37  ;;  %v2585_v47 = vadd.s32 1, %v5524_v40 }
 0x28a   : > { %v2382_v42 = vor.u32 4788187, %v2381_v11  ;;  %v2459_v57 = vsel %vm2453_vm3, %v2456_v32, %v2458_v6  ;;  %v7418_v59 = vadd.s32 %v2489_v43, %v2480_v33  ;;  %v2575_v24 = vand.u32 2147483647, %v7216_v17 }
 0x28b   : > { %v2390_v9 = vsel %vm2267_vm14, %v2389_v56, %v7371_v62  ;;  %v2502_v29 = vshrl.u32 %v2497_v49, 16  ;;  %v2511_v18 = vadd.s32 %v2510_v10, %v2500_v5  ;;  %vm2586_vm13 = vcmp.gt.s32.totalorder %v2585_v47, 0 }
 0x28c   : > { %v2383_v30 = vand.u32 2147483647, %v2382_v42  ;;  %v2385_v7 = vcvt.s32.f32 %v2378_v25  ;;  %v7424_v54 = vadd.s32 %v2505_v51, %v2501_v63  ;;  %v2587_v20 = vsel %vm2586_vm13, %v2585_v47, 0 }
 0x28d   : > { %v356_v50 = vmul.f32 %v7201_v45, %v262_v39  ;;  %v2512_v38 = vadd.s32 %v2511_v18, %v2502_v29  ;;  %v2589_v32 = vand.u32 31, %v2587_v20  ;;  %vm7429_vm15 = vcmp.le.f32.partialorder %v2265_v34, 0.7853982 }
 0x28e   : > { %v2386_v4 = vmul.f32 %v2385_v7, %v2383_v30  ;;  %v2513_v62 = vmul.u32 %v7381_v12, %v2459_v57  ;;  %vm2515_vm0 = vc.u32 %v7418_v59, %v7424_v54  ;;  %v2392_v35 = vsel %vm7429_vm15, 0, %v2390_v9 }
 0x28f   : > { %v2516_v60 = vadd.s32 1, %v2512_v38  ;;  %v2582_v13 = vand.u32 8388607, %v2575_v24  ;;  %v7440_v49 = vsub.s32 32, %v2589_v32  ;;  %v7442_v34 = vshrl.u32 %v2587_v20, 5 }
 0x290   : > { %v2387_v28 = vxor.u32 2147483648, %v2386_v4  ;;  %v2592_v21 = vshll.u32 %v5714_v52, %v2589_v32  ;;  %v2595_v15 = vshll.u32 %v5715_v55, %v2589_v32  ;;  %v2601_v26 = vshll.u32 %v5717_v61, %v2589_v32 }
 0x291   : > { %v2517_v12 = vsel %vm2515_vm0, %v2516_v60, %v2512_v38  ;;  %v2593_v41 = vshrl.u32 %v5715_v55, %v7440_v49  ;;  %v2596_v2 = vshrl.u32 %v5716_v58, %v7440_v49  ;;  %v2599_v14 = vshrl.u32 %v5717_v61, %v7440_v49 }
 0x292   : > { %v2388_v22 = vsel %vm2267_vm14, %v2387_v28, %v2386_v4  ;;  %v2518_v31 = vadd.s32 %v2517_v12, %v2513_v62  ;;  %v2602_v63 = vshrl.u32 %v5718_v1, %v7440_v49  ;;  %v2598_v27 = vshll.u32 %v5716_v58, %v2589_v32 }
 0x293   : > { %v2391_v36 = vsel %vm7429_vm15, %v7127_v16, %v2388_v22  ;;  %v2604_v51 = vshll.u32 %v5718_v1, %v2589_v32  ;;  %v2605_v46 = vshrl.u32 %v5719_v3, %v7440_v49  ;;  %v2583_v56 = vor.u32 8388608, %v2582_v13 }
 0x294   : > { %v2393_v44 = vmul.f32 %v2391_v36, %v2391_v36  ;;  %v2519_v40 = vadd.s32 536870912, %v2518_v31  ;;  %v2603_v43 = vor.u32 %v2602_v63, %v2601_v26  ;;  %v7464_v37 = vor.u32 %v2593_v41, %v2592_v21 }
 0x295   : > { %v7466_v25 = vor.u32 %v2596_v2, %v2595_v15  ;;  %v7468_v11 = vor.u32 %v2599_v14, %v2598_v27  ;;  %v2606_v33 = vor.u32 %v2605_v46, %v2604_v51  ;;  %vm2610_vm1 = vcmp.lt.s32.totalorder %v7442_v34, 4 }
 0x296   : > { %v2394_v8 = vmul.f32 -0.001358992, %v2393_v44  ;;  %v2401_v5 = vmul.f32 -0.00019511016, %v2393_v44  ;;  %v7470_v10 = vshrl.u32 %v2519_v40, 30  ;;  %v355_v47 = vmul.f32 %v7201_v45, %v257_v53 }
 0x297   : > { %v2409_v39 = vadd.s32 3, %v2392_v35  ;;  %vm2607_vm2 = vcmp.lt.s32.totalorder %v7442_v34, 1  ;;  %v2616_v42 = vsel %vm2610_vm1, %v2603_v43, 920167782  ;;  %vm2609_vm3 = vcmp.lt.s32.totalorder %v7442_v34, 3 }
 0x298   : > { %v2395_v57 = vadd.f32 0.041655596, %v2394_v8  ;;  %v2402_v9 = vadd.f32 0.008332121, %v2401_v5  ;;  %v2521_v29 = vshll.u32 %v7470_v10, 30  ;;  %v2615_v18 = vsel %vm2607_vm2, %v7464_v37, %v7466_v25 }
 0x299   : > { %v2617_v30 = vsel %vm2609_vm3, %v7468_v11, %v2616_v42  ;;  %v2620_v7 = vsel %vm2610_vm1, %v2606_v33, 1326507024  ;;  %v7488_v20 = vshll.u32 %v2583_v56, 8  ;;  %v2619_v4 = vsel %vm2607_vm2, %v7466_v25, %v7468_v11 }
 0x29a   : > { %v2396_v38 = vmul.f32 %v2395_v57, %v2393_v44  ;;  %v2403_v32 = vmul.f32 %v2402_v9, %v2393_v44  ;;  %v2522_v6 = vsub.s32 %v2518_v31, %v2521_v29  ;;  %v7495_v62 = vadd.f32 %v7213_v23, %v356_v50 }
 0x29b   : > { %v2410_v35 = vand.u32 3, %v2409_v39  ;;  %vm2608_vm4 = vcmp.lt.s32.totalorder %v7442_v34, 2  ;;  %v2621_v60 = vsel %vm2609_vm3, %v2603_v43, %v2620_v7  ;;  %v7501_v15 = vadd.f32 %v7213_v23, %v355_v47 }
 0x29c   : > { %v2397_v13 = vadd.f32 -0.4999988, %v2396_v38  ;;  %v2404_v28 = vadd.f32 -0.16666654, %v2403_v32  ;;  %vm2523_vm5 = vcmp.lt.s32.totalorder %v2522_v6, 0  ;;  %v2524_v21 = vsub.s32 0, %v2522_v6 }
 0x29d   : > { %v2618_v12 = vsel %vm2608_vm4, %v2615_v18, %v2617_v30  ;;  %v2622_v50 = vsel %vm2608_vm4, %v2619_v4, %v2621_v60  ;;  %v2625_v41 = vshrl.u32 %v7488_v20, 16  ;;  %vm2408_vm6 = vweird.f32 %v7127_v16 }
 0x29e   : > { %v2398_v2 = vmul.f32 %v2397_v13, %v2393_v44  ;;  %v2405_v26 = vmul.f32 %v2404_v28, %v2393_v44  ;;  %v2525_v22 = vsel %vm2523_vm5, %v2524_v21, %v2522_v6  ;;  %v2626_v31 = vand.u32 65535, %v2622_v50 }
 0x29f   : > { %vm2411_vm8 = vcmp.lt.s32.totalorder %v2410_v35, 2  ;;  %v2526_v14 = vclz %v2525_v22  ;;  %v2624_v63 = vand.u32 65535, %v7488_v20  ;;  %v2627_v27 = vshrl.u32 %v2622_v50, 16 }
 0x2a0   : > { %v2399_v51 = vadd.f32 1.0, %v2398_v2  ;;  %v2406_v46 = vadd.f32 1.0, %v2405_v26  ;;  %v7510_v53 = vmul.u32 %v2626_v31, %v2625_v41  ;;  %v2649_v40 = vshrl.u32 %v2618_v12, 16 }
 0x2a1   : > { %vm2412_vm7 = vcmp.eq.s32.totalorder %v2410_v35, 0  ;;  %vm2415_vm9 = vcmp.eq.s32.totalorder %v2410_v35, 2  ;;  %v2514_v56 = vadd.s32 %v7424_v54, %v7418_v59  ;;  %v5522_v44 = vadd.s32 4294967294, %v2526_v14 }
 0x2a2   : > { %v2407_v43 = vmul.f32 %v2406_v46, %v2391_v36  ;;  %v2416_v33 = vxor.u32 2147483648, %v2399_v51  ;;  %v2629_v8 = vmul.u32 %v2627_v27, %v2624_v63  ;;  %v2648_v5 = vand.u32 65535, %v2618_v12 }
 0x2a3   : > { %vm5523_vm10 = vcmp.lt.s32.totalorder %v5522_v44, 0  ;;  %v2628_v47 = vmul.u32 %v2626_v31, %v2624_v63  ;;  %v2631_v39 = vmul.u32 %v2627_v27, %v2625_v41  ;;  %v2634_v42 = vshll.u32 %v7510_v53, 16 }
 0x2a4   : > { %v2413_v57 = vxor.u32 2147483648, %v2407_v43  ;;  %v2529_v9 = vsel %vm5523_vm10, 0, %v5522_v44  ;;  %v2632_v29 = vshll.u32 %v2629_v8, 16  ;;  %v2651_v18 = vmul.u32 %v2649_v40, %v2624_v63 }
 0x2a5   : > { %v2417_v30 = vsel %vm2415_vm9, %v2416_v33, %v2407_v43  ;;  %vm2422_vm11 = vcmp.lt.s32.totalorder %v7111_v48, 0  ;;  %v2530_v7 = vsub.s32 32, %v2529_v9  ;;  %v2531_v38 = vshll.u32 %v2522_v6, %v2529_v9 }
 0x2a6   : > { %v2534_v59 = vsub.s32 4294967266, %v2529_v9  ;;  %v2414_v54 = vsel %vm2412_vm7, %v2399_v51, %v2413_v57  ;;  %vm2636_vm12 = vc.u32 %v2628_v47, %v2632_v29  ;;  %v2638_v36 = vadd.s32 %v2632_v29, %v2628_v47 }
 0x2a7   : > { %v2652_v32 = vmul.u32 %v2648_v5, %v2625_v41  ;;  %v2418_v4 = vsel %vm2411_vm8, %v2414_v54, %v2417_v30  ;;  %v2532_v60 = vshrl.u32 %v2514_v56, %v2530_v7  ;;  %v2637_v28 = vsel %vm2636_vm12, 1, %v5713_v0 }
 0x2a8   : > { %v2535_v13 = vadd.s32 127, %v2534_v59  ;;  %v2419_v21 = vsel %vm2408_vm6, nan, %v2418_v4  ;;  %v2639_v12 = vadd.s32 %v2637_v28, %v2631_v39  ;;  %vm2640_vm14 = vc.u32 %v2638_v36, %v2634_v42  ;;  %v267_v4 = vpop.permute.xlu2 %266 }
 0x2a9   : > { %v2650_v50 = vmul.u32 %v2648_v5, %v2624_v63  ;;  %vm7523_vm13 = vcmp.le.f32.partialorder %v2420_v19, 0.7853982  ;;  %v2533_v2 = vor.u32 %v2532_v60, %v2531_v38  ;;  %v2641_v35 = vsel %vm2640_vm14, 1, %v5713_v0  ;;  %5377 = vst [vmem:[%s6113_s4 + $0x60] sm:$0xff] %v2419_v21 }
 0x2aa   : > { %v2536_v26 = vshll.u32 %v2535_v13, 23  ;;  %v2654_v22 = vshll.u32 %v2651_v18, 16  ;;  %v2544_v31 = vsub.s32 4, %v7470_v10  ;;  %v2633_v14 = vshrl.u32 %v2629_v8, 16 }
 0x2ab   : > { %v2643_v16 = vadd.s32 %v2641_v35, %v2639_v12  ;;  %v2653_v27 = vmul.u32 %v2649_v40, %v2625_v41  ;;  %v2656_v46 = vshll.u32 %v2652_v32, 16  ;;  %v2540_v56 = vcvt.s32.f32 %v2533_v2 }
 0x2ac   : > { %v2537_v51 = vor.u32 4788187, %v2536_v26  ;;  %vm2658_vm15 = vc.u32 %v2650_v50, %v2654_v22  ;;  %v2660_v63 = vadd.s32 %v2654_v22, %v2650_v50  ;;  %v2612_v19 = vsel %vm2610_vm1, %v7468_v11, 2102212464 }
 0x2ad   : > { %v2644_v44 = vadd.s32 %v2643_v16, %v2633_v14  ;;  %v2659_v43 = vsel %vm2658_vm15, 1, %v5713_v0  ;;  %v2730_v47 = vand.u32 2147483647, %v7501_v15  ;;  %v2545_v41 = vsel %vm2422_vm11, %v2544_v31, %v7470_v10 }
 0x2ae   : > { %v2538_v33 = vand.u32 2147483647, %v2537_v51  ;;  %v2661_v5 = vadd.s32 %v2659_v43, %v2653_v27  ;;  %vm2662_vm0 = vc.u32 %v2660_v63, %v2656_v46  ;;  %v2591_v40 = vshrl.u32 %v5714_v52, %v7440_v49 }
 0x2af   : > { %v2635_v8 = vshrl.u32 %v7510_v53, 16  ;;  %v2663_v39 = vsel %vm2662_vm0, 1, %v5713_v0  ;;  %v2655_v42 = vshrl.u32 %v2651_v18, 16  ;;  %v2733_v9 = vand.u32 2139095040, %v7501_v15 }
 0x2b0   : > { %v2541_v11 = vmul.f32 %v2540_v56, %v2538_v33  ;;  %v2665_v57 = vadd.s32 %v2663_v39, %v2661_v5  ;;  %v2611_v29 = vsel %vm2607_vm2, %v2591_v40, %v7464_v37  ;;  %v2613_v10 = vsel %vm2609_vm3, %v7466_v25, %v2612_v19 }
 0x2b1   : > { %v2645_v30 = vadd.s32 %v2644_v44, %v2635_v8  ;;  %v2657_v7 = vshrl.u32 %v2652_v32, 16  ;;  %v2734_v53 = vshrl.u32 %v2733_v9, 23  ;;  %v2737_v59 = vand.u32 8388607, %v2730_v47 }
 0x2b2   : > { %v2542_v49 = vxor.u32 2147483648, %v2541_v11  ;;  %v2666_v38 = vadd.s32 %v2665_v57, %v2655_v42  ;;  %v2547_v18 = vsel %vm7523_vm13, 0, %v2545_v41  ;;  %v2664_v54 = vadd.s32 %v2660_v63, %v2656_v46 }
 0x2b3   : > { %v2888_v36 = vand.u32 2139095040, %v7495_v62  ;;  %v2614_v25 = vsel %vm2608_vm4, %v2611_v29, %v2613_v10  ;;  %v5527_v60 = vadd.s32 4294967169, %v2734_v53  ;;  %v2738_v12 = vor.u32 8388608, %v2737_v59 }
 0x2b4   : > { %v2543_v37 = vsel %vm2422_vm11, %v2542_v49, %v2541_v11  ;;  %v2667_v32 = vadd.s32 %v2666_v38, %v2657_v7  ;;  %vm2670_vm1 = vc.u32 %v2645_v30, %v2664_v54  ;;  %v357_v2 = vmul.f32 %v7201_v45, %v267_v4 }
 0x2b5   : > { %v2546_v13 = vsel %vm7523_vm13, %v7111_v48, %v2543_v37  ;;  %v2740_v50 = vadd.s32 1, %v5527_v60  ;;  %v2564_v26 = vadd.s32 3, %v2547_v18  ;;  %v2668_v35 = vmul.u32 %v7488_v20, %v2614_v25 }
 0x2b6   : > { %v2548_v28 = vmul.f32 %v2546_v13, %v2546_v13  ;;  %v2671_v21 = vadd.s32 1, %v2667_v32  ;;  %v2889_v22 = vshrl.u32 %v2888_v36, 23  ;;  %v2885_v6 = vand.u32 2147483647, %v7495_v62 }
 0x2b7   : > { %vm2741_vm2 = vcmp.gt.s32.totalorder %v2740_v50, 0  ;;  %v7564_v56 = vshll.u32 %v2738_v12, 8  ;;  %v2565_v19 = vand.u32 3, %v2564_v26  ;;  %v7567_v43 = vadd.f32 %v7213_v23, %v357_v2 }
 0x2b8   : > { %v2549_v31 = vmul.f32 -0.001358992, %v2548_v28  ;;  %v2556_v34 = vmul.f32 -0.00019511016, %v2548_v28  ;;  %v2672_v14 = vsel %vm2670_vm1, %v2671_v21, %v2667_v32  ;;  %v2742_v27 = vsel %vm2741_vm2, %v2740_v50, 0 }
 0x2b9   : > { %v2673_v16 = vadd.s32 %v2672_v14, %v2668_v35  ;;  %v2744_v63 = vand.u32 31, %v2742_v27  ;;  %v5530_v45 = vadd.s32 4294967169, %v2889_v22  ;;  %vm2577_vm3 = vcmp.lt.s32.totalorder %v7216_v17, 0 }
 0x2ba   : > { %v2550_v51 = vadd.f32 0.041655596, %v2549_v31  ;;  %v2557_v46 = vadd.f32 0.008332121, %v2556_v34  ;;  %v7570_v41 = vadd.s32 %v2664_v54, %v2645_v30  ;;  %v7574_v8 = vand.u32 8388607, %v2885_v6 }
 0x2bb   : > { %v2674_v44 = vadd.s32 536870912, %v2673_v16  ;;  %v2745_v5 = vsub.s32 32, %v2744_v63  ;;  %v7577_v42 = vand.u32 65535, %v7564_v56  ;;  %v7580_v23 = vshrl.u32 %v7564_v56, 16 }
 0x2bc   : > { %v2551_v20 = vmul.f32 %v2550_v51, %v2548_v28  ;;  %v2558_v33 = vmul.f32 %v2557_v46, %v2548_v28  ;;  %vm2567_vm4 = vcmp.eq.s32.totalorder %v2565_v19, 0  ;;  %vm2570_vm5 = vcmp.eq.s32.totalorder %v2565_v19, 2 }
 0x2bd   : > { %v2675_v40 = vshrl.u32 %v2674_v44, 30  ;;  %v7582_v9 = vshrl.u32 %v2742_v27, 5  ;;  %v2748_v29 = vshrl.u32 %v5715_v55, %v2745_v5  ;;  %v7585_v10 = vadd.s32 1, %v5530_v45 }
 0x2be   : > { %v2552_v39 = vadd.f32 -0.4999988, %v2551_v20  ;;  %v2559_v11 = vadd.f32 -0.16666654, %v2558_v33  ;;  %vm2566_vm6 = vcmp.lt.s32.totalorder %v2565_v19, 2  ;;  %v2747_v49 = vshll.u32 %v5714_v52, %v2744_v63 }
 0x2bf   : > { %v2676_v57 = vshll.u32 %v2675_v40, 30  ;;  %v2751_v38 = vshrl.u32 %v5716_v58, %v2745_v5  ;;  %vm2563_vm8 = vweird.f32 %v7111_v48  ;;  %v2750_v59 = vshll.u32 %v5715_v55, %v2744_v63 }
 0x2c0   : > { %v2553_v30 = vmul.f32 %v2552_v39, %v2548_v28  ;;  %v2560_v7 = vmul.f32 %v2559_v11, %v2548_v28  ;;  %v2754_v18 = vshrl.u32 %v5717_v61, %v2745_v5  ;;  %v2757_v54 = vshrl.u32 %v5718_v1, %v2745_v5 }
 0x2c1   : > { %v7590_v53 = vsub.s32 %v2673_v16, %v2676_v57  ;;  %v2699_v37 = vsub.s32 4, %v2675_v40  ;;  %v2753_v25 = vshll.u32 %v5716_v58, %v2744_v63  ;;  %v2749_v60 = vor.u32 %v2748_v29, %v2747_v49 }
 0x2c2   : > { %v2554_v36 = vadd.f32 1.0, %v2553_v30  ;;  %v2561_v4 = vadd.f32 1.0, %v2560_v7  ;;  %v2756_v28 = vshll.u32 %v5717_v61, %v2744_v63  ;;  %v2752_v50 = vor.u32 %v2751_v38, %v2750_v59 }
 0x2c3   : > { %vm2678_vm7 = vcmp.lt.s32.totalorder %v7590_v53, 0  ;;  %v2679_v32 = vsub.s32 0, %v7590_v53  ;;  %v2760_v2 = vshrl.u32 %v5719_v3, %v2745_v5  ;;  %v2755_v35 = vor.u32 %v2754_v18, %v2753_v25 }
 0x2c4   : > { %v2562_v21 = vmul.f32 %v2561_v4, %v2546_v13  ;;  %v2571_v12 = vxor.u32 2147483648, %v2554_v36  ;;  %v2758_v22 = vor.u32 %v2757_v54, %v2756_v28  ;;  %v2759_v31 = vshll.u32 %v5718_v1, %v2744_v63 }
 0x2c5   : > { %v2680_v26 = vsel %vm2678_vm7, %v2679_v32, %v7590_v53  ;;  %v7604_v16 = vsel %vm2577_vm3, %v2699_v37, %v2675_v40  ;;  %v2746_v27 = vshrl.u32 %v5714_v52, %v2745_v5  ;;  %vm7609_vm9 = vcmp.le.f32.partialorder %v2575_v24, 0.7853982 }
 0x2c6   : > { %v2568_v34 = vxor.u32 2147483648, %v2562_v21  ;;  %v2681_v14 = vclz %v2680_v26  ;;  %v2761_v51 = vor.u32 %v2760_v2, %v2759_v31  ;;  %vm2762_vm10 = vcmp.lt.s32.totalorder %v7582_v9, 1 }
 0x2c7   : > { %vm2763_vm11 = vcmp.lt.s32.totalorder %v7582_v9, 2  ;;  %vm2764_vm12 = vcmp.lt.s32.totalorder %v7582_v9, 3  ;;  %v2572_v63 = vsel %vm2570_vm5, %v2571_v12, %v2562_v21  ;;  %vm2765_vm14 = vcmp.lt.s32.totalorder %v7582_v9, 4 }
 0x2c8   : > { %v2569_v46 = vsel %vm2567_vm4, %v2554_v36, %v2568_v34  ;;  %v5525_v44 = vadd.s32 4294967294, %v2681_v14  ;;  %v2767_v45 = vsel %vm2765_vm14, %v2755_v35, 2102212464  ;;  %v2770_v20 = vsel %vm2762_vm10, %v2749_v60, %v2752_v50 }
 0x2c9   : > { %v2573_v24 = vsel %vm2566_vm6, %v2569_v46, %v2572_v63  ;;  %v2771_v33 = vsel %vm2765_vm14, %v2758_v22, 920167782  ;;  %v2766_v40 = vsel %vm2762_vm10, %v2746_v27, %v2749_v60  ;;  %v2774_v57 = vsel %vm2762_vm10, %v2752_v50, %v2755_v35 }
 0x2ca   : > { %v2574_v5 = vsel %vm2563_vm8, nan, %v2573_v24  ;;  %vm5526_vm13 = vcmp.lt.s32.totalorder %v5525_v44, 0  ;;  %v2772_v39 = vsel %vm2764_vm12, %v2755_v35, %v2771_v33  ;;  %v2775_v29 = vsel %vm2765_vm14, %v2761_v51, 1326507024 }
 0x2cb   : > { %v2684_v11 = vsel %vm5526_vm13, 0, %v5525_v44  ;;  %v2773_v19 = vsel %vm2763_vm11, %v2770_v20, %v2772_v39  ;;  %5378 = vst [vmem:[%s6113_s4 + $0x68] sm:$0xff] %v2574_v5  ;;  %v2768_v48 = vsel %vm2764_vm12, %v2752_v50, %v2767_v45  ;;  %v2776_v49 = vsel %vm2764_vm12, %v2758_v22, %v2775_v29 }
 0x2cc   : > { %v2685_v30 = vsub.s32 32, %v2684_v11  ;;  %v2689_v7 = vsub.s32 4294967266, %v2684_v11  ;;  %v2686_v38 = vshll.u32 %v7590_v53, %v2684_v11  ;;  %v2777_v59 = vsel %vm2763_vm11, %v2774_v57, %v2776_v49 }
 0x2cd   : > { %v2803_v18 = vand.u32 65535, %v2773_v19  ;;  %v2804_v54 = vshrl.u32 %v2773_v19, 16  ;;  %v2781_v37 = vand.u32 65535, %v2777_v59  ;;  %v2782_v25 = vshrl.u32 %v2777_v59, 16 }
 0x2ce   : > { %v2687_v36 = vshrl.u32 %v7570_v41, %v2685_v30  ;;  %v2690_v4 = vadd.s32 127, %v2689_v7  ;;  %v2893_v28 = vor.u32 8388608, %v7574_v8  ;;  %vm2896_vm15 = vcmp.gt.s32.totalorder %v7585_v10, 0 }
 0x2cf   : > { %v2806_v32 = vmul.u32 %v2804_v54, %v7577_v42  ;;  %v2807_v60 = vmul.u32 %v2803_v18, %v7580_v23  ;;  %v2702_v12 = vsel %vm7609_vm9, 0, %v7604_v16  ;;  %v2784_v50 = vmul.u32 %v2782_v25, %v7577_v42 }
 0x2d0   : > { %v2688_v21 = vor.u32 %v2687_v36, %v2686_v38  ;;  %v2691_v53 = vshll.u32 %v2690_v4, 23  ;;  %v7651_v41 = vsel %vm2763_vm11, %v2766_v40, %v2768_v48  ;;  %v2785_v2 = vmul.u32 %v2781_v37, %v7580_v23 }
 0x2d1   : > { %v2805_v26 = vmul.u32 %v2803_v18, %v7577_v42  ;;  %v2809_v35 = vshll.u32 %v2806_v32, 16  ;;  %v2783_v31 = vmul.u32 %v2781_v37, %v7577_v42  ;;  %v2787_v34 = vshll.u32 %v2784_v50, 16 }
 0x2d2   : > { %v2692_v22 = vor.u32 4788187, %v2691_v53  ;;  %v2808_v14 = vmul.u32 %v2804_v54, %v7580_v23  ;;  %v2695_v27 = vcvt.s32.f32 %v2688_v21  ;;  %v2786_v16 = vmul.u32 %v2782_v25, %v7580_v23 }
 0x2d3   : > { %v2789_v51 = vshll.u32 %v2785_v2, 16  ;;  %v2811_v46 = vshll.u32 %v2807_v60, 16  ;;  %vm2791_vm0 = vc.u32 %v2783_v31, %v2787_v34  ;;  %v2793_v9 = vadd.s32 %v2787_v34, %v2783_v31 }
 0x2d4   : > { %v2693_v63 = vand.u32 2147483647, %v2692_v22  ;;  %vm2813_vm1 = vc.u32 %v2805_v26, %v2809_v35  ;;  %v2792_v44 = vsel %vm2791_vm0, 1, %v5713_v0  ;;  %v2815_v45 = vadd.s32 %v2809_v35, %v2805_v26 }
 0x2d5   : > { %v2814_v24 = vsel %vm2813_vm1, 1, %v5713_v0  ;;  %v2897_v42 = vsel %vm2896_vm15, %v7585_v10, 0  ;;  %v2794_v33 = vadd.s32 %v2792_v44, %v2786_v16  ;;  %vm2795_vm2 = vc.u32 %v2793_v9, %v2789_v51 }
 0x2d6   : > { %v2696_v20 = vmul.f32 %v2695_v27, %v2693_v63  ;;  %v2816_v5 = vadd.s32 %v2814_v24, %v2808_v14  ;;  %v2788_v23 = vshrl.u32 %v2784_v50, 16  ;;  %v2796_v40 = vsel %vm2795_vm2, 1, %v5713_v0 }
 0x2d7   : > { %vm2817_vm4 = vc.u32 %v2815_v45, %v2811_v46  ;;  %v3043_v39 = vand.u32 2139095040, %v7567_v43  ;;  %v2798_v19 = vadd.s32 %v2796_v40, %v2794_v33  ;;  %v2899_v29 = vand.u32 31, %v2897_v42 }
 0x2d8   : > { %v2697_v11 = vxor.u32 2147483648, %v2696_v20  ;;  %v2818_v57 = vsel %vm2817_vm4, 1, %v5713_v0  ;;  %v2719_v30 = vadd.s32 3, %v2702_v12  ;;  %v2810_v7 = vshrl.u32 %v2806_v32, 16 }
 0x2d9   : > { %v2820_v48 = vadd.s32 %v2818_v57, %v2816_v5  ;;  %v2823_v10 = vmul.u32 %v7564_v56, %v7651_v41  ;;  %v2790_v38 = vshrl.u32 %v2785_v2, 16  ;;  %v2799_v59 = vadd.s32 %v2798_v19, %v2788_v23 }
 0x2da   : > { %v2698_v49 = vsel %vm2577_vm3, %v2697_v11, %v2696_v20  ;;  %v7670_v18 = vsub.s32 32, %v2899_v29  ;;  %v2812_v36 = vshrl.u32 %v2807_v60, 16  ;;  %v7675_v4 = vadd.s32 %v2815_v45, %v2811_v46 }
 0x2db   : > { %v2701_v54 = vsel %vm7609_vm9, %v7216_v17, %v2698_v49  ;;  %v2821_v37 = vadd.s32 %v2820_v48, %v2810_v7  ;;  %v7677_v32 = vadd.s32 %v2799_v59, %v2790_v38  ;;  %v7679_v21 = vshrl.u32 %v2897_v42, 5 }
 0x2dc   : > { %v2703_v25 = vmul.f32 %v2701_v54, %v2701_v54  ;;  %v2903_v56 = vshrl.u32 %v5715_v55, %v7670_v18  ;;  %v2902_v12 = vshll.u32 %v5714_v52, %v2899_v29  ;;  %v2906_v50 = vshrl.u32 %v5716_v58, %v7670_v18 }
 0x2dd   : > { %v2822_v53 = vadd.s32 %v2821_v37, %v2812_v36  ;;  %v2909_v13 = vshrl.u32 %v5717_v61, %v7670_v18  ;;  %vm2825_vm3 = vc.u32 %v7677_v32, %v7675_v4  ;;  %v2905_v2 = vshll.u32 %v5715_v55, %v2899_v29 }
 0x2de   : > { %v2704_v60 = vmul.f32 -0.001358992, %v2703_v25  ;;  %v2711_v41 = vmul.f32 -0.00019511016, %v2703_v25  ;;  %v7691_v35 = vor.u32 %v2903_v56, %v2902_v12  ;;  %v2908_v22 = vshll.u32 %v5716_v58, %v2899_v29 }
 0x2df   : > { %v2826_v26 = vadd.s32 1, %v2822_v53  ;;  %v2911_v31 = vshll.u32 %v5717_v61, %v2899_v29  ;;  %v7695_v27 = vor.u32 %v2906_v50, %v2905_v2  ;;  %v2912_v16 = vshrl.u32 %v5718_v1, %v7670_v18 }
 0x2e0   : > { %v2705_v34 = vadd.f32 0.041655596, %v2704_v60  ;;  %v2712_v14 = vadd.f32 0.008332121, %v2711_v41  ;;  %v2910_v46 = vor.u32 %v2909_v13, %v2908_v22  ;;  %v2914_v63 = vshll.u32 %v5718_v1, %v2899_v29 }
 0x2e1   : > { %v2827_v51 = vsel %vm2825_vm3, %v2826_v26, %v2822_v53  ;;  %v2915_v9 = vshrl.u32 %v5719_v3, %v7670_v18  ;;  %v2913_v42 = vor.u32 %v2912_v16, %v2911_v31  ;;  %v2720_v20 = vand.u32 3, %v2719_v30 }
 0x2e2   : > { %v2706_v44 = vmul.f32 %v2705_v34, %v2703_v25  ;;  %v2713_v24 = vmul.f32 %v2712_v14, %v2703_v25  ;;  %v2828_v45 = vadd.s32 %v2827_v51, %v2823_v10  ;;  %vm2917_vm5 = vcmp.lt.s32.totalorder %v7679_v21, 1 }
 0x2e3   : > { %v2916_v33 = vor.u32 %v2915_v9, %v2914_v63  ;;  %vm2919_vm6 = vcmp.lt.s32.totalorder %v7679_v21, 3  ;;  %vm2920_vm8 = vcmp.lt.s32.totalorder %v7679_v21, 4  ;;  %v2925_v11 = vsel %vm2917_vm5, %v7691_v35, %v7695_v27 }
 0x2e4   : > { %v2707_v5 = vadd.f32 -0.4999988, %v2706_v44  ;;  %v2714_v23 = vadd.f32 -0.16666654, %v2713_v24  ;;  %v2829_v40 = vadd.s32 536870912, %v2828_v45  ;;  %v2929_v57 = vsel %vm2917_vm5, %v7695_v27, %v2910_v46 }
 0x2e5   : > { %v2926_v19 = vsel %vm2920_vm8, %v2913_v42, 920167782  ;;  %v2930_v29 = vsel %vm2920_vm8, %v2916_v33, 1326507024  ;;  %vm2718_vm7 = vweird.f32 %v7216_v17  ;;  %vm2918_vm9 = vcmp.lt.s32.totalorder %v7679_v21, 2 }
 0x2e6   : > { %v2708_v30 = vmul.f32 %v2707_v5, %v2703_v25  ;;  %v2715_v7 = vmul.f32 %v2714_v23, %v2703_v25  ;;  %v7716_v48 = vshrl.u32 %v2829_v40, 30  ;;  %v2927_v10 = vsel %vm2919_vm6, %v2910_v46, %v2926_v19  ;;  %v7774_v21 = vld [vmem:[%s9600_s1] ss:$0 sm:$0xff] }
 0x2e7   : > { %v2931_v49 = vsel %vm2919_vm6, %v2913_v42, %v2930_v29  ;;  %v7726_v38 = vshll.u32 %v2893_v28, 8  ;;  %v2928_v25 = vsel %vm2918_vm9, %v2925_v11, %v2927_v10  ;;  %vm2721_vm10 = vcmp.lt.s32.totalorder %v2720_v20, 2 }
 0x2e8   : > { %v2709_v59 = vadd.f32 1.0, %v2708_v30  ;;  %v2716_v36 = vadd.f32 1.0, %v2715_v7  ;;  %v2831_v37 = vshll.u32 %v7716_v48, 30  ;;  %vm2722_vm11 = vcmp.eq.s32.totalorder %v2720_v20, 0 }
 0x2e9   : > { %v2932_v56 = vsel %vm2918_vm9, %v2929_v57, %v2931_v49  ;;  %v3044_v53 = vshrl.u32 %v3043_v39, 23  ;;  %vm2725_vm12 = vcmp.eq.s32.totalorder %v2720_v20, 2  ;;  %v2934_v50 = vand.u32 65535, %v7726_v38 }
 0x2ea   : > { %v2717_v12 = vmul.f32 %v2716_v36, %v2701_v54  ;;  %v2726_v8 = vxor.u32 2147483648, %v2709_v59  ;;  %v2832_v28 = vsub.s32 %v2828_v45, %v2831_v37  ;;  %v2936_v13 = vand.u32 65535, %v2932_v56 }
 0x2eb   : > { %v2937_v60 = vshrl.u32 %v2932_v56, 16  ;;  %v2959_v41 = vshrl.u32 %v2928_v25, 16  ;;  %v2935_v22 = vshrl.u32 %v7726_v38, 16  ;;  %v2901_v31 = vshrl.u32 %v5714_v52, %v7670_v18 }
 0x2ec   : > { %v2723_v2 = vxor.u32 2147483648, %v2717_v12  ;;  %vm2833_vm14 = vcmp.lt.s32.totalorder %v2832_v28, 0  ;;  %v2834_v26 = vsub.s32 0, %v2832_v28  ;;  %v2922_v39 = vsel %vm2920_vm8, %v2910_v46, 2102212464 }
 0x2ed   : > { %v2939_v54 = vmul.u32 %v2937_v60, %v2934_v50  ;;  %v2958_v34 = vand.u32 65535, %v2928_v25  ;;  %v2727_v16 = vsel %vm2725_vm12, %v2726_v8, %v2717_v12  ;;  %v2940_v63 = vmul.u32 %v2936_v13, %v2935_v22 }
 0x2ee   : > { %v2724_v14 = vsel %vm2722_vm11, %v2709_v59, %v2723_v2  ;;  %v2835_v51 = vsel %vm2833_vm14, %v2834_v26, %v2832_v28  ;;  %v2961_v45 = vmul.u32 %v2959_v41, %v2934_v50  ;;  %v2824_v46 = vadd.s32 %v7675_v4, %v7677_v32 }
 0x2ef   : > { %v2728_v9 = vsel %vm2721_vm10, %v2724_v14, %v2727_v16  ;;  %v2836_v44 = vclz %v2835_v51  ;;  %v2942_v24 = vshll.u32 %v2939_v54, 16  ;;  %v2921_v42 = vsel %vm2917_vm5, %v2901_v31, %v7691_v35 }
 0x2f0   : > { %v2729_v18 = vsel %vm2718_vm7, nan, %v2728_v9  ;;  %v2938_v33 = vmul.u32 %v2936_v13, %v2934_v50  ;;  %v2923_v20 = vsel %vm2919_vm6, %v7695_v27, %v2922_v39  ;;  %v2941_v23 = vmul.u32 %v2937_v60, %v2935_v22 }
 0x2f1   : > { %v5528_v5 = vadd.s32 4294967294, %v2836_v44  ;;  %v2960_v40 = vmul.u32 %v2958_v34, %v2934_v50  ;;  %5379 = vst [vmem:[%s6113_s4 + $0x70] sm:$0xff] %v2729_v18  ;;  %v2944_v11 = vshll.u32 %v2940_v63, 16  ;;  %v2962_v19 = vmul.u32 %v2958_v34, %v2935_v22 }
 0x2f2   : > { %vm2946_vm13 = vc.u32 %v2938_v33, %v2942_v24  ;;  %v2948_v17 = vadd.s32 %v2942_v24, %v2938_v33  ;;  %v2943_v57 = vshrl.u32 %v2939_v54, 16  ;;  %v2964_v32 = vshll.u32 %v2961_v45, 16  ;;  %v277_v54 = vpop.permute.xlu1 %276 }
 0x2f3   : > { %vm5529_vm15 = vcmp.lt.s32.totalorder %v5528_v5, 0  ;;  %v2947_v4 = vsel %vm2946_vm13, 1, %v5713_v0  ;;  %v2963_v30 = vmul.u32 %v2959_v41, %v2935_v22  ;;  %v2966_v49 = vshll.u32 %v2962_v19, 16 }
 0x2f4   : > { %v2839_v29 = vsel %vm5529_vm15, 0, %v5528_v5  ;;  %v2949_v35 = vadd.s32 %v2947_v4, %v2941_v23  ;;  %vm2950_vm0 = vc.u32 %v2948_v17, %v2944_v11  ;;  %vm2968_vm1 = vc.u32 %v2960_v40, %v2964_v32 }
 0x2f5   : > { %v2840_v7 = vsub.s32 32, %v2839_v29  ;;  %v2844_v10 = vsub.s32 4294967266, %v2839_v29  ;;  %v2951_v27 = vsel %vm2950_vm0, 1, %v5713_v0  ;;  %v2841_v59 = vshll.u32 %v2832_v28, %v2839_v29 }
 0x2f6   : > { %v2953_v36 = vadd.s32 %v2951_v27, %v2949_v35  ;;  %v2970_v37 = vadd.s32 %v2964_v32, %v2960_v40  ;;  %v2969_v12 = vsel %vm2968_vm1, 1, %v5713_v0  ;;  %v5533_v8 = vadd.s32 4294967169, %v3044_v53 }
 0x2f7   : > { %v2842_v25 = vshrl.u32 %v2824_v46, %v2840_v7  ;;  %v2845_v56 = vadd.s32 127, %v2844_v10  ;;  %v2854_v50 = vsub.s32 4, %v7716_v48  ;;  %v2971_v60 = vadd.s32 %v2969_v12, %v2963_v30 }
 0x2f8   : > { %v2954_v13 = vadd.s32 %v2953_v36, %v2943_v57  ;;  %vm2972_vm2 = vc.u32 %v2970_v37, %v2966_v49  ;;  %v2945_v26 = vshrl.u32 %v2940_v63, 16  ;;  %vm2732_vm4 = vcmp.lt.s32.totalorder %v7501_v15, 0 }
 0x2f9   : > { %v2843_v41 = vor.u32 %v2842_v25, %v2841_v59  ;;  %v2846_v2 = vshll.u32 %v2845_v56, 23  ;;  %v2973_v22 = vsel %vm2972_vm2, 1, %v5713_v0  ;;  %v2965_v28 = vshrl.u32 %v2961_v45, 16  ;;  %v272_v25 = vpop.permute.xlu0 %271 }
 0x2fa   : > { %v2975_v31 = vadd.s32 %v2973_v22, %v2971_v60  ;;  %v3050_v39 = vadd.s32 1, %v5533_v8  ;;  %v2924_v53 = vsel %vm2918_vm9, %v2921_v42, %v2923_v20  ;;  %v7763_v14 = vadd.s32 %v2954_v13, %v2945_v26 }
 0x2fb   : > { %v2847_v34 = vor.u32 4788187, %v2846_v2  ;;  %v3040_v16 = vand.u32 2147483647, %v7567_v43  ;;  %v2855_v51 = vsel %vm2732_vm4, %v2854_v50, %v7716_v48  ;;  %v2967_v63 = vshrl.u32 %v2962_v19, 16 }
 0x2fc   : > { %v2976_v9 = vadd.s32 %v2975_v31, %v2965_v28  ;;  %vm3051_vm3 = vcmp.gt.s32.totalorder %v3050_v39, 0  ;;  %v2850_v24 = vcvt.s32.f32 %v2843_v41  ;;  %v7769_v45 = vadd.s32 %v2970_v37, %v2966_v49 }
 0x2fd   : > { %v2848_v44 = vand.u32 2147483647, %v2847_v34  ;;  %v3052_v18 = vsel %vm3051_vm3, %v3050_v39, 0  ;;  %v359_v46 = vmul.f32 %v7774_v21, %v277_v54  ;;  %vm7779_vm5 = vcmp.le.f32.partialorder %v2730_v47, 0.7853982 }
 0x2fe   : > { %v2977_v42 = vadd.s32 %v2976_v9, %v2967_v63  ;;  %v3054_v33 = vand.u32 31, %v3052_v18  ;;  %v2978_v20 = vmul.u32 %v7726_v38, %v2924_v53  ;;  %vm2980_vm6 = vc.u32 %v7763_v14, %v7769_v45 }
 0x2ff   : > { %v2851_v5 = vmul.f32 %v2850_v24, %v2848_v44  ;;  %v2857_v23 = vsel %vm7779_vm5, 0, %v2855_v51  ;;  %v3047_v11 = vand.u32 8388607, %v3040_v16  ;;  %v7792_v47 = vshrl.u32 %v3052_v18, 5 }
 0x300   : > { %v2981_v40 = vadd.s32 1, %v2977_v42  ;;  %v7790_v17 = vsub.s32 32, %v3054_v33  ;;  %v3057_v57 = vshll.u32 %v5714_v52, %v3054_v33  ;;  %v3060_v4 = vshll.u32 %v5715_v55, %v3054_v33 }
 0x301   : > { %v2852_v19 = vxor.u32 2147483648, %v2851_v5  ;;  %v3066_v35 = vshll.u32 %v5717_v61, %v3054_v33  ;;  %v3063_v59 = vshll.u32 %v5716_v58, %v3054_v33  ;;  %v3069_v36 = vshll.u32 %v5718_v1, %v3054_v33 }
 0x302   : > { %v2982_v38 = vsel %vm2980_vm6, %v2981_v40, %v2977_v42  ;;  %v3058_v32 = vshrl.u32 %v5715_v55, %v7790_v17  ;;  %v3061_v29 = vshrl.u32 %v5716_v58, %v7790_v17  ;;  %v3064_v10 = vshrl.u32 %v5717_v61, %v7790_v17 }
 0x303   : > { %v2853_v30 = vsel %vm2732_vm4, %v2852_v19, %v2851_v5  ;;  %v2983_v7 = vadd.s32 %v2982_v38, %v2978_v20  ;;  %v3067_v27 = vshrl.u32 %v5718_v1, %v7790_v17  ;;  %v3070_v37 = vshrl.u32 %v5719_v3, %v7790_v17  ;;  %v7853_v5 = vld [vmem:[%s9600_s1 + $0x1] ss:$0 sm:$0xff] }
 0x304   : > { %v7810_v49 = vsel %vm7779_vm5, %v7501_v15, %v2853_v30  ;;  %v3048_v8 = vor.u32 8388608, %v3047_v11  ;;  %v7818_v13 = vor.u32 %v3058_v32, %v3057_v57  ;;  %v7820_v60 = vor.u32 %v3061_v29, %v3060_v4 }
 0x305   : > { %v2858_v56 = vmul.f32 %v7810_v49, %v7810_v49  ;;  %v2984_v12 = vadd.s32 536870912, %v2983_v7  ;;  %v3068_v50 = vor.u32 %v3067_v27, %v3066_v35  ;;  %v7822_v41 = vor.u32 %v3064_v10, %v3063_v59 }
 0x306   : > { %v3071_v2 = vor.u32 %v3070_v37, %v3069_v36  ;;  %vm3075_vm8 = vcmp.lt.s32.totalorder %v7792_v47, 4  ;;  %v358_v31 = vmul.f32 %v7774_v21, %v272_v25  ;;  %v2874_v39 = vadd.s32 3, %v2857_v23 }
 0x307   : > { %v2859_v26 = vmul.f32 -0.001358992, %v2858_v56  ;;  %v2866_v22 = vmul.f32 -0.00019511016, %v2858_v56  ;;  %v7824_v28 = vshrl.u32 %v2984_v12, 30  ;;  %vm3072_vm7 = vcmp.lt.s32.totalorder %v7792_v47, 1 }
 0x308   : > { %v3081_v54 = vsel %vm3075_vm8, %v3068_v50, 920167782  ;;  %vm3074_vm9 = vcmp.lt.s32.totalorder %v7792_v47, 3  ;;  %v3080_v63 = vsel %vm3072_vm7, %v7818_v13, %v7820_v60  ;;  %v3085_v44 = vsel %vm3075_vm8, %v3071_v2, 1326507024 }
 0x309   : > { %v2860_v34 = vadd.f32 0.041655596, %v2859_v26  ;;  %v2867_v53 = vadd.f32 0.008332121, %v2866_v22  ;;  %v2986_v51 = vshll.u32 %v7824_v28, 30  ;;  %v3082_v9 = vsel %vm3074_vm9, %v7822_v41, %v3081_v54 }
 0x30a   : > { %v7842_v24 = vshll.u32 %v3048_v8, 8  ;;  %v3084_v48 = vsel %vm3072_vm7, %v7820_v60, %v7822_v41  ;;  %v7856_v20 = vadd.f32 %v7853_v5, %v359_v46  ;;  %v2875_v23 = vand.u32 3, %v2874_v39 }
 0x30b   : > { %v2861_v18 = vmul.f32 %v2860_v34, %v2858_v56  ;;  %v2868_v42 = vmul.f32 %v2867_v53, %v2858_v56  ;;  %v7844_v33 = vsub.s32 %v2983_v7, %v2986_v51  ;;  %vm3073_vm10 = vcmp.lt.s32.totalorder %v7792_v47, 2 }
 0x30c   : > { %v3086_v40 = vsel %vm3074_vm9, %v3068_v50, %v3085_v44  ;;  %v7864_v4 = vadd.f32 %v7853_v5, %v358_v31  ;;  %v3083_v38 = vsel %vm3073_vm10, %v3080_v63, %v3082_v9  ;;  %v3090_v32 = vshrl.u32 %v7842_v24, 16 }
 0x30d   : > { %v2862_v11 = vadd.f32 -0.4999988, %v2861_v18  ;;  %v2869_v19 = vadd.f32 -0.16666654, %v2868_v42  ;;  %vm2988_vm11 = vcmp.lt.s32.totalorder %v7844_v33, 0  ;;  %v2989_v57 = vsub.s32 0, %v7844_v33 }
 0x30e   : > { %v3087_v46 = vsel %vm3073_vm10, %v3084_v48, %v3086_v40  ;;  %vm2873_vm12 = vweird.f32 %v7501_v15  ;;  %vm2876_vm14 = vcmp.lt.s32.totalorder %v2875_v23, 2  ;;  %v3089_v27 = vand.u32 65535, %v7842_v24 }
 0x30f   : > { %v2863_v29 = vmul.f32 %v2862_v11, %v2858_v56  ;;  %v2870_v35 = vmul.f32 %v2869_v19, %v2858_v56  ;;  %v2990_v30 = vsel %vm2988_vm11, %v2989_v57, %v7844_v33  ;;  %v3091_v7 = vand.u32 65535, %v3087_v46 }
 0x310   : > { %v2991_v10 = vclz %v2990_v30  ;;  %v3092_v59 = vshrl.u32 %v3087_v46, 16  ;;  %v3114_v12 = vshrl.u32 %v3083_v38, 16  ;;  %vm2877_vm13 = vcmp.eq.s32.totalorder %v2875_v23, 0 }
 0x311   : > { %v2864_v36 = vadd.f32 1.0, %v2863_v29  ;;  %v2871_v37 = vadd.f32 1.0, %v2870_v35  ;;  %v7874_v25 = vmul.u32 %v3091_v7, %v3090_v32  ;;  %vm2880_vm15 = vcmp.eq.s32.totalorder %v2875_v23, 2 }
 0x312   : > { %v2979_v56 = vadd.s32 %v7769_v45, %v7763_v14  ;;  %v5531_v8 = vadd.s32 4294967294, %v2991_v10  ;;  %v3094_v26 = vmul.u32 %v3092_v59, %v3089_v27  ;;  %v3113_v22 = vand.u32 65535, %v3083_v38 }
 0x313   : > { %v2872_v50 = vmul.f32 %v2871_v37, %v7810_v49  ;;  %v2881_v2 = vxor.u32 2147483648, %v2864_v36  ;;  %v3093_v31 = vmul.u32 %v3091_v7, %v3089_v27  ;;  %v3096_v39 = vmul.u32 %v3092_v59, %v3090_v32 }
 0x314   : > { %vm5532_vm0 = vcmp.lt.s32.totalorder %v5531_v8, 0  ;;  %v3099_v54 = vshll.u32 %v7874_v25, 16  ;;  %v3097_v51 = vshll.u32 %v3094_v26, 16  ;;  %v3116_v63 = vmul.u32 %v3114_v12, %v3089_v27 }
 0x315   : > { %v2878_v34 = vxor.u32 2147483648, %v2872_v50  ;;  %v2994_v53 = vsel %vm5532_vm0, 0, %v5531_v8  ;;  %v2882_v9 = vsel %vm2880_vm15, %v2881_v2, %v2872_v50  ;;  %vm2887_vm1 = vcmp.lt.s32.totalorder %v7495_v62, 0 }
 0x316   : > { %v2995_v44 = vsub.s32 32, %v2994_v53  ;;  %v2996_v14 = vshll.u32 %v7844_v33, %v2994_v53  ;;  %v2999_v45 = vsub.s32 4294967266, %v2994_v53  ;;  %vm3101_vm2 = vc.u32 %v3093_v31, %v3097_v51 }
 0x317   : > { %v2879_v49 = vsel %vm2877_vm13, %v2864_v36, %v2878_v34  ;;  %v3103_v18 = vadd.s32 %v3097_v51, %v3093_v31  ;;  %v3117_v42 = vmul.u32 %v3113_v22, %v3090_v32  ;;  %v3102_v19 = vsel %vm3101_vm2, 1, %v5713_v0 }
 0x318   : > { %v2883_v48 = vsel %vm2876_vm14, %v2879_v49, %v2882_v9  ;;  %v2997_v40 = vshrl.u32 %v2979_v56, %v2995_v44  ;;  %v3000_v11 = vadd.s32 127, %v2999_v45  ;;  %v3104_v38 = vadd.s32 %v3102_v19, %v3096_v39 }
 0x319   : > { %v2884_v57 = vsel %vm2873_vm12, nan, %v2883_v48  ;;  %vm3105_vm4 = vc.u32 %v3103_v18, %v3099_v54  ;;  %v3115_v46 = vmul.u32 %v3113_v22, %v3089_v27  ;;  %vm7889_vm3 = vcmp.le.f32.partialorder %v2885_v6, 0.7853982  ;;  %v282_v48 = vpop.permute.xlu2 %281 }
 0x31a   : > { %v2998_v29 = vor.u32 %v2997_v40, %v2996_v14  ;;  %v3001_v35 = vshll.u32 %v3000_v11, 23  ;;  %v3106_v23 = vsel %vm3105_vm4, 1, %v5713_v0  ;;  %v3119_v30 = vshll.u32 %v3116_v63, 16  ;;  %5380 = vst [vmem:[%s6113_s4 + $0x78] sm:$0xff] %v2884_v57 }
 0x31b   : > { %v3009_v7 = vsub.s32 4, %v7824_v28  ;;  %v3098_v10 = vshrl.u32 %v3094_v26, 16  ;;  %v3108_v15 = vadd.s32 %v3106_v23, %v3104_v38  ;;  %v3118_v59 = vmul.u32 %v3114_v12, %v3090_v32 }
 0x31c   : > { %v3002_v36 = vor.u32 4788187, %v3001_v35  ;;  %v3121_v37 = vshll.u32 %v3117_v42, 16  ;;  %vm3123_vm5 = vc.u32 %v3115_v46, %v3119_v30  ;;  %v3125_v27 = vadd.s32 %v3119_v30, %v3115_v46 }
 0x31d   : > { %v3005_v56 = vcvt.s32.f32 %v2998_v29  ;;  %v3077_v6 = vsel %vm3075_vm8, %v7822_v41, 2102212464  ;;  %v3109_v8 = vadd.s32 %v3108_v15, %v3098_v10  ;;  %v3124_v50 = vsel %vm3123_vm5, 1, %v5713_v0 }
 0x31e   : > { %v3003_v2 = vand.u32 2147483647, %v3002_v36  ;;  %v3126_v22 = vadd.s32 %v3124_v50, %v3118_v59  ;;  %vm3127_vm6 = vc.u32 %v3125_v27, %v3121_v37  ;;  %v3195_v31 = vand.u32 2147483647, %v7864_v4 }
 0x31f   : > { %v3010_v32 = vsel %vm2887_vm1, %v3009_v7, %v7824_v28  ;;  %v3056_v12 = vshrl.u32 %v5714_v52, %v7790_v17  ;;  %v3100_v26 = vshrl.u32 %v7874_v25, 16  ;;  %v3128_v39 = vsel %vm3127_vm6, 1, %v5713_v0 }
 0x320   : > { %v3006_v41 = vmul.f32 %v3005_v56, %v3003_v2  ;;  %v3120_v54 = vshrl.u32 %v3116_v63, 16  ;;  %v3130_v34 = vadd.s32 %v3128_v39, %v3126_v22  ;;  %v3198_v53 = vand.u32 2139095040, %v7864_v4 }
 0x321   : > { %v3076_v51 = vsel %vm3072_vm7, %v3056_v12, %v7818_v13  ;;  %v3078_v28 = vsel %vm3074_vm9, %v7820_v60, %v3077_v6  ;;  %v3110_v9 = vadd.s32 %v3109_v8, %v3100_v26  ;;  %v3122_v44 = vshrl.u32 %v3117_v42, 16 }
 0x322   : > { %v3007_v17 = vxor.u32 2147483648, %v3006_v41  ;;  %v3131_v14 = vadd.s32 %v3130_v34, %v3120_v54  ;;  %v3199_v25 = vshrl.u32 %v3198_v53, 23  ;;  %v3202_v45 = vand.u32 8388607, %v3195_v31 }
 0x323   : > { %v3012_v63 = vsel %vm7889_vm3, 0, %v3010_v32  ;;  %v3129_v49 = vadd.s32 %v3125_v27, %v3121_v37  ;;  %v3353_v18 = vand.u32 2139095040, %v7856_v20  ;;  %v3079_v60 = vsel %vm3073_vm10, %v3076_v51, %v3078_v28 }
 0x324   : > { %v3008_v13 = vsel %vm2887_vm1, %v3007_v17, %v3006_v41  ;;  %v3132_v42 = vadd.s32 %v3131_v14, %v3122_v44  ;;  %v5536_v40 = vadd.s32 4294967169, %v3199_v25  ;;  %v3203_v38 = vor.u32 8388608, %v3202_v45 }
 0x325   : > { %v3011_v11 = vsel %vm7889_vm3, %v7495_v62, %v3008_v13  ;;  %vm3135_vm8 = vc.u32 %v3110_v9, %v3129_v49  ;;  %v360_v29 = vmul.f32 %v7774_v21, %v282_v48  ;;  %v3029_v35 = vadd.s32 3, %v3012_v63 }
 0x326   : > { %v3013_v19 = vmul.f32 %v3011_v11, %v3011_v11  ;;  %v3136_v57 = vadd.s32 1, %v3132_v42  ;;  %v3205_v46 = vadd.s32 1, %v5536_v40  ;;  %v3133_v23 = vmul.u32 %v7842_v24, %v3079_v60 }
 0x327   : > { %v3354_v30 = vshrl.u32 %v3353_v18, 23  ;;  %v3350_v33 = vand.u32 2147483647, %v7856_v20  ;;  %v7930_v56 = vshll.u32 %v3203_v38, 8  ;;  %v3030_v6 = vand.u32 3, %v3029_v35 }
 0x328   : > { %v3014_v7 = vmul.f32 -0.001358992, %v3013_v19  ;;  %v3021_v47 = vmul.f32 -0.00019511016, %v3013_v19  ;;  %v3137_v10 = vsel %vm3135_vm8, %v3136_v57, %v3132_v42  ;;  %vm3206_vm7 = vcmp.gt.s32.totalorder %v3205_v46, 0 }
 0x329   : > { %v3138_v15 = vadd.s32 %v3137_v10, %v3133_v23  ;;  %v3207_v59 = vsel %vm3206_vm7, %v3205_v46, 0  ;;  %v5539_v50 = vadd.s32 4294967169, %v3354_v30  ;;  %v7933_v2 = vadd.f32 %v7853_v5, %v360_v29 }
 0x32a   : > { %v3015_v36 = vadd.f32 0.041655596, %v3014_v7  ;;  %v3022_v37 = vadd.f32 0.008332121, %v3021_v47  ;;  %v3209_v27 = vand.u32 31, %v3207_v59  ;;  %vm3042_vm9 = vcmp.lt.s32.totalorder %v7567_v43, 0 }
 0x32b   : > { %v3139_v8 = vadd.s32 536870912, %v3138_v15  ;;  %v7936_v12 = vadd.s32 %v3129_v49, %v3110_v9  ;;  %v7940_v39 = vand.u32 8388607, %v3350_v33  ;;  %v7943_v34 = vand.u32 65535, %v7930_v56 }
 0x32c   : > { %v3016_v24 = vmul.f32 %v3015_v36, %v3013_v19  ;;  %v3023_v22 = vmul.f32 %v3022_v37, %v3013_v19  ;;  %v3210_v32 = vsub.s32 32, %v3209_v27  ;;  %v7946_v53 = vshrl.u32 %v7930_v56, 16 }
 0x32d   : > { %v3140_v26 = vshrl.u32 %v3139_v8, 30  ;;  %vm3032_vm10 = vcmp.eq.s32.totalorder %v3030_v6, 0  ;;  %vm3035_vm11 = vcmp.eq.s32.totalorder %v3030_v6, 2  ;;  %v7948_v28 = vshrl.u32 %v3207_v59, 5 }
 0x32e   : > { %v3017_v41 = vadd.f32 -0.4999988, %v3016_v24  ;;  %v3024_v54 = vadd.f32 -0.16666654, %v3023_v22  ;;  %v3213_v9 = vshrl.u32 %v5715_v55, %v3210_v32  ;;  %v7951_v44 = vadd.s32 1, %v5539_v50 }
 0x32f   : > { %v3141_v51 = vshll.u32 %v3140_v26, 30  ;;  %vm3031_vm12 = vcmp.lt.s32.totalorder %v3030_v6, 2  ;;  %v3212_v25 = vshll.u32 %v5714_v52, %v3209_v27  ;;  %v3216_v45 = vshrl.u32 %v5716_v58, %v3210_v32 }
 0x330   : > { %v3018_v17 = vmul.f32 %v3017_v41, %v3013_v19  ;;  %v3025_v14 = vmul.f32 %v3024_v54, %v3013_v19  ;;  %vm3028_vm14 = vweird.f32 %v7495_v62  ;;  %v3215_v49 = vshll.u32 %v5715_v55, %v3209_v27 }
 0x331   : > { %v7956_v63 = vsub.s32 %v3138_v15, %v3141_v51  ;;  %v3219_v18 = vshrl.u32 %v5717_v61, %v3210_v32  ;;  %v3222_v48 = vshrl.u32 %v5718_v1, %v3210_v32  ;;  %v3164_v42 = vsub.s32 4, %v3140_v26 }
 0x332   : > { %v3019_v13 = vadd.f32 1.0, %v3018_v17  ;;  %v3026_v60 = vadd.f32 1.0, %v3025_v14  ;;  %v3218_v40 = vshll.u32 %v5716_v58, %v3209_v27  ;;  %v3214_v57 = vor.u32 %v3213_v9, %v3212_v25 }
 0x333   : > { %vm3143_vm13 = vcmp.lt.s32.totalorder %v7956_v63, 0  ;;  %v3144_v19 = vsub.s32 0, %v7956_v63  ;;  %v3221_v38 = vshll.u32 %v5717_v61, %v3209_v27  ;;  %v3217_v35 = vor.u32 %v3216_v45, %v3215_v49 }
 0x334   : > { %v3027_v46 = vmul.f32 %v3026_v60, %v3011_v11  ;;  %v3036_v29 = vxor.u32 2147483648, %v3019_v13  ;;  %v3225_v23 = vshrl.u32 %v5719_v3, %v3210_v32  ;;  %v3220_v7 = vor.u32 %v3219_v18, %v3218_v40 }
 0x335   : > { %v3145_v30 = vsel %vm3143_vm13, %v3144_v19, %v7956_v63  ;;  %v3223_v47 = vor.u32 %v3222_v48, %v3221_v38  ;;  %v3224_v10 = vshll.u32 %v5718_v1, %v3209_v27  ;;  %v7970_v36 = vsel %vm3042_vm9, %v3164_v42, %v3140_v26 }
 0x336   : > { %v3033_v15 = vxor.u32 2147483648, %v3027_v46  ;;  %v3146_v59 = vclz %v3145_v30  ;;  %v3211_v37 = vshrl.u32 %v5714_v52, %v3210_v32  ;;  %vm7975_vm15 = vcmp.le.f32.partialorder %v3040_v16, 0.7853982 }
 0x337   : > { %v3226_v8 = vor.u32 %v3225_v23, %v3224_v10  ;;  %vm3227_vm0 = vcmp.lt.s32.totalorder %v7948_v28, 1  ;;  %vm3228_vm1 = vcmp.lt.s32.totalorder %v7948_v28, 2  ;;  %vm3229_vm2 = vcmp.lt.s32.totalorder %v7948_v28, 3 }
 0x338   : > { %v3034_v27 = vsel %vm3032_vm10, %v3019_v13, %v3033_v15  ;;  %v3037_v50 = vsel %vm3035_vm11, %v3036_v29, %v3027_v46  ;;  %v5534_v24 = vadd.s32 4294967294, %v3146_v59  ;;  %vm3230_vm4 = vcmp.lt.s32.totalorder %v7948_v28, 4 }
 0x339   : > { %v3038_v16 = vsel %vm3031_vm12, %v3034_v27, %v3037_v50  ;;  %v3232_v22 = vsel %vm3230_vm4, %v3220_v7, 2102212464  ;;  %v3235_v32 = vsel %vm3227_vm0, %v3214_v57, %v3217_v35  ;;  %v3236_v26 = vsel %vm3230_vm4, %v3223_v47, 920167782 }
 0x33a   : > { %v3039_v41 = vsel %vm3028_vm14, nan, %v3038_v16  ;;  %vm5535_vm3 = vcmp.lt.s32.totalorder %v5534_v24, 0  ;;  %v3231_v54 = vsel %vm3227_vm0, %v3211_v37, %v3214_v57  ;;  %v3237_v51 = vsel %vm3229_vm2, %v3220_v7, %v3236_v26 }
 0x33b   : > { %v3149_v9 = vsel %vm5535_vm3, 0, %v5534_v24  ;;  %v3238_v6 = vsel %vm3228_vm1, %v3235_v32, %v3237_v51  ;;  %v3239_v17 = vsel %vm3227_vm0, %v3217_v35, %v3220_v7  ;;  %v3240_v14 = vsel %vm3230_vm4, %v3226_v8, 1326507024  ;;  %5381 = vst [vmem:[%s6113_s4 + $0x80] sm:$0xff] %v3039_v41 }
 0x33c   : > { %v3150_v25 = vsub.s32 32, %v3149_v9  ;;  %v3154_v45 = vsub.s32 4294967266, %v3149_v9  ;;  %v3233_v62 = vsel %vm3229_vm2, %v3217_v35, %v3232_v22  ;;  %v3241_v49 = vsel %vm3229_vm2, %v3223_v47, %v3240_v14 }
 0x33d   : > { %v3151_v18 = vshll.u32 %v7956_v63, %v3149_v9  ;;  %v3242_v48 = vsel %vm3228_vm1, %v3239_v17, %v3241_v49  ;;  %v3268_v13 = vand.u32 65535, %v3238_v6  ;;  %v3269_v60 = vshrl.u32 %v3238_v6, 16 }
 0x33e   : > { %v3152_v42 = vshrl.u32 %v7936_v12, %v3150_v25  ;;  %v3155_v40 = vadd.s32 127, %v3154_v45  ;;  %v3246_v19 = vand.u32 65535, %v3242_v48  ;;  %v3247_v57 = vshrl.u32 %v3242_v48, 16 }
 0x33f   : > { %v3271_v38 = vmul.u32 %v3269_v60, %v7943_v34  ;;  %v3272_v46 = vmul.u32 %v3268_v13, %v7946_v53  ;;  %v3358_v29 = vor.u32 8388608, %v7940_v39  ;;  %vm3361_vm5 = vcmp.gt.s32.totalorder %v7951_v44, 0 }
 0x340   : > { %v3153_v35 = vor.u32 %v3152_v42, %v3151_v18  ;;  %v3156_v63 = vshll.u32 %v3155_v40, 23  ;;  %v3167_v23 = vsel %vm7975_vm15, 0, %v7970_v36  ;;  %v3249_v30 = vmul.u32 %v3247_v57, %v7943_v34 }
 0x341   : > { %v8017_v12 = vsel %vm3228_vm1, %v3231_v54, %v3233_v62  ;;  %v3250_v7 = vmul.u32 %v3246_v19, %v7946_v53  ;;  %v3270_v47 = vmul.u32 %v3268_v13, %v7943_v34  ;;  %v3274_v10 = vshll.u32 %v3271_v38, 16 }
 0x342   : > { %v3157_v15 = vor.u32 4788187, %v3156_v63  ;;  %v3248_v59 = vmul.u32 %v3246_v19, %v7943_v34  ;;  %v3252_v37 = vshll.u32 %v3249_v30, 16  ;;  %v3273_v8 = vmul.u32 %v3269_v60, %v7946_v53 }
 0x343   : > { %v3160_v27 = vcvt.s32.f32 %v3153_v35  ;;  %v3251_v36 = vmul.u32 %v3247_v57, %v7946_v53  ;;  %v3254_v50 = vshll.u32 %v3250_v7, 16  ;;  %v3276_v24 = vshll.u32 %v3272_v46, 16 }
 0x344   : > { %v3158_v16 = vand.u32 2147483647, %v3157_v15  ;;  %vm3256_vm6 = vc.u32 %v3248_v59, %v3252_v37  ;;  %v3258_v28 = vadd.s32 %v3252_v37, %v3248_v59  ;;  %vm3278_vm8 = vc.u32 %v3270_v47, %v3274_v10 }
 0x345   : > { %v3257_v22 = vsel %vm3256_vm6, 1, %v5713_v0  ;;  %v3279_v32 = vsel %vm3278_vm8, 1, %v5713_v0  ;;  %v3280_v26 = vadd.s32 %v3274_v10, %v3270_v47  ;;  %v3362_v34 = vsel %vm3361_vm5, %v7951_v44, 0 }
 0x346   : > { %v3161_v41 = vmul.f32 %v3160_v27, %v3158_v16  ;;  %v3259_v54 = vadd.s32 %v3257_v22, %v3251_v36  ;;  %vm3260_vm7 = vc.u32 %v3258_v28, %v3254_v50  ;;  %v3281_v51 = vadd.s32 %v3279_v32, %v3273_v8 }
 0x347   : > { %v3253_v53 = vshrl.u32 %v3249_v30, 16  ;;  %v3261_v9 = vsel %vm3260_vm7, 1, %v5713_v0  ;;  %vm3282_vm10 = vc.u32 %v3280_v26, %v3276_v24  ;;  %v3508_v6 = vand.u32 2139095040, %v7933_v2 }
 0x348   : > { %v3162_v17 = vxor.u32 2147483648, %v3161_v41  ;;  %v3263_v14 = vadd.s32 %v3261_v9, %v3259_v54  ;;  %v3283_v25 = vsel %vm3282_vm10, 1, %v5713_v0  ;;  %v3364_v45 = vand.u32 31, %v3362_v34 }
 0x349   : > { %v3184_v62 = vadd.s32 3, %v3167_v23  ;;  %v3275_v49 = vshrl.u32 %v3271_v38, 16  ;;  %v3285_v18 = vadd.s32 %v3283_v25, %v3281_v51  ;;  %v3288_v44 = vmul.u32 %v7930_v56, %v8017_v12 }
 0x34a   : > { %v3163_v48 = vsel %vm3042_vm9, %v3162_v17, %v3161_v41  ;;  %v3255_v13 = vshrl.u32 %v3250_v7, 16  ;;  %v3264_v60 = vadd.s32 %v3263_v14, %v3253_v53  ;;  %v8036_v42 = vsub.s32 32, %v3364_v45 }
 0x34b   : > { %v3166_v40 = vsel %vm7975_vm15, %v7567_v43, %v3163_v48  ;;  %v3277_v19 = vshrl.u32 %v3272_v46, 16  ;;  %v8041_v57 = vadd.s32 %v3280_v26, %v3276_v24  ;;  %v3286_v35 = vadd.s32 %v3285_v18, %v3275_v49 }
 0x34c   : > { %v3168_v38 = vmul.f32 %v3166_v40, %v3166_v40  ;;  %v8043_v63 = vadd.s32 %v3264_v60, %v3255_v13  ;;  %v8045_v23 = vshrl.u32 %v3362_v34, 5  ;;  %v3368_v56 = vshrl.u32 %v5715_v55, %v8036_v42 }
 0x34d   : > { %v3287_v30 = vadd.s32 %v3286_v35, %v3277_v19  ;;  %v3367_v12 = vshll.u32 %v5714_v52, %v3364_v45  ;;  %v3371_v7 = vshrl.u32 %v5716_v58, %v8036_v42  ;;  %v3374_v11 = vshrl.u32 %v5717_v61, %v8036_v42 }
 0x34e   : > { %v3169_v46 = vmul.f32 -0.001358992, %v3168_v38  ;;  %v3176_v47 = vmul.f32 -0.00019511016, %v3168_v38  ;;  %vm3290_vm9 = vc.u32 %v8043_v63, %v8041_v57  ;;  %v3370_v10 = vshll.u32 %v5715_v55, %v3364_v45 }
 0x34f   : > { %v3291_v15 = vadd.s32 1, %v3287_v30  ;;  %v8057_v59 = vor.u32 %v3368_v56, %v3367_v12  ;;  %v3373_v37 = vshll.u32 %v5716_v58, %v3364_v45  ;;  %v3376_v8 = vshll.u32 %v5717_v61, %v3364_v45 }
 0x350   : > { %v3170_v27 = vadd.f32 0.041655596, %v3169_v46  ;;  %v3177_v36 = vadd.f32 0.008332121, %v3176_v47  ;;  %v8061_v50 = vor.u32 %v3371_v7, %v3370_v10  ;;  %v3377_v24 = vshrl.u32 %v5718_v1, %v8036_v42 }
 0x351   : > { %v3292_v16 = vsel %vm3290_vm9, %v3291_v15, %v3287_v30  ;;  %v3375_v28 = vor.u32 %v3374_v11, %v3373_v37  ;;  %v3379_v22 = vshll.u32 %v5718_v1, %v3364_v45  ;;  %v3380_v32 = vshrl.u32 %v5719_v3, %v8036_v42 }
 0x352   : > { %v3171_v26 = vmul.f32 %v3170_v27, %v3168_v38  ;;  %v3178_v34 = vmul.f32 %v3177_v36, %v3168_v38  ;;  %v3293_v41 = vadd.s32 %v3292_v16, %v3288_v44  ;;  %v3378_v54 = vor.u32 %v3377_v24, %v3376_v8 }
 0x353   : > { %v3185_v51 = vand.u32 3, %v3184_v62  ;;  %v3381_v53 = vor.u32 %v3380_v32, %v3379_v22  ;;  %vm3382_vm11 = vcmp.lt.s32.totalorder %v8045_v23, 1  ;;  %vm3384_vm12 = vcmp.lt.s32.totalorder %v8045_v23, 3 }
 0x354   : > { %v3172_v9 = vadd.f32 -0.4999988, %v3171_v26  ;;  %v3179_v17 = vadd.f32 -0.16666654, %v3178_v34  ;;  %v3294_v14 = vadd.s32 536870912, %v3293_v41  ;;  %vm3385_vm14 = vcmp.lt.s32.totalorder %v8045_v23, 4 }
 0x355   : > { %v3390_v25 = vsel %vm3382_vm11, %v8057_v59, %v8061_v50  ;;  %v3391_v45 = vsel %vm3385_vm14, %v3378_v54, 920167782  ;;  %v3394_v62 = vsel %vm3382_vm11, %v8061_v50, %v3375_v28  ;;  %v3395_v49 = vsel %vm3385_vm14, %v3381_v53, 1326507024 }
 0x356   : > { %v3173_v18 = vmul.f32 %v3172_v9, %v3168_v38  ;;  %v3180_v44 = vmul.f32 %v3179_v17, %v3168_v38  ;;  %v8082_v48 = vshrl.u32 %v3294_v14, 30  ;;  %v3392_v13 = vsel %vm3384_vm12, %v3375_v28, %v3391_v45 }
 0x357   : > { %vm3183_vm13 = vweird.f32 %v7567_v43  ;;  %vm3383_vm15 = vcmp.lt.s32.totalorder %v8045_v23, 2  ;;  %v3396_v60 = vsel %vm3384_vm12, %v3378_v54, %v3395_v49  ;;  %v8092_v19 = vshll.u32 %v3358_v29, 8 }
 0x358   : > { %v3174_v35 = vadd.f32 1.0, %v3173_v18  ;;  %v3181_v56 = vadd.f32 1.0, %v3180_v44  ;;  %v3296_v38 = vshll.u32 %v8082_v48, 30  ;;  %v3393_v30 = vsel %vm3383_vm15, %v3390_v25, %v3392_v13 }
 0x359   : > { %vm3186_vm0 = vcmp.lt.s32.totalorder %v3185_v51, 2  ;;  %vm3187_vm1 = vcmp.eq.s32.totalorder %v3185_v51, 0  ;;  %v3397_v12 = vsel %vm3383_vm15, %v3394_v62, %v3396_v60  ;;  %v3509_v7 = vshrl.u32 %v3508_v6, 23 }
 0x35a   : > { %v3182_v11 = vmul.f32 %v3181_v56, %v3166_v40  ;;  %vm3190_vm2 = vcmp.eq.s32.totalorder %v3185_v51, 2  ;;  %v3191_v39 = vxor.u32 2147483648, %v3174_v35  ;;  %v3297_v29 = vsub.s32 %v3293_v41, %v3296_v38 }
 0x35b   : > { %v3399_v46 = vand.u32 65535, %v8092_v19  ;;  %v3401_v47 = vand.u32 65535, %v3397_v12  ;;  %v3402_v10 = vshrl.u32 %v3397_v12, 16  ;;  %v3424_v15 = vshrl.u32 %v3393_v30, 16 }
 0x35c   : > { %v3188_v37 = vxor.u32 2147483648, %v3182_v11  ;;  %vm3298_vm4 = vcmp.lt.s32.totalorder %v3297_v29, 0  ;;  %v3299_v8 = vsub.s32 0, %v3297_v29  ;;  %v3400_v27 = vshrl.u32 %v8092_v19, 16 }
 0x35d   : > { %v3366_v36 = vshrl.u32 %v5714_v52, %v8036_v42  ;;  %v3387_v6 = vsel %vm3385_vm14, %v3375_v28, 2102212464  ;;  %v3404_v40 = vmul.u32 %v3402_v10, %v3399_v46  ;;  %v3423_v24 = vand.u32 65535, %v3393_v30 }
 0x35e   : > { %v3189_v16 = vsel %vm3187_vm1, %v3174_v35, %v3188_v37  ;;  %v3192_v22 = vsel %vm3190_vm2, %v3191_v39, %v3182_v11  ;;  %v3300_v32 = vsel %vm3298_vm4, %v3299_v8, %v3297_v29  ;;  %v3405_v26 = vmul.u32 %v3401_v47, %v3400_v27 }
 0x35f   : > { %v3193_v34 = vsel %vm3186_vm0, %v3189_v16, %v3192_v22  ;;  %v3301_v41 = vclz %v3300_v32  ;;  %v3407_v54 = vshll.u32 %v3404_v40, 16  ;;  %v3426_v53 = vmul.u32 %v3424_v15, %v3399_v46  ;;  %v292_v16 = vpop.permute.xlu1 %291 }
 0x360   : > { %v3194_v42 = vsel %vm3183_vm13, nan, %v3193_v34  ;;  %v3289_v28 = vadd.s32 %v8041_v57, %v8043_v63  ;;  %v3386_v9 = vsel %vm3382_vm11, %v3366_v36, %v8057_v59  ;;  %v3403_v17 = vmul.u32 %v3401_v47, %v3399_v46 }
 0x361   : > { %v5537_v14 = vadd.s32 4294967294, %v3301_v41  ;;  %v3388_v51 = vsel %vm3384_vm12, %v8061_v50, %v3387_v6  ;;  %v3406_v25 = vmul.u32 %v3402_v10, %v3400_v27  ;;  %v3425_v45 = vmul.u32 %v3423_v24, %v3399_v46  ;;  %5382 = vst [vmem:[%s6113_s4 + $0x88] sm:$0xff] %v3194_v42 }
 0x362   : > { %v3409_v62 = vshll.u32 %v3405_v26, 16  ;;  %vm3411_vm3 = vc.u32 %v3403_v17, %v3407_v54  ;;  %v3413_v43 = vadd.s32 %v3407_v54, %v3403_v17  ;;  %v3427_v49 = vmul.u32 %v3423_v24, %v3400_v27 }
 0x363   : > { %vm5538_vm5 = vcmp.lt.s32.totalorder %v5537_v14, 0  ;;  %v3408_v18 = vshrl.u32 %v3404_v40, 16  ;;  %v3412_v57 = vsel %vm3411_vm3, 1, %v5713_v0  ;;  %v3429_v63 = vshll.u32 %v3426_v53, 16 }
 0x364   : > { %v3304_v44 = vsel %vm5538_vm5, 0, %v5537_v14  ;;  %v3414_v59 = vadd.s32 %v3412_v57, %v3406_v25  ;;  %vm3415_vm6 = vc.u32 %v3413_v43, %v3409_v62  ;;  %v3428_v13 = vmul.u32 %v3424_v15, %v3400_v27 }
 0x365   : > { %v3305_v60 = vsub.s32 32, %v3304_v44  ;;  %v3309_v35 = vsub.s32 4294967266, %v3304_v44  ;;  %v3416_v50 = vsel %vm3415_vm6, 1, %v5713_v0  ;;  %v3431_v56 = vshll.u32 %v3427_v49, 16 }
 0x366   : > { %v3306_v38 = vshll.u32 %v3297_v29, %v3304_v44  ;;  %v3418_v30 = vadd.s32 %v3416_v50, %v3414_v59  ;;  %vm3433_vm8 = vc.u32 %v3425_v45, %v3429_v63  ;;  %v3435_v12 = vadd.s32 %v3429_v63, %v3425_v45 }
 0x367   : > { %v3307_v11 = vshrl.u32 %v3289_v28, %v3305_v60  ;;  %v3310_v39 = vadd.s32 127, %v3309_v35  ;;  %v3434_v46 = vsel %vm3433_vm8, 1, %v5713_v0  ;;  %v5542_v47 = vadd.s32 4294967169, %v3509_v7 }
 0x368   : > { %v3319_v10 = vsub.s32 4, %v8082_v48  ;;  %v3419_v37 = vadd.s32 %v3418_v30, %v3408_v18  ;;  %v3436_v8 = vadd.s32 %v3434_v46, %v3428_v13  ;;  %vm3437_vm7 = vc.u32 %v3435_v12, %v3431_v56 }
 0x369   : > { %v3308_v15 = vor.u32 %v3307_v11, %v3306_v38  ;;  %v3311_v27 = vshll.u32 %v3310_v39, 23  ;;  %v3410_v36 = vshrl.u32 %v3405_v26, 16  ;;  %v3438_v6 = vsel %vm3437_vm7, 1, %v5713_v0  ;;  %v287_v39 = vpop.permute.xlu0 %286 }
 0x36a   : > { %vm3197_vm10 = vcmp.lt.s32.totalorder %v7864_v4, 0  ;;  %v3430_v29 = vshrl.u32 %v3426_v53, 16  ;;  %v3440_v40 = vadd.s32 %v3438_v6, %v3436_v8  ;;  %v3515_v24 = vadd.s32 1, %v5542_v47 }
 0x36b   : > { %v3312_v22 = vor.u32 4788187, %v3311_v27  ;;  %v3389_v7 = vsel %vm3383_vm15, %v3386_v9, %v3388_v51  ;;  %v8129_v32 = vadd.s32 %v3419_v37, %v3410_v36  ;;  %v3505_v34 = vand.u32 2147483647, %v7933_v2 }
 0x36c   : > { %v3320_v26 = vsel %vm3197_vm10, %v3319_v10, %v8082_v48  ;;  %v3432_v41 = vshrl.u32 %v3427_v49, 16  ;;  %v3441_v54 = vadd.s32 %v3440_v40, %v3430_v29  ;;  %vm3516_vm9 = vcmp.gt.s32.totalorder %v3515_v24, 0 }
 0x36d   : > { %v3313_v42 = vand.u32 2147483647, %v3312_v22  ;;  %v3315_v53 = vcvt.s32.f32 %v3308_v15  ;;  %v8135_v28 = vadd.s32 %v3435_v12, %v3431_v56  ;;  %v3517_v17 = vsel %vm3516_vm9, %v3515_v24, 0 }
 0x36e   : > { %v362_v14 = vmul.f32 %v7774_v21, %v292_v16  ;;  %v3442_v23 = vadd.s32 %v3441_v54, %v3432_v41  ;;  %v3519_v9 = vand.u32 31, %v3517_v17  ;;  %vm8140_vm11 = vcmp.le.f32.partialorder %v3195_v31, 0.7853982 }
 0x36f   : > { %v3316_v25 = vmul.f32 %v3315_v53, %v3313_v42  ;;  %v3443_v48 = vmul.u32 %v8092_v19, %v3389_v7  ;;  %vm3445_vm12 = vc.u32 %v8129_v32, %v8135_v28  ;;  %v3322_v45 = vsel %vm8140_vm11, 0, %v3320_v26 }
 0x370   : > { %v3446_v62 = vadd.s32 1, %v3442_v23  ;;  %v3512_v43 = vand.u32 8388607, %v3505_v34  ;;  %v8151_v49 = vsub.s32 32, %v3519_v9  ;;  %v8153_v31 = vshrl.u32 %v3517_v17, 5 }
 0x371   : > { %v3317_v18 = vxor.u32 2147483648, %v3316_v25  ;;  %v3522_v57 = vshll.u32 %v5714_v52, %v3519_v9  ;;  %v3525_v63 = vshll.u32 %v5715_v55, %v3519_v9  ;;  %v3531_v13 = vshll.u32 %v5717_v61, %v3519_v9 }
 0x372   : > { %v3447_v19 = vsel %vm3445_vm12, %v3446_v62, %v3442_v23  ;;  %v3523_v44 = vshrl.u32 %v5715_v55, %v8151_v49  ;;  %v3526_v59 = vshrl.u32 %v5716_v58, %v8151_v49  ;;  %v3529_v50 = vshrl.u32 %v5717_v61, %v8151_v49 }
 0x373   : > { %v3318_v60 = vsel %vm3197_vm10, %v3317_v18, %v3316_v25  ;;  %v3448_v35 = vadd.s32 %v3447_v19, %v3443_v48  ;;  %v3532_v56 = vshrl.u32 %v5718_v1, %v8151_v49  ;;  %v3528_v30 = vshll.u32 %v5716_v58, %v3519_v9 }
 0x374   : > { %v3321_v38 = vsel %vm8140_vm11, %v7864_v4, %v3318_v60  ;;  %v3534_v12 = vshll.u32 %v5718_v1, %v3519_v9  ;;  %v3535_v11 = vshrl.u32 %v5719_v3, %v8151_v49  ;;  %v3513_v10 = vor.u32 8388608, %v3512_v43 }
 0x375   : > { %v3323_v46 = vmul.f32 %v3321_v38, %v3321_v38  ;;  %v3449_v47 = vadd.s32 536870912, %v3448_v35  ;;  %v3533_v37 = vor.u32 %v3532_v56, %v3531_v13  ;;  %v8175_v8 = vor.u32 %v3523_v44, %v3522_v57 }
 0x376   : > { %v8177_v15 = vor.u32 %v3526_v59, %v3525_v63  ;;  %v8179_v27 = vor.u32 %v3529_v50, %v3528_v30  ;;  %v3536_v36 = vor.u32 %v3535_v11, %v3534_v12  ;;  %vm3540_vm14 = vcmp.lt.s32.totalorder %v8153_v31, 4 }
 0x377   : > { %v3324_v6 = vmul.f32 -0.001358992, %v3323_v46  ;;  %v3331_v29 = vmul.f32 -0.00019511016, %v3323_v46  ;;  %v8181_v40 = vshrl.u32 %v3449_v47, 30  ;;  %v361_v24 = vmul.f32 %v7774_v21, %v287_v39 }
 0x378   : > { %v3339_v16 = vadd.s32 3, %v3322_v45  ;;  %vm3537_vm13 = vcmp.lt.s32.totalorder %v8153_v31, 1  ;;  %v3546_v22 = vsel %vm3540_vm14, %v3533_v37, 920167782  ;;  %vm3539_vm15 = vcmp.lt.s32.totalorder %v8153_v31, 3 }
 0x379   : > { %v3325_v7 = vadd.f32 0.041655596, %v3324_v6  ;;  %v3332_v26 = vadd.f32 0.008332121, %v3331_v29  ;;  %v3451_v41 = vshll.u32 %v8181_v40, 30  ;;  %v3545_v54 = vsel %vm3537_vm13, %v8175_v8, %v8177_v15 }
 0x37a   : > { %v3547_v21 = vsel %vm3539_vm15, %v8179_v27, %v3546_v22  ;;  %v3550_v42 = vsel %vm3540_vm14, %v3536_v36, 1326507024  ;;  %v8199_v53 = vshll.u32 %v3513_v10, 8  ;;  %v3549_v51 = vsel %vm3537_vm13, %v8177_v15, %v8179_v27 }
 0x37b   : > { %v3326_v17 = vmul.f32 %v3325_v7, %v3323_v46  ;;  %v3333_v23 = vmul.f32 %v3332_v26, %v3323_v46  ;;  %v3452_v9 = vsub.s32 %v3448_v35, %v3451_v41  ;;  %v8206_v25 = vadd.f32 %v7853_v5, %v362_v14 }
 0x37c   : > { %v3340_v48 = vand.u32 3, %v3339_v16  ;;  %vm3538_vm0 = vcmp.lt.s32.totalorder %v8153_v31, 2  ;;  %v3551_v45 = vsel %vm3539_vm15, %v3533_v37, %v3550_v42  ;;  %v8212_v57 = vadd.f32 %v7853_v5, %v361_v24 }
 0x37d   : > { %v3327_v62 = vadd.f32 -0.4999988, %v3326_v17  ;;  %v3334_v43 = vadd.f32 -0.16666654, %v3333_v23  ;;  %vm3453_vm1 = vcmp.lt.s32.totalorder %v3452_v9, 0  ;;  %v3454_v18 = vsub.s32 0, %v3452_v9 }
 0x37e   : > { %v3548_v63 = vsel %vm3538_vm0, %v3545_v54, %v3547_v21  ;;  %v3552_v14 = vsel %vm3538_vm0, %v3549_v51, %v3551_v45  ;;  %v3555_v19 = vshrl.u32 %v8199_v53, 16  ;;  %vm3338_vm2 = vweird.f32 %v7864_v4 }
 0x37f   : > { %v3328_v44 = vmul.f32 %v3327_v62, %v3323_v46  ;;  %v3335_v59 = vmul.f32 %v3334_v43, %v3323_v46  ;;  %v3455_v13 = vsel %vm3453_vm1, %v3454_v18, %v3452_v9  ;;  %v3556_v60 = vand.u32 65535, %v3552_v14 }
 0x380   : > { %vm3341_vm4 = vcmp.lt.s32.totalorder %v3340_v48, 2  ;;  %v3456_v35 = vclz %v3455_v13  ;;  %v3554_v50 = vand.u32 65535, %v8199_v53  ;;  %v3557_v5 = vshrl.u32 %v3552_v14, 16 }
 0x381   : > { %v3329_v56 = vadd.f32 1.0, %v3328_v44  ;;  %v3336_v30 = vadd.f32 1.0, %v3335_v59  ;;  %v8221_v12 = vmul.u32 %v3556_v60, %v3555_v19  ;;  %v3579_v11 = vshrl.u32 %v3548_v63, 16 }
 0x382   : > { %vm3342_vm3 = vcmp.eq.s32.totalorder %v3340_v48, 0  ;;  %vm3345_vm5 = vcmp.eq.s32.totalorder %v3340_v48, 2  ;;  %v3444_v39 = vadd.s32 %v8135_v28, %v8129_v32  ;;  %v5540_v46 = vadd.s32 4294967294, %v3456_v35 }
 0x383   : > { %v3337_v47 = vmul.f32 %v3336_v30, %v3321_v38  ;;  %v3346_v10 = vxor.u32 2147483648, %v3329_v56  ;;  %v3559_v37 = vmul.u32 %v3557_v5, %v3554_v50  ;;  %v3578_v36 = vand.u32 65535, %v3548_v63 }
 0x384   : > { %vm5541_vm6 = vcmp.lt.s32.totalorder %v5540_v46, 0  ;;  %v3558_v6 = vmul.u32 %v3556_v60, %v3554_v50  ;;  %v3561_v29 = vmul.u32 %v3557_v5, %v3555_v19  ;;  %v3564_v24 = vshll.u32 %v8221_v12, 16 }
 0x385   : > { %v3343_v16 = vxor.u32 2147483648, %v3337_v47  ;;  %v3459_v22 = vsel %vm5541_vm6, 0, %v5540_v46  ;;  %v3562_v7 = vshll.u32 %v3559_v37, 16  ;;  %v3581_v26 = vmul.u32 %v3579_v11, %v3554_v50 }
 0x386   : > { %v3347_v41 = vsel %vm3345_vm5, %v3346_v10, %v3337_v47  ;;  %vm3352_vm8 = vcmp.lt.s32.totalorder %v7856_v20, 0  ;;  %v3460_v54 = vsub.s32 32, %v3459_v22  ;;  %v3461_v21 = vshll.u32 %v3452_v9, %v3459_v22 }
 0x387   : > { %v3464_v32 = vsub.s32 4294967266, %v3459_v22  ;;  %v3344_v28 = vsel %vm3342_vm3, %v3329_v56, %v3343_v16  ;;  %vm3566_vm7 = vc.u32 %v3558_v6, %v3562_v7  ;;  %v3568_v38 = vadd.s32 %v3562_v7, %v3558_v6 }
 0x388   : > { %v3582_v42 = vmul.u32 %v3578_v36, %v3555_v19  ;;  %v3348_v17 = vsel %vm3341_vm4, %v3344_v28, %v3347_v41  ;;  %v3462_v23 = vshrl.u32 %v3444_v39, %v3460_v54  ;;  %v3567_v45 = vsel %vm3566_vm7, 1, %v5713_v0  ;;  %v297_v28 = vpop.permute.xlu2 %296 }
 0x389   : > { %v3465_v51 = vadd.s32 127, %v3464_v32  ;;  %v3349_v62 = vsel %vm3338_vm2, nan, %v3348_v17  ;;  %v3569_v43 = vadd.s32 %v3567_v45, %v3561_v29  ;;  %vm3570_vm10 = vc.u32 %v3568_v38, %v3564_v24 }
 0x38a   : > { %v3580_v18 = vmul.u32 %v3578_v36, %v3554_v50  ;;  %vm8234_vm9 = vcmp.le.f32.partialorder %v3350_v33, 0.7853982  ;;  %v3463_v63 = vor.u32 %v3462_v23, %v3461_v21  ;;  %v3571_v48 = vsel %vm3570_vm10, 1, %v5713_v0  ;;  %5383 = vst [vmem:[%s6113_s4 + $0x90] sm:$0xff] %v3349_v62 }
 0x38b   : > { %v3466_v14 = vshll.u32 %v3465_v51, 23  ;;  %v3584_v44 = vshll.u32 %v3581_v26, 16  ;;  %v3474_v59 = vsub.s32 4, %v8181_v40  ;;  %v3563_v13 = vshrl.u32 %v3559_v37, 16 }
 0x38c   : > { %v3573_v4 = vadd.s32 %v3571_v48, %v3569_v43  ;;  %v3583_v60 = vmul.u32 %v3579_v11, %v3555_v19  ;;  %v3586_v5 = vshll.u32 %v3582_v42, 16  ;;  %v3470_v56 = vcvt.s32.f32 %v3463_v63  ;;  %v8275_v43 = vld [vmem:[%s9600_s1] ss:$0 sm:$0xff] }
 0x38d   : > { %v3467_v35 = vor.u32 4788187, %v3466_v14  ;;  %vm3588_vm11 = vc.u32 %v3580_v18, %v3584_v44  ;;  %v3590_v50 = vadd.s32 %v3584_v44, %v3580_v18  ;;  %v3542_v33 = vsel %vm3540_vm14, %v8179_v27, 2102212464 }
 0x38e   : > { %v3574_v30 = vadd.s32 %v3573_v4, %v3563_v13  ;;  %v3589_v39 = vsel %vm3588_vm11, 1, %v5713_v0  ;;  %v3660_v10 = vand.u32 2147483647, %v8212_v57  ;;  %v3475_v19 = vsel %vm3352_vm8, %v3474_v59, %v8181_v40 }
 0x38f   : > { %v3468_v46 = vand.u32 2147483647, %v3467_v35  ;;  %v3591_v47 = vadd.s32 %v3589_v39, %v3583_v60  ;;  %vm3592_vm12 = vc.u32 %v3590_v50, %v3586_v5  ;;  %v3521_v11 = vshrl.u32 %v5714_v52, %v8151_v49 }
 0x390   : > { %v3565_v37 = vshrl.u32 %v8221_v12, 16  ;;  %v3593_v36 = vsel %vm3592_vm12, 1, %v5713_v0  ;;  %v3585_v6 = vshrl.u32 %v3581_v26, 16  ;;  %v3663_v24 = vand.u32 2139095040, %v8212_v57 }
 0x391   : > { %v3471_v27 = vmul.f32 %v3470_v56, %v3468_v46  ;;  %v3595_v29 = vadd.s32 %v3593_v36, %v3591_v47  ;;  %v3541_v16 = vsel %vm3537_vm13, %v3521_v11, %v8175_v8  ;;  %v3543_v40 = vsel %vm3539_vm15, %v8177_v15, %v3542_v33 }
 0x392   : > { %v3575_v22 = vadd.s32 %v3574_v30, %v3565_v37  ;;  %v3587_v7 = vshrl.u32 %v3582_v42, 16  ;;  %v3664_v12 = vshrl.u32 %v3663_v24, 23  ;;  %v3667_v54 = vand.u32 8388607, %v3660_v10 }
 0x393   : > { %v3472_v49 = vxor.u32 2147483648, %v3471_v27  ;;  %v3596_v41 = vadd.s32 %v3595_v29, %v3585_v6  ;;  %v3477_v26 = vsel %vm8234_vm9, 0, %v3475_v19  ;;  %v3594_v21 = vadd.s32 %v3590_v50, %v3586_v5 }
 0x394   : > { %v3818_v32 = vand.u32 2139095040, %v8206_v25  ;;  %v3544_v15 = vsel %vm3538_vm0, %v3541_v16, %v3543_v40  ;;  %v5545_v42 = vadd.s32 4294967169, %v3664_v12  ;;  %v3668_v45 = vor.u32 8388608, %v3667_v54 }
 0x395   : > { %v3473_v8 = vsel %vm3352_vm8, %v3472_v49, %v3471_v27  ;;  %v3597_v38 = vadd.s32 %v3596_v41, %v3587_v7  ;;  %vm3600_vm14 = vc.u32 %v3575_v22, %v3594_v21  ;;  %v363_v18 = vmul.f32 %v8275_v43, %v297_v28 }
 0x396   : > { %v3476_v17 = vsel %vm8234_vm9, %v7856_v20, %v3473_v8  ;;  %v3670_v62 = vadd.s32 1, %v5545_v42  ;;  %v3494_v31 = vadd.s32 3, %v3477_v26  ;;  %v3598_v63 = vmul.u32 %v8199_v53, %v3544_v15  ;;  %v8287_v53 = vld [vmem:[%s9600_s1 + $0x1] ss:$0 sm:$0xff] }
 0x397   : > { %v3478_v23 = vmul.f32 %v3476_v17, %v3476_v17  ;;  %v3601_v51 = vadd.s32 1, %v3597_v38  ;;  %v3819_v14 = vshrl.u32 %v3818_v32, 23  ;;  %v3815_v4 = vand.u32 2147483647, %v8206_v25 }
 0x398   : > { %vm3671_vm13 = vcmp.gt.s32.totalorder %v3670_v62, 0  ;;  %v8280_v50 = vshll.u32 %v3668_v45, 8  ;;  %v8282_v56 = vand.u32 3, %v3494_v31  ;;  %v8290_v39 = vadd.f32 %v8287_v53, %v363_v18 }
 0x399   : > { %v3479_v48 = vmul.f32 -0.001358992, %v3478_v23  ;;  %v3486_v44 = vmul.f32 -0.00019511016, %v3478_v23  ;;  %v3602_v9 = vsel %vm3600_vm14, %v3601_v51, %v3597_v38  ;;  %v3672_v13 = vsel %vm3671_vm13, %v3670_v62, 0 }
 0x39a   : > { %v3603_v59 = vadd.s32 %v3602_v9, %v3598_v63  ;;  %v3674_v5 = vand.u32 31, %v3672_v13  ;;  %v5548_v30 = vadd.s32 4294967169, %v3819_v14  ;;  %vm3507_vm15 = vcmp.lt.s32.totalorder %v7933_v2, 0 }
 0x39b   : > { %v3480_v60 = vadd.f32 0.041655596, %v3479_v48  ;;  %v3487_v35 = vadd.f32 0.008332121, %v3486_v44  ;;  %v8293_v11 = vadd.s32 %v3594_v21, %v3575_v22  ;;  %v8297_v36 = vand.u32 8388607, %v3815_v4 }
 0x39c   : > { %v3604_v33 = vadd.s32 536870912, %v3603_v59  ;;  %v3675_v19 = vsub.s32 32, %v3674_v5  ;;  %v8300_v29 = vand.u32 65535, %v8280_v50  ;;  %v8303_v24 = vshrl.u32 %v8280_v50, 16 }
 0x39d   : > { %v3481_v46 = vmul.f32 %v3480_v60, %v3478_v23  ;;  %v3488_v47 = vmul.f32 %v3487_v35, %v3478_v23  ;;  %vm3497_vm0 = vcmp.eq.s32.totalorder %v8282_v56, 0  ;;  %vm3500_vm1 = vcmp.eq.s32.totalorder %v8282_v56, 2 }
 0x39e   : > { %v3605_v37 = vshrl.u32 %v3604_v33, 30  ;;  %v8307_v40 = vshrl.u32 %v3672_v13, 5  ;;  %v3678_v22 = vshrl.u32 %v5715_v55, %v3675_v19  ;;  %v8310_v7 = vadd.s32 1, %v5548_v30 }
 0x39f   : > { %v3482_v27 = vadd.f32 -0.4999988, %v3481_v46  ;;  %v3489_v6 = vadd.f32 -0.16666654, %v3488_v47  ;;  %vm3496_vm2 = vcmp.lt.s32.totalorder %v8282_v56, 2  ;;  %v3677_v12 = vshll.u32 %v5714_v52, %v3674_v5 }
 0x3a0   : > { %v3606_v16 = vshll.u32 %v3605_v37, 30  ;;  %v3681_v54 = vshrl.u32 %v5716_v58, %v3675_v19  ;;  %vm3493_vm4 = vweird.f32 %v7856_v20  ;;  %v3680_v21 = vshll.u32 %v5715_v55, %v3674_v5 }
 0x3a1   : > { %v3483_v49 = vmul.f32 %v3482_v27, %v3478_v23  ;;  %v3490_v41 = vmul.f32 %v3489_v6, %v3478_v23  ;;  %v3684_v32 = vshrl.u32 %v5717_v61, %v3675_v19  ;;  %v3687_v28 = vshrl.u32 %v5718_v1, %v3675_v19 }
 0x3a2   : > { %v8316_v26 = vsub.s32 %v3603_v59, %v3606_v16  ;;  %v3629_v38 = vsub.s32 4, %v3605_v37  ;;  %v3683_v42 = vshll.u32 %v5716_v58, %v3674_v5  ;;  %v3679_v51 = vor.u32 %v3678_v22, %v3677_v12 }
 0x3a3   : > { %v3484_v8 = vadd.f32 1.0, %v3483_v49  ;;  %v3491_v15 = vadd.f32 1.0, %v3490_v41  ;;  %v3686_v45 = vshll.u32 %v5717_v61, %v3674_v5  ;;  %v3682_v31 = vor.u32 %v3681_v54, %v3680_v21 }
 0x3a4   : > { %vm3608_vm3 = vcmp.lt.s32.totalorder %v8316_v26, 0  ;;  %v3609_v23 = vsub.s32 0, %v8316_v26  ;;  %v3690_v63 = vshrl.u32 %v5719_v3, %v3675_v19  ;;  %v3685_v48 = vor.u32 %v3684_v32, %v3683_v42 }
 0x3a5   : > { %v3492_v62 = vmul.f32 %v3491_v15, %v3476_v17  ;;  %v3501_v18 = vxor.u32 2147483648, %v3484_v8  ;;  %v3688_v44 = vor.u32 %v3687_v28, %v3686_v45  ;;  %v3689_v9 = vshll.u32 %v5718_v1, %v3674_v5 }
 0x3a6   : > { %v3610_v14 = vsel %vm3608_vm3, %v3609_v23, %v8316_v26  ;;  %v8330_v60 = vsel %vm3507_vm15, %v3629_v38, %v3605_v37  ;;  %v3676_v35 = vshrl.u32 %v5714_v52, %v3675_v19  ;;  %vm8335_vm5 = vcmp.le.f32.partialorder %v3505_v34, 0.7853982 }
 0x3a7   : > { %v3498_v59 = vxor.u32 2147483648, %v3492_v62  ;;  %v3611_v13 = vclz %v3610_v14  ;;  %v3691_v33 = vor.u32 %v3690_v63, %v3689_v9  ;;  %vm3692_vm6 = vcmp.lt.s32.totalorder %v8307_v40, 1 }
 0x3a8   : > { %vm3693_vm8 = vcmp.lt.s32.totalorder %v8307_v40, 2  ;;  %vm3694_vm7 = vcmp.lt.s32.totalorder %v8307_v40, 3  ;;  %v3502_v30 = vsel %vm3500_vm1, %v3501_v18, %v3492_v62  ;;  %vm3695_vm10 = vcmp.lt.s32.totalorder %v8307_v40, 4 }
 0x3a9   : > { %v3499_v5 = vsel %vm3497_vm0, %v3484_v8, %v3498_v59  ;;  %v5543_v46 = vadd.s32 4294967294, %v3611_v13  ;;  %v3697_v47 = vsel %vm3695_vm10, %v3685_v48, 2102212464  ;;  %v3700_v19 = vsel %vm3692_vm6, %v3679_v51, %v3682_v31 }
 0x3aa   : > { %v3503_v34 = vsel %vm3496_vm2, %v3499_v5, %v3502_v30  ;;  %v3701_v37 = vsel %vm3695_vm10, %v3688_v44, 920167782  ;;  %v3696_v6 = vsel %vm3692_vm6, %v3676_v35, %v3679_v51  ;;  %v3704_v49 = vsel %vm3692_vm6, %v3682_v31, %v3685_v48 }
 0x3ab   : > { %v3504_v27 = vsel %vm3493_vm4, nan, %v3503_v34  ;;  %vm5544_vm9 = vcmp.lt.s32.totalorder %v5543_v46, 0  ;;  %v3702_v16 = vsel %vm3694_vm7, %v3685_v48, %v3701_v37  ;;  %v3705_v41 = vsel %vm3695_vm10, %v3691_v33, 1326507024 }
 0x3ac   : > { %v3614_v22 = vsel %vm5544_vm9, 0, %v5543_v46  ;;  %v3703_v56 = vsel %vm3693_vm8, %v3700_v19, %v3702_v16  ;;  %5384 = vst [vmem:[%s6113_s4 + $0x98] sm:$0xff] %v3504_v27  ;;  %v3698_v20 = vsel %vm3694_vm7, %v3682_v31, %v3697_v47  ;;  %v3706_v21 = vsel %vm3694_vm7, %v3688_v44, %v3705_v41 }
 0x3ad   : > { %v3615_v12 = vsub.s32 32, %v3614_v22  ;;  %v3619_v54 = vsub.s32 4294967266, %v3614_v22  ;;  %v3616_v32 = vshll.u32 %v8316_v26, %v3614_v22  ;;  %v3707_v28 = vsel %vm3693_vm8, %v3704_v49, %v3706_v21 }
 0x3ae   : > { %v3733_v8 = vand.u32 65535, %v3703_v56  ;;  %v3734_v15 = vshrl.u32 %v3703_v56, 16  ;;  %v3711_v23 = vand.u32 65535, %v3707_v28  ;;  %v3712_v51 = vshrl.u32 %v3707_v28, 16 }
 0x3af   : > { %v3617_v38 = vshrl.u32 %v8293_v11, %v3615_v12  ;;  %v3620_v42 = vadd.s32 127, %v3619_v54  ;;  %v3823_v18 = vor.u32 8388608, %v8297_v36  ;;  %vm3826_vm11 = vcmp.gt.s32.totalorder %v8310_v7, 0 }
 0x3b0   : > { %v3736_v45 = vmul.u32 %v3734_v15, %v8300_v29  ;;  %v3737_v62 = vmul.u32 %v3733_v8, %v8303_v24  ;;  %v3632_v63 = vsel %vm8335_vm5, 0, %v8330_v60  ;;  %v3714_v14 = vmul.u32 %v3712_v51, %v8300_v29 }
 0x3b1   : > { %v3618_v31 = vor.u32 %v3617_v38, %v3616_v32  ;;  %v3621_v26 = vshll.u32 %v3620_v42, 23  ;;  %v8380_v11 = vsel %vm3693_vm8, %v3696_v6, %v3698_v20  ;;  %v3715_v48 = vmul.u32 %v3711_v23, %v8303_v24 }
 0x3b2   : > { %v3735_v44 = vmul.u32 %v3733_v8, %v8300_v29  ;;  %v3739_v9 = vshll.u32 %v3736_v45, 16  ;;  %v3713_v13 = vmul.u32 %v3711_v23, %v8300_v29  ;;  %v3717_v35 = vshll.u32 %v3714_v14, 16 }
 0x3b3   : > { %v3622_v59 = vor.u32 4788187, %v3621_v26  ;;  %v3738_v33 = vmul.u32 %v3734_v15, %v8303_v24  ;;  %v3625_v5 = vcvt.s32.f32 %v3618_v31  ;;  %v3716_v60 = vmul.u32 %v3712_v51, %v8303_v24 }
 0x3b4   : > { %v3719_v30 = vshll.u32 %v3715_v48, 16  ;;  %v3741_v46 = vshll.u32 %v3737_v62, 16  ;;  %vm3721_vm12 = vc.u32 %v3713_v13, %v3717_v35  ;;  %v3723_v40 = vadd.s32 %v3717_v35, %v3713_v13 }
 0x3b5   : > { %v3623_v34 = vand.u32 2147483647, %v3622_v59  ;;  %vm3743_vm14 = vc.u32 %v3735_v44, %v3739_v9  ;;  %v3722_v47 = vsel %vm3721_vm12, 1, %v5713_v0  ;;  %v3745_v37 = vadd.s32 %v3739_v9, %v3735_v44 }
 0x3b6   : > { %v3744_v19 = vsel %vm3743_vm14, 1, %v5713_v0  ;;  %v3827_v29 = vsel %vm3826_vm11, %v8310_v7, 0  ;;  %v3724_v6 = vadd.s32 %v3722_v47, %v3716_v60  ;;  %vm3725_vm13 = vc.u32 %v3723_v40, %v3719_v30 }
 0x3b7   : > { %v3626_v27 = vmul.f32 %v3625_v5, %v3623_v34  ;;  %v3746_v16 = vadd.s32 %v3744_v19, %v3738_v33  ;;  %v3718_v24 = vshrl.u32 %v3714_v14, 16  ;;  %v3726_v22 = vsel %vm3725_vm13, 1, %v5713_v0 }
 0x3b8   : > { %vm3747_vm0 = vc.u32 %v3745_v37, %v3741_v46  ;;  %v3973_v56 = vand.u32 2139095040, %v8290_v39  ;;  %v3728_v41 = vadd.s32 %v3726_v22, %v3724_v6  ;;  %v3829_v54 = vand.u32 31, %v3827_v29 }
 0x3b9   : > { %v3627_v49 = vxor.u32 2147483648, %v3626_v27  ;;  %v3748_v12 = vsel %vm3747_vm0, 1, %v5713_v0  ;;  %v3649_v20 = vadd.s32 3, %v3632_v63  ;;  %v3740_v21 = vshrl.u32 %v3736_v45, 16 }
 0x3ba   : > { %v3750_v32 = vadd.s32 %v3748_v12, %v3746_v16  ;;  %v3753_v7 = vmul.u32 %v8280_v50, %v8380_v11  ;;  %v3720_v8 = vshrl.u32 %v3715_v48, 16  ;;  %v3729_v15 = vadd.s32 %v3728_v41, %v3718_v24 }
 0x3bb   : > { %v3628_v28 = vsel %vm3507_vm15, %v3627_v49, %v3626_v27  ;;  %v8399_v38 = vsub.s32 32, %v3829_v54  ;;  %v3742_v23 = vshrl.u32 %v3737_v62, 16  ;;  %v8404_v51 = vadd.s32 %v3745_v37, %v3741_v46 }
 0x3bc   : > { %v3631_v42 = vsel %vm8335_vm5, %v7933_v2, %v3628_v28  ;;  %v3751_v31 = vadd.s32 %v3750_v32, %v3740_v21  ;;  %v8406_v26 = vadd.s32 %v3729_v15, %v3720_v8  ;;  %v8408_v63 = vshrl.u32 %v3827_v29, 5 }
 0x3bd   : > { %v3633_v45 = vmul.f32 %v3631_v42, %v3631_v42  ;;  %v3833_v50 = vshrl.u32 %v5715_v55, %v8399_v38  ;;  %v3832_v11 = vshll.u32 %v5714_v52, %v3829_v54  ;;  %v3836_v48 = vshrl.u32 %v5716_v58, %v8399_v38 }
 0x3be   : > { %v3752_v14 = vadd.s32 %v3751_v31, %v3742_v23  ;;  %v3839_v17 = vshrl.u32 %v5717_v61, %v8399_v38  ;;  %vm3755_vm15 = vc.u32 %v8406_v26, %v8404_v51  ;;  %v3835_v9 = vshll.u32 %v5715_v55, %v3829_v54 }
 0x3bf   : > { %v3634_v62 = vmul.f32 -0.001358992, %v3633_v45  ;;  %v3641_v44 = vmul.f32 -0.00019511016, %v3633_v45  ;;  %v8420_v13 = vor.u32 %v3833_v50, %v3832_v11  ;;  %v3838_v35 = vshll.u32 %v5716_v58, %v3829_v54 }
 0x3c0   : > { %v3756_v59 = vadd.s32 1, %v3752_v14  ;;  %v3841_v33 = vshll.u32 %v5717_v61, %v3829_v54  ;;  %v8424_v30 = vor.u32 %v3836_v48, %v3835_v9  ;;  %v3842_v46 = vshrl.u32 %v5718_v1, %v8399_v38 }
 0x3c1   : > { %v3635_v5 = vadd.f32 0.041655596, %v3634_v62  ;;  %v3642_v60 = vadd.f32 0.008332121, %v3641_v44  ;;  %v3840_v40 = vor.u32 %v3839_v17, %v3838_v35  ;;  %v3844_v47 = vshll.u32 %v5718_v1, %v3829_v54 }
 0x3c2   : > { %v3757_v34 = vsel %vm3755_vm15, %v3756_v59, %v3752_v14  ;;  %v3845_v19 = vshrl.u32 %v5719_v3, %v8399_v38  ;;  %v3843_v6 = vor.u32 %v3842_v46, %v3841_v33  ;;  %v3650_v16 = vand.u32 3, %v3649_v20 }
 0x3c3   : > { %v3636_v37 = vmul.f32 %v3635_v5, %v3633_v45  ;;  %v3643_v29 = vmul.f32 %v3642_v60, %v3633_v45  ;;  %v3758_v27 = vadd.s32 %v3757_v34, %v3753_v7  ;;  %vm3847_vm1 = vcmp.lt.s32.totalorder %v8408_v63, 1 }
 0x3c4   : > { %v3846_v24 = vor.u32 %v3845_v19, %v3844_v47  ;;  %vm3849_vm2 = vcmp.lt.s32.totalorder %v8408_v63, 3  ;;  %vm3850_vm4 = vcmp.lt.s32.totalorder %v8408_v63, 4  ;;  %v3855_v12 = vsel %vm3847_vm1, %v8420_v13, %v8424_v30 }
 0x3c5   : > { %v3637_v22 = vadd.f32 -0.4999988, %v3636_v37  ;;  %v3644_v49 = vadd.f32 -0.16666654, %v3643_v29  ;;  %v3759_v41 = vadd.s32 536870912, %v3758_v27  ;;  %v3859_v20 = vsel %vm3847_vm1, %v8424_v30, %v3840_v40 }
 0x3c6   : > { %v3856_v54 = vsel %vm3850_vm4, %v3843_v6, 920167782  ;;  %v3860_v21 = vsel %vm3850_vm4, %v3846_v24, 1326507024  ;;  %vm3648_vm3 = vweird.f32 %v7933_v2  ;;  %vm3848_vm5 = vcmp.lt.s32.totalorder %v8408_v63, 2 }
 0x3c7   : > { %v3638_v32 = vmul.f32 %v3637_v22, %v3633_v45  ;;  %v3645_v7 = vmul.f32 %v3644_v49, %v3633_v45  ;;  %v8445_v28 = vshrl.u32 %v3759_v41, 30  ;;  %v3857_v8 = vsel %vm3849_vm2, %v3840_v40, %v3856_v54 }
 0x3c8   : > { %v3861_v15 = vsel %vm3849_vm2, %v3843_v6, %v3860_v21  ;;  %v8455_v23 = vshll.u32 %v3823_v18, 8  ;;  %v3858_v14 = vsel %vm3848_vm5, %v3855_v12, %v3857_v8  ;;  %vm3651_vm6 = vcmp.lt.s32.totalorder %v3650_v16, 2 }
 0x3c9   : > { %v3639_v31 = vadd.f32 1.0, %v3638_v32  ;;  %v3646_v50 = vadd.f32 1.0, %v3645_v7  ;;  %v3761_v45 = vshll.u32 %v8445_v28, 30  ;;  %vm3652_vm8 = vcmp.eq.s32.totalorder %v3650_v16, 0 }
 0x3ca   : > { %v3862_v11 = vsel %vm3848_vm5, %v3859_v20, %v3861_v15  ;;  %v3974_v48 = vshrl.u32 %v3973_v56, 23  ;;  %vm3655_vm7 = vcmp.eq.s32.totalorder %v3650_v16, 2  ;;  %v3864_v62 = vand.u32 65535, %v8455_v23 }
 0x3cb   : > { %v3647_v17 = vmul.f32 %v3646_v50, %v3631_v42  ;;  %v3656_v36 = vxor.u32 2147483648, %v3639_v31  ;;  %v3762_v18 = vsub.s32 %v3758_v27, %v3761_v45  ;;  %v3866_v44 = vand.u32 65535, %v3862_v11 }
 0x3cc   : > { %v3867_v9 = vshrl.u32 %v3862_v11, 16  ;;  %v3889_v59 = vshrl.u32 %v3858_v14, 16  ;;  %v3865_v5 = vshrl.u32 %v8455_v23, 16  ;;  %v3831_v60 = vshrl.u32 %v5714_v52, %v8399_v38 }
 0x3cd   : > { %v3653_v35 = vxor.u32 2147483648, %v3647_v17  ;;  %vm3763_vm10 = vcmp.lt.s32.totalorder %v3762_v18, 0  ;;  %v3764_v33 = vsub.s32 0, %v3762_v18  ;;  %v3852_v56 = vsel %vm3850_vm4, %v3840_v40, 2102212464 }
 0x3ce   : > { %v3869_v42 = vmul.u32 %v3867_v9, %v3864_v62  ;;  %v3888_v46 = vand.u32 65535, %v3858_v14  ;;  %v3657_v47 = vsel %vm3655_vm7, %v3656_v36, %v3647_v17  ;;  %v3870_v37 = vmul.u32 %v3866_v44, %v3865_v5 }
 0x3cf   : > { %v3654_v34 = vsel %vm3652_vm8, %v3639_v31, %v3653_v35  ;;  %v3765_v19 = vsel %vm3763_vm10, %v3764_v33, %v3762_v18  ;;  %v3891_v24 = vmul.u32 %v3889_v59, %v3864_v62  ;;  %v3754_v40 = vadd.s32 %v8404_v51, %v8406_v26 }
 0x3d0   : > { %v3658_v29 = vsel %vm3651_vm6, %v3654_v34, %v3657_v47  ;;  %v3766_v27 = vclz %v3765_v19  ;;  %v3872_v6 = vshll.u32 %v3869_v42, 16  ;;  %v3851_v22 = vsel %vm3847_vm1, %v3831_v60, %v8420_v13  ;;  %v307_v34 = vpop.permute.xlu1 %306 }
 0x3d1   : > { %v3659_v38 = vsel %vm3648_vm3, nan, %v3658_v29  ;;  %v3868_v49 = vmul.u32 %v3866_v44, %v3864_v62  ;;  %v3853_v16 = vsel %vm3849_vm2, %v8424_v30, %v3852_v56  ;;  %v3871_v12 = vmul.u32 %v3867_v9, %v3865_v5 }
 0x3d2   : > { %v5546_v41 = vadd.s32 4294967294, %v3766_v27  ;;  %v3890_v54 = vmul.u32 %v3888_v46, %v3864_v62  ;;  %5385 = vst [vmem:[%s6113_s4 + $0xa0] sm:$0xff] %v3659_v38  ;;  %v3874_v20 = vshll.u32 %v3870_v37, 16  ;;  %v3892_v21 = vmul.u32 %v3888_v46, %v3865_v5 }
 0x3d3   : > { %vm3876_vm9 = vc.u32 %v3868_v49, %v3872_v6  ;;  %v3878_v2 = vadd.s32 %v3872_v6, %v3868_v49  ;;  %v3873_v32 = vshrl.u32 %v3869_v42, 16  ;;  %v3894_v26 = vshll.u32 %v3891_v24, 16 }
 0x3d4   : > { %vm5547_vm11 = vcmp.lt.s32.totalorder %v5546_v41, 0  ;;  %v3877_v51 = vsel %vm3876_vm9, 1, %v5713_v0  ;;  %v3893_v8 = vmul.u32 %v3889_v59, %v3865_v5  ;;  %v3896_v50 = vshll.u32 %v3892_v21, 16 }
 0x3d5   : > { %v3769_v7 = vsel %vm5547_vm11, 0, %v5546_v41  ;;  %v3879_v13 = vadd.s32 %v3877_v51, %v3871_v12  ;;  %vm3880_vm12 = vc.u32 %v3878_v2, %v3874_v20  ;;  %vm3898_vm14 = vc.u32 %v3890_v54, %v3894_v26 }
 0x3d6   : > { %v3770_v15 = vsub.s32 32, %v3769_v7  ;;  %v3774_v31 = vsub.s32 4294967266, %v3769_v7  ;;  %v3881_v30 = vsel %vm3880_vm12, 1, %v5713_v0  ;;  %v3771_v45 = vshll.u32 %v3762_v18, %v3769_v7 }
 0x3d7   : > { %v3883_v14 = vadd.s32 %v3881_v30, %v3879_v13  ;;  %v3900_v11 = vadd.s32 %v3894_v26, %v3890_v54  ;;  %v3899_v62 = vsel %vm3898_vm14, 1, %v5713_v0  ;;  %v5551_v44 = vadd.s32 4294967169, %v3974_v48 }
 0x3d8   : > { %v3772_v17 = vshrl.u32 %v3754_v40, %v3770_v15  ;;  %v3775_v36 = vadd.s32 127, %v3774_v31  ;;  %v3784_v9 = vsub.s32 4, %v8445_v28  ;;  %v3901_v33 = vadd.s32 %v3899_v62, %v3893_v8 }
 0x3d9   : > { %v3884_v35 = vadd.s32 %v3883_v14, %v3873_v32  ;;  %vm3902_vm13 = vc.u32 %v3900_v11, %v3896_v50  ;;  %v3875_v60 = vshrl.u32 %v3870_v37, 16  ;;  %vm3662_vm0 = vcmp.lt.s32.totalorder %v8212_v57, 0 }
 0x3da   : > { %v3773_v59 = vor.u32 %v3772_v17, %v3771_v45  ;;  %v3776_v5 = vshll.u32 %v3775_v36, 23  ;;  %v3903_v56 = vsel %vm3902_vm13, 1, %v5713_v0  ;;  %v3895_v18 = vshrl.u32 %v3891_v24, 16  ;;  %v302_v36 = vpop.permute.xlu0 %301 }
 0x3db   : > { %v3905_v42 = vadd.s32 %v3903_v56, %v3901_v33  ;;  %v3980_v46 = vadd.s32 1, %v5551_v44  ;;  %v3854_v48 = vsel %vm3848_vm5, %v3851_v22, %v3853_v16  ;;  %v8492_v19 = vadd.s32 %v3884_v35, %v3875_v60 }
 0x3dc   : > { %v3777_v47 = vor.u32 4788187, %v3776_v5  ;;  %v3970_v29 = vand.u32 2147483647, %v8290_v39  ;;  %v3785_v37 = vsel %vm3662_vm0, %v3784_v9, %v8445_v28  ;;  %v3897_v27 = vshrl.u32 %v3892_v21, 16 }
 0x3dd   : > { %v3906_v6 = vadd.s32 %v3905_v42, %v3895_v18  ;;  %vm3981_vm15 = vcmp.gt.s32.totalorder %v3980_v46, 0  ;;  %v3780_v24 = vcvt.s32.f32 %v3773_v59  ;;  %v8498_v40 = vadd.s32 %v3900_v11, %v3896_v50 }
 0x3de   : > { %v3778_v38 = vand.u32 2147483647, %v3777_v47  ;;  %v3982_v49 = vsel %vm3981_vm15, %v3980_v46, 0  ;;  %v365_v41 = vmul.f32 %v8275_v43, %v307_v34  ;;  %vm8503_vm1 = vcmp.le.f32.partialorder %v3660_v10, 0.7853982 }
 0x3df   : > { %v3907_v63 = vadd.s32 %v3906_v6, %v3897_v27  ;;  %v3984_v22 = vand.u32 31, %v3982_v49  ;;  %v3908_v28 = vmul.u32 %v8455_v23, %v3854_v48  ;;  %vm3910_vm2 = vc.u32 %v8492_v19, %v8498_v40 }
 0x3e0   : > { %v3781_v12 = vmul.f32 %v3780_v24, %v3778_v38  ;;  %v3787_v54 = vsel %vm8503_vm1, 0, %v3785_v37  ;;  %v3977_v2 = vand.u32 8388607, %v3970_v29  ;;  %v8516_v10 = vshrl.u32 %v3982_v49, 5 }
 0x3e1   : > { %v3911_v20 = vadd.s32 1, %v3907_v63  ;;  %v8514_v21 = vsub.s32 32, %v3984_v22  ;;  %v3987_v51 = vshll.u32 %v5714_v52, %v3984_v22  ;;  %v3990_v26 = vshll.u32 %v5715_v55, %v3984_v22 }
 0x3e2   : > { %v3782_v32 = vxor.u32 2147483648, %v3781_v12  ;;  %v3996_v8 = vshll.u32 %v5717_v61, %v3984_v22  ;;  %v3993_v14 = vshll.u32 %v5716_v58, %v3984_v22  ;;  %v3999_v11 = vshll.u32 %v5718_v1, %v3984_v22 }
 0x3e3   : > { %v3912_v23 = vsel %vm3910_vm2, %v3911_v20, %v3907_v63  ;;  %v3988_v7 = vshrl.u32 %v5715_v55, %v8514_v21  ;;  %v3991_v13 = vshrl.u32 %v5716_v58, %v8514_v21  ;;  %v3994_v30 = vshrl.u32 %v5717_v61, %v8514_v21 }
 0x3e4   : > { %v3783_v15 = vsel %vm3662_vm0, %v3782_v32, %v3781_v12  ;;  %v3913_v31 = vadd.s32 %v3912_v23, %v3908_v28  ;;  %v3997_v50 = vshrl.u32 %v5718_v1, %v8514_v21  ;;  %v4000_v17 = vshrl.u32 %v5719_v3, %v8514_v21 }
 0x3e5   : > { %v3786_v45 = vsel %vm8503_vm1, %v8212_v57, %v3783_v15  ;;  %v3978_v9 = vor.u32 8388608, %v3977_v2  ;;  %v8538_v33 = vor.u32 %v3988_v7, %v3987_v51  ;;  %v8540_v59 = vor.u32 %v3991_v13, %v3990_v26 }
 0x3e6   : > { %v3788_v62 = vmul.f32 %v3786_v45, %v3786_v45  ;;  %v3914_v44 = vadd.s32 536870912, %v3913_v31  ;;  %v3998_v35 = vor.u32 %v3997_v50, %v3996_v8  ;;  %v8542_v5 = vor.u32 %v3994_v30, %v3993_v14 }
 0x3e7   : > { %v4001_v60 = vor.u32 %v4000_v17, %v3999_v11  ;;  %vm4005_vm4 = vcmp.lt.s32.totalorder %v8516_v10, 4  ;;  %v364_v46 = vmul.f32 %v8275_v43, %v302_v36  ;;  %v3804_v34 = vadd.s32 3, %v3787_v54 }
 0x3e8   : > { %v3789_v56 = vmul.f32 -0.001358992, %v3788_v62  ;;  %v3796_v18 = vmul.f32 -0.00019511016, %v3788_v62  ;;  %v8544_v42 = vshrl.u32 %v3914_v44, 30  ;;  %vm4002_vm3 = vcmp.lt.s32.totalorder %v8516_v10, 1 }
 0x3e9   : > { %v4011_v47 = vsel %vm4005_vm4, %v3998_v35, 920167782  ;;  %vm4004_vm5 = vcmp.lt.s32.totalorder %v8516_v10, 3  ;;  %v4010_v6 = vsel %vm4002_vm3, %v8538_v33, %v8540_v59  ;;  %v4015_v24 = vsel %vm4005_vm4, %v4001_v60, 1326507024 }
 0x3ea   : > { %v3790_v48 = vadd.f32 0.041655596, %v3789_v56  ;;  %v3797_v37 = vadd.f32 0.008332121, %v3796_v18  ;;  %v3916_v27 = vshll.u32 %v8544_v42, 30  ;;  %v4012_v38 = vsel %vm4004_vm5, %v8542_v5, %v4011_v47 }
 0x3eb   : > { %v8562_v49 = vshll.u32 %v3978_v9, 8  ;;  %v4014_v12 = vsel %vm4002_vm3, %v8540_v59, %v8542_v5  ;;  %v8569_v28 = vadd.f32 %v8287_v53, %v365_v41  ;;  %v3805_v54 = vand.u32 3, %v3804_v34 }
 0x3ec   : > { %v3791_v63 = vmul.f32 %v3790_v48, %v3788_v62  ;;  %v3798_v22 = vmul.f32 %v3797_v37, %v3788_v62  ;;  %v3917_v16 = vsub.s32 %v3913_v31, %v3916_v27  ;;  %vm4003_vm6 = vcmp.lt.s32.totalorder %v8516_v10, 2 }
 0x3ed   : > { %v4016_v20 = vsel %vm4004_vm5, %v3998_v35, %v4015_v24  ;;  %v8575_v26 = vadd.f32 %v8287_v53, %v364_v46  ;;  %v4013_v23 = vsel %vm4003_vm6, %v4010_v6, %v4012_v38  ;;  %v4020_v7 = vshrl.u32 %v8562_v49, 16 }
 0x3ee   : > { %v3792_v2 = vadd.f32 -0.4999988, %v3791_v63  ;;  %v3799_v32 = vadd.f32 -0.16666654, %v3798_v22  ;;  %vm3918_vm8 = vcmp.lt.s32.totalorder %v3917_v16, 0  ;;  %v3919_v51 = vsub.s32 0, %v3917_v16 }
 0x3ef   : > { %v4017_v41 = vsel %vm4003_vm6, %v4014_v12, %v4016_v20  ;;  %vm3803_vm7 = vweird.f32 %v8212_v57  ;;  %vm3806_vm10 = vcmp.lt.s32.totalorder %v3805_v54, 2  ;;  %v4019_v50 = vand.u32 65535, %v8562_v49 }
 0x3f0   : > { %v3793_v13 = vmul.f32 %v3792_v2, %v3788_v62  ;;  %v3800_v8 = vmul.f32 %v3799_v32, %v3788_v62  ;;  %v3920_v15 = vsel %vm3918_vm8, %v3919_v51, %v3917_v16  ;;  %v4021_v31 = vand.u32 65535, %v4017_v41 }
 0x3f1   : > { %v3921_v30 = vclz %v3920_v15  ;;  %v4022_v14 = vshrl.u32 %v4017_v41, 16  ;;  %v4044_v44 = vshrl.u32 %v4013_v23, 16  ;;  %vm3807_vm9 = vcmp.eq.s32.totalorder %v3805_v54, 0 }
 0x3f2   : > { %v3794_v11 = vadd.f32 1.0, %v3793_v13  ;;  %v3801_v17 = vadd.f32 1.0, %v3800_v8  ;;  %v8584_v36 = vmul.u32 %v4021_v31, %v4020_v7  ;;  %vm3810_vm11 = vcmp.eq.s32.totalorder %v3805_v54, 2 }
 0x3f3   : > { %v3909_v9 = vadd.s32 %v8498_v40, %v8492_v19  ;;  %v5549_v62 = vadd.s32 4294967294, %v3921_v30  ;;  %v4024_v56 = vmul.u32 %v4022_v14, %v4019_v50  ;;  %v4043_v18 = vand.u32 65535, %v4013_v23 }
 0x3f4   : > { %v3802_v35 = vmul.f32 %v3801_v17, %v3786_v45  ;;  %v3811_v60 = vxor.u32 2147483648, %v3794_v11  ;;  %v4023_v46 = vmul.u32 %v4021_v31, %v4019_v50  ;;  %v4026_v34 = vmul.u32 %v4022_v14, %v4020_v7 }
 0x3f5   : > { %vm5550_vm12 = vcmp.lt.s32.totalorder %v5549_v62, 0  ;;  %v4029_v47 = vshll.u32 %v8584_v36, 16  ;;  %v4027_v27 = vshll.u32 %v4024_v56, 16  ;;  %v4046_v6 = vmul.u32 %v4044_v44, %v4019_v50 }
 0x3f6   : > { %v3808_v48 = vxor.u32 2147483648, %v3802_v35  ;;  %v3924_v37 = vsel %vm5550_vm12, 0, %v5549_v62  ;;  %v3812_v38 = vsel %vm3810_vm11, %v3811_v60, %v3802_v35  ;;  %vm3817_vm14 = vcmp.lt.s32.totalorder %v8206_v25, 0 }
 0x3f7   : > { %v3925_v24 = vsub.s32 32, %v3924_v37  ;;  %v3926_v63 = vshll.u32 %v3917_v16, %v3924_v37  ;;  %v3929_v19 = vsub.s32 4294967266, %v3924_v37  ;;  %vm4031_vm13 = vc.u32 %v4023_v46, %v4027_v27 }
 0x3f8   : > { %v3809_v40 = vsel %vm3807_vm9, %v3794_v11, %v3808_v48  ;;  %v4033_v45 = vadd.s32 %v4027_v27, %v4023_v46  ;;  %v4047_v22 = vmul.u32 %v4043_v18, %v4020_v7  ;;  %v4032_v32 = vsel %vm4031_vm13, 1, %v5713_v0 }
 0x3f9   : > { %v3813_v12 = vsel %vm3806_vm10, %v3809_v40, %v3812_v38  ;;  %v3927_v20 = vshrl.u32 %v3909_v9, %v3925_v24  ;;  %v3930_v2 = vadd.s32 127, %v3929_v19  ;;  %v4034_v23 = vadd.s32 %v4032_v32, %v4026_v34 }
 0x3fa   : > { %v3814_v51 = vsel %vm3803_vm7, nan, %v3813_v12  ;;  %vm4035_vm0 = vc.u32 %v4033_v45, %v4029_v47  ;;  %v4045_v41 = vmul.u32 %v4043_v18, %v4019_v50  ;;  %vm8597_vm15 = vcmp.le.f32.partialorder %v3815_v4, 0.7853982  ;;  %v312_v12 = vpop.permute.xlu2 %311 }
 0x3fb   : > { %v3928_v13 = vor.u32 %v3927_v20, %v3926_v63  ;;  %v3931_v8 = vshll.u32 %v3930_v2, 23  ;;  %v4036_v54 = vsel %vm4035_vm0, 1, %v5713_v0  ;;  %v4049_v15 = vshll.u32 %v4046_v6, 16  ;;  %5386 = vst [vmem:[%s6113_s4 + $0xa8] sm:$0xff] %v3814_v51 }
 0x3fc   : > { %v3939_v31 = vsub.s32 4, %v8544_v42  ;;  %v4028_v30 = vshrl.u32 %v4024_v56, 16  ;;  %v4038_v57 = vadd.s32 %v4036_v54, %v4034_v23  ;;  %v4048_v14 = vmul.u32 %v4044_v44, %v4020_v7 }
 0x3fd   : > { %v3932_v11 = vor.u32 4788187, %v3931_v8  ;;  %v4051_v17 = vshll.u32 %v4047_v22, 16  ;;  %vm4053_vm1 = vc.u32 %v4045_v41, %v4049_v15  ;;  %v4055_v50 = vadd.s32 %v4049_v15, %v4045_v41 }
 0x3fe   : > { %v3935_v9 = vcvt.s32.f32 %v3928_v13  ;;  %v4007_v4 = vsel %vm4005_vm4, %v8542_v5, 2102212464  ;;  %v4039_v62 = vadd.s32 %v4038_v57, %v4028_v30  ;;  %v4054_v35 = vsel %vm4053_vm1, 1, %v5713_v0 }
 0x3ff   : > { %v3933_v60 = vand.u32 2147483647, %v3932_v11  ;;  %v4056_v18 = vadd.s32 %v4054_v35, %v4048_v14  ;;  %vm4057_vm2 = vc.u32 %v4055_v50, %v4051_v17  ;;  %v4125_v46 = vand.u32 2147483647, %v8575_v26 }
 0x400   : > { %v3940_v7 = vsel %vm3817_vm14, %v3939_v31, %v8544_v42  ;;  %v3986_v44 = vshrl.u32 %v5714_v52, %v8514_v21  ;;  %v4030_v56 = vshrl.u32 %v8584_v36, 16  ;;  %v4058_v34 = vsel %vm4057_vm2, 1, %v5713_v0 }
 0x401   : > { %v3936_v5 = vmul.f32 %v3935_v9, %v3933_v60  ;;  %v4050_v47 = vshrl.u32 %v4046_v6, 16  ;;  %v4060_v48 = vadd.s32 %v4058_v34, %v4056_v18  ;;  %v4128_v37 = vand.u32 2139095040, %v8575_v26 }
 0x402   : > { %v4006_v27 = vsel %vm4002_vm3, %v3986_v44, %v8538_v33  ;;  %v4008_v42 = vsel %vm4004_vm5, %v8540_v59, %v4007_v4  ;;  %v4040_v38 = vadd.s32 %v4039_v62, %v4030_v56  ;;  %v4052_v24 = vshrl.u32 %v4047_v22, 16 }
 0x403   : > { %v3937_v21 = vxor.u32 2147483648, %v3936_v5  ;;  %v4061_v63 = vadd.s32 %v4060_v48, %v4050_v47  ;;  %v4129_v36 = vshrl.u32 %v4128_v37, 23  ;;  %v4132_v19 = vand.u32 8388607, %v4125_v46 }
 0x404   : > { %v3942_v6 = vsel %vm8597_vm15, 0, %v3940_v7  ;;  %v4059_v40 = vadd.s32 %v4055_v50, %v4051_v17  ;;  %v4283_v45 = vand.u32 2139095040, %v8569_v28  ;;  %v4009_v59 = vsel %vm4003_vm6, %v4006_v27, %v4008_v42 }
 0x405   : > { %v3938_v33 = vsel %vm3817_vm14, %v3937_v21, %v3936_v5  ;;  %v4062_v22 = vadd.s32 %v4061_v63, %v4052_v24  ;;  %v5554_v20 = vadd.s32 4294967169, %v4129_v36  ;;  %v4133_v23 = vor.u32 8388608, %v4132_v19 }
 0x406   : > { %v3941_v2 = vsel %vm8597_vm15, %v8206_v25, %v3938_v33  ;;  %vm4065_vm4 = vc.u32 %v4040_v38, %v4059_v40  ;;  %v366_v13 = vmul.f32 %v8275_v43, %v312_v12  ;;  %v3959_v8 = vadd.s32 3, %v3942_v6 }
 0x407   : > { %v3943_v32 = vmul.f32 %v3941_v2, %v3941_v2  ;;  %v4066_v51 = vadd.s32 1, %v4062_v22  ;;  %v4135_v41 = vadd.s32 1, %v5554_v20  ;;  %v4063_v54 = vmul.u32 %v8562_v49, %v4009_v59 }
 0x408   : > { %v4284_v15 = vshrl.u32 %v4283_v45, 23  ;;  %v4280_v16 = vand.u32 2147483647, %v8569_v28  ;;  %v8638_v9 = vshll.u32 %v4133_v23, 8  ;;  %v3960_v4 = vand.u32 3, %v3959_v8 }
 0x409   : > { %v3944_v31 = vmul.f32 -0.001358992, %v3943_v32  ;;  %v3951_v10 = vmul.f32 -0.00019511016, %v3943_v32  ;;  %v4067_v30 = vsel %vm4065_vm4, %v4066_v51, %v4062_v22  ;;  %vm4136_vm3 = vcmp.gt.s32.totalorder %v4135_v41, 0 }
 0x40a   : > { %v4068_v57 = vadd.s32 %v4067_v30, %v4063_v54  ;;  %v4137_v14 = vsel %vm4136_vm3, %v4135_v41, 0  ;;  %v5557_v43 = vadd.s32 4294967169, %v4284_v15  ;;  %v8641_v35 = vadd.f32 %v8287_v53, %v366_v13 }
 0x40b   : > { %v3945_v11 = vadd.f32 0.041655596, %v3944_v31  ;;  %v3952_v17 = vadd.f32 0.008332121, %v3951_v10  ;;  %v4139_v50 = vand.u32 31, %v4137_v14  ;;  %vm3972_vm5 = vcmp.lt.s32.totalorder %v8290_v39, 0 }
 0x40c   : > { %v4069_v62 = vadd.s32 536870912, %v4068_v57  ;;  %v8644_v7 = vadd.s32 %v4059_v40, %v4040_v38  ;;  %v8648_v56 = vand.u32 8388607, %v4280_v16  ;;  %v8651_v47 = vand.u32 65535, %v8638_v9 }
 0x40d   : > { %v3946_v49 = vmul.f32 %v3945_v11, %v3943_v32  ;;  %v3953_v60 = vmul.f32 %v3952_v17, %v3943_v32  ;;  %v4140_v18 = vsub.s32 32, %v4139_v50  ;;  %v8654_v53 = vshrl.u32 %v8638_v9, 16 }
 0x40e   : > { %v4070_v44 = vshrl.u32 %v4069_v62, 30  ;;  %vm3962_vm6 = vcmp.eq.s32.totalorder %v3960_v4, 0  ;;  %vm3965_vm8 = vcmp.eq.s32.totalorder %v3960_v4, 2  ;;  %v8656_v37 = vshrl.u32 %v4137_v14, 5 }
 0x40f   : > { %v3947_v34 = vadd.f32 -0.4999988, %v3946_v49  ;;  %v3954_v5 = vadd.f32 -0.16666654, %v3953_v60  ;;  %v4143_v27 = vshrl.u32 %v5715_v55, %v4140_v18  ;;  %v8659_v42 = vadd.s32 1, %v5557_v43 }
 0x410   : > { %v4071_v48 = vshll.u32 %v4070_v44, 30  ;;  %vm3961_vm7 = vcmp.lt.s32.totalorder %v3960_v4, 2  ;;  %v4142_v21 = vshll.u32 %v5714_v52, %v4139_v50  ;;  %v4146_v63 = vshrl.u32 %v5716_v58, %v4140_v18 }
 0x411   : > { %v3948_v38 = vmul.f32 %v3947_v34, %v3943_v32  ;;  %v3955_v24 = vmul.f32 %v3954_v5, %v3943_v32  ;;  %vm3958_vm10 = vweird.f32 %v8206_v25  ;;  %v4145_v19 = vshll.u32 %v5715_v55, %v4139_v50 }
 0x412   : > { %v8664_v36 = vsub.s32 %v4068_v57, %v4071_v48  ;;  %v4149_v6 = vshrl.u32 %v5717_v61, %v4140_v18  ;;  %v4152_v40 = vshrl.u32 %v5718_v1, %v4140_v18  ;;  %v4094_v33 = vsub.s32 4, %v4070_v44 }
 0x413   : > { %v3949_v45 = vadd.f32 1.0, %v3948_v38  ;;  %v3956_v12 = vadd.f32 1.0, %v3955_v24  ;;  %v4148_v59 = vshll.u32 %v5716_v58, %v4139_v50  ;;  %v4144_v20 = vor.u32 %v4143_v27, %v4142_v21 }
 0x414   : > { %vm4073_vm9 = vcmp.lt.s32.totalorder %v8664_v36, 0  ;;  %v4074_v22 = vsub.s32 0, %v8664_v36  ;;  %v4151_v32 = vshll.u32 %v5717_v61, %v4139_v50  ;;  %v4147_v41 = vor.u32 %v4146_v63, %v4145_v19 }
 0x415   : > { %v3957_v51 = vmul.f32 %v3956_v12, %v3941_v2  ;;  %v3966_v23 = vxor.u32 2147483648, %v3949_v45  ;;  %v4155_v13 = vshrl.u32 %v5719_v3, %v4140_v18  ;;  %v4150_v54 = vor.u32 %v4149_v6, %v4148_v59 }
 0x416   : > { %v4075_v8 = vsel %vm4073_vm9, %v4074_v22, %v8664_v36  ;;  %v4153_v15 = vor.u32 %v4152_v40, %v4151_v32  ;;  %v4154_v31 = vshll.u32 %v5718_v1, %v4139_v50  ;;  %v8678_v57 = vsel %vm3972_vm5, %v4094_v33, %v4070_v44 }
 0x417   : > { %v3963_v10 = vxor.u32 2147483648, %v3957_v51  ;;  %v4076_v30 = vclz %v4075_v8  ;;  %v4141_v14 = vshrl.u32 %v5714_v52, %v4140_v18  ;;  %vm8683_vm11 = vcmp.le.f32.partialorder %v3970_v29, 0.7853982 }
 0x418   : > { %v4156_v11 = vor.u32 %v4155_v13, %v4154_v31  ;;  %vm4157_vm12 = vcmp.lt.s32.totalorder %v8656_v37, 1  ;;  %vm4158_vm14 = vcmp.lt.s32.totalorder %v8656_v37, 2  ;;  %vm4159_vm13 = vcmp.lt.s32.totalorder %v8656_v37, 3 }
 0x419   : > { %v3964_v17 = vsel %vm3962_vm6, %v3949_v45, %v3963_v10  ;;  %v3967_v50 = vsel %vm3965_vm8, %v3966_v23, %v3957_v51  ;;  %v5552_v62 = vadd.s32 4294967294, %v4076_v30  ;;  %vm4160_vm0 = vcmp.lt.s32.totalorder %v8656_v37, 4 }
 0x41a   : > { %v3968_v29 = vsel %vm3961_vm7, %v3964_v17, %v3967_v50  ;;  %v4162_v43 = vsel %vm4160_vm0, %v4150_v54, 2102212464  ;;  %v4165_v49 = vsel %vm4157_vm12, %v4144_v20, %v4147_v41  ;;  %v4166_v60 = vsel %vm4160_vm0, %v4153_v15, 920167782 }
 0x41b   : > { %v3969_v18 = vsel %vm3958_vm10, nan, %v3968_v29  ;;  %vm5553_vm15 = vcmp.lt.s32.totalorder %v5552_v62, 0  ;;  %v4161_v44 = vsel %vm4157_vm12, %v4141_v14, %v4144_v20  ;;  %v4167_v34 = vsel %vm4159_vm13, %v4150_v54, %v4166_v60 }
 0x41c   : > { %v4079_v5 = vsel %vm5553_vm15, 0, %v5552_v62  ;;  %v4168_v4 = vsel %vm4158_vm14, %v4165_v49, %v4167_v34  ;;  %v4169_v48 = vsel %vm4157_vm12, %v4147_v41, %v4150_v54  ;;  %v4170_v27 = vsel %vm4160_vm0, %v4156_v11, 1326507024  ;;  %5387 = vst [vmem:[%s6113_s4 + $0xb0] sm:$0xff] %v3969_v18 }
 0x41d   : > { %v4080_v38 = vsub.s32 32, %v4079_v5  ;;  %v4084_v24 = vsub.s32 4294967266, %v4079_v5  ;;  %v4163_v25 = vsel %vm4159_vm13, %v4147_v41, %v4162_v43  ;;  %v4171_v21 = vsel %vm4159_vm13, %v4153_v15, %v4170_v27 }
 0x41e   : > { %v4081_v63 = vshll.u32 %v8664_v36, %v4079_v5  ;;  %v4172_v19 = vsel %vm4158_vm14, %v4169_v48, %v4171_v21  ;;  %v4198_v6 = vand.u32 65535, %v4168_v4  ;;  %v4199_v40 = vshrl.u32 %v4168_v4, 16 }
 0x41f   : > { %v4082_v45 = vshrl.u32 %v8644_v7, %v4080_v38  ;;  %v4085_v12 = vadd.s32 127, %v4084_v24  ;;  %v4176_v33 = vand.u32 65535, %v4172_v19  ;;  %v4177_v59 = vshrl.u32 %v4172_v19, 16 }
 0x420   : > { %v4201_v22 = vmul.u32 %v4199_v40, %v8651_v47  ;;  %v4202_v20 = vmul.u32 %v4198_v6, %v8654_v53  ;;  %v4288_v32 = vor.u32 8388608, %v8648_v56  ;;  %vm4291_vm1 = vcmp.gt.s32.totalorder %v8659_v42, 0 }
 0x421   : > { %v4083_v51 = vor.u32 %v4082_v45, %v4081_v63  ;;  %v4086_v36 = vshll.u32 %v4085_v12, 23  ;;  %v4097_v23 = vsel %vm8683_vm11, 0, %v8678_v57  ;;  %v4179_v41 = vmul.u32 %v4177_v59, %v8651_v47 }
 0x422   : > { %v8725_v7 = vsel %vm4158_vm14, %v4161_v44, %v4163_v25  ;;  %v4180_v13 = vmul.u32 %v4176_v33, %v8654_v53  ;;  %v4200_v8 = vmul.u32 %v4198_v6, %v8651_v47  ;;  %v4204_v54 = vshll.u32 %v4201_v22, 16 }
 0x423   : > { %v4087_v15 = vor.u32 4788187, %v4086_v36  ;;  %v4178_v31 = vmul.u32 %v4176_v33, %v8651_v47  ;;  %v4182_v10 = vshll.u32 %v4179_v41, 16  ;;  %v4203_v30 = vmul.u32 %v4199_v40, %v8654_v53 }
 0x424   : > { %v4090_v14 = vcvt.s32.f32 %v4083_v51  ;;  %v4181_v57 = vmul.u32 %v4177_v59, %v8654_v53  ;;  %v4184_v11 = vshll.u32 %v4180_v13, 16  ;;  %v4206_v17 = vshll.u32 %v4202_v20, 16 }
 0x425   : > { %v4088_v50 = vand.u32 2147483647, %v4087_v15  ;;  %vm4186_vm2 = vc.u32 %v4178_v31, %v4182_v10  ;;  %v4188_v37 = vadd.s32 %v4182_v10, %v4178_v31  ;;  %vm4208_vm4 = vc.u32 %v4200_v8, %v4204_v54 }
 0x426   : > { %v4187_v62 = vsel %vm4186_vm2, 1, %v5713_v0  ;;  %v4209_v29 = vsel %vm4208_vm4, 1, %v5713_v0  ;;  %v4210_v43 = vadd.s32 %v4204_v54, %v4200_v8  ;;  %v4292_v47 = vsel %vm4291_vm1, %v8659_v42, 0 }
 0x427   : > { %v4091_v49 = vmul.f32 %v4090_v14, %v4088_v50  ;;  %v4189_v60 = vadd.s32 %v4187_v62, %v4181_v57  ;;  %vm4190_vm3 = vc.u32 %v4188_v37, %v4184_v11  ;;  %v4211_v18 = vadd.s32 %v4209_v29, %v4203_v30 }
 0x428   : > { %v4183_v53 = vshrl.u32 %v4179_v41, 16  ;;  %v4191_v44 = vsel %vm4190_vm3, 1, %v5713_v0  ;;  %vm4212_vm6 = vc.u32 %v4210_v43, %v4206_v17  ;;  %v4438_v34 = vand.u32 2139095040, %v8641_v35 }
 0x429   : > { %v4092_v5 = vxor.u32 2147483648, %v4091_v49  ;;  %v4193_v4 = vadd.s32 %v4191_v44, %v4189_v60  ;;  %v4213_v48 = vsel %vm4212_vm6, 1, %v5713_v0  ;;  %v4294_v27 = vand.u32 31, %v4292_v47 }
 0x42a   : > { %v4114_v38 = vadd.s32 3, %v4097_v23  ;;  %v4205_v24 = vshrl.u32 %v4201_v22, 16  ;;  %v4215_v25 = vadd.s32 %v4213_v48, %v4211_v18  ;;  %v4218_v42 = vmul.u32 %v8638_v9, %v8725_v7 }
 0x42b   : > { %v4093_v21 = vsel %vm3972_vm5, %v4092_v5, %v4091_v49  ;;  %v4185_v63 = vshrl.u32 %v4180_v13, 16  ;;  %v4194_v19 = vadd.s32 %v4193_v4, %v4183_v53  ;;  %v8744_v6 = vsub.s32 32, %v4294_v27 }
 0x42c   : > { %v4096_v40 = vsel %vm8683_vm11, %v8290_v39, %v4093_v21  ;;  %v4207_v45 = vshrl.u32 %v4202_v20, 16  ;;  %v8749_v12 = vadd.s32 %v4210_v43, %v4206_v17  ;;  %v4216_v33 = vadd.s32 %v4215_v25, %v4205_v24 }
 0x42d   : > { %v4098_v59 = vmul.f32 %v4096_v40, %v4096_v40  ;;  %v8751_v22 = vadd.s32 %v4194_v19, %v4185_v63  ;;  %v8753_v51 = vshrl.u32 %v4292_v47, 5  ;;  %v4298_v9 = vshrl.u32 %v5715_v55, %v8744_v6 }
 0x42e   : > { %v4217_v36 = vadd.s32 %v4216_v33, %v4207_v45  ;;  %v4297_v23 = vshll.u32 %v5714_v52, %v4294_v27  ;;  %v4301_v41 = vshrl.u32 %v5716_v58, %v8744_v6  ;;  %v4304_v2 = vshrl.u32 %v5717_v61, %v8744_v6 }
 0x42f   : > { %v4099_v20 = vmul.f32 -0.001358992, %v4098_v59  ;;  %v4106_v7 = vmul.f32 -0.00019511016, %v4098_v59  ;;  %vm4220_vm5 = vc.u32 %v8751_v22, %v8749_v12  ;;  %v4300_v13 = vshll.u32 %v5715_v55, %v4294_v27 }
 0x430   : > { %v4221_v8 = vadd.s32 1, %v4217_v36  ;;  %v8765_v54 = vor.u32 %v4298_v9, %v4297_v23  ;;  %v4303_v15 = vshll.u32 %v5716_v58, %v4294_v27  ;;  %v4306_v31 = vshll.u32 %v5717_v61, %v4294_v27 }
 0x431   : > { %v4100_v10 = vadd.f32 0.041655596, %v4099_v20  ;;  %v4107_v30 = vadd.f32 0.008332121, %v4106_v7  ;;  %v8769_v14 = vor.u32 %v4301_v41, %v4300_v13  ;;  %v4307_v57 = vshrl.u32 %v5718_v1, %v8744_v6 }
 0x432   : > { %v4222_v11 = vsel %vm4220_vm5, %v4221_v8, %v4217_v36  ;;  %v4305_v17 = vor.u32 %v4304_v2, %v4303_v15  ;;  %v4309_v50 = vshll.u32 %v5718_v1, %v4294_v27  ;;  %v4310_v37 = vshrl.u32 %v5719_v3, %v8744_v6 }
 0x433   : > { %v4101_v62 = vmul.f32 %v4100_v10, %v4098_v59  ;;  %v4108_v29 = vmul.f32 %v4107_v30, %v4098_v59  ;;  %v4223_v43 = vadd.s32 %v4222_v11, %v4218_v42  ;;  %v4308_v47 = vor.u32 %v4307_v57, %v4306_v31 }
 0x434   : > { %v4115_v49 = vand.u32 3, %v4114_v38  ;;  %v4311_v60 = vor.u32 %v4310_v37, %v4309_v50  ;;  %vm4312_vm8 = vcmp.lt.s32.totalorder %v8753_v51, 1  ;;  %vm4314_vm7 = vcmp.lt.s32.totalorder %v8753_v51, 3 }
 0x435   : > { %v4102_v18 = vadd.f32 -0.4999988, %v4101_v62  ;;  %v4109_v53 = vadd.f32 -0.16666654, %v4108_v29  ;;  %v4224_v44 = vadd.s32 536870912, %v4223_v43  ;;  %vm4315_vm10 = vcmp.lt.s32.totalorder %v8753_v51, 4 }
 0x436   : > { %v4320_v5 = vsel %vm4312_vm8, %v8765_v54, %v8769_v14  ;;  %v4321_v4 = vsel %vm4315_vm10, %v4308_v47, 920167782  ;;  %v4324_v48 = vsel %vm4312_vm8, %v8769_v14, %v4305_v17  ;;  %v4325_v27 = vsel %vm4315_vm10, %v4311_v60, 1326507024 }
 0x437   : > { %v4103_v38 = vmul.f32 %v4102_v18, %v4098_v59  ;;  %v4110_v24 = vmul.f32 %v4109_v53, %v4098_v59  ;;  %v8790_v25 = vshrl.u32 %v4224_v44, 30  ;;  %v4322_v42 = vsel %vm4314_vm7, %v4305_v17, %v4321_v4 }
 0x438   : > { %vm4113_vm9 = vweird.f32 %v8290_v39  ;;  %vm4313_vm11 = vcmp.lt.s32.totalorder %v8753_v51, 2  ;;  %v4326_v21 = vsel %vm4314_vm7, %v4308_v47, %v4325_v27  ;;  %v8800_v63 = vshll.u32 %v4288_v32, 8  ;;  %v8848_v51 = vld [vmem:[%s9600_s1] ss:$0 sm:$0xff] }
 0x439   : > { %v4104_v19 = vadd.f32 1.0, %v4103_v38  ;;  %v4111_v45 = vadd.f32 1.0, %v4110_v24  ;;  %v4226_v33 = vshll.u32 %v8790_v25, 30  ;;  %v4323_v59 = vsel %vm4313_vm11, %v4320_v5, %v4322_v42 }
 0x43a   : > { %vm4116_vm12 = vcmp.lt.s32.totalorder %v4115_v49, 2  ;;  %vm4117_vm14 = vcmp.eq.s32.totalorder %v4115_v49, 0  ;;  %v4327_v9 = vsel %vm4313_vm11, %v4324_v48, %v4326_v21  ;;  %v4439_v36 = vshrl.u32 %v4438_v34, 23 }
 0x43b   : > { %v4112_v23 = vmul.f32 %v4111_v45, %v4096_v40  ;;  %vm4120_vm13 = vcmp.eq.s32.totalorder %v4115_v49, 2  ;;  %v4121_v56 = vxor.u32 2147483648, %v4104_v19  ;;  %v4227_v32 = vsub.s32 %v4223_v43, %v4226_v33 }
 0x43c   : > { %v4329_v41 = vand.u32 65535, %v8800_v63  ;;  %v4331_v2 = vand.u32 65535, %v4327_v9  ;;  %v4332_v20 = vshrl.u32 %v4327_v9, 16  ;;  %v4354_v7 = vshrl.u32 %v4323_v59, 16 }
 0x43d   : > { %v4118_v13 = vxor.u32 2147483648, %v4112_v23  ;;  %vm4228_vm0 = vcmp.lt.s32.totalorder %v4227_v32, 0  ;;  %v4229_v8 = vsub.s32 0, %v4227_v32  ;;  %v4330_v15 = vshrl.u32 %v8800_v63, 16 }
 0x43e   : > { %v4296_v31 = vshrl.u32 %v5714_v52, %v8744_v6  ;;  %v4317_v34 = vsel %vm4315_vm10, %v4305_v17, 2102212464  ;;  %v4334_v40 = vmul.u32 %v4332_v20, %v4329_v41  ;;  %v4353_v10 = vand.u32 65535, %v4323_v59 }
 0x43f   : > { %v4119_v30 = vsel %vm4117_vm14, %v4104_v19, %v4118_v13  ;;  %v4122_v57 = vsel %vm4120_vm13, %v4121_v56, %v4112_v23  ;;  %v4230_v11 = vsel %vm4228_vm0, %v4229_v8, %v4227_v32  ;;  %v4335_v50 = vmul.u32 %v4331_v2, %v4330_v15 }
 0x440   : > { %v4123_v37 = vsel %vm4116_vm12, %v4119_v30, %v4122_v57  ;;  %v4231_v62 = vclz %v4230_v11  ;;  %v4337_v29 = vshll.u32 %v4334_v40, 16  ;;  %v4356_v43 = vmul.u32 %v4354_v7, %v4329_v41 }
 0x441   : > { %v4124_v6 = vsel %vm4113_vm9, nan, %v4123_v37  ;;  %v4219_v17 = vadd.s32 %v8749_v12, %v8751_v22  ;;  %v4316_v47 = vsel %vm4312_vm8, %v4296_v31, %v8765_v54  ;;  %v4333_v60 = vmul.u32 %v4331_v2, %v4329_v41 }
 0x442   : > { %v5555_v18 = vadd.s32 4294967294, %v4231_v62  ;;  %v4318_v49 = vsel %vm4314_vm7, %v8769_v14, %v4317_v34  ;;  %v4336_v53 = vmul.u32 %v4332_v20, %v4330_v15  ;;  %v4355_v44 = vmul.u32 %v4353_v10, %v4329_v41  ;;  %5388 = vst [vmem:[%s6113_s4 + $0xb8] sm:$0xff] %v4124_v6 }
 0x443   : > { %v4339_v5 = vshll.u32 %v4335_v50, 16  ;;  %vm4341_vm15 = vc.u32 %v4333_v60, %v4337_v29  ;;  %v4343_v39 = vadd.s32 %v4337_v29, %v4333_v60  ;;  %v4357_v4 = vmul.u32 %v4353_v10, %v4330_v15 }
 0x444   : > { %vm5556_vm1 = vcmp.lt.s32.totalorder %v5555_v18, 0  ;;  %v4338_v48 = vshrl.u32 %v4334_v40, 16  ;;  %v4342_v12 = vsel %vm4341_vm15, 1, %v5713_v0  ;;  %v4359_v22 = vshll.u32 %v4356_v43, 16  ;;  %v322_v40 = vpop.permute.xlu1 %321 }
 0x445   : > { %v4234_v27 = vsel %vm5556_vm1, 0, %v5555_v18  ;;  %v4344_v54 = vadd.s32 %v4342_v12, %v4336_v53  ;;  %vm4345_vm2 = vc.u32 %v4343_v39, %v4339_v5  ;;  %v4358_v38 = vmul.u32 %v4354_v7, %v4330_v15 }
 0x446   : > { %v4235_v24 = vsub.s32 32, %v4234_v27  ;;  %v4239_v42 = vsub.s32 4294967266, %v4234_v27  ;;  %v4346_v14 = vsel %vm4345_vm2, 1, %v5713_v0  ;;  %v4361_v21 = vshll.u32 %v4357_v4, 16 }
 0x447   : > { %v4236_v19 = vshll.u32 %v4227_v32, %v4234_v27  ;;  %v4348_v45 = vadd.s32 %v4346_v14, %v4344_v54  ;;  %vm4363_vm4 = vc.u32 %v4355_v44, %v4359_v22  ;;  %v4365_v33 = vadd.s32 %v4359_v22, %v4355_v44 }
 0x448   : > { %v4237_v59 = vshrl.u32 %v4219_v17, %v4235_v24  ;;  %v4240_v9 = vadd.s32 127, %v4239_v42  ;;  %v4364_v23 = vsel %vm4363_vm4, 1, %v5713_v0  ;;  %v5560_v56 = vadd.s32 4294967169, %v4439_v36 }
 0x449   : > { %v4249_v41 = vsub.s32 4, %v8790_v25  ;;  %v4349_v2 = vadd.s32 %v4348_v45, %v4338_v48  ;;  %v4366_v20 = vadd.s32 %v4364_v23, %v4358_v38  ;;  %vm4367_vm3 = vc.u32 %v4365_v33, %v4361_v21 }
 0x44a   : > { %v4238_v7 = vor.u32 %v4237_v59, %v4236_v19  ;;  %v4241_v13 = vshll.u32 %v4240_v9, 23  ;;  %v4340_v8 = vshrl.u32 %v4335_v50, 16  ;;  %v4368_v15 = vsel %vm4367_vm3, 1, %v5713_v0  ;;  %v317_v59 = vpop.permute.xlu0 %316 }
 0x44b   : > { %vm4127_vm6 = vcmp.lt.s32.totalorder %v8575_v26, 0  ;;  %v4360_v32 = vshrl.u32 %v4356_v43, 16  ;;  %v4370_v31 = vadd.s32 %v4368_v15, %v4366_v20  ;;  %v4445_v34 = vadd.s32 1, %v5560_v56 }
 0x44c   : > { %v4242_v10 = vor.u32 4788187, %v4241_v13  ;;  %v4319_v36 = vsel %vm4313_vm11, %v4316_v47, %v4318_v49  ;;  %v8837_v30 = vadd.s32 %v4349_v2, %v4340_v8  ;;  %v4435_v57 = vand.u32 2147483647, %v8641_v35 }
 0x44d   : > { %v4250_v11 = vsel %vm4127_vm6, %v4249_v41, %v8790_v25  ;;  %v4362_v50 = vshrl.u32 %v4357_v4, 16  ;;  %v4371_v37 = vadd.s32 %v4370_v31, %v4360_v32  ;;  %vm4446_vm5 = vcmp.gt.s32.totalorder %v4445_v34, 0 }
 0x44e   : > { %v4243_v62 = vand.u32 2147483647, %v4242_v10  ;;  %v4245_v29 = vcvt.s32.f32 %v4238_v7  ;;  %v8843_v43 = vadd.s32 %v4365_v33, %v4361_v21  ;;  %v4447_v6 = vsel %vm4446_vm5, %v4445_v34, 0 }
 0x44f   : > { %v368_v17 = vmul.f32 %v8848_v51, %v322_v40  ;;  %v4372_v47 = vadd.s32 %v4371_v37, %v4362_v50  ;;  %v4449_v60 = vand.u32 31, %v4447_v6  ;;  %vm8853_vm8 = vcmp.le.f32.partialorder %v4125_v46, 0.7853982 }
 0x450   : > { %v4246_v18 = vmul.f32 %v4245_v29, %v4243_v62  ;;  %v4373_v49 = vmul.u32 %v8800_v63, %v4319_v36  ;;  %vm4375_vm7 = vc.u32 %v8837_v30, %v8843_v43  ;;  %v4252_v53 = vsel %vm8853_vm8, 0, %v4250_v11 }
 0x451   : > { %v4376_v44 = vadd.s32 1, %v4372_v47  ;;  %v4442_v5 = vand.u32 8388607, %v4435_v57  ;;  %v8864_v39 = vsub.s32 32, %v4449_v60  ;;  %v8866_v46 = vshrl.u32 %v4447_v6, 5 }
 0x452   : > { %v4247_v4 = vxor.u32 2147483648, %v4246_v18  ;;  %v4452_v48 = vshll.u32 %v5714_v52, %v4449_v60  ;;  %v4455_v12 = vshll.u32 %v5715_v55, %v4449_v60  ;;  %v4461_v54 = vshll.u32 %v5717_v61, %v4449_v60 }
 0x453   : > { %v4377_v63 = vsel %vm4375_vm7, %v4376_v44, %v4372_v47  ;;  %v4453_v22 = vshrl.u32 %v5715_v55, %v8864_v39  ;;  %v4456_v27 = vshrl.u32 %v5716_v58, %v8864_v39  ;;  %v4459_v42 = vshrl.u32 %v5717_v61, %v8864_v39 }
 0x454   : > { %v4248_v38 = vsel %vm4127_vm6, %v4247_v4, %v4246_v18  ;;  %v4378_v24 = vadd.s32 %v4377_v63, %v4373_v49  ;;  %v4462_v14 = vshrl.u32 %v5718_v1, %v8864_v39  ;;  %v4458_v19 = vshll.u32 %v5716_v58, %v4449_v60  ;;  %v8927_v18 = vld [vmem:[%s9600_s1 + $0x1] ss:$0 sm:$0xff] }
 0x455   : > { %v8884_v21 = vsel %vm8853_vm8, %v8575_v26, %v4248_v38  ;;  %v4464_v45 = vshll.u32 %v5718_v1, %v4449_v60  ;;  %v4465_v33 = vshrl.u32 %v5719_v3, %v8864_v39  ;;  %v4443_v56 = vor.u32 8388608, %v4442_v5 }
 0x456   : > { %v4253_v9 = vmul.f32 %v8884_v21, %v8884_v21  ;;  %v4379_v23 = vadd.s32 536870912, %v4378_v24  ;;  %v4463_v41 = vor.u32 %v4462_v14, %v4461_v54  ;;  %v8892_v2 = vor.u32 %v4453_v22, %v4452_v48 }
 0x457   : > { %v8894_v20 = vor.u32 %v4456_v27, %v4455_v12  ;;  %v8896_v7 = vor.u32 %v4459_v42, %v4458_v19  ;;  %v4466_v13 = vor.u32 %v4465_v33, %v4464_v45  ;;  %vm4470_vm10 = vcmp.lt.s32.totalorder %v8866_v46, 4 }
 0x458   : > { %v4254_v8 = vmul.f32 -0.001358992, %v4253_v9  ;;  %v4261_v15 = vmul.f32 -0.00019511016, %v4253_v9  ;;  %v8898_v32 = vshrl.u32 %v4379_v23, 30  ;;  %v367_v31 = vmul.f32 %v8848_v51, %v317_v59 }
 0x459   : > { %v4269_v34 = vadd.s32 3, %v4252_v53  ;;  %vm4467_vm9 = vcmp.lt.s32.totalorder %v8866_v46, 1  ;;  %v4476_v40 = vsel %vm4470_vm10, %v4463_v41, 920167782  ;;  %vm4469_vm11 = vcmp.lt.s32.totalorder %v8866_v46, 3 }
 0x45a   : > { %v4255_v10 = vadd.f32 0.041655596, %v4254_v8  ;;  %v4262_v36 = vadd.f32 0.008332121, %v4261_v15  ;;  %v4381_v11 = vshll.u32 %v8898_v32, 30  ;;  %v4475_v50 = vsel %vm4467_vm9, %v8892_v2, %v8894_v20 }
 0x45b   : > { %v4477_v37 = vsel %vm4469_vm11, %v8896_v7, %v4476_v40  ;;  %v4480_v62 = vsel %vm4470_vm10, %v4466_v13, 1326507024  ;;  %v8916_v29 = vshll.u32 %v4443_v56, 8  ;;  %v4479_v25 = vsel %vm4467_vm9, %v8894_v20, %v8896_v7 }
 0x45c   : > { %v4256_v6 = vmul.f32 %v4255_v10, %v4253_v9  ;;  %v4263_v47 = vmul.f32 %v4262_v36, %v4253_v9  ;;  %v8918_v60 = vsub.s32 %v4378_v24, %v4381_v11  ;;  %v8930_v49 = vadd.f32 %v8927_v18, %v368_v17 }
 0x45d   : > { %v4270_v53 = vand.u32 3, %v4269_v34  ;;  %vm4468_vm12 = vcmp.lt.s32.totalorder %v8866_v46, 2  ;;  %v4481_v44 = vsel %vm4469_vm11, %v4463_v41, %v4480_v62  ;;  %v8938_v12 = vadd.f32 %v8927_v18, %v367_v31 }
 0x45e   : > { %v4257_v5 = vadd.f32 -0.4999988, %v4256_v6  ;;  %v4264_v4 = vadd.f32 -0.16666654, %v4263_v47  ;;  %vm4383_vm14 = vcmp.lt.s32.totalorder %v8918_v60, 0  ;;  %v4384_v48 = vsub.s32 0, %v8918_v60 }
 0x45f   : > { %v4478_v63 = vsel %vm4468_vm12, %v4475_v50, %v4477_v37  ;;  %v4482_v17 = vsel %vm4468_vm12, %v4479_v25, %v4481_v44  ;;  %v4485_v22 = vshrl.u32 %v8916_v29, 16  ;;  %vm4268_vm13 = vweird.f32 %v8575_v26 }
 0x460   : > { %v4258_v27 = vmul.f32 %v4257_v5, %v4253_v9  ;;  %v4265_v54 = vmul.f32 %v4264_v4, %v4253_v9  ;;  %v4385_v38 = vsel %vm4383_vm14, %v4384_v48, %v8918_v60  ;;  %v4486_v24 = vand.u32 65535, %v4482_v17 }
 0x461   : > { %vm4271_vm0 = vcmp.lt.s32.totalorder %v4270_v53, 2  ;;  %v4386_v42 = vclz %v4385_v38  ;;  %v4484_v14 = vand.u32 65535, %v8916_v29  ;;  %v4487_v19 = vshrl.u32 %v4482_v17, 16 }
 0x462   : > { %v4259_v45 = vadd.f32 1.0, %v4258_v27  ;;  %v4266_v33 = vadd.f32 1.0, %v4265_v54  ;;  %v8948_v59 = vmul.u32 %v4486_v24, %v4485_v22  ;;  %v4509_v23 = vshrl.u32 %v4478_v63, 16 }
 0x463   : > { %vm4272_vm15 = vcmp.eq.s32.totalorder %v4270_v53, 0  ;;  %vm4275_vm1 = vcmp.eq.s32.totalorder %v4270_v53, 2  ;;  %v4374_v9 = vadd.s32 %v8843_v43, %v8837_v30  ;;  %v5558_v56 = vadd.s32 4294967294, %v4386_v42 }
 0x464   : > { %v4267_v41 = vmul.f32 %v4266_v33, %v8884_v21  ;;  %v4276_v13 = vxor.u32 2147483648, %v4259_v45  ;;  %v4489_v8 = vmul.u32 %v4487_v19, %v4484_v14  ;;  %v4508_v15 = vand.u32 65535, %v4478_v63 }
 0x465   : > { %vm5559_vm2 = vcmp.lt.s32.totalorder %v5558_v56, 0  ;;  %v4488_v31 = vmul.u32 %v4486_v24, %v4484_v14  ;;  %v4491_v34 = vmul.u32 %v4487_v19, %v4485_v22  ;;  %v4494_v40 = vshll.u32 %v8948_v59, 16 }
 0x466   : > { %v4273_v10 = vxor.u32 2147483648, %v4267_v41  ;;  %v4389_v36 = vsel %vm5559_vm2, 0, %v5558_v56  ;;  %v4492_v11 = vshll.u32 %v4489_v8, 16  ;;  %v4511_v50 = vmul.u32 %v4509_v23, %v4484_v14 }
 0x467   : > { %v4277_v37 = vsel %vm4275_vm1, %v4276_v13, %v4267_v41  ;;  %vm4282_vm4 = vcmp.lt.s32.totalorder %v8569_v28, 0  ;;  %v4390_v62 = vsub.s32 32, %v4389_v36  ;;  %v4391_v30 = vshll.u32 %v8918_v60, %v4389_v36 }
 0x468   : > { %v4394_v43 = vsub.s32 4294967266, %v4389_v36  ;;  %v4274_v21 = vsel %vm4272_vm15, %v4259_v45, %v4273_v10  ;;  %vm4496_vm3 = vc.u32 %v4488_v31, %v4492_v11  ;;  %v4498_v6 = vadd.s32 %v4492_v11, %v4488_v31 }
 0x469   : > { %v4512_v47 = vmul.u32 %v4508_v15, %v4485_v22  ;;  %v4278_v25 = vsel %vm4271_vm0, %v4274_v21, %v4277_v37  ;;  %v4392_v44 = vshrl.u32 %v4374_v9, %v4390_v62  ;;  %v4497_v4 = vsel %vm4496_vm3, 1, %v5713_v0 }
 0x46a   : > { %v4395_v5 = vadd.s32 127, %v4394_v43  ;;  %v4279_v48 = vsel %vm4268_vm13, nan, %v4278_v25  ;;  %v4499_v63 = vadd.s32 %v4497_v4, %v4491_v34  ;;  %vm4500_vm6 = vc.u32 %v4498_v6, %v4494_v40  ;;  %v327_v25 = vpop.permute.xlu2 %326 }
 0x46b   : > { %v4510_v17 = vmul.u32 %v4508_v15, %v4484_v14  ;;  %vm8963_vm5 = vcmp.le.f32.partialorder %v4280_v16, 0.7853982  ;;  %v4393_v27 = vor.u32 %v4392_v44, %v4391_v30  ;;  %v4501_v53 = vsel %vm4500_vm6, 1, %v5713_v0  ;;  %5389 = vst [vmem:[%s6113_s4 + $0xc0] sm:$0xff] %v4279_v48 }
 0x46c   : > { %v4396_v54 = vshll.u32 %v4395_v5, 23  ;;  %v4514_v38 = vshll.u32 %v4511_v50, 16  ;;  %v4404_v24 = vsub.s32 4, %v8898_v32  ;;  %v4493_v42 = vshrl.u32 %v4489_v8, 16 }
 0x46d   : > { %v4503_v26 = vadd.s32 %v4501_v53, %v4499_v63  ;;  %v4513_v19 = vmul.u32 %v4509_v23, %v4485_v22  ;;  %v4516_v33 = vshll.u32 %v4512_v47, 16  ;;  %v4400_v9 = vcvt.s32.f32 %v4393_v27 }
 0x46e   : > { %v4397_v45 = vor.u32 4788187, %v4396_v54  ;;  %vm4518_vm8 = vc.u32 %v4510_v17, %v4514_v38  ;;  %v4520_v14 = vadd.s32 %v4514_v38, %v4510_v17  ;;  %v4472_v16 = vsel %vm4470_vm10, %v8896_v7, 2102212464 }
 0x46f   : > { %v4504_v56 = vadd.s32 %v4503_v26, %v4493_v42  ;;  %v4519_v41 = vsel %vm4518_vm8, 1, %v5713_v0  ;;  %v4590_v31 = vand.u32 2147483647, %v8938_v12  ;;  %v4405_v22 = vsel %vm4282_vm4, %v4404_v24, %v8898_v32 }
 0x470   : > { %v4398_v13 = vand.u32 2147483647, %v4397_v45  ;;  %v4521_v15 = vadd.s32 %v4519_v41, %v4513_v19  ;;  %vm4522_vm7 = vc.u32 %v4520_v14, %v4516_v33  ;;  %v4451_v23 = vshrl.u32 %v5714_v52, %v8864_v39 }
 0x471   : > { %v4495_v8 = vshrl.u32 %v8948_v59, 16  ;;  %v4523_v34 = vsel %vm4522_vm7, 1, %v5713_v0  ;;  %v4515_v40 = vshrl.u32 %v4511_v50, 16  ;;  %v4593_v36 = vand.u32 2139095040, %v8938_v12 }
 0x472   : > { %v4401_v7 = vmul.f32 %v4400_v9, %v4398_v13  ;;  %v4525_v10 = vadd.s32 %v4523_v34, %v4521_v15  ;;  %v4471_v11 = vsel %vm4467_vm9, %v4451_v23, %v8892_v2  ;;  %v4473_v32 = vsel %vm4469_vm11, %v8894_v20, %v4472_v16 }
 0x473   : > { %v4505_v37 = vadd.s32 %v4504_v56, %v4495_v8  ;;  %v4517_v62 = vshrl.u32 %v4512_v47, 16  ;;  %v4594_v59 = vshrl.u32 %v4593_v36, 23  ;;  %v4597_v43 = vand.u32 8388607, %v4590_v31 }
 0x474   : > { %v4402_v39 = vxor.u32 2147483648, %v4401_v7  ;;  %v4526_v30 = vadd.s32 %v4525_v10, %v4515_v40  ;;  %v4407_v50 = vsel %vm8963_vm5, 0, %v4405_v22  ;;  %v4524_v21 = vadd.s32 %v4520_v14, %v4516_v33 }
 0x475   : > { %v4748_v6 = vand.u32 2139095040, %v8930_v49  ;;  %v4474_v20 = vsel %vm4468_vm12, %v4471_v11, %v4473_v32  ;;  %v5563_v44 = vadd.s32 4294967169, %v4594_v59  ;;  %v4598_v63 = vor.u32 8388608, %v4597_v43 }
 0x476   : > { %v4403_v2 = vsel %vm4282_vm4, %v4402_v39, %v4401_v7  ;;  %v4527_v47 = vadd.s32 %v4526_v30, %v4517_v62  ;;  %vm4530_vm10 = vc.u32 %v4505_v37, %v4524_v21  ;;  %v369_v27 = vmul.f32 %v8848_v51, %v327_v25 }
 0x477   : > { %v4406_v5 = vsel %vm8963_vm5, %v8569_v28, %v4403_v2  ;;  %v4600_v17 = vadd.s32 1, %v5563_v44  ;;  %v4424_v54 = vadd.s32 3, %v4407_v50  ;;  %v4528_v53 = vmul.u32 %v8916_v29, %v4474_v20 }
 0x478   : > { %v4408_v4 = vmul.f32 %v4406_v5, %v4406_v5  ;;  %v4531_v48 = vadd.s32 1, %v4527_v47  ;;  %v4749_v38 = vshrl.u32 %v4748_v6, 23  ;;  %v4745_v60 = vand.u32 2147483647, %v8930_v49 }
 0x479   : > { %vm4601_vm9 = vcmp.gt.s32.totalorder %v4600_v17, 0  ;;  %v9004_v9 = vshll.u32 %v4598_v63, 8  ;;  %v4425_v16 = vand.u32 3, %v4424_v54  ;;  %v9007_v13 = vadd.f32 %v8927_v18, %v369_v27 }
 0x47a   : > { %v4409_v24 = vmul.f32 -0.001358992, %v4408_v4  ;;  %v4416_v46 = vmul.f32 -0.00019511016, %v4408_v4  ;;  %v4532_v42 = vsel %vm4530_vm10, %v4531_v48, %v4527_v47  ;;  %v4602_v19 = vsel %vm4601_vm9, %v4600_v17, 0 }
 0x47b   : > { %v4533_v26 = vadd.s32 %v4532_v42, %v4528_v53  ;;  %v4604_v14 = vand.u32 31, %v4602_v19  ;;  %v5566_v41 = vadd.s32 4294967169, %v4749_v38  ;;  %vm4437_vm11 = vcmp.lt.s32.totalorder %v8641_v35, 0 }
 0x47c   : > { %v4410_v45 = vadd.f32 0.041655596, %v4409_v24  ;;  %v4417_v33 = vadd.f32 0.008332121, %v4416_v46  ;;  %v9010_v23 = vadd.s32 %v4524_v21, %v4505_v37  ;;  %v9014_v34 = vand.u32 8388607, %v4745_v60 }
 0x47d   : > { %v4534_v56 = vadd.s32 536870912, %v4533_v26  ;;  %v4605_v22 = vsub.s32 32, %v4604_v14  ;;  %v9017_v10 = vand.u32 65535, %v9004_v9  ;;  %v9020_v36 = vshrl.u32 %v9004_v9, 16 }
 0x47e   : > { %v4411_v29 = vmul.f32 %v4410_v45, %v4408_v4  ;;  %v4418_v15 = vmul.f32 %v4417_v33, %v4408_v4  ;;  %vm4427_vm12 = vcmp.eq.s32.totalorder %v4425_v16, 0  ;;  %vm4430_vm14 = vcmp.eq.s32.totalorder %v4425_v16, 2 }
 0x47f   : > { %v4535_v8 = vshrl.u32 %v4534_v56, 30  ;;  %v9022_v32 = vshrl.u32 %v4602_v19, 5  ;;  %v4608_v37 = vshrl.u32 %v5715_v55, %v4605_v22  ;;  %v9025_v62 = vadd.s32 1, %v5566_v41 }
 0x480   : > { %v4412_v7 = vadd.f32 -0.4999988, %v4411_v29  ;;  %v4419_v40 = vadd.f32 -0.16666654, %v4418_v15  ;;  %vm4426_vm13 = vcmp.lt.s32.totalorder %v4425_v16, 2  ;;  %v4607_v59 = vshll.u32 %v5714_v52, %v4604_v14 }
 0x481   : > { %v4536_v11 = vshll.u32 %v4535_v8, 30  ;;  %v4611_v43 = vshrl.u32 %v5716_v58, %v4605_v22  ;;  %vm4423_vm0 = vweird.f32 %v8569_v28  ;;  %v4610_v21 = vshll.u32 %v5715_v55, %v4604_v14 }
 0x482   : > { %v4413_v39 = vmul.f32 %v4412_v7, %v4408_v4  ;;  %v4420_v30 = vmul.f32 %v4419_v40, %v4408_v4  ;;  %v4614_v6 = vshrl.u32 %v5717_v61, %v4605_v22  ;;  %v4617_v25 = vshrl.u32 %v5718_v1, %v4605_v22 }
 0x483   : > { %v9030_v50 = vsub.s32 %v4533_v26, %v4536_v11  ;;  %v4559_v47 = vsub.s32 4, %v4535_v8  ;;  %v4613_v44 = vshll.u32 %v5716_v58, %v4604_v14  ;;  %v4609_v48 = vor.u32 %v4608_v37, %v4607_v59 }
 0x484   : > { %v4414_v2 = vadd.f32 1.0, %v4413_v39  ;;  %v4421_v20 = vadd.f32 1.0, %v4420_v30  ;;  %v4616_v63 = vshll.u32 %v5717_v61, %v4604_v14  ;;  %v4612_v54 = vor.u32 %v4611_v43, %v4610_v21 }
 0x485   : > { %vm4538_vm15 = vcmp.lt.s32.totalorder %v9030_v50, 0  ;;  %v4539_v4 = vsub.s32 0, %v9030_v50  ;;  %v4620_v53 = vshrl.u32 %v5719_v3, %v4605_v22  ;;  %v4615_v24 = vor.u32 %v4614_v6, %v4613_v44 }
 0x486   : > { %v4422_v17 = vmul.f32 %v4421_v20, %v4406_v5  ;;  %v4431_v27 = vxor.u32 2147483648, %v4414_v2  ;;  %v4618_v46 = vor.u32 %v4617_v25, %v4616_v63  ;;  %v4619_v42 = vshll.u32 %v5718_v1, %v4604_v14 }
 0x487   : > { %v4540_v38 = vsel %vm4538_vm15, %v4539_v4, %v9030_v50  ;;  %v9044_v45 = vsel %vm4437_vm11, %v4559_v47, %v4535_v8  ;;  %v4606_v33 = vshrl.u32 %v5714_v52, %v4605_v22  ;;  %vm9049_vm1 = vcmp.le.f32.partialorder %v4435_v57, 0.7853982 }
 0x488   : > { %v4428_v26 = vxor.u32 2147483648, %v4422_v17  ;;  %v4541_v19 = vclz %v4540_v38  ;;  %v4621_v56 = vor.u32 %v4620_v53, %v4619_v42  ;;  %vm4622_vm2 = vcmp.lt.s32.totalorder %v9022_v32, 1 }
 0x489   : > { %vm4623_vm4 = vcmp.lt.s32.totalorder %v9022_v32, 2  ;;  %vm4624_vm3 = vcmp.lt.s32.totalorder %v9022_v32, 3  ;;  %v4432_v41 = vsel %vm4430_vm14, %v4431_v27, %v4422_v17  ;;  %vm4625_vm6 = vcmp.lt.s32.totalorder %v9022_v32, 4 }
 0x48a   : > { %v4429_v14 = vsel %vm4427_vm12, %v4414_v2, %v4428_v26  ;;  %v5561_v29 = vadd.s32 4294967294, %v4541_v19  ;;  %v4627_v15 = vsel %vm4625_vm6, %v4615_v24, 2102212464  ;;  %v4630_v22 = vsel %vm4622_vm2, %v4609_v48, %v4612_v54 }
 0x48b   : > { %v4433_v57 = vsel %vm4426_vm13, %v4429_v14, %v4432_v41  ;;  %v4631_v8 = vsel %vm4625_vm6, %v4618_v46, 920167782  ;;  %v4626_v40 = vsel %vm4622_vm2, %v4606_v33, %v4609_v48  ;;  %v4634_v39 = vsel %vm4622_vm2, %v4612_v54, %v4615_v24 }
 0x48c   : > { %v4434_v7 = vsel %vm4423_vm0, nan, %v4433_v57  ;;  %vm5562_vm5 = vcmp.lt.s32.totalorder %v5561_v29, 0  ;;  %v4632_v11 = vsel %vm4624_vm3, %v4615_v24, %v4631_v8  ;;  %v4635_v30 = vsel %vm4625_vm6, %v4621_v56, 1326507024 }
 0x48d   : > { %v4544_v37 = vsel %vm5562_vm5, 0, %v5561_v29  ;;  %v4633_v16 = vsel %vm4623_vm4, %v4630_v22, %v4632_v11  ;;  %5390 = vst [vmem:[%s6113_s4 + $0xc8] sm:$0xff] %v4434_v7  ;;  %v4628_v28 = vsel %vm4624_vm3, %v4612_v54, %v4627_v15  ;;  %v4636_v21 = vsel %vm4624_vm3, %v4618_v46, %v4635_v30 }
 0x48e   : > { %v4545_v59 = vsub.s32 32, %v4544_v37  ;;  %v4549_v43 = vsub.s32 4294967266, %v4544_v37  ;;  %v4546_v6 = vshll.u32 %v9030_v50, %v4544_v37  ;;  %v4637_v25 = vsel %vm4623_vm4, %v4634_v39, %v4636_v21 }
 0x48f   : > { %v4663_v2 = vand.u32 65535, %v4633_v16  ;;  %v4664_v20 = vshrl.u32 %v4633_v16, 16  ;;  %v4641_v4 = vand.u32 65535, %v4637_v25  ;;  %v4642_v48 = vshrl.u32 %v4637_v25, 16 }
 0x490   : > { %v4547_v47 = vshrl.u32 %v9010_v23, %v4545_v59  ;;  %v4550_v44 = vadd.s32 127, %v4549_v43  ;;  %v4753_v27 = vor.u32 8388608, %v9014_v34  ;;  %vm4756_vm8 = vcmp.gt.s32.totalorder %v9025_v62, 0 }
 0x491   : > { %v4666_v63 = vmul.u32 %v4664_v20, %v9017_v10  ;;  %v4667_v17 = vmul.u32 %v4663_v2, %v9020_v36  ;;  %v4562_v53 = vsel %vm9049_vm1, 0, %v9044_v45  ;;  %v4644_v38 = vmul.u32 %v4642_v48, %v9017_v10 }
 0x492   : > { %v4548_v54 = vor.u32 %v4547_v47, %v4546_v6  ;;  %v4551_v50 = vshll.u32 %v4550_v44, 23  ;;  %v9091_v23 = vsel %vm4623_vm4, %v4626_v40, %v4628_v28  ;;  %v4645_v24 = vmul.u32 %v4641_v4, %v9020_v36 }
 0x493   : > { %v4665_v46 = vmul.u32 %v4663_v2, %v9017_v10  ;;  %v4669_v42 = vshll.u32 %v4666_v63, 16  ;;  %v4643_v19 = vmul.u32 %v4641_v4, %v9017_v10  ;;  %v4647_v33 = vshll.u32 %v4644_v38, 16 }
 0x494   : > { %v4552_v26 = vor.u32 4788187, %v4551_v50  ;;  %v4668_v56 = vmul.u32 %v4664_v20, %v9020_v36  ;;  %v4555_v14 = vcvt.s32.f32 %v4548_v54  ;;  %v4646_v45 = vmul.u32 %v4642_v48, %v9020_v36 }
 0x495   : > { %v4649_v41 = vshll.u32 %v4645_v24, 16  ;;  %v4671_v29 = vshll.u32 %v4667_v17, 16  ;;  %vm4651_vm7 = vc.u32 %v4643_v19, %v4647_v33  ;;  %v4653_v32 = vadd.s32 %v4647_v33, %v4643_v19 }
 0x496   : > { %v4553_v57 = vand.u32 2147483647, %v4552_v26  ;;  %vm4673_vm10 = vc.u32 %v4665_v46, %v4669_v42  ;;  %v4652_v15 = vsel %vm4651_vm7, 1, %v5713_v0  ;;  %v4675_v8 = vadd.s32 %v4669_v42, %v4665_v46 }
 0x497   : > { %v4674_v22 = vsel %vm4673_vm10, 1, %v5713_v0  ;;  %v4757_v10 = vsel %vm4756_vm8, %v9025_v62, 0  ;;  %v4654_v40 = vadd.s32 %v4652_v15, %v4646_v45  ;;  %vm4655_vm9 = vc.u32 %v4653_v32, %v4649_v41 }
 0x498   : > { %v4556_v7 = vmul.f32 %v4555_v14, %v4553_v57  ;;  %v4676_v11 = vadd.s32 %v4674_v22, %v4668_v56  ;;  %v4648_v36 = vshrl.u32 %v4644_v38, 16  ;;  %v4656_v37 = vsel %vm4655_vm9, 1, %v5713_v0 }
 0x499   : > { %vm4677_vm12 = vc.u32 %v4675_v8, %v4671_v29  ;;  %v4903_v16 = vand.u32 2139095040, %v9007_v13  ;;  %v4658_v30 = vadd.s32 %v4656_v37, %v4654_v40  ;;  %v4759_v43 = vand.u32 31, %v4757_v10 }
 0x49a   : > { %v4557_v39 = vxor.u32 2147483648, %v4556_v7  ;;  %v4678_v59 = vsel %vm4677_vm12, 1, %v5713_v0  ;;  %v4579_v28 = vadd.s32 3, %v4562_v53  ;;  %v4670_v21 = vshrl.u32 %v4666_v63, 16 }
 0x49b   : > { %v4680_v6 = vadd.s32 %v4678_v59, %v4676_v11  ;;  %v4683_v62 = vmul.u32 %v9004_v9, %v9091_v23  ;;  %v4650_v2 = vshrl.u32 %v4645_v24, 16  ;;  %v4659_v20 = vadd.s32 %v4658_v30, %v4648_v36 }
 0x49c   : > { %v4558_v25 = vsel %vm4437_vm11, %v4557_v39, %v4556_v7  ;;  %v9110_v47 = vsub.s32 32, %v4759_v43  ;;  %v4672_v4 = vshrl.u32 %v4667_v17, 16  ;;  %v9115_v48 = vadd.s32 %v4675_v8, %v4671_v29 }
 0x49d   : > { %v4561_v44 = vsel %vm9049_vm1, %v8641_v35, %v4558_v25  ;;  %v4681_v54 = vadd.s32 %v4680_v6, %v4670_v21  ;;  %v9117_v50 = vadd.s32 %v4659_v20, %v4650_v2  ;;  %v9119_v53 = vshrl.u32 %v4757_v10, 5 }
 0x49e   : > { %v4563_v63 = vmul.f32 %v4561_v44, %v4561_v44  ;;  %v4763_v9 = vshrl.u32 %v5715_v55, %v9110_v47  ;;  %v4762_v23 = vshll.u32 %v5714_v52, %v4759_v43  ;;  %v4766_v24 = vshrl.u32 %v5716_v58, %v9110_v47 }
 0x49f   : > { %v4682_v38 = vadd.s32 %v4681_v54, %v4672_v4  ;;  %v4769_v5 = vshrl.u32 %v5717_v61, %v9110_v47  ;;  %vm4685_vm11 = vc.u32 %v9117_v50, %v9115_v48  ;;  %v4765_v42 = vshll.u32 %v5715_v55, %v4759_v43 }
 0x4a0   : > { %v4564_v17 = vmul.f32 -0.001358992, %v4563_v63  ;;  %v4571_v46 = vmul.f32 -0.00019511016, %v4563_v63  ;;  %v9131_v19 = vor.u32 %v4763_v9, %v4762_v23  ;;  %v4768_v33 = vshll.u32 %v5716_v58, %v4759_v43 }
 0x4a1   : > { %v4686_v26 = vadd.s32 1, %v4682_v38  ;;  %v4771_v56 = vshll.u32 %v5717_v61, %v4759_v43  ;;  %v9135_v41 = vor.u32 %v4766_v24, %v4765_v42  ;;  %v4772_v29 = vshrl.u32 %v5718_v1, %v9110_v47 }
 0x4a2   : > { %v4565_v14 = vadd.f32 0.041655596, %v4564_v17  ;;  %v4572_v45 = vadd.f32 0.008332121, %v4571_v46  ;;  %v4770_v32 = vor.u32 %v4769_v5, %v4768_v33  ;;  %v4774_v15 = vshll.u32 %v5718_v1, %v4759_v43 }
 0x4a3   : > { %v4687_v57 = vsel %vm4685_vm11, %v4686_v26, %v4682_v38  ;;  %v4775_v22 = vshrl.u32 %v5719_v3, %v9110_v47  ;;  %v4773_v40 = vor.u32 %v4772_v29, %v4771_v56  ;;  %v4580_v11 = vand.u32 3, %v4579_v28 }
 0x4a4   : > { %v4566_v8 = vmul.f32 %v4565_v14, %v4563_v63  ;;  %v4573_v10 = vmul.f32 %v4572_v45, %v4563_v63  ;;  %v4688_v7 = vadd.s32 %v4687_v57, %v4683_v62  ;;  %vm4777_vm14 = vcmp.lt.s32.totalorder %v9119_v53, 1 }
 0x4a5   : > { %v4776_v36 = vor.u32 %v4775_v22, %v4774_v15  ;;  %vm4779_vm13 = vcmp.lt.s32.totalorder %v9119_v53, 3  ;;  %vm4780_vm0 = vcmp.lt.s32.totalorder %v9119_v53, 4  ;;  %v4785_v59 = vsel %vm4777_vm14, %v9131_v19, %v9135_v41 }
 0x4a6   : > { %v4567_v37 = vadd.f32 -0.4999988, %v4566_v8  ;;  %v4574_v39 = vadd.f32 -0.16666654, %v4573_v10  ;;  %v4689_v30 = vadd.s32 536870912, %v4688_v7  ;;  %v4789_v28 = vsel %vm4777_vm14, %v9135_v41, %v4770_v32 }
 0x4a7   : > { %v4786_v43 = vsel %vm4780_vm0, %v4773_v40, 920167782  ;;  %v4790_v21 = vsel %vm4780_vm0, %v4776_v36, 1326507024  ;;  %vm4578_vm15 = vweird.f32 %v8641_v35  ;;  %vm4778_vm1 = vcmp.lt.s32.totalorder %v9119_v53, 2 }
 0x4a8   : > { %v4568_v6 = vmul.f32 %v4567_v37, %v4563_v63  ;;  %v4575_v62 = vmul.f32 %v4574_v39, %v4563_v63  ;;  %v9156_v25 = vshrl.u32 %v4689_v30, 30  ;;  %v4787_v2 = vsel %vm4779_vm13, %v4770_v32, %v4786_v43 }
 0x4a9   : > { %v4791_v20 = vsel %vm4779_vm13, %v4773_v40, %v4790_v21  ;;  %v9166_v4 = vshll.u32 %v4753_v27, 8  ;;  %v4788_v38 = vsel %vm4778_vm1, %v4785_v59, %v4787_v2  ;;  %vm4581_vm2 = vcmp.lt.s32.totalorder %v4580_v11, 2 }
 0x4aa   : > { %v4569_v54 = vadd.f32 1.0, %v4568_v6  ;;  %v4576_v9 = vadd.f32 1.0, %v4575_v62  ;;  %v4691_v63 = vshll.u32 %v9156_v25, 30  ;;  %vm4582_vm4 = vcmp.eq.s32.totalorder %v4580_v11, 0 }
 0x4ab   : > { %v4792_v23 = vsel %vm4778_vm1, %v4789_v28, %v4791_v20  ;;  %v4904_v24 = vshrl.u32 %v4903_v16, 23  ;;  %vm4585_vm3 = vcmp.eq.s32.totalorder %v4580_v11, 2  ;;  %v4794_v17 = vand.u32 65535, %v9166_v4 }
 0x4ac   : > { %v4577_v5 = vmul.f32 %v4576_v9, %v4561_v44  ;;  %v4586_v34 = vxor.u32 2147483648, %v4569_v54  ;;  %v4692_v27 = vsub.s32 %v4688_v7, %v4691_v63  ;;  %v4796_v46 = vand.u32 65535, %v4792_v23 }
 0x4ad   : > { %v4797_v42 = vshrl.u32 %v4792_v23, 16  ;;  %v4819_v26 = vshrl.u32 %v4788_v38, 16  ;;  %v4795_v14 = vshrl.u32 %v9166_v4, 16  ;;  %v4761_v45 = vshrl.u32 %v5714_v52, %v9110_v47 }
 0x4ae   : > { %v4583_v33 = vxor.u32 2147483648, %v4577_v5  ;;  %vm4693_vm6 = vcmp.lt.s32.totalorder %v4692_v27, 0  ;;  %v4694_v56 = vsub.s32 0, %v4692_v27  ;;  %v4782_v16 = vsel %vm4780_vm0, %v4770_v32, 2102212464 }
 0x4af   : > { %v4799_v44 = vmul.u32 %v4797_v42, %v4794_v17  ;;  %v4818_v29 = vand.u32 65535, %v4788_v38  ;;  %v4587_v15 = vsel %vm4585_vm3, %v4586_v34, %v4577_v5  ;;  %v4800_v8 = vmul.u32 %v4796_v46, %v4795_v14 }
 0x4b0   : > { %v4584_v57 = vsel %vm4582_vm4, %v4569_v54, %v4583_v33  ;;  %v4695_v22 = vsel %vm4693_vm6, %v4694_v56, %v4692_v27  ;;  %v4821_v36 = vmul.u32 %v4819_v26, %v4794_v17  ;;  %v4684_v32 = vadd.s32 %v9115_v48, %v9117_v50 }
 0x4b1   : > { %v4588_v10 = vsel %vm4581_vm2, %v4584_v57, %v4587_v15  ;;  %v4696_v7 = vclz %v4695_v22  ;;  %v4802_v40 = vshll.u32 %v4799_v44, 16  ;;  %v4781_v37 = vsel %vm4777_vm14, %v4761_v45, %v9131_v19  ;;  %v337_v57 = vpop.permute.xlu1 %336 }
 0x4b2   : > { %v4589_v47 = vsel %vm4578_vm15, nan, %v4588_v10  ;;  %v4798_v39 = vmul.u32 %v4796_v46, %v4794_v17  ;;  %v4783_v11 = vsel %vm4779_vm13, %v9135_v41, %v4782_v16  ;;  %v4801_v59 = vmul.u32 %v4797_v42, %v4795_v14 }
 0x4b3   : > { %v5564_v30 = vadd.s32 4294967294, %v4696_v7  ;;  %v4820_v43 = vmul.u32 %v4818_v29, %v4794_v17  ;;  %5391 = vst [vmem:[%s6113_s4 + $0xd0] sm:$0xff] %v4589_v47  ;;  %v4804_v28 = vshll.u32 %v4800_v8, 16  ;;  %v4822_v21 = vmul.u32 %v4818_v29, %v4795_v14 }
 0x4b4   : > { %vm4806_vm5 = vc.u32 %v4798_v39, %v4802_v40  ;;  %v4808_v35 = vadd.s32 %v4802_v40, %v4798_v39  ;;  %v4803_v6 = vshrl.u32 %v4799_v44, 16  ;;  %v4824_v50 = vshll.u32 %v4821_v36, 16 }
 0x4b5   : > { %vm5565_vm8 = vcmp.lt.s32.totalorder %v5564_v30, 0  ;;  %v4807_v48 = vsel %vm4806_vm5, 1, %v5713_v0  ;;  %v4823_v2 = vmul.u32 %v4819_v26, %v4795_v14  ;;  %v4826_v9 = vshll.u32 %v4822_v21, 16 }
 0x4b6   : > { %v4699_v62 = vsel %vm5565_vm8, 0, %v5564_v30  ;;  %v4809_v19 = vadd.s32 %v4807_v48, %v4801_v59  ;;  %vm4810_vm7 = vc.u32 %v4808_v35, %v4804_v28  ;;  %vm4828_vm10 = vc.u32 %v4820_v43, %v4824_v50 }
 0x4b7   : > { %v4700_v20 = vsub.s32 32, %v4699_v62  ;;  %v4704_v54 = vsub.s32 4294967266, %v4699_v62  ;;  %v4811_v41 = vsel %vm4810_vm7, 1, %v5713_v0  ;;  %v4701_v63 = vshll.u32 %v4692_v27, %v4699_v62 }
 0x4b8   : > { %v4813_v38 = vadd.s32 %v4811_v41, %v4809_v19  ;;  %v4830_v23 = vadd.s32 %v4824_v50, %v4820_v43  ;;  %v4829_v17 = vsel %vm4828_vm10, 1, %v5713_v0  ;;  %v5569_v46 = vadd.s32 4294967169, %v4904_v24 }
 0x4b9   : > { %v4702_v5 = vshrl.u32 %v4684_v32, %v4700_v20  ;;  %v4705_v34 = vadd.s32 127, %v4704_v54  ;;  %v4714_v42 = vsub.s32 4, %v9156_v25  ;;  %v4831_v56 = vadd.s32 %v4829_v17, %v4823_v2 }
 0x4ba   : > { %v4814_v33 = vadd.s32 %v4813_v38, %v4803_v6  ;;  %vm4832_vm9 = vc.u32 %v4830_v23, %v4826_v9  ;;  %v4805_v45 = vshrl.u32 %v4800_v8, 16  ;;  %vm4592_vm12 = vcmp.lt.s32.totalorder %v8938_v12, 0 }
 0x4bb   : > { %v4703_v26 = vor.u32 %v4702_v5, %v4701_v63  ;;  %v4706_v14 = vshll.u32 %v4705_v34, 23  ;;  %v4833_v16 = vsel %vm4832_vm9, 1, %v5713_v0  ;;  %v4825_v27 = vshrl.u32 %v4821_v36, 16  ;;  %v332_v34 = vpop.permute.xlu0 %331 }
 0x4bc   : > { %v4835_v44 = vadd.s32 %v4833_v16, %v4831_v56  ;;  %v4910_v29 = vadd.s32 1, %v5569_v46  ;;  %v4784_v24 = vsel %vm4778_vm1, %v4781_v37, %v4783_v11  ;;  %v9203_v22 = vadd.s32 %v4814_v33, %v4805_v45 }
 0x4bd   : > { %v4707_v15 = vor.u32 4788187, %v4706_v14  ;;  %v4900_v10 = vand.u32 2147483647, %v9007_v13  ;;  %v4715_v8 = vsel %vm4592_vm12, %v4714_v42, %v9156_v25  ;;  %v4827_v7 = vshrl.u32 %v4822_v21, 16 }
 0x4be   : > { %v4836_v40 = vadd.s32 %v4835_v44, %v4825_v27  ;;  %vm4911_vm11 = vcmp.gt.s32.totalorder %v4910_v29, 0  ;;  %v4710_v36 = vcvt.s32.f32 %v4703_v26  ;;  %v9209_v32 = vadd.s32 %v4830_v23, %v4826_v9 }
 0x4bf   : > { %v4708_v47 = vand.u32 2147483647, %v4707_v15  ;;  %v4912_v39 = vsel %vm4911_vm11, %v4910_v29, 0  ;;  %v371_v30 = vmul.f32 %v8848_v51, %v337_v57  ;;  %vm9214_vm14 = vcmp.le.f32.partialorder %v4590_v31, 0.7853982 }
 0x4c0   : > { %v4837_v53 = vadd.s32 %v4836_v40, %v4827_v7  ;;  %v4914_v37 = vand.u32 31, %v4912_v39  ;;  %v4838_v25 = vmul.u32 %v9166_v4, %v4784_v24  ;;  %vm4840_vm13 = vc.u32 %v9203_v22, %v9209_v32 }
 0x4c1   : > { %v4711_v59 = vmul.f32 %v4710_v36, %v4708_v47  ;;  %v4717_v43 = vsel %vm9214_vm14, 0, %v4715_v8  ;;  %v4907_v35 = vand.u32 8388607, %v4900_v10  ;;  %v9227_v31 = vshrl.u32 %v4912_v39, 5 }
 0x4c2   : > { %v4841_v28 = vadd.s32 1, %v4837_v53  ;;  %v9225_v21 = vsub.s32 32, %v4914_v37  ;;  %v4917_v48 = vshll.u32 %v5714_v52, %v4914_v37  ;;  %v4920_v50 = vshll.u32 %v5715_v55, %v4914_v37 }
 0x4c3   : > { %v4712_v6 = vxor.u32 2147483648, %v4711_v59  ;;  %v4926_v2 = vshll.u32 %v5717_v61, %v4914_v37  ;;  %v4923_v38 = vshll.u32 %v5716_v58, %v4914_v37  ;;  %v4929_v23 = vshll.u32 %v5718_v1, %v4914_v37 }
 0x4c4   : > { %v4842_v4 = vsel %vm4840_vm13, %v4841_v28, %v4837_v53  ;;  %v4918_v62 = vshrl.u32 %v5715_v55, %v9225_v21  ;;  %v4921_v19 = vshrl.u32 %v5716_v58, %v9225_v21  ;;  %v4924_v41 = vshrl.u32 %v5717_v61, %v9225_v21 }
 0x4c5   : > { %v4713_v20 = vsel %vm4592_vm12, %v4712_v6, %v4711_v59  ;;  %v4843_v54 = vadd.s32 %v4842_v4, %v4838_v25  ;;  %v4927_v9 = vshrl.u32 %v5718_v1, %v9225_v21  ;;  %v4930_v5 = vshrl.u32 %v5719_v3, %v9225_v21 }
 0x4c6   : > { %v4716_v63 = vsel %vm9214_vm14, %v8938_v12, %v4713_v20  ;;  %v4908_v42 = vor.u32 8388608, %v4907_v35  ;;  %v9249_v56 = vor.u32 %v4918_v62, %v4917_v48  ;;  %v9251_v26 = vor.u32 %v4921_v19, %v4920_v50 }
 0x4c7   : > { %v4718_v17 = vmul.f32 %v4716_v63, %v4716_v63  ;;  %v4844_v46 = vadd.s32 536870912, %v4843_v54  ;;  %v4928_v33 = vor.u32 %v4927_v9, %v4926_v2  ;;  %v9253_v14 = vor.u32 %v4924_v41, %v4923_v38 }
 0x4c8   : > { %v4931_v45 = vor.u32 %v4930_v5, %v4929_v23  ;;  %vm4935_vm0 = vcmp.lt.s32.totalorder %v9227_v31, 4  ;;  %v370_v29 = vmul.f32 %v8848_v51, %v332_v34  ;;  %v4734_v57 = vadd.s32 3, %v4717_v43 }
 0x4c9   : > { %v4719_v16 = vmul.f32 -0.001358992, %v4718_v17  ;;  %v4726_v27 = vmul.f32 -0.00019511016, %v4718_v17  ;;  %v9255_v44 = vshrl.u32 %v4844_v46, 30  ;;  %vm4932_vm15 = vcmp.lt.s32.totalorder %v9227_v31, 1 }
 0x4ca   : > { %v4941_v15 = vsel %vm4935_vm0, %v4928_v33, 920167782  ;;  %vm4934_vm1 = vcmp.lt.s32.totalorder %v9227_v31, 3  ;;  %v4940_v40 = vsel %vm4932_vm15, %v9249_v56, %v9251_v26  ;;  %v4945_v47 = vsel %vm4935_vm0, %v4931_v45, 1326507024 }
 0x4cb   : > { %v4720_v24 = vadd.f32 0.041655596, %v4719_v16  ;;  %v4727_v8 = vadd.f32 0.008332121, %v4726_v27  ;;  %v4846_v7 = vshll.u32 %v9255_v44, 30  ;;  %v4942_v51 = vsel %vm4934_vm1, %v9253_v14, %v4941_v15 }
 0x4cc   : > { %v9273_v36 = vshll.u32 %v4908_v42, 8  ;;  %v4944_v11 = vsel %vm4932_vm15, %v9251_v26, %v9253_v14  ;;  %v9280_v59 = vadd.f32 %v8927_v18, %v371_v30  ;;  %v4735_v25 = vand.u32 3, %v4734_v57 }
 0x4cd   : > { %v4721_v39 = vmul.f32 %v4720_v24, %v4718_v17  ;;  %v4728_v53 = vmul.f32 %v4727_v8, %v4718_v17  ;;  %v4847_v37 = vsub.s32 %v4843_v54, %v4846_v7  ;;  %vm4933_vm2 = vcmp.lt.s32.totalorder %v9227_v31, 2 }
 0x4ce   : > { %v4946_v43 = vsel %vm4934_vm1, %v4928_v33, %v4945_v47  ;;  %v9286_v48 = vadd.f32 %v8927_v18, %v370_v29  ;;  %v4943_v50 = vsel %vm4933_vm2, %v4940_v40, %v4942_v51  ;;  %v4950_v4 = vshrl.u32 %v9273_v36, 16 }
 0x4cf   : > { %v4722_v28 = vadd.f32 -0.4999988, %v4721_v39  ;;  %v4729_v35 = vadd.f32 -0.16666654, %v4728_v53  ;;  %vm4848_vm4 = vcmp.lt.s32.totalorder %v4847_v37, 0  ;;  %v4849_v6 = vsub.s32 0, %v4847_v37 }
 0x4d0   : > { %v4947_v30 = vsel %vm4933_vm2, %v4944_v11, %v4946_v43  ;;  %vm4733_vm3 = vweird.f32 %v8938_v12  ;;  %vm4736_vm6 = vcmp.lt.s32.totalorder %v4735_v25, 2  ;;  %v4949_v41 = vand.u32 65535, %v9273_v36 }
 0x4d1   : > { %v4723_v62 = vmul.f32 %v4722_v28, %v4718_v17  ;;  %v4730_v19 = vmul.f32 %v4729_v35, %v4718_v17  ;;  %v4850_v2 = vsel %vm4848_vm4, %v4849_v6, %v4847_v37  ;;  %v4951_v20 = vand.u32 65535, %v4947_v30 }
 0x4d2   : > { %v4851_v54 = vclz %v4850_v2  ;;  %v4952_v18 = vshrl.u32 %v4947_v30, 16  ;;  %v4974_v5 = vshrl.u32 %v4943_v50, 16  ;;  %vm4737_vm5 = vcmp.eq.s32.totalorder %v4735_v25, 0 }
 0x4d3   : > { %v4724_v9 = vadd.f32 1.0, %v4723_v62  ;;  %v4731_v38 = vadd.f32 1.0, %v4730_v19  ;;  %v9295_v23 = vmul.u32 %v4951_v20, %v4950_v4  ;;  %vm4740_vm8 = vcmp.eq.s32.totalorder %v4735_v25, 2 }
 0x4d4   : > { %v4839_v34 = vadd.s32 %v9209_v32, %v9203_v22  ;;  %v5567_v17 = vadd.s32 4294967294, %v4851_v54  ;;  %v4954_v33 = vmul.u32 %v4952_v18, %v4949_v41  ;;  %v4973_v45 = vand.u32 65535, %v4943_v50 }
 0x4d5   : > { %v4732_v46 = vmul.f32 %v4731_v38, %v4716_v63  ;;  %v4741_v42 = vxor.u32 2147483648, %v4724_v9  ;;  %v4953_v16 = vmul.u32 %v4951_v20, %v4949_v41  ;;  %v4956_v27 = vmul.u32 %v4952_v18, %v4950_v4 }
 0x4d6   : > { %vm5568_vm7 = vcmp.lt.s32.totalorder %v5567_v17, 0  ;;  %v4959_v29 = vshll.u32 %v9295_v23, 16  ;;  %v4957_v24 = vshll.u32 %v4954_v33, 16  ;;  %v4976_v8 = vmul.u32 %v4974_v5, %v4949_v41 }
 0x4d7   : > { %v4738_v57 = vxor.u32 2147483648, %v4732_v46  ;;  %v4854_v15 = vsel %vm5568_vm7, 0, %v5567_v17  ;;  %v4742_v7 = vsel %vm4740_vm8, %v4741_v42, %v4732_v46  ;;  %vm4747_vm10 = vcmp.lt.s32.totalorder %v8930_v49, 0 }
 0x4d8   : > { %v4855_v40 = vsub.s32 32, %v4854_v15  ;;  %v4856_v51 = vshll.u32 %v4847_v37, %v4854_v15  ;;  %v4859_v22 = vsub.s32 4294967266, %v4854_v15  ;;  %vm4961_vm9 = vc.u32 %v4953_v16, %v4957_v24 }
 0x4d9   : > { %v4739_v32 = vsel %vm4737_vm5, %v4724_v9, %v4738_v57  ;;  %v4963_v63 = vadd.s32 %v4957_v24, %v4953_v16  ;;  %v4977_v47 = vmul.u32 %v4973_v45, %v4950_v4  ;;  %v4962_v43 = vsel %vm4961_vm9, 1, %v5713_v0 }
 0x4da   : > { %v4743_v39 = vsel %vm4736_vm6, %v4739_v32, %v4742_v7  ;;  %v4857_v53 = vshrl.u32 %v4839_v34, %v4855_v40  ;;  %v4860_v11 = vadd.s32 127, %v4859_v22  ;;  %v4964_v35 = vadd.s32 %v4962_v43, %v4956_v27 }
 0x4db   : > { %v4744_v28 = vsel %vm4733_vm3, nan, %v4743_v39  ;;  %vm4965_vm12 = vc.u32 %v4963_v63, %v4959_v29  ;;  %v4975_v6 = vmul.u32 %v4973_v45, %v4949_v41  ;;  %vm9308_vm11 = vcmp.le.f32.partialorder %v4745_v60, 0.7853982 }
 0x4dc   : > { %v4858_v50 = vor.u32 %v4857_v53, %v4856_v51  ;;  %v4861_v30 = vshll.u32 %v4860_v11, 23  ;;  %v4966_v25 = vsel %vm4965_vm12, 1, %v5713_v0  ;;  %v4979_v62 = vshll.u32 %v4976_v8, 16  ;;  %5392 = vst [vmem:[%s6113_s4 + $0xd8] sm:$0xff] %v4744_v28 }
 0x4dd   : > { %v4869_v19 = vsub.s32 4, %v9255_v44  ;;  %v4958_v2 = vshrl.u32 %v4954_v33, 16  ;;  %v4968_v12 = vadd.s32 %v4966_v25, %v4964_v35  ;;  %v4978_v20 = vmul.u32 %v4974_v5, %v4950_v4 }
 0x4de   : > { %v4862_v54 = vor.u32 4788187, %v4861_v30  ;;  %v4981_v18 = vshll.u32 %v4977_v47, 16  ;;  %vm4983_vm14 = vc.u32 %v4975_v6, %v4979_v62  ;;  %v4985_v41 = vadd.s32 %v4979_v62, %v4975_v6 }
 0x4df   : > { %v4865_v9 = vcvt.s32.f32 %v4858_v50  ;;  %v4937_v60 = vsel %vm4935_vm0, %v9253_v14, 2102212464  ;;  %v4969_v38 = vadd.s32 %v4968_v12, %v4958_v2  ;;  %v4984_v34 = vsel %vm4983_vm14, 1, %v5713_v0 }
 0x4e0   : > { %v4863_v17 = vand.u32 2147483647, %v4862_v54  ;;  %v4986_v46 = vadd.s32 %v4984_v34, %v4978_v20  ;;  %vm4987_vm13 = vc.u32 %v4985_v41, %v4981_v18  ;;  %v5055_v42 = vand.u32 2147483647, %v9286_v48 }
 0x4e1   : > { %v4870_v4 = vsel %vm4747_vm10, %v4869_v19, %v9255_v44  ;;  %v4916_v5 = vshrl.u32 %v5714_v52, %v9225_v21  ;;  %v4960_v33 = vshrl.u32 %v9295_v23, 16  ;;  %v4988_v45 = vsel %vm4987_vm13, 1, %v5713_v0 }
 0x4e2   : > { %v4866_v14 = vmul.f32 %v4865_v9, %v4863_v17  ;;  %v4980_v16 = vshrl.u32 %v4976_v8, 16  ;;  %v4990_v27 = vadd.s32 %v4988_v45, %v4986_v46  ;;  %v5058_v29 = vand.u32 2139095040, %v9286_v48 }
 0x4e3   : > { %v4936_v57 = vsel %vm4932_vm15, %v4916_v5, %v9249_v56  ;;  %v4938_v44 = vsel %vm4934_vm1, %v9251_v26, %v4937_v60  ;;  %v4970_v15 = vadd.s32 %v4969_v38, %v4960_v33  ;;  %v4982_v24 = vshrl.u32 %v4977_v47, 16 }
 0x4e4   : > { %v4867_v21 = vxor.u32 2147483648, %v4866_v14  ;;  %v4991_v7 = vadd.s32 %v4990_v27, %v4980_v16  ;;  %v5059_v23 = vshrl.u32 %v5058_v29, 23  ;;  %v5062_v40 = vand.u32 8388607, %v5055_v42 }
 0x4e5   : > { %v4872_v8 = vsel %vm9308_vm11, 0, %v4870_v4  ;;  %v4989_v51 = vadd.s32 %v4985_v41, %v4981_v18  ;;  %v5213_v22 = vand.u32 2139095040, %v9280_v59  ;;  %v4939_v26 = vsel %vm4933_vm2, %v4936_v57, %v4938_v44 }
 0x4e6   : > { %v4868_v56 = vsel %vm4747_vm10, %v4867_v21, %v4866_v14  ;;  %v4992_v32 = vadd.s32 %v4991_v7, %v4982_v24  ;;  %v5572_v63 = vadd.s32 4294967169, %v5059_v23  ;;  %v5063_v11 = vor.u32 8388608, %v5062_v40 }
 0x4e7   : > { %v4871_v47 = vsel %vm9308_vm11, %v8930_v49, %v4868_v56  ;;  %vm4995_vm0 = vc.u32 %v4970_v15, %v4989_v51  ;;  %v4889_v28 = vadd.s32 3, %v4872_v8  ;;  %v4993_v35 = vmul.u32 %v9273_v36, %v4939_v26 }
 0x4e8   : > { %v4873_v39 = vmul.f32 %v4871_v47, %v4871_v47  ;;  %v4996_v53 = vadd.s32 1, %v4992_v32  ;;  %v5065_v43 = vadd.s32 1, %v5572_v63  ;;  %v5214_v6 = vshrl.u32 %v5213_v22, 23 }
 0x4e9   : > { %v9347_v37 = vshll.u32 %v5063_v11, 8  ;;  %v4890_v20 = vand.u32 3, %v4889_v28  ;;  %vm4902_vm1 = vcmp.lt.s32.totalorder %v9007_v13, 0  ;;  %v9350_v36 = vadd.s32 %v4989_v51, %v4970_v15 }
 0x4ea   : > { %v4874_v50 = vmul.f32 -0.001358992, %v4873_v39  ;;  %v4881_v30 = vmul.f32 -0.00019511016, %v4873_v39  ;;  %v4997_v25 = vsel %vm4995_vm0, %v4996_v53, %v4992_v32  ;;  %vm5066_vm15 = vcmp.gt.s32.totalorder %v5065_v43, 0 }
 0x4eb   : > { %v4998_v31 = vadd.s32 %v4997_v25, %v4993_v35  ;;  %v5067_v62 = vsel %vm5066_vm15, %v5065_v43, 0  ;;  %v5575_v18 = vadd.s32 4294967169, %v5214_v6  ;;  %v5210_v34 = vand.u32 2147483647, %v9280_v59 }
 0x4ec   : > { %v4875_v19 = vadd.f32 0.041655596, %v4874_v50  ;;  %v4882_v2 = vadd.f32 0.008332121, %v4881_v30  ;;  %v5069_v12 = vand.u32 31, %v5067_v62  ;;  %v9354_v4 = vand.u32 65535, %v9347_v37 }
 0x4ed   : > { %v4999_v54 = vadd.s32 536870912, %v4998_v31  ;;  %v9357_v5 = vshrl.u32 %v9347_v37, 16  ;;  %vm4892_vm2 = vcmp.eq.s32.totalorder %v4890_v20, 0  ;;  %vm4895_vm4 = vcmp.eq.s32.totalorder %v4890_v20, 2 }
 0x4ee   : > { %v4876_v41 = vmul.f32 %v4875_v19, %v4873_v39  ;;  %v4883_v9 = vmul.f32 %v4882_v2, %v4873_v39  ;;  %v5070_v60 = vsub.s32 32, %v5069_v12  ;;  %v9359_v45 = vshrl.u32 %v5067_v62, 5 }
 0x4ef   : > { %v5000_v38 = vshrl.u32 %v4999_v54, 30  ;;  %v9362_v16 = vadd.s32 1, %v5575_v18  ;;  %vm4891_vm3 = vcmp.lt.s32.totalorder %v4890_v20, 2  ;;  %v5072_v57 = vshll.u32 %v5714_v52, %v5069_v12 }
 0x4f0   : > { %v4877_v17 = vadd.f32 -0.4999988, %v4876_v41  ;;  %v4884_v46 = vadd.f32 -0.16666654, %v4883_v9  ;;  %v5073_v14 = vshrl.u32 %v5715_v55, %v5070_v60  ;;  %v5076_v44 = vshrl.u32 %v5716_v58, %v5070_v60 }
 0x4f1   : > { %v5001_v33 = vshll.u32 %v5000_v38, 30  ;;  %vm4888_vm6 = vweird.f32 %v8930_v49  ;;  %v5075_v24 = vshll.u32 %v5715_v55, %v5069_v12  ;;  %v5079_v21 = vshrl.u32 %v5717_v61, %v5070_v60 }
 0x4f2   : > { %v4878_v27 = vmul.f32 %v4877_v17, %v4873_v39  ;;  %v4885_v29 = vmul.f32 %v4884_v46, %v4873_v39  ;;  %v5082_v7 = vshrl.u32 %v5718_v1, %v5070_v60  ;;  %v5024_v8 = vsub.s32 4, %v5000_v38 }
 0x4f3   : > { %v9367_v15 = vsub.s32 %v4998_v31, %v5001_v33  ;;  %v5078_v51 = vshll.u32 %v5716_v58, %v5069_v12  ;;  %v5074_v56 = vor.u32 %v5073_v14, %v5072_v57  ;;  %v5081_v26 = vshll.u32 %v5717_v61, %v5069_v12 }
 0x4f4   : > { %v4879_v23 = vadd.f32 1.0, %v4878_v27  ;;  %v4886_v40 = vadd.f32 1.0, %v4885_v29  ;;  %v5077_v39 = vor.u32 %v5076_v44, %v5075_v24  ;;  %v5085_v53 = vshrl.u32 %v5719_v3, %v5070_v60 }
 0x4f5   : > { %vm5003_vm5 = vcmp.lt.s32.totalorder %v9367_v15, 0  ;;  %v5004_v22 = vsub.s32 0, %v9367_v15  ;;  %v5080_v43 = vor.u32 %v5079_v21, %v5078_v51  ;;  %v5083_v28 = vor.u32 %v5082_v7, %v5081_v26 }
 0x4f6   : > { %v4887_v32 = vmul.f32 %v4886_v40, %v4871_v47  ;;  %v4896_v63 = vxor.u32 2147483648, %v4879_v23  ;;  %v5084_v35 = vshll.u32 %v5718_v1, %v5069_v12  ;;  %v9381_v30 = vsel %vm4902_vm1, %v5024_v8, %v5000_v38 }
 0x4f7   : > { %v5005_v11 = vsel %vm5003_vm5, %v5004_v22, %v9367_v15  ;;  %v5071_v25 = vshrl.u32 %v5714_v52, %v5070_v60  ;;  %vm9386_vm8 = vcmp.le.f32.partialorder %v4900_v10, 0.7853982  ;;  %vm5087_vm7 = vcmp.lt.s32.totalorder %v9359_v45, 1 }
 0x4f8   : > { %v4893_v6 = vxor.u32 2147483648, %v4887_v32  ;;  %v5006_v50 = vclz %v5005_v11  ;;  %v5086_v31 = vor.u32 %v5085_v53, %v5084_v35  ;;  %vm5088_vm10 = vcmp.lt.s32.totalorder %v9359_v45, 2 }
 0x4f9   : > { %vm5089_vm9 = vcmp.lt.s32.totalorder %v9359_v45, 3  ;;  %v4897_v19 = vsel %vm4895_vm4, %v4896_v63, %v4887_v32  ;;  %vm5090_vm12 = vcmp.lt.s32.totalorder %v9359_v45, 4  ;;  %v5095_v54 = vsel %vm5087_vm7, %v5074_v56, %v5077_v39 }
 0x4fa   : > { %v4894_v62 = vsel %vm4892_vm2, %v4879_v23, %v4893_v6  ;;  %v5570_v2 = vadd.s32 4294967294, %v5006_v50  ;;  %v5092_v12 = vsel %vm5090_vm12, %v5080_v43, 2102212464  ;;  %v5096_v18 = vsel %vm5090_vm12, %v5083_v28, 920167782 }
 0x4fb   : > { %v4898_v10 = vsel %vm4891_vm3, %v4894_v62, %v4897_v19  ;;  %v5091_v9 = vsel %vm5087_vm7, %v5071_v25, %v5074_v56  ;;  %v5097_v60 = vsel %vm5089_vm9, %v5080_v43, %v5096_v18  ;;  %v5099_v17 = vsel %vm5087_vm7, %v5077_v39, %v5080_v43 }
 0x4fc   : > { %v4899_v41 = vsel %vm4888_vm6, nan, %v4898_v10  ;;  %vm5571_vm11 = vcmp.lt.s32.totalorder %v5570_v2, 0  ;;  %v5098_v20 = vsel %vm5088_vm10, %v5095_v54, %v5097_v60  ;;  %v5100_v46 = vsel %vm5090_vm12, %v5086_v31, 1326507024 }
 0x4fd   : > { %v5009_v38 = vsel %vm5571_vm11, 0, %v5570_v2  ;;  %5393 = vst [vmem:[%s6113_s4 + $0xe0] sm:$0xff] %v4899_v41  ;;  %v5093_v49 = vsel %vm5089_vm9, %v5077_v39, %v5092_v12  ;;  %v5101_v27 = vsel %vm5089_vm9, %v5083_v28, %v5100_v46  ;;  %v5128_v44 = vand.u32 65535, %v5098_v20 }
 0x4fe   : > { %v5010_v33 = vsub.s32 32, %v5009_v38  ;;  %v5014_v14 = vsub.s32 4294967266, %v5009_v38  ;;  %v5011_v29 = vshll.u32 %v9367_v15, %v5009_v38  ;;  %v5102_v57 = vsel %vm5088_vm10, %v5099_v17, %v5101_v27 }
 0x4ff   : > { %v5129_v24 = vshrl.u32 %v5098_v20, 16  ;;  %v5106_v23 = vand.u32 65535, %v5102_v57  ;;  %v5107_v40 = vshrl.u32 %v5102_v57, 16  ;;  %v5132_v51 = vmul.u32 %v5128_v44, %v9357_v5 }
 0x500   : > { %v5012_v21 = vshrl.u32 %v9350_v36, %v5010_v33  ;;  %v5015_v7 = vadd.s32 127, %v5014_v14  ;;  %v9422_v22 = vand.u32 8388607, %v5210_v34  ;;  %vm5221_vm14 = vcmp.gt.s32.totalorder %v9362_v16, 0 }
 0x501   : > { %v5131_v8 = vmul.u32 %v5129_v24, %v9354_v4  ;;  %v5027_v26 = vsel %vm9386_vm8, 0, %v9381_v30  ;;  %v5109_v36 = vmul.u32 %v5107_v40, %v9354_v4  ;;  %v9431_v32 = vsel %vm5088_vm10, %v5091_v9, %v5093_v49 }
 0x502   : > { %v5013_v15 = vor.u32 %v5012_v21, %v5011_v29  ;;  %v5016_v56 = vshll.u32 %v5015_v7, 23  ;;  %v5110_v63 = vmul.u32 %v5106_v23, %v9357_v5  ;;  %v5130_v39 = vmul.u32 %v5128_v44, %v9354_v4 }
 0x503   : > { %v5134_v53 = vshll.u32 %v5131_v8, 16  ;;  %v5108_v43 = vmul.u32 %v5106_v23, %v9354_v4  ;;  %v5112_v28 = vshll.u32 %v5109_v36, 16  ;;  %v5133_v35 = vmul.u32 %v5129_v24, %v9357_v5 }
 0x504   : > { %v5017_v11 = vor.u32 4788187, %v5016_v56  ;;  %v5020_v6 = vcvt.s32.f32 %v5013_v15  ;;  %v5111_v50 = vmul.u32 %v5107_v40, %v9357_v5  ;;  %v5114_v30 = vshll.u32 %v5110_v63, 16 }
 0x505   : > { %v5136_v25 = vshll.u32 %v5132_v51, 16  ;;  %vm5116_vm13 = vc.u32 %v5108_v43, %v5112_v28  ;;  %v5118_v45 = vadd.s32 %v5112_v28, %v5108_v43  ;;  %vm5138_vm0 = vc.u32 %v5130_v39, %v5134_v53 }
 0x506   : > { %v5018_v31 = vand.u32 2147483647, %v5017_v11  ;;  %v5117_v62 = vsel %vm5116_vm13, 1, %v5713_v0  ;;  %v5139_v19 = vsel %vm5138_vm0, 1, %v5713_v0  ;;  %v5140_v2 = vadd.s32 %v5134_v53, %v5130_v39 }
 0x507   : > { %v5222_v4 = vsel %vm5221_vm14, %v9362_v16, 0  ;;  %v5119_v12 = vadd.s32 %v5117_v62, %v5111_v50  ;;  %vm5120_vm15 = vc.u32 %v5118_v45, %v5114_v30  ;;  %v5141_v54 = vadd.s32 %v5139_v19, %v5133_v35 }
 0x508   : > { %v5021_v10 = vmul.f32 %v5020_v6, %v5018_v31  ;;  %v5113_v5 = vshrl.u32 %v5109_v36, 16  ;;  %v5121_v18 = vsel %vm5120_vm15, 1, %v5713_v0  ;;  %vm5142_vm2 = vc.u32 %v5140_v2, %v5136_v25 }
 0x509   : > { %v5218_v41 = vor.u32 8388608, %v9422_v22  ;;  %v5123_v60 = vadd.s32 %v5121_v18, %v5119_v12  ;;  %v5143_v38 = vsel %vm5142_vm2, 1, %v5713_v0  ;;  %v5224_v20 = vand.u32 31, %v5222_v4 }
 0x50a   : > { %v5022_v9 = vxor.u32 2147483648, %v5021_v10  ;;  %v5044_v17 = vadd.s32 3, %v5027_v26  ;;  %v5135_v46 = vshrl.u32 %v5131_v8, 16  ;;  %v5145_v33 = vadd.s32 %v5143_v38, %v5141_v54 }
 0x50b   : > { %v5148_v16 = vmul.u32 %v9347_v37, %v9431_v32  ;;  %v5115_v49 = vshrl.u32 %v5110_v63, 16  ;;  %v5124_v27 = vadd.s32 %v5123_v60, %v5113_v5  ;;  %v9450_v29 = vsub.s32 32, %v5224_v20 }
 0x50c   : > { %v5023_v14 = vsel %vm4902_vm1, %v5022_v9, %v5021_v10  ;;  %v5137_v44 = vshrl.u32 %v5132_v51, 16  ;;  %v9455_v24 = vadd.s32 %v5140_v2, %v5136_v25  ;;  %v5146_v21 = vadd.s32 %v5145_v33, %v5135_v46 }
 0x50d   : > { %v5026_v57 = vsel %vm9386_vm8, %v9007_v13, %v5023_v14  ;;  %v9457_v23 = vadd.s32 %v5124_v27, %v5115_v49  ;;  %v9459_v40 = vshrl.u32 %v5222_v4, 5  ;;  %v5228_v37 = vshrl.u32 %v5715_v55, %v9450_v29 }
 0x50e   : > { %v5028_v7 = vmul.f32 %v5026_v57, %v5026_v57  ;;  %v5147_v8 = vadd.s32 %v5146_v21, %v5137_v44  ;;  %v5227_v15 = vshll.u32 %v5714_v52, %v5224_v20  ;;  %v5231_v56 = vshrl.u32 %v5716_v58, %v9450_v29 }
 0x50f   : > { %v5234_v47 = vshrl.u32 %v5717_v61, %v9450_v29  ;;  %vm5150_vm1 = vc.u32 %v9457_v23, %v9455_v24  ;;  %v5230_v36 = vshll.u32 %v5715_v55, %v5224_v20  ;;  %v5233_v39 = vshll.u32 %v5716_v58, %v5224_v20 }
 0x510   : > { %v5029_v51 = vmul.f32 -0.001358992, %v5028_v7  ;;  %v5036_v26 = vmul.f32 -0.00019511016, %v5028_v7  ;;  %v5151_v32 = vadd.s32 1, %v5147_v8  ;;  %v9471_v63 = vor.u32 %v5228_v37, %v5227_v15 }
 0x511   : > { %v5236_v53 = vshll.u32 %v5717_v61, %v5224_v20  ;;  %v9475_v28 = vor.u32 %v5231_v56, %v5230_v36  ;;  %v5237_v35 = vshrl.u32 %v5718_v1, %v9450_v29  ;;  %v9479_v50 = vor.u32 %v5234_v47, %v5233_v39 }
 0x512   : > { %v5030_v11 = vadd.f32 0.041655596, %v5029_v51  ;;  %v5037_v43 = vadd.f32 0.008332121, %v5036_v26  ;;  %v5152_v6 = vsel %vm5150_vm1, %v5151_v32, %v5147_v8  ;;  %v5239_v30 = vshll.u32 %v5718_v1, %v5224_v20 }
 0x513   : > { %v5240_v55 = vshrl.u32 %v5719_v3, %v9450_v29  ;;  %v5153_v58 = vadd.s32 %v5152_v6, %v5148_v16  ;;  %v5238_v45 = vor.u32 %v5237_v35, %v5236_v53  ;;  %v5045_v61 = vand.u32 3, %v5044_v17 }
 0x514   : > { %v5031_v25 = vmul.f32 %v5030_v11, %v5028_v7  ;;  %v5038_v31 = vmul.f32 %v5037_v43, %v5028_v7  ;;  %vm5242_vm4 = vcmp.lt.s32.totalorder %v9459_v40, 1  ;;  %vm5244_vm3 = vcmp.lt.s32.totalorder %v9459_v40, 3 }
 0x515   : > { %v5241_v62 = vor.u32 %v5240_v55, %v5239_v30  ;;  %v5154_v4 = vadd.s32 536870912, %v5153_v58  ;;  %vm5245_vm6 = vcmp.lt.s32.totalorder %v9459_v40, 4  ;;  %v5250_v1 = vsel %vm5242_vm4, %v9471_v63, %v9475_v28 }
 0x516   : > { %v5032_v19 = vadd.f32 -0.4999988, %v5031_v25  ;;  %v5039_v2 = vadd.f32 -0.16666654, %v5038_v31  ;;  %v5251_v3 = vsel %vm5245_vm6, %v5238_v45, 920167782  ;;  %v5254_v10 = vsel %vm5242_vm4, %v9475_v28, %v9479_v50 }
 0x517   : > { %v5255_v12 = vsel %vm5245_vm6, %v5241_v62, 1326507024  ;;  %v9499_v18 = vshrl.u32 %v5154_v4, 30  ;;  %v5252_v9 = vsel %vm5244_vm3, %v9479_v50, %v5251_v3  ;;  %vm5243_vm5 = vcmp.lt.s32.totalorder %v9459_v40, 2 }
 0x518   : > { %v5033_v54 = vmul.f32 %v5032_v19, %v5028_v7  ;;  %v5040_v5 = vmul.f32 %v5039_v2, %v5028_v7  ;;  %v5256_v60 = vsel %vm5244_vm3, %v5238_v45, %v5255_v12  ;;  %v9509_v38 = vshll.u32 %v5218_v41, 8 }
 0x519   : > { %v5156_v46 = vshll.u32 %v9499_v18, 30  ;;  %v5253_v33 = vsel %vm5243_vm5, %v5250_v1, %v5252_v9  ;;  %vm5043_vm8 = vweird.f32 %v9007_v13  ;;  %v5257_v16 = vsel %vm5243_vm5, %v5254_v10, %v5256_v60 }
 0x51a   : > { %v5034_v20 = vadd.f32 1.0, %v5033_v54  ;;  %v5041_v17 = vadd.f32 1.0, %v5040_v5  ;;  %vm5046_vm7 = vcmp.lt.s32.totalorder %v5045_v61, 2  ;;  %v5259_v22 = vand.u32 65535, %v9509_v38 }
 0x51b   : > { %v5157_v27 = vsub.s32 %v5153_v58, %v5156_v46  ;;  %v5261_v41 = vand.u32 65535, %v5257_v16  ;;  %v5262_v44 = vshrl.u32 %v5257_v16, 16  ;;  %v5284_v21 = vshrl.u32 %v5253_v33, 16 }
 0x51c   : > { %v5042_v14 = vmul.f32 %v5041_v17, %v5026_v57  ;;  %v5051_v49 = vxor.u32 2147483648, %v5034_v20  ;;  %v5260_v8 = vshrl.u32 %v9509_v38, 16  ;;  %vm5047_vm9 = vcmp.eq.s32.totalorder %v5045_v61, 0 }
 0x51d   : > { %vm5158_vm10 = vcmp.lt.s32.totalorder %v5157_v27, 0  ;;  %v5159_v37 = vsub.s32 0, %v5157_v27  ;;  %vm5050_vm12 = vcmp.eq.s32.totalorder %v5045_v61, 2  ;;  %v5264_v15 = vmul.u32 %v5262_v44, %v5259_v22 }
 0x51e   : > { %v5048_v7 = vxor.u32 2147483648, %v5042_v14  ;;  %v5283_v56 = vand.u32 65535, %v5253_v33  ;;  %v5052_v57 = vsel %vm5050_vm12, %v5051_v49, %v5042_v14  ;;  %v5265_v26 = vmul.u32 %v5261_v41, %v5260_v8 }
 0x51f   : > { %v5160_v51 = vsel %vm5158_vm10, %v5159_v37, %v5157_v27  ;;  %v5267_v39 = vshll.u32 %v5264_v15, 16  ;;  %v5286_v53 = vmul.u32 %v5284_v21, %v5259_v22  ;;  %v5263_v43 = vmul.u32 %v5261_v41, %v5259_v22 }
 0x520   : > { %v5049_v47 = vsel %vm5047_vm9, %v5034_v20, %v5048_v7  ;;  %v5161_v32 = vclz %v5160_v51  ;;  %v5149_v35 = vadd.s32 %v9455_v24, %v9457_v23  ;;  %v5226_v30 = vshrl.u32 %v5714_v52, %v9450_v29 }
 0x521   : > { %v5053_v36 = vsel %vm5046_vm7, %v5049_v47, %v5052_v57  ;;  %v5266_v55 = vmul.u32 %v5262_v44, %v5260_v8  ;;  %v5269_v25 = vshll.u32 %v5265_v26, 16  ;;  %vm5271_vm11 = vc.u32 %v5263_v43, %v5267_v39 }
 0x522   : > { %v5054_v11 = vsel %vm5043_vm8, nan, %v5053_v36  ;;  %v5573_v6 = vadd.s32 4294967294, %v5161_v32  ;;  %v5273_v31 = vadd.s32 %v5267_v39, %v5263_v43  ;;  %v5287_v58 = vmul.u32 %v5283_v56, %v5260_v8 }
 0x523   : > { %5394 = vst [vmem:[%s6113_s4 + $0xe8] sm:$0xff] %v5054_v11  ;;  %v5272_v45 = vsel %vm5271_vm11, 1, %v5713_v0  ;;  %v5285_v61 = vmul.u32 %v5283_v56, %v5259_v22  ;;  %v5289_v13 = vshll.u32 %v5286_v53, 16  ;;  %v5268_v19 = vshrl.u32 %v5264_v15, 16 }
 0x524   : > { %vm5574_vm14 = vcmp.lt.s32.totalorder %v5573_v6, 0  ;;  %v5274_v2 = vadd.s32 %v5272_v45, %v5266_v55  ;;  %vm5275_vm13 = vc.u32 %v5273_v31, %v5269_v25  ;;  %v5288_v52 = vmul.u32 %v5284_v21, %v5260_v8 }
 0x525   : > { %v5164_v62 = vsel %vm5574_vm14, 0, %v5573_v6  ;;  %v5276_v4 = vsel %vm5275_vm13, 1, %v5713_v0  ;;  %v5291_v1 = vshll.u32 %v5287_v58, 16  ;;  %vm5293_vm0 = vc.u32 %v5285_v61, %v5289_v13 }
 0x526   : > { %v5165_v24 = vsub.s32 32, %v5164_v62  ;;  %v5169_v23 = vsub.s32 4294967266, %v5164_v62  ;;  %v5278_v29 = vadd.s32 %v5276_v4, %v5274_v2  ;;  %v5295_v3 = vadd.s32 %v5289_v13, %v5285_v61 }
 0x527   : > { %v5166_v10 = vshll.u32 %v5157_v27, %v5164_v62  ;;  %v5294_v5 = vsel %vm5293_vm0, 1, %v5713_v0  ;;  %v5247_v9 = vsel %vm5245_vm6, %v9479_v50, 2102212464  ;;  %v5270_v33 = vshrl.u32 %v5265_v26, 16 }
 0x528   : > { %v5167_v12 = vshrl.u32 %v5149_v35, %v5165_v24  ;;  %v5170_v54 = vadd.s32 127, %v5169_v23  ;;  %v5279_v60 = vadd.s32 %v5278_v29, %v5268_v19  ;;  %v5296_v20 = vadd.s32 %v5294_v5, %v5288_v52 }
 0x529   : > { %vm5297_vm15 = vc.u32 %v5295_v3, %v5291_v1  ;;  %v5290_v14 = vshrl.u32 %v5286_v53, 16  ;;  %v5246_v27 = vsel %vm5242_vm4, %v5226_v30, %v9471_v63  ;;  %v5248_v41 = vsel %vm5244_vm3, %v9475_v28, %v5247_v9 }
 0x52a   : > { %v5168_v17 = vor.u32 %v5167_v12, %v5166_v10  ;;  %v5171_v46 = vshll.u32 %v5170_v54, 23  ;;  %v5298_v16 = vsel %vm5297_vm15, 1, %v5713_v0  ;;  %v5280_v50 = vadd.s32 %v5279_v60, %v5270_v33 }
 0x52b   : > { %v5300_v49 = vadd.s32 %v5298_v16, %v5296_v20  ;;  %v5292_v44 = vshrl.u32 %v5287_v58, 16  ;;  %v5299_v8 = vadd.s32 %v5295_v3, %v5291_v1  ;;  %v5249_v0 = vsel %vm5243_vm5, %v5246_v27, %v5248_v41 }
 0x52c   : > { %v5172_v22 = vor.u32 4788187, %v5171_v46  ;;  %v5175_v37 = vcvt.s32.f32 %v5168_v17  ;;  %v5303_v63 = vmul.u32 %v9509_v38, %v5249_v0  ;;  %vm5057_vm1 = vcmp.lt.s32.totalorder %v9286_v48, 0 }
 0x52d   : > { %v5301_v21 = vadd.s32 %v5300_v49, %v5290_v14  ;;  %vm5305_vm2 = vc.u32 %v5280_v50, %v5299_v8  ;;  %v5179_v28 = vsub.s32 4, %v9499_v18  ;;  %vm9547_vm4 = vcmp.le.f32.partialorder %v5055_v42, 0.7853982 }
 0x52e   : > { %v5173_v7 = vand.u32 2147483647, %v5172_v22  ;;  %v5304_v54 = vadd.s32 %v5299_v8, %v5280_v50  ;;  %vm5198_vm7 = vweird.f32 %v9286_v48  ;;  %vm5212_vm9 = vcmp.lt.s32.totalorder %v9280_v59, 0 }
 0x52f   : > { %v5302_v15 = vadd.s32 %v5301_v21, %v5292_v44  ;;  %v5180_v38 = vsel %vm5057_vm1, %v5179_v28, %v9499_v18  ;;  %vm5211_vm12 = vcmp.le.f32.partialorder %v5210_v34, 0.7853982  ;;  %vm5353_vm0 = vweird.f32 %v9280_v59 }
 0x530   : > { %v5176_v56 = vmul.f32 %v5175_v37, %v5173_v7  ;;  %v5182_v6 = vsel %vm9547_vm4, 0, %v5180_v38 }
 0x531   : > { %v5306_v47 = vadd.s32 1, %v5302_v15  ;;  %v5199_v45 = vadd.s32 3, %v5182_v6 }
 0x532   : > { %v5177_v57 = vxor.u32 2147483648, %v5176_v56 }
 0x533   : > { %v5307_v51 = vsel %vm5305_vm2, %v5306_v47, %v5302_v15  ;;  %v5200_v52 = vand.u32 3, %v5199_v45 }
 0x534   : > { %v5178_v40 = vsel %vm5057_vm1, %v5177_v57, %v5176_v56  ;;  %v5308_v36 = vadd.s32 %v5307_v51, %v5303_v63 }
 0x535   : > { %v5181_v32 = vsel %vm9547_vm4, %v9286_v48, %v5178_v40  ;;  %vm5202_vm5 = vcmp.eq.s32.totalorder %v5200_v52, 0  ;;  %vm5205_vm8 = vcmp.eq.s32.totalorder %v5200_v52, 2  ;;  %vm5201_vm10 = vcmp.lt.s32.totalorder %v5200_v52, 2 }
 0x536   : > { %v5183_v39 = vmul.f32 %v5181_v32, %v5181_v32  ;;  %v5309_v53 = vadd.s32 536870912, %v5308_v36 }
 0x538   : > { %v5184_v11 = vmul.f32 -0.001358992, %v5183_v39  ;;  %v5191_v43 = vmul.f32 -0.00019511016, %v5183_v39  ;;  %v5310_v35 = vshrl.u32 %v5309_v53, 30 }
 0x53a   : > { %v5185_v42 = vadd.f32 0.041655596, %v5184_v11  ;;  %v5192_v30 = vadd.f32 0.008332121, %v5191_v43  ;;  %v5311_v55 = vshll.u32 %v5310_v35, 30  ;;  %v5334_v7 = vsub.s32 4, %v5310_v35 }
 0x53c   : > { %v5186_v25 = vmul.f32 %v5185_v42, %v5183_v39  ;;  %v5193_v31 = vmul.f32 %v5192_v30, %v5183_v39  ;;  %v5312_v58 = vsub.s32 %v5308_v36, %v5311_v55  ;;  %v5335_v56 = vsel %vm5212_vm9, %v5334_v7, %v5310_v35 }
 0x53d   : > { %v5337_v63 = vsel %vm5211_vm12, 0, %v5335_v56 }
 0x53e   : > { %v5187_v61 = vadd.f32 -0.4999988, %v5186_v25  ;;  %v5194_v13 = vadd.f32 -0.16666654, %v5193_v31  ;;  %vm5313_vm3 = vcmp.lt.s32.totalorder %v5312_v58, 0  ;;  %v5314_v62 = vsub.s32 0, %v5312_v58 }
 0x53f   : > { %v5354_v36 = vadd.s32 3, %v5337_v63 }
 0x540   : > { %v5188_v19 = vmul.f32 %v5187_v61, %v5183_v39  ;;  %v5195_v2 = vmul.f32 %v5194_v13, %v5183_v39  ;;  %v5315_v18 = vsel %vm5313_vm3, %v5314_v62, %v5312_v58 }
 0x541   : > { %v5316_v24 = vclz %v5315_v18  ;;  %v5355_v38 = vand.u32 3, %v5354_v36 }
 0x542   : > { %v5189_v23 = vadd.f32 1.0, %v5188_v19  ;;  %v5196_v4 = vadd.f32 1.0, %v5195_v2 }
 0x543   : > { %v5576_v29 = vadd.s32 4294967294, %v5316_v24  ;;  %vm5357_vm11 = vcmp.eq.s32.totalorder %v5355_v38, 0  ;;  %vm5360_vm14 = vcmp.eq.s32.totalorder %v5355_v38, 2  ;;  %vm5356_vm13 = vcmp.lt.s32.totalorder %v5355_v38, 2 }
 0x544   : > { %v5197_v1 = vmul.f32 %v5196_v4, %v5181_v32  ;;  %v5206_v3 = vxor.u32 2147483648, %v5189_v23 }
 0x545   : > { %vm5577_vm6 = vcmp.lt.s32.totalorder %v5576_v29, 0 }
 0x546   : > { %v5203_v10 = vxor.u32 2147483648, %v5197_v1  ;;  %v5319_v12 = vsel %vm5577_vm6, 0, %v5576_v29  ;;  %v5207_v20 = vsel %vm5205_vm8, %v5206_v3, %v5197_v1 }
 0x547   : > { %v5320_v5 = vsub.s32 32, %v5319_v12  ;;  %v5324_v9 = vsub.s32 4294967266, %v5319_v12  ;;  %v5321_v46 = vshll.u32 %v5312_v58, %v5319_v12 }
 0x548   : > { %v5204_v60 = vsel %vm5202_vm5, %v5189_v23, %v5203_v10 }
 0x549   : > { %v5208_v17 = vsel %vm5201_vm10, %v5204_v60, %v5207_v20  ;;  %v5322_v33 = vshrl.u32 %v5304_v54, %v5320_v5  ;;  %v5325_v16 = vadd.s32 127, %v5324_v9 }
 0x54a   : > { %v5209_v14 = vsel %vm5198_vm7, nan, %v5208_v17 }
 0x54b   : > { %v5323_v49 = vor.u32 %v5322_v33, %v5321_v46  ;;  %v5326_v22 = vshll.u32 %v5325_v16, 23  ;;  %5395 = vst [vmem:[%s6113_s4 + $0xf0] sm:$0xff] %v5209_v14 }
 0x54d   : > { %v5327_v27 = vor.u32 4788187, %v5326_v22  ;;  %v5330_v44 = vcvt.s32.f32 %v5323_v49 }
 0x54f   : > { %v5328_v41 = vand.u32 2147483647, %v5327_v27 }
 0x551   : > { %v5331_v21 = vmul.f32 %v5330_v44, %v5328_v41 }
 0x553   : > { %v5332_v50 = vxor.u32 2147483648, %v5331_v21 }
 0x555   : > { %v5333_v48 = vsel %vm5212_vm9, %v5332_v50, %v5331_v21 }
 0x556   : > { %v5336_v37 = vsel %vm5211_vm12, %v9280_v59, %v5333_v48 }
 0x557   : > { %v5338_v8 = vmul.f32 %v5336_v37, %v5336_v37 }
 0x559   : > { %v5339_v0 = vmul.f32 -0.001358992, %v5338_v8  ;;  %v5346_v15 = vmul.f32 -0.00019511016, %v5338_v8 }
 0x55b   : > { %v5340_v47 = vadd.f32 0.041655596, %v5339_v0  ;;  %v5347_v57 = vadd.f32 0.008332121, %v5346_v15 }
 0x55d   : > { %v5341_v28 = vmul.f32 %v5340_v47, %v5338_v8  ;;  %v5348_v51 = vmul.f32 %v5347_v57, %v5338_v8 }
 0x55f   : > { %v5342_v26 = vadd.f32 -0.4999988, %v5341_v28  ;;  %v5349_v40 = vadd.f32 -0.16666654, %v5348_v51 }
 0x561   : > { %v5343_v34 = vmul.f32 %v5342_v26, %v5338_v8  ;;  %v5350_v32 = vmul.f32 %v5349_v40, %v5338_v8 }
 0x563   : > { %v5344_v39 = vadd.f32 1.0, %v5343_v34  ;;  %v5351_v53 = vadd.f32 1.0, %v5350_v32 }
 0x565   : > { %v5352_v11 = vmul.f32 %v5351_v53, %v5336_v37  ;;  %v5361_v43 = vxor.u32 2147483648, %v5344_v39 }
 0x567   : > { %v5358_v35 = vxor.u32 2147483648, %v5352_v11  ;;  %v5362_v42 = vsel %vm5360_vm14, %v5361_v43, %v5352_v11 }
 0x569   : > { %v5359_v6 = vsel %vm5357_vm11, %v5344_v39, %v5358_v35 }
 0x56a   : > { %v5363_v30 = vsel %vm5356_vm13, %v5359_v6, %v5362_v42 }
 0x56b   : > { %v5364_v55 = vsel %vm5353_vm0, nan, %v5363_v30 }
 0x56c   : > { %5396 = vst [vmem:[%s6113_s4 + $0xf8] sm:$0xff] %v5364_v55 }
 0x56d   : > { %5676 = shalt.err (!%p5673_p3)
}
 0x56e   : > { %s5720_s30 = smov 128   ;;  %s5721_s4 = smov 8  }
 0x56f   : > { %5584 = dma.vmem_to_hbm [thread:$0]  (%p5775_p5), %s5411_s25, 4096, %s5413_s26, %s5398_s13, %s5720_s30, %s5720_s30, %s5721_s4  }
 0x570 PF: > { %p5590_p4 = scmp.ge.s32.totalorder %s5711_s12, 2  ;;  %s5427_s8 = sand.u32 1, %s5699_s9  }
 0x571   : > { %s5428_s14 = scalar_lea.sflag [#allocation3], %s5427_s8 }
 0x572   : > { %p5587_p7 = pnand %p5590_p4, %p5779_p6 }
 0x574   : > { %p5588_p8 = pneg %p5587_p7 }
 0x576   : > { %5694 = dma.done.wait (%p5588_p8), %s5428_s14, 4096  }
 0x577   : > { %5696 = vsyncadd (%p5588_p8), %s5428_s14, 4294963200  ;;  %p12_p9 = scmp.ge.s32.totalorder %s5762_s15, 4   ;;  %s9664_s9 = smov %s5703_s10 }
 0x578   : > { %s9665_s10 = smov %s5707_s11  ;;  %s9666_s11 = smov %s5773_s18 }
 0x579   : > { %s9667_s12 = smov %s5762_s15  ;;  %14 = sbr.rel (!%p12_p9) target bundleno = 3 (0x3), region = 63 }
 0x57e   :  { %5434 = vsyncpa [#allocation3], 1 }
 0x57f   :  { %5436 = vsyncpa [#allocation3 + $0x1], 1 }

</bundles_post_ra>
